<compile_context>
chip_gen: v5e
topology: v5e:2x2
jax: 0.10.0
libtpu: 0.0.40
codegen_flags: <defaults>
</compile_context>

<pallas_src>
import functools

import jax
import jax.numpy as jnp
import numpy as np
from jax.experimental import pallas as pl
from jax.experimental.pallas import tpu as pltpu


def exp_block_kernel(x_ref, m1_ref, m2_ref, m3_ref,
                     w1_ref, w2_ref, w3_ref, bcat_ref,
                     watt1_ref, batt1_ref, wmain1_ref,
                     watt2_ref, batt2_ref, wmain2_ref,
                     out_ref, *, H, W):
    """Processes one image: x_ref block is [1, C, H*W] (channels x pixels)."""
    HW = H * W
    f32 = jnp.float32
    x = x_ref[0]                                            # [C, HW]

    def masked_taps(v, m_ref, dil):
        """9 zero-padded 3x3 taps of v (flattened pixel axis) as masked rolls.

        shifted[p] = v[p + oh*W + ow] via circular roll; wrapped / out-of-image
        positions are exactly the ones zeroed by the precomputed mask row,
        reproducing zero padding.
        """
        taps = []
        for i in range(3):
            for j in range(3):
                t = i * 3 + j
                off = (i - 1) * dil * W + (j - 1) * dil
                vs = v if off == 0 else pltpu.roll(v, (-off) % HW, axis=1)
                if i == 1 and j == 1:            # centre tap: mask is all ones
                    taps.append(vs)
                else:
                    taps.append(vs * m_ref[t:t + 1, :])
        return taps

    def unfold(v, m_ref, dil):
        """In-VMEM im2col: [9*C, HW], row order t*C + c (matches weight layout)."""
        return jnp.concatenate(masked_taps(v, m_ref, dil), axis=0)

    # Stage 1: three dilated 3x3 convs (dil 1/2/3), one big-K matmul each,
    # bias, channel concat.
    out2 = jnp.concatenate(
        [jnp.dot(w1_ref[...], unfold(x, m1_ref, 1), preferred_element_type=f32),
         jnp.dot(w2_ref[...], unfold(x, m2_ref, 2), preferred_element_type=f32),
         jnp.dot(w3_ref[...], unfold(x, m3_ref, 3), preferred_element_type=f32)],
        axis=0) + bcat_ref[...]

    # Stage 2 & 3: attention-modulated AdapConvs.
    def adapconv(v, watt_ref, batt_ref, wmain_ref):
        taps = masked_taps(v, m1_ref, 1)
        vs = jnp.concatenate(taps, axis=0)                  # [9C, HW]
        # attention1: Conv2d(C -> 9, 3x3, pad=1) + bias, single matmul.
        att = jnp.dot(watt_ref[...], vs, preferred_element_type=f32) + batt_ref[...]
        # TODO(synk): attention1 also contains InvBlock(UNetConvBlock, 9, 4) and
        # a ChannelAttention module whose definitions are not in the spec; they
        # are treated as identity here (ch_att is unused in the reference forward).
        # Per-pixel per-tap attention modulates the unfolded input, then one
        # big-K matmul with the (bias-free) main conv weight.
        mod = jnp.concatenate([taps[t] * att[t:t + 1, :] for t in range(9)], axis=0)
        return jnp.dot(wmain_ref[...], mod, preferred_element_type=f32)

    out3 = adapconv(out2, watt1_ref, batt1_ref, wmain1_ref)
    out4 = adapconv(out3, watt2_ref, batt2_ref, wmain2_ref)

    # Residual add + ReLU, fused.
    out_ref[0] = jnp.maximum(out4 + x, 0.0)


def _flat_w(w):
    """[Cout, Cin, 3, 3] -> [Cout, 9*Cin]; column index = (kh*3+kw)*Cin + c."""
    co, ci = w.shape[0], w.shape[1]
    return jnp.transpose(w, (0, 2, 3, 1)).reshape(co, 9 * ci).astype(jnp.float32)


def _tap_masks(H, W, dil):
    """Float {0,1} validity mask per tap: [9, H*W]."""
    hh, ww = np.meshgrid(np.arange(H), np.arange(W), indexing="ij")
    m = np.zeros((9, H * W), np.float32)
    for i in range(3):
        for j in range(3):
            oh, ow = (i - 1) * dil, (j - 1) * dil
            ok = (hh + oh >= 0) & (hh + oh < H) & (ww + ow >= 0) & (ww + ow < W)
            m[i * 3 + j] = ok.reshape(-1)
    return jnp.asarray(m)


def exp_block_pallas(x, params):
    (w21, b21, w22, b22, w23, b23,
     watt1, batt1, wmain1, watt2, batt2, wmain2) = params
    N, C, H, W = x.shape
    assert C % 3 == 0, "Exp_block requires out_channels divisible by 3"
    HW = H * W
    Cp = C // 3

    x_flat = x.reshape(N, C, HW).astype(jnp.float32)
    m1, m2, m3 = _tap_masks(H, W, 1), _tap_masks(H, W, 2), _tap_masks(H, W, 3)
    w1f, w2f, w3f = _flat_w(w21), _flat_w(w22), _flat_w(w23)
    bcat = jnp.concatenate([b21, b22, b23]).reshape(C, 1).astype(jnp.float32)
    watt1f, wmain1f = _flat_w(watt1), _flat_w(wmain1)
    watt2f, wmain2f = _flat_w(watt2), _flat_w(wmain2)
    batt1c = batt1.reshape(9, 1).astype(jnp.float32)
    batt2c = batt2.reshape(9, 1).astype(jnp.float32)

    img_spec = pl.BlockSpec((1, C, HW), lambda n: (n, 0, 0))

    def const_spec(shape):
        return pl.BlockSpec(shape, lambda n: (0,) * len(shape))

    out = pl.pallas_call(
        functools.partial(exp_block_kernel, H=H, W=W),
        out_shape=jax.ShapeDtypeStruct((N, C, HW), jnp.float32),
        grid=(N,),
        in_specs=[img_spec,
                  const_spec((9, HW)), const_spec((9, HW)), const_spec((9, HW)),
                  const_spec((Cp, 9 * C)), const_spec((Cp, 9 * C)),
                  const_spec((Cp, 9 * C)), const_spec((C, 1)),
                  const_spec((9, 9 * C)), const_spec((9, 1)), const_spec((C, 9 * C)),
                  const_spec((9, 9 * C)), const_spec((9, 1)), const_spec((C, 9 * C))],
        out_specs=img_spec,
        compiler_params=pltpu.CompilerParams(
            dimension_semantics=("parallel",),
            vmem_limit_bytes=32 * 1024 * 1024),
    )(x_flat, m1, m2, m3, w1f, w2f, w3f, bcat,
      watt1f, batt1c, wmain1f, watt2f, batt2c, wmain2f)

    return out.reshape(N, C, H, W)


# ----------------------------- pure-JAX reference -----------------------------

def exp_block_ref(x, w21, b21, w22, b22, w23, b23,
                  watt1, batt1, wmain1, watt2, batt2, wmain2):
    prec = jax.lax.Precision.HIGHEST

    def conv(xin, w, b, dil):
        y = jax.lax.conv_general_dilated(
            xin, w, window_strides=(1, 1),
            padding=[(dil, dil), (dil, dil)], rhs_dilation=(dil, dil),
            dimension_numbers=("NCHW", "OIHW", "NCHW"), precision=prec)
        return y + b.reshape(1, -1, 1, 1)

    out2 = jnp.concatenate([conv(x, w21, b21, 1),
                            conv(x, w22, b22, 2),
                            conv(x, w23, b23, 3)], axis=1)

    def adapconv(xin, watt, batt, wmain):
        N, C, H, W = xin.shape
        att = conv(xin, watt, batt, 1)                    # [N, 9, H, W]
        xp = jnp.pad(xin, ((0, 0), (0, 0), (1, 1), (1, 1)))
        out = jnp.zeros((N, wmain.shape[0], H, W), jnp.float32)
        for i in range(3):
            for j in range(3):
                t = i * 3 + j
                tap = xp[:, :, i:i + H, j:j + W]
                mod = tap * att[:, t:t + 1, :, :]
                out = out + jnp.einsum('nchw,oc->nohw', mod, wmain[:, :, i, j],
                                       precision=prec)
        return out

    y = adapconv(out2, watt1, batt1, wmain1)
    y = adapconv(y, watt2, batt2, wmain2)
    return jnp.maximum(y + x, 0.0)


if __name__ == "__main__":
    # Exp_block(out_channels=48) on a small input.
    N, C, H, W = 2, 48, 16, 16
    Cp = C // 3

    key = jax.random.PRNGKey(0)
    keys = jax.random.split(key, 13)

    def w_init(k, shape):
        fan_in = shape[1] * shape[2] * shape[3]
        return (jax.random.normal(k, shape, jnp.float32)
                / np.sqrt(fan_in)).astype(jnp.float32)

    x = jax.random.normal(keys[0], (N, C, H, W), jnp.float32)

    w21 = w_init(keys[1], (Cp, C, 3, 3))
    b21 = 0.1 * jax.random.normal(keys[2], (Cp,), jnp.float32)
    w22 = w_init(keys[3], (Cp, C, 3, 3))
    b22 = 0.1 * jax.random.normal(keys[4], (Cp,), jnp.float32)
    w23 = w_init(keys[5], (Cp, C, 3, 3))
    b23 = 0.1 * jax.random.normal(keys[6], (Cp,), jnp.float32)

    watt1 = w_init(keys[7], (9, C, 3, 3))
    batt1 = 0.1 * jax.random.normal(keys[8], (9,), jnp.float32)
    wmain1 = w_init(keys[9], (C, C, 3, 3))
    watt2 = w_init(keys[10], (9, C, 3, 3))
    batt2 = 0.1 * jax.random.normal(keys[11], (9,), jnp.float32)
    wmain2 = w_init(keys[12], (C, C, 3, 3))

    params = (w21, b21, w22, b22, w23, b23,
              watt1, batt1, wmain1, watt2, batt2, wmain2)

    out = jax.block_until_ready(exp_block_pallas(x, params))
    ref = jax.block_until_ready(exp_block_ref(x, *params))

    np.testing.assert_allclose(np.asarray(out), np.asarray(ref),
                               atol=1e-3, rtol=1e-3)
    assert out.shape == (N, C, H, W)
    print("KERNEL_OK")
</pallas_src>

<mosaic_0001>
module attributes {stable_mosaic.version = 11 : i64} {
  func.func @exp_block_kernel(%arg0: i32, %arg1: memref<1x48x256xf32, #tpu.memory_space<vmem>>, %arg2: memref<9x256xf32, #tpu.memory_space<vmem>>, %arg3: memref<9x256xf32, #tpu.memory_space<vmem>>, %arg4: memref<9x256xf32, #tpu.memory_space<vmem>>, %arg5: memref<16x432xf32, #tpu.memory_space<vmem>>, %arg6: memref<16x432xf32, #tpu.memory_space<vmem>>, %arg7: memref<16x432xf32, #tpu.memory_space<vmem>>, %arg8: memref<48x1xf32, #tpu.memory_space<vmem>>, %arg9: memref<9x432xf32, #tpu.memory_space<vmem>>, %arg10: memref<9x1xf32, #tpu.memory_space<vmem>>, %arg11: memref<48x432xf32, #tpu.memory_space<vmem>>, %arg12: memref<9x432xf32, #tpu.memory_space<vmem>>, %arg13: memref<9x1xf32, #tpu.memory_space<vmem>>, %arg14: memref<48x432xf32, #tpu.memory_space<vmem>>, %arg15: memref<1x48x256xf32, #tpu.memory_space<vmem>>) attributes {dimension_semantics = [#tpu.dimension_semantics<parallel>], iteration_bounds = array<i64: 2>, scalar_prefetch = 0 : i64, scratch_operands = 0 : i64, tpu.core_type = #tpu.core_type<tc>, window_params = [{transform_indices = @transform_0, window_bounds = array<i64: 1, 48, 256>}, {pipeline_mode = #tpu.pipeline_mode<synchronous>, transform_indices = @transform_1, window_bounds = array<i64: 9, 256>}, {pipeline_mode = #tpu.pipeline_mode<synchronous>, transform_indices = @transform_2, window_bounds = array<i64: 9, 256>}, {pipeline_mode = #tpu.pipeline_mode<synchronous>, transform_indices = @transform_3, window_bounds = array<i64: 9, 256>}, {pipeline_mode = #tpu.pipeline_mode<synchronous>, transform_indices = @transform_4, window_bounds = array<i64: 16, 432>}, {pipeline_mode = #tpu.pipeline_mode<synchronous>, transform_indices = @transform_5, window_bounds = array<i64: 16, 432>}, {pipeline_mode = #tpu.pipeline_mode<synchronous>, transform_indices = @transform_6, window_bounds = array<i64: 16, 432>}, {pipeline_mode = #tpu.pipeline_mode<synchronous>, transform_indices = @transform_7, window_bounds = array<i64: 48, 1>}, {pipeline_mode = #tpu.pipeline_mode<synchronous>, transform_indices = @transform_8, window_bounds = array<i64: 9, 432>}, {pipeline_mode = #tpu.pipeline_mode<synchronous>, transform_indices = @transform_9, window_bounds = array<i64: 9, 1>}, {pipeline_mode = #tpu.pipeline_mode<synchronous>, transform_indices = @transform_10, window_bounds = array<i64: 48, 432>}, {pipeline_mode = #tpu.pipeline_mode<synchronous>, transform_indices = @transform_11, window_bounds = array<i64: 9, 432>}, {pipeline_mode = #tpu.pipeline_mode<synchronous>, transform_indices = @transform_12, window_bounds = array<i64: 9, 1>}, {pipeline_mode = #tpu.pipeline_mode<synchronous>, transform_indices = @transform_13, window_bounds = array<i64: 48, 432>}, {transform_indices = @transform_14, window_bounds = array<i64: 1, 48, 256>}]} {
    %c0 = arith.constant 0 : index
    %c0_0 = arith.constant 0 : index
    %c0_1 = arith.constant 0 : index
    %0 = vector.load %arg1[%c0, %c0_0, %c0_1] : memref<1x48x256xf32, #tpu.memory_space<vmem>>, vector<1x48x256xf32>
    %1 = vector.shape_cast %0 : vector<1x48x256xf32> to vector<48x256xf32>
    %c0_2 = arith.constant 0 : index
    %c0_3 = arith.constant 0 : index
    %2 = vector.load %arg5[%c0_2, %c0_3] : memref<16x432xf32, #tpu.memory_space<vmem>>, vector<16x432xf32>
    %c17_i32 = arith.constant 17 : i32
    %3 = tpu.dynamic_rotate %1 by %c17_i32 dim 1 : vector<48x256xf32>, i32 -> vector<48x256xf32>
    %c0_4 = arith.constant 0 : index
    %c0_5 = arith.constant 0 : index
    %4 = vector.load %arg2[%c0_4, %c0_5] : memref<9x256xf32, #tpu.memory_space<vmem>>, vector<1x256xf32>
    %5 = vector.broadcast %4 : vector<1x256xf32> to vector<48x256xf32>
    %6 = arith.mulf %3, %5 : vector<48x256xf32>
    %c16_i32 = arith.constant 16 : i32
    %7 = tpu.dynamic_rotate %1 by %c16_i32 dim 1 : vector<48x256xf32>, i32 -> vector<48x256xf32>
    %c1 = arith.constant 1 : index
    %c0_6 = arith.constant 0 : index
    %8 = vector.load %arg2[%c1, %c0_6] : memref<9x256xf32, #tpu.memory_space<vmem>>, vector<1x256xf32>
    %9 = vector.broadcast %8 : vector<1x256xf32> to vector<48x256xf32>
    %10 = arith.mulf %7, %9 : vector<48x256xf32>
    %c15_i32 = arith.constant 15 : i32
    %11 = tpu.dynamic_rotate %1 by %c15_i32 dim 1 : vector<48x256xf32>, i32 -> vector<48x256xf32>
    %c2 = arith.constant 2 : index
    %c0_7 = arith.constant 0 : index
    %12 = vector.load %arg2[%c2, %c0_7] : memref<9x256xf32, #tpu.memory_space<vmem>>, vector<1x256xf32>
    %13 = vector.broadcast %12 : vector<1x256xf32> to vector<48x256xf32>
    %14 = arith.mulf %11, %13 : vector<48x256xf32>
    %c1_i32 = arith.constant 1 : i32
    %15 = tpu.dynamic_rotate %1 by %c1_i32 dim 1 : vector<48x256xf32>, i32 -> vector<48x256xf32>
    %c3 = arith.constant 3 : index
    %c0_8 = arith.constant 0 : index
    %16 = vector.load %arg2[%c3, %c0_8] : memref<9x256xf32, #tpu.memory_space<vmem>>, vector<1x256xf32>
    %17 = vector.broadcast %16 : vector<1x256xf32> to vector<48x256xf32>
    %18 = arith.mulf %15, %17 : vector<48x256xf32>
    %c255_i32 = arith.constant 255 : i32
    %19 = tpu.dynamic_rotate %1 by %c255_i32 dim 1 : vector<48x256xf32>, i32 -> vector<48x256xf32>
    %c5 = arith.constant 5 : index
    %c0_9 = arith.constant 0 : index
    %20 = vector.load %arg2[%c5, %c0_9] : memref<9x256xf32, #tpu.memory_space<vmem>>, vector<1x256xf32>
    %21 = vector.broadcast %20 : vector<1x256xf32> to vector<48x256xf32>
    %22 = arith.mulf %19, %21 : vector<48x256xf32>
    %c241_i32 = arith.constant 241 : i32
    %23 = tpu.dynamic_rotate %1 by %c241_i32 dim 1 : vector<48x256xf32>, i32 -> vector<48x256xf32>
    %c6 = arith.constant 6 : index
    %c0_10 = arith.constant 0 : index
    %24 = vector.load %arg2[%c6, %c0_10] : memref<9x256xf32, #tpu.memory_space<vmem>>, vector<1x256xf32>
    %25 = vector.broadcast %24 : vector<1x256xf32> to vector<48x256xf32>
    %26 = arith.mulf %23, %25 : vector<48x256xf32>
    %c240_i32 = arith.constant 240 : i32
    %27 = tpu.dynamic_rotate %1 by %c240_i32 dim 1 : vector<48x256xf32>, i32 -> vector<48x256xf32>
    %c7 = arith.constant 7 : index
    %c0_11 = arith.constant 0 : index
    %28 = vector.load %arg2[%c7, %c0_11] : memref<9x256xf32, #tpu.memory_space<vmem>>, vector<1x256xf32>
    %29 = vector.broadcast %28 : vector<1x256xf32> to vector<48x256xf32>
    %30 = arith.mulf %27, %29 : vector<48x256xf32>
    %c239_i32 = arith.constant 239 : i32
    %31 = tpu.dynamic_rotate %1 by %c239_i32 dim 1 : vector<48x256xf32>, i32 -> vector<48x256xf32>
    %c8 = arith.constant 8 : index
    %c0_12 = arith.constant 0 : index
    %32 = vector.load %arg2[%c8, %c0_12] : memref<9x256xf32, #tpu.memory_space<vmem>>, vector<1x256xf32>
    %33 = vector.broadcast %32 : vector<1x256xf32> to vector<48x256xf32>
    %34 = arith.mulf %31, %33 : vector<48x256xf32>
    %35 = tpu.concatenate %6, %10, %14, %18, %1, %22, %26, %30, %34 in 0 : vector<48x256xf32>, vector<48x256xf32>, vector<48x256xf32>, vector<48x256xf32>, vector<48x256xf32>, vector<48x256xf32>, vector<48x256xf32>, vector<48x256xf32>, vector<48x256xf32> -> vector<432x256xf32>
    %cst = arith.constant dense<0.000000e+00> : vector<16x256xf32>
    %36 = tpu.matmul %2, %35, %cst {dimension_numbers = #tpu.dot_dimension_numbers<[1], [0], [0], [1], [0, 0, 1, 1], [], []>} : vector<16x432xf32>, vector<432x256xf32>, vector<16x256xf32> -> vector<16x256xf32>
    %c0_13 = arith.constant 0 : index
    %c0_14 = arith.constant 0 : index
    %37 = vector.load %arg6[%c0_13, %c0_14] : memref<16x432xf32, #tpu.memory_space<vmem>>, vector<16x432xf32>
    %c34_i32 = arith.constant 34 : i32
    %38 = tpu.dynamic_rotate %1 by %c34_i32 dim 1 : vector<48x256xf32>, i32 -> vector<48x256xf32>
    %c0_15 = arith.constant 0 : index
    %c0_16 = arith.constant 0 : index
    %39 = vector.load %arg3[%c0_15, %c0_16] : memref<9x256xf32, #tpu.memory_space<vmem>>, vector<1x256xf32>
    %40 = vector.broadcast %39 : vector<1x256xf32> to vector<48x256xf32>
    %41 = arith.mulf %38, %40 : vector<48x256xf32>
    %c32_i32 = arith.constant 32 : i32
    %42 = tpu.dynamic_rotate %1 by %c32_i32 dim 1 : vector<48x256xf32>, i32 -> vector<48x256xf32>
    %c1_17 = arith.constant 1 : index
    %c0_18 = arith.constant 0 : index
    %43 = vector.load %arg3[%c1_17, %c0_18] : memref<9x256xf32, #tpu.memory_space<vmem>>, vector<1x256xf32>
    %44 = vector.broadcast %43 : vector<1x256xf32> to vector<48x256xf32>
    %45 = arith.mulf %42, %44 : vector<48x256xf32>
    %c30_i32 = arith.constant 30 : i32
    %46 = tpu.dynamic_rotate %1 by %c30_i32 dim 1 : vector<48x256xf32>, i32 -> vector<48x256xf32>
    %c2_19 = arith.constant 2 : index
    %c0_20 = arith.constant 0 : index
    %47 = vector.load %arg3[%c2_19, %c0_20] : memref<9x256xf32, #tpu.memory_space<vmem>>, vector<1x256xf32>
    %48 = vector.broadcast %47 : vector<1x256xf32> to vector<48x256xf32>
    %49 = arith.mulf %46, %48 : vector<48x256xf32>
    %c2_i32 = arith.constant 2 : i32
    %50 = tpu.dynamic_rotate %1 by %c2_i32 dim 1 : vector<48x256xf32>, i32 -> vector<48x256xf32>
    %c3_21 = arith.constant 3 : index
    %c0_22 = arith.constant 0 : index
    %51 = vector.load %arg3[%c3_21, %c0_22] : memref<9x256xf32, #tpu.memory_space<vmem>>, vector<1x256xf32>
    %52 = vector.broadcast %51 : vector<1x256xf32> to vector<48x256xf32>
    %53 = arith.mulf %50, %52 : vector<48x256xf32>
    %c254_i32 = arith.constant 254 : i32
    %54 = tpu.dynamic_rotate %1 by %c254_i32 dim 1 : vector<48x256xf32>, i32 -> vector<48x256xf32>
    %c5_23 = arith.constant 5 : index
    %c0_24 = arith.constant 0 : index
    %55 = vector.load %arg3[%c5_23, %c0_24] : memref<9x256xf32, #tpu.memory_space<vmem>>, vector<1x256xf32>
    %56 = vector.broadcast %55 : vector<1x256xf32> to vector<48x256xf32>
    %57 = arith.mulf %54, %56 : vector<48x256xf32>
    %c226_i32 = arith.constant 226 : i32
    %58 = tpu.dynamic_rotate %1 by %c226_i32 dim 1 : vector<48x256xf32>, i32 -> vector<48x256xf32>
    %c6_25 = arith.constant 6 : index
    %c0_26 = arith.constant 0 : index
    %59 = vector.load %arg3[%c6_25, %c0_26] : memref<9x256xf32, #tpu.memory_space<vmem>>, vector<1x256xf32>
    %60 = vector.broadcast %59 : vector<1x256xf32> to vector<48x256xf32>
    %61 = arith.mulf %58, %60 : vector<48x256xf32>
    %c224_i32 = arith.constant 224 : i32
    %62 = tpu.dynamic_rotate %1 by %c224_i32 dim 1 : vector<48x256xf32>, i32 -> vector<48x256xf32>
    %c7_27 = arith.constant 7 : index
    %c0_28 = arith.constant 0 : index
    %63 = vector.load %arg3[%c7_27, %c0_28] : memref<9x256xf32, #tpu.memory_space<vmem>>, vector<1x256xf32>
    %64 = vector.broadcast %63 : vector<1x256xf32> to vector<48x256xf32>
    %65 = arith.mulf %62, %64 : vector<48x256xf32>
    %c222_i32 = arith.constant 222 : i32
    %66 = tpu.dynamic_rotate %1 by %c222_i32 dim 1 : vector<48x256xf32>, i32 -> vector<48x256xf32>
    %c8_29 = arith.constant 8 : index
    %c0_30 = arith.constant 0 : index
    %67 = vector.load %arg3[%c8_29, %c0_30] : memref<9x256xf32, #tpu.memory_space<vmem>>, vector<1x256xf32>
    %68 = vector.broadcast %67 : vector<1x256xf32> to vector<48x256xf32>
    %69 = arith.mulf %66, %68 : vector<48x256xf32>
    %70 = tpu.concatenate %41, %45, %49, %53, %1, %57, %61, %65, %69 in 0 : vector<48x256xf32>, vector<48x256xf32>, vector<48x256xf32>, vector<48x256xf32>, vector<48x256xf32>, vector<48x256xf32>, vector<48x256xf32>, vector<48x256xf32>, vector<48x256xf32> -> vector<432x256xf32>
    %cst_31 = arith.constant dense<0.000000e+00> : vector<16x256xf32>
    %71 = tpu.matmul %37, %70, %cst_31 {dimension_numbers = #tpu.dot_dimension_numbers<[1], [0], [0], [1], [0, 0, 1, 1], [], []>} : vector<16x432xf32>, vector<432x256xf32>, vector<16x256xf32> -> vector<16x256xf32>
    %c0_32 = arith.constant 0 : index
    %c0_33 = arith.constant 0 : index
    %72 = vector.load %arg7[%c0_32, %c0_33] : memref<16x432xf32, #tpu.memory_space<vmem>>, vector<16x432xf32>
    %c51_i32 = arith.constant 51 : i32
    %73 = tpu.dynamic_rotate %1 by %c51_i32 dim 1 : vector<48x256xf32>, i32 -> vector<48x256xf32>
    %c0_34 = arith.constant 0 : index
    %c0_35 = arith.constant 0 : index
    %74 = vector.load %arg4[%c0_34, %c0_35] : memref<9x256xf32, #tpu.memory_space<vmem>>, vector<1x256xf32>
    %75 = vector.broadcast %74 : vector<1x256xf32> to vector<48x256xf32>
    %76 = arith.mulf %73, %75 : vector<48x256xf32>
    %c48_i32 = arith.constant 48 : i32
    %77 = tpu.dynamic_rotate %1 by %c48_i32 dim 1 : vector<48x256xf32>, i32 -> vector<48x256xf32>
    %c1_36 = arith.constant 1 : index
    %c0_37 = arith.constant 0 : index
    %78 = vector.load %arg4[%c1_36, %c0_37] : memref<9x256xf32, #tpu.memory_space<vmem>>, vector<1x256xf32>
    %79 = vector.broadcast %78 : vector<1x256xf32> to vector<48x256xf32>
    %80 = arith.mulf %77, %79 : vector<48x256xf32>
    %c45_i32 = arith.constant 45 : i32
    %81 = tpu.dynamic_rotate %1 by %c45_i32 dim 1 : vector<48x256xf32>, i32 -> vector<48x256xf32>
    %c2_38 = arith.constant 2 : index
    %c0_39 = arith.constant 0 : index
    %82 = vector.load %arg4[%c2_38, %c0_39] : memref<9x256xf32, #tpu.memory_space<vmem>>, vector<1x256xf32>
    %83 = vector.broadcast %82 : vector<1x256xf32> to vector<48x256xf32>
    %84 = arith.mulf %81, %83 : vector<48x256xf32>
    %c3_i32 = arith.constant 3 : i32
    %85 = tpu.dynamic_rotate %1 by %c3_i32 dim 1 : vector<48x256xf32>, i32 -> vector<48x256xf32>
    %c3_40 = arith.constant 3 : index
    %c0_41 = arith.constant 0 : index
    %86 = vector.load %arg4[%c3_40, %c0_41] : memref<9x256xf32, #tpu.memory_space<vmem>>, vector<1x256xf32>
    %87 = vector.broadcast %86 : vector<1x256xf32> to vector<48x256xf32>
    %88 = arith.mulf %85, %87 : vector<48x256xf32>
    %c253_i32 = arith.constant 253 : i32
    %89 = tpu.dynamic_rotate %1 by %c253_i32 dim 1 : vector<48x256xf32>, i32 -> vector<48x256xf32>
    %c5_42 = arith.constant 5 : index
    %c0_43 = arith.constant 0 : index
    %90 = vector.load %arg4[%c5_42, %c0_43] : memref<9x256xf32, #tpu.memory_space<vmem>>, vector<1x256xf32>
    %91 = vector.broadcast %90 : vector<1x256xf32> to vector<48x256xf32>
    %92 = arith.mulf %89, %91 : vector<48x256xf32>
    %c211_i32 = arith.constant 211 : i32
    %93 = tpu.dynamic_rotate %1 by %c211_i32 dim 1 : vector<48x256xf32>, i32 -> vector<48x256xf32>
    %c6_44 = arith.constant 6 : index
    %c0_45 = arith.constant 0 : index
    %94 = vector.load %arg4[%c6_44, %c0_45] : memref<9x256xf32, #tpu.memory_space<vmem>>, vector<1x256xf32>
    %95 = vector.broadcast %94 : vector<1x256xf32> to vector<48x256xf32>
    %96 = arith.mulf %93, %95 : vector<48x256xf32>
    %c208_i32 = arith.constant 208 : i32
    %97 = tpu.dynamic_rotate %1 by %c208_i32 dim 1 : vector<48x256xf32>, i32 -> vector<48x256xf32>
    %c7_46 = arith.constant 7 : index
    %c0_47 = arith.constant 0 : index
    %98 = vector.load %arg4[%c7_46, %c0_47] : memref<9x256xf32, #tpu.memory_space<vmem>>, vector<1x256xf32>
    %99 = vector.broadcast %98 : vector<1x256xf32> to vector<48x256xf32>
    %100 = arith.mulf %97, %99 : vector<48x256xf32>
    %c205_i32 = arith.constant 205 : i32
    %101 = tpu.dynamic_rotate %1 by %c205_i32 dim 1 : vector<48x256xf32>, i32 -> vector<48x256xf32>
    %c8_48 = arith.constant 8 : index
    %c0_49 = arith.constant 0 : index
    %102 = vector.load %arg4[%c8_48, %c0_49] : memref<9x256xf32, #tpu.memory_space<vmem>>, vector<1x256xf32>
    %103 = vector.broadcast %102 : vector<1x256xf32> to vector<48x256xf32>
    %104 = arith.mulf %101, %103 : vector<48x256xf32>
    %105 = tpu.concatenate %76, %80, %84, %88, %1, %92, %96, %100, %104 in 0 : vector<48x256xf32>, vector<48x256xf32>, vector<48x256xf32>, vector<48x256xf32>, vector<48x256xf32>, vector<48x256xf32>, vector<48x256xf32>, vector<48x256xf32>, vector<48x256xf32> -> vector<432x256xf32>
    %cst_50 = arith.constant dense<0.000000e+00> : vector<16x256xf32>
    %106 = tpu.matmul %72, %105, %cst_50 {dimension_numbers = #tpu.dot_dimension_numbers<[1], [0], [0], [1], [0, 0, 1, 1], [], []>} : vector<16x432xf32>, vector<432x256xf32>, vector<16x256xf32> -> vector<16x256xf32>
    %107 = tpu.concatenate %36, %71, %106 in 0 : vector<16x256xf32>, vector<16x256xf32>, vector<16x256xf32> -> vector<48x256xf32>
    %c0_51 = arith.constant 0 : index
    %c0_52 = arith.constant 0 : index
    %108 = vector.load %arg8[%c0_51, %c0_52] : memref<48x1xf32, #tpu.memory_space<vmem>>, vector<48x1xf32>
    %109 = vector.broadcast %108 : vector<48x1xf32> to vector<48x256xf32>
    %110 = arith.addf %107, %109 : vector<48x256xf32>
    %c17_i32_53 = arith.constant 17 : i32
    %111 = tpu.dynamic_rotate %110 by %c17_i32_53 dim 1 : vector<48x256xf32>, i32 -> vector<48x256xf32>
    %c0_54 = arith.constant 0 : index
    %c0_55 = arith.constant 0 : index
    %112 = vector.load %arg2[%c0_54, %c0_55] : memref<9x256xf32, #tpu.memory_space<vmem>>, vector<1x256xf32>
    %113 = vector.broadcast %112 : vector<1x256xf32> to vector<48x256xf32>
    %114 = arith.mulf %111, %113 : vector<48x256xf32>
    %c16_i32_56 = arith.constant 16 : i32
    %115 = tpu.dynamic_rotate %110 by %c16_i32_56 dim 1 : vector<48x256xf32>, i32 -> vector<48x256xf32>
    %c1_57 = arith.constant 1 : index
    %c0_58 = arith.constant 0 : index
    %116 = vector.load %arg2[%c1_57, %c0_58] : memref<9x256xf32, #tpu.memory_space<vmem>>, vector<1x256xf32>
    %117 = vector.broadcast %116 : vector<1x256xf32> to vector<48x256xf32>
    %118 = arith.mulf %115, %117 : vector<48x256xf32>
    %c15_i32_59 = arith.constant 15 : i32
    %119 = tpu.dynamic_rotate %110 by %c15_i32_59 dim 1 : vector<48x256xf32>, i32 -> vector<48x256xf32>
    %c2_60 = arith.constant 2 : index
    %c0_61 = arith.constant 0 : index
    %120 = vector.load %arg2[%c2_60, %c0_61] : memref<9x256xf32, #tpu.memory_space<vmem>>, vector<1x256xf32>
    %121 = vector.broadcast %120 : vector<1x256xf32> to vector<48x256xf32>
    %122 = arith.mulf %119, %121 : vector<48x256xf32>
    %c1_i32_62 = arith.constant 1 : i32
    %123 = tpu.dynamic_rotate %110 by %c1_i32_62 dim 1 : vector<48x256xf32>, i32 -> vector<48x256xf32>
    %c3_63 = arith.constant 3 : index
    %c0_64 = arith.constant 0 : index
    %124 = vector.load %arg2[%c3_63, %c0_64] : memref<9x256xf32, #tpu.memory_space<vmem>>, vector<1x256xf32>
    %125 = vector.broadcast %124 : vector<1x256xf32> to vector<48x256xf32>
    %126 = arith.mulf %123, %125 : vector<48x256xf32>
    %c255_i32_65 = arith.constant 255 : i32
    %127 = tpu.dynamic_rotate %110 by %c255_i32_65 dim 1 : vector<48x256xf32>, i32 -> vector<48x256xf32>
    %c5_66 = arith.constant 5 : index
    %c0_67 = arith.constant 0 : index
    %128 = vector.load %arg2[%c5_66, %c0_67] : memref<9x256xf32, #tpu.memory_space<vmem>>, vector<1x256xf32>
    %129 = vector.broadcast %128 : vector<1x256xf32> to vector<48x256xf32>
    %130 = arith.mulf %127, %129 : vector<48x256xf32>
    %c241_i32_68 = arith.constant 241 : i32
    %131 = tpu.dynamic_rotate %110 by %c241_i32_68 dim 1 : vector<48x256xf32>, i32 -> vector<48x256xf32>
    %c6_69 = arith.constant 6 : index
    %c0_70 = arith.constant 0 : index
    %132 = vector.load %arg2[%c6_69, %c0_70] : memref<9x256xf32, #tpu.memory_space<vmem>>, vector<1x256xf32>
    %133 = vector.broadcast %132 : vector<1x256xf32> to vector<48x256xf32>
    %134 = arith.mulf %131, %133 : vector<48x256xf32>
    %c240_i32_71 = arith.constant 240 : i32
    %135 = tpu.dynamic_rotate %110 by %c240_i32_71 dim 1 : vector<48x256xf32>, i32 -> vector<48x256xf32>
    %c7_72 = arith.constant 7 : index
    %c0_73 = arith.constant 0 : index
    %136 = vector.load %arg2[%c7_72, %c0_73] : memref<9x256xf32, #tpu.memory_space<vmem>>, vector<1x256xf32>
    %137 = vector.broadcast %136 : vector<1x256xf32> to vector<48x256xf32>
    %138 = arith.mulf %135, %137 : vector<48x256xf32>
    %c239_i32_74 = arith.constant 239 : i32
    %139 = tpu.dynamic_rotate %110 by %c239_i32_74 dim 1 : vector<48x256xf32>, i32 -> vector<48x256xf32>
    %c8_75 = arith.constant 8 : index
    %c0_76 = arith.constant 0 : index
    %140 = vector.load %arg2[%c8_75, %c0_76] : memref<9x256xf32, #tpu.memory_space<vmem>>, vector<1x256xf32>
    %141 = vector.broadcast %140 : vector<1x256xf32> to vector<48x256xf32>
    %142 = arith.mulf %139, %141 : vector<48x256xf32>
    %143 = tpu.concatenate %114, %118, %122, %126, %110, %130, %134, %138, %142 in 0 : vector<48x256xf32>, vector<48x256xf32>, vector<48x256xf32>, vector<48x256xf32>, vector<48x256xf32>, vector<48x256xf32>, vector<48x256xf32>, vector<48x256xf32>, vector<48x256xf32> -> vector<432x256xf32>
    %c0_77 = arith.constant 0 : index
    %c0_78 = arith.constant 0 : index
    %144 = vector.load %arg9[%c0_77, %c0_78] : memref<9x432xf32, #tpu.memory_space<vmem>>, vector<9x432xf32>
    %cst_79 = arith.constant dense<0.000000e+00> : vector<9x256xf32>
    %145 = tpu.matmul %144, %143, %cst_79 {dimension_numbers = #tpu.dot_dimension_numbers<[1], [0], [0], [1], [0, 0, 1, 1], [], []>} : vector<9x432xf32>, vector<432x256xf32>, vector<9x256xf32> -> vector<9x256xf32>
    %c0_80 = arith.constant 0 : index
    %c0_81 = arith.constant 0 : index
    %146 = vector.load %arg10[%c0_80, %c0_81] : memref<9x1xf32, #tpu.memory_space<vmem>>, vector<9x1xf32>
    %147 = vector.broadcast %146 : vector<9x1xf32> to vector<9x256xf32>
    %148 = arith.addf %145, %147 : vector<9x256xf32>
    %149 = vector.extract_strided_slice %148 {offsets = [0, 0], sizes = [1, 256], strides = [1, 1]} : vector<9x256xf32> to vector<1x256xf32>
    %150 = vector.broadcast %149 : vector<1x256xf32> to vector<48x256xf32>
    %151 = arith.mulf %114, %150 : vector<48x256xf32>
    %152 = vector.extract_strided_slice %148 {offsets = [1, 0], sizes = [1, 256], strides = [1, 1]} : vector<9x256xf32> to vector<1x256xf32>
    %153 = vector.broadcast %152 : vector<1x256xf32> to vector<48x256xf32>
    %154 = arith.mulf %118, %153 : vector<48x256xf32>
    %155 = vector.extract_strided_slice %148 {offsets = [2, 0], sizes = [1, 256], strides = [1, 1]} : vector<9x256xf32> to vector<1x256xf32>
    %156 = vector.broadcast %155 : vector<1x256xf32> to vector<48x256xf32>
    %157 = arith.mulf %122, %156 : vector<48x256xf32>
    %158 = vector.extract_strided_slice %148 {offsets = [3, 0], sizes = [1, 256], strides = [1, 1]} : vector<9x256xf32> to vector<1x256xf32>
    %159 = vector.broadcast %158 : vector<1x256xf32> to vector<48x256xf32>
    %160 = arith.mulf %126, %159 : vector<48x256xf32>
    %161 = vector.extract_strided_slice %148 {offsets = [4, 0], sizes = [1, 256], strides = [1, 1]} : vector<9x256xf32> to vector<1x256xf32>
    %162 = vector.broadcast %161 : vector<1x256xf32> to vector<48x256xf32>
    %163 = arith.mulf %110, %162 : vector<48x256xf32>
    %164 = vector.extract_strided_slice %148 {offsets = [5, 0], sizes = [1, 256], strides = [1, 1]} : vector<9x256xf32> to vector<1x256xf32>
    %165 = vector.broadcast %164 : vector<1x256xf32> to vector<48x256xf32>
    %166 = arith.mulf %130, %165 : vector<48x256xf32>
    %167 = vector.extract_strided_slice %148 {offsets = [6, 0], sizes = [1, 256], strides = [1, 1]} : vector<9x256xf32> to vector<1x256xf32>
    %168 = vector.broadcast %167 : vector<1x256xf32> to vector<48x256xf32>
    %169 = arith.mulf %134, %168 : vector<48x256xf32>
    %170 = vector.extract_strided_slice %148 {offsets = [7, 0], sizes = [1, 256], strides = [1, 1]} : vector<9x256xf32> to vector<1x256xf32>
    %171 = vector.broadcast %170 : vector<1x256xf32> to vector<48x256xf32>
    %172 = arith.mulf %138, %171 : vector<48x256xf32>
    %173 = vector.extract_strided_slice %148 {offsets = [8, 0], sizes = [1, 256], strides = [1, 1]} : vector<9x256xf32> to vector<1x256xf32>
    %174 = vector.broadcast %173 : vector<1x256xf32> to vector<48x256xf32>
    %175 = arith.mulf %142, %174 : vector<48x256xf32>
    %176 = tpu.concatenate %151, %154, %157, %160, %163, %166, %169, %172, %175 in 0 : vector<48x256xf32>, vector<48x256xf32>, vector<48x256xf32>, vector<48x256xf32>, vector<48x256xf32>, vector<48x256xf32>, vector<48x256xf32>, vector<48x256xf32>, vector<48x256xf32> -> vector<432x256xf32>
    %c0_82 = arith.constant 0 : index
    %c0_83 = arith.constant 0 : index
    %177 = vector.load %arg11[%c0_82, %c0_83] : memref<48x432xf32, #tpu.memory_space<vmem>>, vector<48x432xf32>
    %cst_84 = arith.constant dense<0.000000e+00> : vector<48x256xf32>
    %178 = tpu.matmul %177, %176, %cst_84 {dimension_numbers = #tpu.dot_dimension_numbers<[1], [0], [0], [1], [0, 0, 1, 1], [], []>} : vector<48x432xf32>, vector<432x256xf32>, vector<48x256xf32> -> vector<48x256xf32>
    %c17_i32_85 = arith.constant 17 : i32
    %179 = tpu.dynamic_rotate %178 by %c17_i32_85 dim 1 : vector<48x256xf32>, i32 -> vector<48x256xf32>
    %c0_86 = arith.constant 0 : index
    %c0_87 = arith.constant 0 : index
    %180 = vector.load %arg2[%c0_86, %c0_87] : memref<9x256xf32, #tpu.memory_space<vmem>>, vector<1x256xf32>
    %181 = vector.broadcast %180 : vector<1x256xf32> to vector<48x256xf32>
    %182 = arith.mulf %179, %181 : vector<48x256xf32>
    %c16_i32_88 = arith.constant 16 : i32
    %183 = tpu.dynamic_rotate %178 by %c16_i32_88 dim 1 : vector<48x256xf32>, i32 -> vector<48x256xf32>
    %c1_89 = arith.constant 1 : index
    %c0_90 = arith.constant 0 : index
    %184 = vector.load %arg2[%c1_89, %c0_90] : memref<9x256xf32, #tpu.memory_space<vmem>>, vector<1x256xf32>
    %185 = vector.broadcast %184 : vector<1x256xf32> to vector<48x256xf32>
    %186 = arith.mulf %183, %185 : vector<48x256xf32>
    %c15_i32_91 = arith.constant 15 : i32
    %187 = tpu.dynamic_rotate %178 by %c15_i32_91 dim 1 : vector<48x256xf32>, i32 -> vector<48x256xf32>
    %c2_92 = arith.constant 2 : index
    %c0_93 = arith.constant 0 : index
    %188 = vector.load %arg2[%c2_92, %c0_93] : memref<9x256xf32, #tpu.memory_space<vmem>>, vector<1x256xf32>
    %189 = vector.broadcast %188 : vector<1x256xf32> to vector<48x256xf32>
    %190 = arith.mulf %187, %189 : vector<48x256xf32>
    %c1_i32_94 = arith.constant 1 : i32
    %191 = tpu.dynamic_rotate %178 by %c1_i32_94 dim 1 : vector<48x256xf32>, i32 -> vector<48x256xf32>
    %c3_95 = arith.constant 3 : index
    %c0_96 = arith.constant 0 : index
    %192 = vector.load %arg2[%c3_95, %c0_96] : memref<9x256xf32, #tpu.memory_space<vmem>>, vector<1x256xf32>
    %193 = vector.broadcast %192 : vector<1x256xf32> to vector<48x256xf32>
    %194 = arith.mulf %191, %193 : vector<48x256xf32>
    %c255_i32_97 = arith.constant 255 : i32
    %195 = tpu.dynamic_rotate %178 by %c255_i32_97 dim 1 : vector<48x256xf32>, i32 -> vector<48x256xf32>
    %c5_98 = arith.constant 5 : index
    %c0_99 = arith.constant 0 : index
    %196 = vector.load %arg2[%c5_98, %c0_99] : memref<9x256xf32, #tpu.memory_space<vmem>>, vector<1x256xf32>
    %197 = vector.broadcast %196 : vector<1x256xf32> to vector<48x256xf32>
    %198 = arith.mulf %195, %197 : vector<48x256xf32>
    %c241_i32_100 = arith.constant 241 : i32
    %199 = tpu.dynamic_rotate %178 by %c241_i32_100 dim 1 : vector<48x256xf32>, i32 -> vector<48x256xf32>
    %c6_101 = arith.constant 6 : index
    %c0_102 = arith.constant 0 : index
    %200 = vector.load %arg2[%c6_101, %c0_102] : memref<9x256xf32, #tpu.memory_space<vmem>>, vector<1x256xf32>
    %201 = vector.broadcast %200 : vector<1x256xf32> to vector<48x256xf32>
    %202 = arith.mulf %199, %201 : vector<48x256xf32>
    %c240_i32_103 = arith.constant 240 : i32
    %203 = tpu.dynamic_rotate %178 by %c240_i32_103 dim 1 : vector<48x256xf32>, i32 -> vector<48x256xf32>
    %c7_104 = arith.constant 7 : index
    %c0_105 = arith.constant 0 : index
    %204 = vector.load %arg2[%c7_104, %c0_105] : memref<9x256xf32, #tpu.memory_space<vmem>>, vector<1x256xf32>
    %205 = vector.broadcast %204 : vector<1x256xf32> to vector<48x256xf32>
    %206 = arith.mulf %203, %205 : vector<48x256xf32>
    %c239_i32_106 = arith.constant 239 : i32
    %207 = tpu.dynamic_rotate %178 by %c239_i32_106 dim 1 : vector<48x256xf32>, i32 -> vector<48x256xf32>
    %c8_107 = arith.constant 8 : index
    %c0_108 = arith.constant 0 : index
    %208 = vector.load %arg2[%c8_107, %c0_108] : memref<9x256xf32, #tpu.memory_space<vmem>>, vector<1x256xf32>
    %209 = vector.broadcast %208 : vector<1x256xf32> to vector<48x256xf32>
    %210 = arith.mulf %207, %209 : vector<48x256xf32>
    %211 = tpu.concatenate %182, %186, %190, %194, %178, %198, %202, %206, %210 in 0 : vector<48x256xf32>, vector<48x256xf32>, vector<48x256xf32>, vector<48x256xf32>, vector<48x256xf32>, vector<48x256xf32>, vector<48x256xf32>, vector<48x256xf32>, vector<48x256xf32> -> vector<432x256xf32>
    %c0_109 = arith.constant 0 : index
    %c0_110 = arith.constant 0 : index
    %212 = vector.load %arg12[%c0_109, %c0_110] : memref<9x432xf32, #tpu.memory_space<vmem>>, vector<9x432xf32>
    %cst_111 = arith.constant dense<0.000000e+00> : vector<9x256xf32>
    %213 = tpu.matmul %212, %211, %cst_111 {dimension_numbers = #tpu.dot_dimension_numbers<[1], [0], [0], [1], [0, 0, 1, 1], [], []>} : vector<9x432xf32>, vector<432x256xf32>, vector<9x256xf32> -> vector<9x256xf32>
    %c0_112 = arith.constant 0 : index
    %c0_113 = arith.constant 0 : index
    %214 = vector.load %arg13[%c0_112, %c0_113] : memref<9x1xf32, #tpu.memory_space<vmem>>, vector<9x1xf32>
    %215 = vector.broadcast %214 : vector<9x1xf32> to vector<9x256xf32>
    %216 = arith.addf %213, %215 : vector<9x256xf32>
    %217 = vector.extract_strided_slice %216 {offsets = [0, 0], sizes = [1, 256], strides = [1, 1]} : vector<9x256xf32> to vector<1x256xf32>
    %218 = vector.broadcast %217 : vector<1x256xf32> to vector<48x256xf32>
    %219 = arith.mulf %182, %218 : vector<48x256xf32>
    %220 = vector.extract_strided_slice %216 {offsets = [1, 0], sizes = [1, 256], strides = [1, 1]} : vector<9x256xf32> to vector<1x256xf32>
    %221 = vector.broadcast %220 : vector<1x256xf32> to vector<48x256xf32>
    %222 = arith.mulf %186, %221 : vector<48x256xf32>
    %223 = vector.extract_strided_slice %216 {offsets = [2, 0], sizes = [1, 256], strides = [1, 1]} : vector<9x256xf32> to vector<1x256xf32>
    %224 = vector.broadcast %223 : vector<1x256xf32> to vector<48x256xf32>
    %225 = arith.mulf %190, %224 : vector<48x256xf32>
    %226 = vector.extract_strided_slice %216 {offsets = [3, 0], sizes = [1, 256], strides = [1, 1]} : vector<9x256xf32> to vector<1x256xf32>
    %227 = vector.broadcast %226 : vector<1x256xf32> to vector<48x256xf32>
    %228 = arith.mulf %194, %227 : vector<48x256xf32>
    %229 = vector.extract_strided_slice %216 {offsets = [4, 0], sizes = [1, 256], strides = [1, 1]} : vector<9x256xf32> to vector<1x256xf32>
    %230 = vector.broadcast %229 : vector<1x256xf32> to vector<48x256xf32>
    %231 = arith.mulf %178, %230 : vector<48x256xf32>
    %232 = vector.extract_strided_slice %216 {offsets = [5, 0], sizes = [1, 256], strides = [1, 1]} : vector<9x256xf32> to vector<1x256xf32>
    %233 = vector.broadcast %232 : vector<1x256xf32> to vector<48x256xf32>
    %234 = arith.mulf %198, %233 : vector<48x256xf32>
    %235 = vector.extract_strided_slice %216 {offsets = [6, 0], sizes = [1, 256], strides = [1, 1]} : vector<9x256xf32> to vector<1x256xf32>
    %236 = vector.broadcast %235 : vector<1x256xf32> to vector<48x256xf32>
    %237 = arith.mulf %202, %236 : vector<48x256xf32>
    %238 = vector.extract_strided_slice %216 {offsets = [7, 0], sizes = [1, 256], strides = [1, 1]} : vector<9x256xf32> to vector<1x256xf32>
    %239 = vector.broadcast %238 : vector<1x256xf32> to vector<48x256xf32>
    %240 = arith.mulf %206, %239 : vector<48x256xf32>
    %241 = vector.extract_strided_slice %216 {offsets = [8, 0], sizes = [1, 256], strides = [1, 1]} : vector<9x256xf32> to vector<1x256xf32>
    %242 = vector.broadcast %241 : vector<1x256xf32> to vector<48x256xf32>
    %243 = arith.mulf %210, %242 : vector<48x256xf32>
    %244 = tpu.concatenate %219, %222, %225, %228, %231, %234, %237, %240, %243 in 0 : vector<48x256xf32>, vector<48x256xf32>, vector<48x256xf32>, vector<48x256xf32>, vector<48x256xf32>, vector<48x256xf32>, vector<48x256xf32>, vector<48x256xf32>, vector<48x256xf32> -> vector<432x256xf32>
    %c0_114 = arith.constant 0 : index
    %c0_115 = arith.constant 0 : index
    %245 = vector.load %arg14[%c0_114, %c0_115] : memref<48x432xf32, #tpu.memory_space<vmem>>, vector<48x432xf32>
    %cst_116 = arith.constant dense<0.000000e+00> : vector<48x256xf32>
    %246 = tpu.matmul %245, %244, %cst_116 {dimension_numbers = #tpu.dot_dimension_numbers<[1], [0], [0], [1], [0, 0, 1, 1], [], []>} : vector<48x432xf32>, vector<432x256xf32>, vector<48x256xf32> -> vector<48x256xf32>
    %247 = arith.addf %246, %1 : vector<48x256xf32>
    %cst_117 = arith.constant 0.000000e+00 : f32
    %248 = vector.broadcast %cst_117 : f32 to vector<48x256xf32>
    %249 = arith.maximumf %247, %248 : vector<48x256xf32>
    %c0_118 = arith.constant 0 : index
    %c0_119 = arith.constant 0 : index
    %c0_120 = arith.constant 0 : index
    %250 = vector.load %arg15[%c0_118, %c0_119, %c0_120] : memref<1x48x256xf32, #tpu.memory_space<vmem>>, vector<1x48x256xf32>
    %251 = vector.shape_cast %250 : vector<1x48x256xf32> to vector<48x256xf32>
    %252 = vector.shape_cast %249 : vector<48x256xf32> to vector<1x48x256xf32>
    tpu.vector_store %arg15[%c0_118, %c0_119, %c0_120], %252 {strides = array<i32>} : memref<1x48x256xf32, #tpu.memory_space<vmem>>, vector<1x48x256xf32>,
    return
  }
  func.func @transform_0(%arg0: i32) -> (i32, i32, i32) {
    %c0_i32 = arith.constant 0 : i32
    %c0_i32_0 = arith.constant 0 : i32
    %c0_i32_1 = arith.constant 0 : i32
    return %arg0, %c0_i32, %c0_i32_0 : i32, i32, i32
  }
  func.func @transform_1(%arg0: i32) -> (i32, i32) {
    %c0_i32 = arith.constant 0 : i32
    %c0_i32_0 = arith.constant 0 : i32
    %c0_i32_1 = arith.constant 0 : i32
    return %c0_i32, %c0_i32_0 : i32, i32
  }
  func.func @transform_2(%arg0: i32) -> (i32, i32) {
    %c0_i32 = arith.constant 0 : i32
    %c0_i32_0 = arith.constant 0 : i32
    %c0_i32_1 = arith.constant 0 : i32
    return %c0_i32, %c0_i32_0 : i32, i32
  }
  func.func @transform_3(%arg0: i32) -> (i32, i32) {
    %c0_i32 = arith.constant 0 : i32
    %c0_i32_0 = arith.constant 0 : i32
    %c0_i32_1 = arith.constant 0 : i32
    return %c0_i32, %c0_i32_0 : i32, i32
  }
  func.func @transform_4(%arg0: i32) -> (i32, i32) {
    %c0_i32 = arith.constant 0 : i32
    %c0_i32_0 = arith.constant 0 : i32
    %c0_i32_1 = arith.constant 0 : i32
    return %c0_i32, %c0_i32_0 : i32, i32
  }
  func.func @transform_5(%arg0: i32) -> (i32, i32) {
    %c0_i32 = arith.constant 0 : i32
    %c0_i32_0 = arith.constant 0 : i32
    %c0_i32_1 = arith.constant 0 : i32
    return %c0_i32, %c0_i32_0 : i32, i32
  }
  func.func @transform_6(%arg0: i32) -> (i32, i32) {
    %c0_i32 = arith.constant 0 : i32
    %c0_i32_0 = arith.constant 0 : i32
    %c0_i32_1 = arith.constant 0 : i32
    return %c0_i32, %c0_i32_0 : i32, i32
  }
  func.func @transform_7(%arg0: i32) -> (i32, i32) {
    %c0_i32 = arith.constant 0 : i32
    %c0_i32_0 = arith.constant 0 : i32
    %c0_i32_1 = arith.constant 0 : i32
    return %c0_i32, %c0_i32_0 : i32, i32
  }
  func.func @transform_8(%arg0: i32) -> (i32, i32) {
    %c0_i32 = arith.constant 0 : i32
    %c0_i32_0 = arith.constant 0 : i32
    %c0_i32_1 = arith.constant 0 : i32
    return %c0_i32, %c0_i32_0 : i32, i32
  }
  func.func @transform_9(%arg0: i32) -> (i32, i32) {
    %c0_i32 = arith.constant 0 : i32
    %c0_i32_0 = arith.constant 0 : i32
    %c0_i32_1 = arith.constant 0 : i32
    return %c0_i32, %c0_i32_0 : i32, i32
  }
  func.func @transform_10(%arg0: i32) -> (i32, i32) {
    %c0_i32 = arith.constant 0 : i32
    %c0_i32_0 = arith.constant 0 : i32
    %c0_i32_1 = arith.constant 0 : i32
    return %c0_i32, %c0_i32_0 : i32, i32
  }
  func.func @transform_11(%arg0: i32) -> (i32, i32) {
    %c0_i32 = arith.constant 0 : i32
    %c0_i32_0 = arith.constant 0 : i32
    %c0_i32_1 = arith.constant 0 : i32
    return %c0_i32, %c0_i32_0 : i32, i32
  }
  func.func @transform_12(%arg0: i32) -> (i32, i32) {
    %c0_i32 = arith.constant 0 : i32
    %c0_i32_0 = arith.constant 0 : i32
    %c0_i32_1 = arith.constant 0 : i32
    return %c0_i32, %c0_i32_0 : i32, i32
  }
  func.func @transform_13(%arg0: i32) -> (i32, i32) {
    %c0_i32 = arith.constant 0 : i32
    %c0_i32_0 = arith.constant 0 : i32
    %c0_i32_1 = arith.constant 0 : i32
    return %c0_i32, %c0_i32_0 : i32, i32
  }
  func.func @transform_14(%arg0: i32) -> (i32, i32, i32) {
    %c0_i32 = arith.constant 0 : i32
    %c0_i32_0 = arith.constant 0 : i32
    %c0_i32_1 = arith.constant 0 : i32
    return %arg0, %c0_i32, %c0_i32_0 : i32, i32, i32
  }
}

</mosaic_0001>

<bundles_post_ra>
// kernel: tpu_custom_call.1
= control target key start
LH: loop header
LB: loop body
LE: loop exit
PB: predicated region body
PF: predicated region fallthrough
CT: control target
= control target key end

     0   :  { %s11486_s0 = inlined_call_operand.hbm [shape: f32[2,48,256], index: 0, kind: input, shape index: {}]   ;;  %s11487_s1 = inlined_call_operand.hbm [shape: f32[9,256], index: 1, kind: input, shape index: {}]   ;;  %s11488_s2 = inlined_call_operand.hbm [shape: f32[9,256], index: 2, kind: input, shape index: {}]   ;;  %s11489_s3 = inlined_call_operand.hbm [shape: f32[9,256], index: 3, kind: input, shape index: {}]   ;;  %s11490_s4 = inlined_call_operand.vmem [shape: f32[16,432], index: 4, kind: input, shape index: {}]   ;;  %s11491_s5 = inlined_call_operand.hbm [shape: f32[16,432], index: 5, kind: input, shape index: {}]   ;;  %s11492_s6 = inlined_call_operand.hbm [shape: f32[16,432], index: 6, kind: input, shape index: {}]   ;;  %s11493_s7 = inlined_call_operand.vmem [shape: f32[48,1], index: 7, kind: input, shape index: {}]   ;;  %s11494_s8 = inlined_call_operand.hbm [shape: f32[9,432], index: 8, kind: input, shape index: {}]   ;;  %s11495_s9 = inlined_call_operand.vmem [shape: f32[9,1], index: 9, kind: input, shape index: {}]   ;;  %s11496_s10 = inlined_call_operand.hbm [shape: f32[48,432], index: 10, kind: input, shape index: {}]   ;;  %s11497_s11 = inlined_call_operand.hbm [shape: f32[9,432], index: 11, kind: input, shape index: {}]   ;;  %s11498_s12 = inlined_call_operand.vmem [shape: f32[9,1], index: 12, kind: input, shape index: {}]   ;;  %s11499_s13 = inlined_call_operand.hbm [shape: f32[48,432], index: 13, kind: input, shape index: {}]   ;;  %s11500_s14 = inlined_call_operand.hbm [shape: f32[2,48,256], index: 14, kind: output, shape index: {}]  }
   0x1   :  { %11788 = sst [smem:[#allocation127_spill]] %s11487_s1 }
   0x2   :  { %11789 = sst [smem:[#allocation128_spill]] %s11488_s2 }
   0x3   :  { %11790 = sst [smem:[#allocation129_spill]] %s11489_s3 }
   0x4   :  { %11791 = sst [smem:[#allocation130_spill]] %s11491_s5 }
   0x5   :  { %11792 = sst [smem:[#allocation131_spill]] %s11492_s6 }
   0x6   :  { %11793 = sst [smem:[#allocation132_spill]] %s11494_s8 }
   0x7   :  { %11794 = sst [smem:[#allocation133_spill]] %s11495_s9 }
   0x8   :  { %11795 = sst [smem:[#allocation134_spill]] %s11496_s10 }
   0x9   :  { %11796 = sst [smem:[#allocation135_spill]] %s11497_s11 }
   0xa   :  { %11797 = sst [smem:[#allocation136_spill]] %s11498_s12 }
   0xb   :  { %11798 = sst [smem:[#allocation137_spill]] %s11499_s13 }
   0xc   :  { %11799 = sst [smem:[#allocation138_spill]] %s11500_s14 }
   0xd   :  { %19 = vsyncpa [#allocation3], 0 }
   0xe   :  { %21 = vsyncpa [#allocation3 + $0x1], 0 }
   0xf   :  { %22 = vsyncpa [#allocation6], 0 }
  0x10   :  { %23 = vsyncpa [#allocation9], 0 }
  0x11   :  { %24 = vsyncpa [#allocation12], 0 }
  0x12   :  { %25 = vsyncpa [#allocation15], 0 }
  0x13   :  { %26 = vsyncpa [#allocation18], 0 }
  0x14   :  { %27 = vsyncpa [#allocation4], 0 }
  0x15   :  { %29 = vsyncpa [#allocation4 + $0x1], 0  ;;  %s5707_s29 = smov 0   ;;  %s5709_s30 = smov 0  }
  0x16   :  { %s5711_s15 = smov 0   ;;  %s5713_s16 = smov 0  }
  0x17 LB: > { %s11800_s1 = sld [smem:[#allocation127_spill]]  ;;  %s5731_s20 = sadd.s32 4294967295, %s5591_s16   ;;  %s5591_s16 = sphi %s5713_s16, %s12366_s16   ;;  %s5587_s15 = sphi %s5711_s15, %s12365_s15   ;;  %s5583_s30 = sphi %s5709_s30, %s12364_s30   ;;  %s5579_s29 = sphi %s5707_s29, %s12363_s29  }
  0x18   : > { %p4919_p0 = scmp.ge.s32.totalorder %s5591_s16, 1  ;;  %p56_p1 = scmp.eq.s32.totalorder %s5731_s20, 0 }
  0x19   : > { %p365_p2 = scmp.lt.s32.totalorder %s5591_s16, 3  ;;  %s5593_s22 = smov [#allocation5]  }
  0x1a   : > { %s378_s23 = sshll.u32 %s5593_s22, 4  ;;  %s11802_s3 = sld [smem:[#allocation129_spill]]  ;;  %s379_s23 = int_to_ptr.vmem [resolvable:$true] %s378_s23 }
  0x1b   : > { %p5736_p3 = pnand %p4919_p0, %p365_p2  ;;  %s5594_s28 = smov [#allocation8]  }
  0x1c   : > { %s406_s17 = sshll.u32 %s5594_s28, 4  ;;  %s11504_s18 = smov 256   ;;  %s407_s17 = int_to_ptr.vmem [resolvable:$true] %s406_s17 }
  0x1d   : > { %s376_s19 = sshll.u32 %s11800_s1, 4  ;;  %p5038_p4 = pneg %p5736_p3  ;;  %s377_s19 = int_to_ptr.hbm [resolvable:$true] %s376_s19 }
  0x1e   : > { %s11506_s22 = smov 16   ;;  %s11804_s6 = sld [smem:[#allocation131_spill]] }
  0x1f   : > { %p5748_p6 = pnand %p5038_p4, %p56_p1  ;;  %s5597_s28 = smov [#allocation11]  }
  0x20   : > { %s404_s26 = sshll.u32 %s11802_s3, 4  ;;  %s437_s3 = sshll.u32 %s5597_s28, 4  ;;  %s405_s26 = int_to_ptr.hbm [resolvable:$true] %s404_s26  ;;  %s438_s3 = int_to_ptr.vmem [resolvable:$true] %s437_s3 }
  0x21   : > { %5041 = dma.hbm_to_vmem [thread:$0]  (!%p5748_p6), %s377_s19, 512, %s379_s23, [#allocation6], %s11504_s18, %s11504_s18, %s11506_s22  }
  0x22   : > { %5047 = dma.hbm_to_vmem [thread:$0]  (!%p5748_p6), %s405_s26, 512, %s407_s17, [#allocation9], %s11504_s18, %s11504_s18, %s11506_s22  }
  0x23   : > { %s11805_s10 = sld [smem:[#allocation134_spill]]  ;;  %s5598_s19 = smov 512  }
  0x24   : > { %s435_s1 = sshll.u32 %s11804_s6, 4  ;;  %s5599_s23 = smov 32   ;;  %s436_s1 = int_to_ptr.hbm [resolvable:$true] %s435_s1 }
  0x25   : > { %5053 = dma.hbm_to_vmem [thread:$0]  (!%p5748_p6), %s436_s1, 1024, %s438_s3, [#allocation12], %s5598_s19, %s5598_s19, %s5599_s23  }
  0x26   : > { %s5600_s26 = smov [#allocation14]   ;;  %s11806_s2 = sld [smem:[#allocation128_spill]] }
  0x27   : > { %s471_s17 = sshll.u32 %s5600_s26, 4  ;;  %s11807_s5 = sld [smem:[#allocation130_spill]]  ;;  %s472_s17 = int_to_ptr.vmem [resolvable:$true] %s471_s17 }
  0x28   : > { %s5601_s1 = smov [#allocation7]   ;;  %s11808_s26 = smov 256  }
  0x29   : > { %s469_s9 = sshll.u32 %s11805_s10, 4  ;;  %s392_s3 = sshll.u32 %s5601_s1, 4  ;;  %s470_s9 = int_to_ptr.hbm [resolvable:$true] %s469_s9  ;;  %s393_s3 = int_to_ptr.vmem [resolvable:$true] %s392_s3 }
  0x2a   : > { %5059 = dma.hbm_to_vmem [thread:$0]  (!%p5748_p6), %s470_s9, 3072, %s472_s17, [#allocation15], %s5598_s19, %s5598_s19, %s5599_s23  }
  0x2b   : > { %s5602_s24 = smov [#allocation10]   ;;  %s11809_s8 = sld [smem:[#allocation132_spill]] }
  0x2c   : > { %s390_s28 = sshll.u32 %s11806_s2, 4  ;;  %s423_s25 = sshll.u32 %s5602_s24, 4  ;;  %s391_s28 = int_to_ptr.hbm [resolvable:$true] %s390_s28  ;;  %s424_s25 = int_to_ptr.vmem [resolvable:$true] %s423_s25 }
  0x2d   : > { %s421_s18 = sshll.u32 %s11807_s5, 4  ;;  %s11810_s11 = sld [smem:[#allocation135_spill]]  ;;  %s422_s18 = int_to_ptr.hbm [resolvable:$true] %s421_s18 }
  0x2e   : > { %5044 = dma.hbm_to_vmem [thread:$0]  (!%p5748_p6), %s391_s28, 512, %s393_s3, [#allocation6], %s11808_s26, %s11808_s26, %s11506_s22  }
  0x2f   : > { %5050 = dma.hbm_to_vmem [thread:$0]  (!%p5748_p6), %s422_s18, 1024, %s424_s25, [#allocation9], %s5598_s19, %s5598_s19, %s5599_s23  }
  0x30   : > { %s5603_s28 = smov [#allocation13]   ;;  %s5604_s2 = smov [#allocation16]  }
  0x31   : > { %s452_s9 = sshll.u32 %s11809_s8, 4  ;;  %s454_s1 = sshll.u32 %s5603_s28, 4  ;;  %s453_s9 = int_to_ptr.hbm [resolvable:$true] %s452_s9  ;;  %s455_s1 = int_to_ptr.vmem [resolvable:$true] %s454_s1 }
  0x32   : > { %5056 = dma.hbm_to_vmem [thread:$0]  (!%p5748_p6), %s453_s9, 1024, %s455_s1, [#allocation12], %s5598_s19, %s5598_s19, %s5599_s23  }
  0x33   : > { %s483_s14 = sshll.u32 %s11810_s11, 4  ;;  %s485_s6 = sshll.u32 %s5604_s2, 4  ;;  %s484_s14 = int_to_ptr.hbm [resolvable:$true] %s483_s14  ;;  %s486_s6 = int_to_ptr.vmem [resolvable:$true] %s485_s6 }
  0x34   : > { %s11811_s13 = sld [smem:[#allocation137_spill]]  ;;  %s5605_s25 = smov [#allocation17]  }
  0x35   : > { %5062 = dma.hbm_to_vmem [thread:$0]  (!%p5748_p6), %s484_s14, 1024, %s486_s6, [#allocation15], %s5598_s19, %s5598_s19, %s5599_s23  }
  0x36   : > { %s502_s9 = sshll.u32 %s5605_s25, 4  ;;  %s4918_s17 = sadd.s32 4294967294, %s5591_s16   ;;  %s503_s9 = int_to_ptr.vmem [resolvable:$true] %s502_s9 }
  0x37   : > { %s5820_s12 = sadd.s32 1, %s5591_s16   ;;  %s42_s28 = sadd.s32 1, %s5587_s15 }
  0x38   : > { %s39_s1 = ssub.s32 %s5591_s16, %s5820_s12  ;;  %p49_p7 = scmp.ne.s32.totalorder %s5587_s15, %s5583_s30 }
  0x39   : > { %p40_p8 = scmp.eq.s32.totalorder %s39_s1, 0  ;;  %p50_p9 = scmp.eq.s32.totalorder %s5591_s16, 0 }
  0x3a   : > { %s500_s24 = sshll.u32 %s11811_s13, 4  ;;  %p55_p10 = scmp.ne.s32.totalorder %s5583_s30, %s5579_s29  ;;  %s501_s24 = int_to_ptr.hbm [resolvable:$true] %s500_s24 }
  0x3b   : > { %5065 = dma.hbm_to_vmem [thread:$0]  (!%p5748_p6), %s501_s24, 3072, %s503_s9, [#allocation18], %s5598_s19, %s5598_s19, %s5599_s23  }
  0x3c   : > { %p352_p11 = scmp.eq.s32.totalorder %s5731_s20, 1  ;;  %p51_p12 = por %p50_p9, %p49_p7 }
  0x3d   : > { %s5832_s14 = scalar_select %p40_p8, %s5587_s15, %s42_s28  }
  0x3e   : > { %p5836_p13 = por %p56_p1, %p55_p10  ;;  %p5840_p0 = por %p352_p11, %p49_p7 }
  0x3f   : > { %p358_p2 = scmp.eq.s32.totalorder %s4918_s17, 1  ;;  %p5083_p4 = scmp.lt.s32.totalorder %s5591_s16, 2 }
  0x40   : > { %s516_s23 = sand.u32 1, %s5587_s15   ;;  %s4995_s3 = smul.u32 96, %s5591_s16 }
  0x41   : > { %p5846_p6 = por %p358_p2, %p55_p10  ;;  %s4994_s6 = smul.u32 96, %s516_s23 }
  0x42   : > { %p5850_p8 = pnand %p5083_p4, %p51_p12  ;;  %s525_s9 = scalar_lea.hbm %s11486_s0, %s4995_s3 }
  0x43   : > { %s520_s28 = scalar_lea.vmem [#allocation2], %s4994_s6  ;;  %s526_s17 = sshll.u32 %s525_s9, 4  ;;  %s527_s17 = int_to_ptr.hbm [resolvable:$true] %s526_s17 }
  0x44   : > { %s528_s1 = sshll.u32 %s520_s28, 4  ;;  %s517_s22 = scalar_lea.sflag [#allocation3], %s516_s23  ;;  %s529_s1 = int_to_ptr.vmem [resolvable:$true] %s528_s1 }
  0x45   : > { %s5475_s5 = sshra.s32 %s527_s17, 4  ;;  %p5479_p9 = pneg %p5850_p8  ;;  %s5476_s5 = int_to_ptr.hbm [resolvable:$true] %s5475_s5 }
  0x46   : > { %s5477_s8 = scalar_lea.hbm %s5476_s5, 96  ;;  %s5482_s13 = scalar_lea.hbm %s11486_s0, 192 }
  0x47   : > { %p5478_p7 = scmp.ne.s32.totalorder %s5476_s5, %s5477_s8  ;;  %p5483_p12 = scmp.lt.s32.totalorder %s5476_s5, %s11486_s0 }
  0x48   : > { %p5484_p2 = scmp.lt.s32.totalorder %s5482_s13, %s5477_s8 }
  0x49   : > { %p5480_p10 = pnand %p5479_p9, %p5478_p7 }
  0x4a   : > { %p5485_p4 = por %p5484_p2, %p5483_p12 }
  0x4b   : > { %p5481_p11 = pneg %p5480_p10 }
  0x4d   : > { %p5486_p5 = pnand %p5485_p4, %p5481_p11 }
  0x4f   : > { %5489 = shalt.err (!%p5486_p5)
}
  0x50   : > { %s11816_s23 = smov 16   ;;  %540 = sbr.rel (%p5736_p3) target bundleno = 2651 (0xa5b), region = 76 }
  0x51   : > { %5069 = dma.hbm_to_vmem [thread:$0]  (!%p5850_p8), %s527_s17, 1536, %s529_s1, %s517_s22, %s11808_s26, %s11808_s26, %s11816_s23  }
  0x55   : > { %s5874_s10 = sand.u32 1, %s5583_s30  }
  0x56   : > { %s4996_s5 = smul.u32 96, %s5874_s10  ;;  %s543_s8 = scalar_lea.sflag [#allocation3], %s5874_s10 }
  0x58   : > { %s5880_s11 = scalar_lea.vmem [#allocation2], %s4996_s5 }
  0x59   : > { %5550 = dma.done.wait (%p5836_p13), %s543_s8, 1536  }
  0x5a   : > { %5552 = vsyncadd (%p5836_p13), %s543_s8, 4294965760 }
  0x5b   : > { %5554 = dma.done.wait (%p56_p1), [#allocation6], 1024  }
  0x5c   : > { %5556 = vsyncadd (%p56_p1), [#allocation6], 4294966272 }
  0x5d   : > { %5558 = dma.done.wait (%p56_p1), [#allocation9], 1536  }
  0x5e   : > { %5560 = vsyncadd (%p56_p1), [#allocation9], 4294965760 }
  0x5f   : > { %5562 = dma.done.wait (%p56_p1), [#allocation12], 2048  }
  0x60   : > { %5564 = vsyncadd (%p56_p1), [#allocation12], 4294965248 }
  0x61   : > { %5566 = dma.done.wait (%p56_p1), [#allocation15], 4096  }
  0x62   : > { %5568 = vsyncadd (%p56_p1), [#allocation15], 4294963200 }
  0x63   : > { %5570 = dma.done.wait (%p56_p1), [#allocation18], 3072  }
  0x64   : > { %5572 = vsyncadd (%p56_p1), [#allocation18], 4294964224  ;;  %v5907_v0 = vld [vmem:[%s5880_s11 + $0x40] sm:$0xff]  ;;  %s5606_s13 = smov 17   ;;  %v5922_v3 = vld [vmem:[%s5880_s11 + $0x50] sm:$0xff]  ;;  %s5607_s21 = smov 16   ;;  %v681_v48 = vlaneseq }
  0x65   : > { %v5910_v1 = vld [vmem:[%s5880_s11 + $0x20] sm:$0xff]  ;;  %665 = vrot.lane.b32.xlu2 %v5907_v0, %s5606_s13  ;;  %v5925_v4 = vld [vmem:[%s5880_s11 + $0x30] sm:$0xff]  ;;  %v5937_v6 = vld [vmem:[%s5880_s11 + $0x28] sm:$0xff]  ;;  %s5608_s22 = smov 15   ;;  %s5609_s26 = smov 1   ;;  %vm1106_vm9 = vcmask 392192  }
  0x66   : > { %v5913_v2 = vld [vmem:[%s5880_s11] sm:$0xff]  ;;  %661 = vrot.lane.b32.xlu1 %v5910_v1, %s5606_s13  ;;  %v5928_v5 = vld [vmem:[%s5880_s11 + $0x10] sm:$0xff]  ;;  %v5940_v7 = vld [vmem:[%s5880_s11 + $0x18] sm:$0xff]  ;;  %s5610_s27 = smov 127   ;;  %s5611_s6 = smov 113   ;;  %v6164_v49 = vand.u32 127, %v681_v48 }
  0x67   : > { %657 = vrot.lane.b32.xlu0 %v5913_v2, %s5606_s13  ;;  %v5943_v8 = vld [vmem:[%s5880_s11 + $0x8] sm:$0xff]  ;;  %v5952_v9 = vld [vmem:[%s5880_s11 + $0x58] sm:$0xff]  ;;  %s5612_s18 = smov 112   ;;  %s5613_s25 = smov 111  }
  0x68   : > { %v5955_v10 = vld [vmem:[%s5880_s11 + $0x48] sm:$0xff]  ;;  %v5958_v11 = vld [vmem:[%s5880_s11 + $0x38] sm:$0xff]  ;;  %11841 = vst [vmem:[#allocation51_spill] sm:$0xff] %v6164_v49  ;;  %vm794_vm0 = vcmp.lt.s32.totalorder %v6164_v49, 15  ;;  %vm738_vm1 = vcmp.lt.s32.totalorder %v6164_v49, 16  ;;  %vm683_vm2 = vcmp.lt.s32.totalorder %v6164_v49, 17 }
  0x69   : > { %v6170_v50 = vld [vmem:[#allocation5 + $0x2] ss:$8 sm:$0x3]  ;;  %v6206_v61 = vld [vmem:[#allocation5 + $0x1] ss:$8 sm:$0x3] }
  0x6a   : > { %v6182_v54 = vperm.slane %v6170_v50, 0  ;;  %s5614_s9 = smov 30   ;;  %s5615_s28 = smov 34   ;;  %vm906_vm3 = vcmp.lt.s32.totalorder %v6164_v49, 127  ;;  %vm850_vm4 = vcmp.lt.s32.totalorder %v6164_v49, 1  ;;  %vm1018_vm5 = vcmp.lt.s32.totalorder %v6164_v49, 112 }
  0x6b   : > { %s5616_s1 = smov 126   ;;  %s5617_s17 = smov 32   ;;  %vm962_vm6 = vcmp.lt.s32.totalorder %v6164_v49, 113  ;;  %vm1074_vm7 = vcmp.lt.s32.totalorder %v6164_v49, 111  ;;  %vm1552_vm8 = vcmp.lt.s32.totalorder %v6164_v49, 126  ;;  %vm1440_vm10 = vcmp.lt.s32.totalorder %v6164_v49, 30 }
  0x6c   : > { %11842 = vst [vmem:[#allocation52_spill] sm:$0xff] %v6182_v54  ;;  %s5618_s24 = smov 96   ;;  %s5619_s3 = smov 2   ;;  %vm1664_vm11 = vcmp.lt.s32.totalorder %v6164_v49, 96  ;;  %vm1384_vm12 = vcmp.lt.s32.totalorder %v6164_v49, 32  ;;  %vm1496_vm13 = vcmp.lt.s32.totalorder %v6164_v49, 2 }
  0x6d   : > { %667 = vrot.lane.b32.xlu2 %v5922_v3, %s5606_s13  ;;  %vm1329_vm14 = vcmp.lt.s32.totalorder %v6164_v49, 34  ;;  %vm1608_vm15 = vcmp.lt.s32.totalorder %v6164_v49, 98  ;;  %s5623_s8 = smov 48   ;;  %s5625_s23 = smov 80  }
  0x6e   : > { %663 = vrot.lane.b32.xlu1 %v5925_v4, %s5606_s13 }
  0x6f   : > { %659 = vrot.lane.b32.xlu0 %v5928_v5, %s5606_s13 }
  0x75   : > { %673 = vrot.lane.b32.xlu2 %v5937_v6, %s5606_s13 }
  0x76   : > { %671 = vrot.lane.b32.xlu1 %v5940_v7, %s5606_s13 }
  0x77   : > { %669 = vrot.lane.b32.xlu0 %v5943_v8, %s5606_s13 }
  0x7d   : > { %679 = vrot.lane.b32.xlu2 %v5952_v9, %s5606_s13 }
  0x7e   : > { %677 = vrot.lane.b32.xlu1 %v5955_v10, %s5606_s13 }
  0x7f   : > { %675 = vrot.lane.b32.xlu0 %v5958_v11, %s5606_s13 }
  0x85   : > { %718 = vrot.lane.b32.xlu2 %v5910_v1, %s5607_s21 }
  0x86   : > { %716 = vrot.lane.b32.xlu1 %v5928_v5, %s5607_s21 }
  0x87   : > { %714 = vrot.lane.b32.xlu0 %v5913_v2, %s5607_s21 }
  0x8d   : > { %724 = vrot.lane.b32.xlu2 %v5922_v3, %s5607_s21 }
  0x8e   : > { %722 = vrot.lane.b32.xlu1 %v5907_v0, %s5607_s21 }
  0x8f   : > { %720 = vrot.lane.b32.xlu0 %v5925_v4, %s5607_s21 }
  0x95   : > { %730 = vrot.lane.b32.xlu2 %v5937_v6, %s5607_s21 }
  0x96   : > { %728 = vrot.lane.b32.xlu1 %v5940_v7, %s5607_s21 }
  0x97   : > { %726 = vrot.lane.b32.xlu0 %v5943_v8, %s5607_s21 }
  0x9d   : > { %736 = vrot.lane.b32.xlu2 %v5952_v9, %s5607_s21 }
  0x9e   : > { %734 = vrot.lane.b32.xlu1 %v5955_v10, %s5607_s21 }
  0x9f   : > { %732 = vrot.lane.b32.xlu0 %v5958_v11, %s5607_s21 }
  0xa5   : > { %774 = vrot.lane.b32.xlu2 %v5910_v1, %s5608_s22 }
  0xa6   : > { %772 = vrot.lane.b32.xlu1 %v5928_v5, %s5608_s22 }
  0xa7   : > { %770 = vrot.lane.b32.xlu0 %v5913_v2, %s5608_s22 }
  0xad   : > { %780 = vrot.lane.b32.xlu2 %v5922_v3, %s5608_s22 }
  0xae   : > { %778 = vrot.lane.b32.xlu1 %v5907_v0, %s5608_s22 }
  0xaf   : > { %776 = vrot.lane.b32.xlu0 %v5925_v4, %s5608_s22 }
  0xb5   : > { %786 = vrot.lane.b32.xlu2 %v5937_v6, %s5608_s22 }
  0xb6   : > { %784 = vrot.lane.b32.xlu1 %v5940_v7, %s5608_s22 }
  0xb7   : > { %782 = vrot.lane.b32.xlu0 %v5943_v8, %s5608_s22 }
  0xbd   : > { %792 = vrot.lane.b32.xlu2 %v5952_v9, %s5608_s22 }
  0xbe   : > { %790 = vrot.lane.b32.xlu1 %v5955_v10, %s5608_s22 }
  0xbf   : > { %788 = vrot.lane.b32.xlu0 %v5958_v11, %s5608_s22  ;;  %v6014_v12 = vpop.permute.xlu2 %665 }
  0xc0   : > { %11817 = vst [vmem:[#allocation27_spill] sm:$0xff] %v6014_v12 }
  0xc5   : > { %830 = vrot.lane.b32.xlu2 %v5910_v1, %s5609_s26 }
  0xc6   : > { %828 = vrot.lane.b32.xlu1 %v5928_v5, %s5609_s26 }
  0xc7   : > { %826 = vrot.lane.b32.xlu0 %v5913_v2, %s5609_s26  ;;  %v6022_v13 = vpop.permute.xlu2 %667 }
  0xc8   : > { %11818 = vst [vmem:[#allocation28_spill] sm:$0xff] %v6022_v13 }
  0xcd   : > { %836 = vrot.lane.b32.xlu2 %v5922_v3, %s5609_s26 }
  0xce   : > { %834 = vrot.lane.b32.xlu1 %v5907_v0, %s5609_s26 }
  0xcf   : > { %832 = vrot.lane.b32.xlu0 %v5925_v4, %s5609_s26  ;;  %v6030_v14 = vpop.permute.xlu2 %673 }
  0xd0   : > { %11819 = vst [vmem:[#allocation29_spill] sm:$0xff] %v6030_v14 }
  0xd5   : > { %842 = vrot.lane.b32.xlu2 %v5937_v6, %s5609_s26 }
  0xd6   : > { %840 = vrot.lane.b32.xlu1 %v5940_v7, %s5609_s26 }
  0xd7   : > { %838 = vrot.lane.b32.xlu0 %v5943_v8, %s5609_s26  ;;  %v6038_v15 = vpop.permute.xlu2 %679 }
  0xd8   : > { %11820 = vst [vmem:[#allocation30_spill] sm:$0xff] %v6038_v15  ;;  %v6040_v16 = vpop.permute.xlu1 %661 }
  0xd9   : > { %11821 = vst [vmem:[#allocation31_spill] sm:$0xff] %v6040_v16  ;;  %v6042_v17 = vpop.permute.xlu0 %657 }
  0xda   : > { %11822 = vst [vmem:[#allocation32_spill] sm:$0xff] %v6042_v17 }
  0xdd   : > { %848 = vrot.lane.b32.xlu2 %v5952_v9, %s5609_s26 }
  0xde   : > { %846 = vrot.lane.b32.xlu1 %v5955_v10, %s5609_s26 }
  0xdf   : > { %844 = vrot.lane.b32.xlu0 %v5958_v11, %s5609_s26  ;;  %v6050_v18 = vpop.permute.xlu2 %718 }
  0xe0   : > { %11823 = vst [vmem:[#allocation33_spill] sm:$0xff] %v6050_v18  ;;  %v6052_v19 = vpop.permute.xlu1 %663 }
  0xe1   : > { %11824 = vst [vmem:[#allocation34_spill] sm:$0xff] %v6052_v19  ;;  %v6054_v20 = vpop.permute.xlu0 %659 }
  0xe2   : > { %11825 = vst [vmem:[#allocation35_spill] sm:$0xff] %v6054_v20 }
  0xe5   : > { %886 = vrot.lane.b32.xlu2 %v5910_v1, %s5610_s27 }
  0xe6   : > { %884 = vrot.lane.b32.xlu1 %v5928_v5, %s5610_s27 }
  0xe7   : > { %882 = vrot.lane.b32.xlu0 %v5913_v2, %s5610_s27  ;;  %v6062_v21 = vpop.permute.xlu2 %724 }
  0xe8   : > { %11826 = vst [vmem:[#allocation36_spill] sm:$0xff] %v6062_v21  ;;  %v6064_v22 = vpop.permute.xlu1 %671 }
  0xe9   : > { %11827 = vst [vmem:[#allocation37_spill] sm:$0xff] %v6064_v22  ;;  %v6066_v23 = vpop.permute.xlu0 %669 }
  0xea   : > { %11828 = vst [vmem:[#allocation38_spill] sm:$0xff] %v6066_v23 }
  0xed   : > { %892 = vrot.lane.b32.xlu2 %v5922_v3, %s5610_s27 }
  0xee   : > { %890 = vrot.lane.b32.xlu1 %v5907_v0, %s5610_s27 }
  0xef   : > { %888 = vrot.lane.b32.xlu0 %v5925_v4, %s5610_s27  ;;  %v6074_v24 = vpop.permute.xlu2 %730 }
  0xf0   : > { %11829 = vst [vmem:[#allocation39_spill] sm:$0xff] %v6074_v24  ;;  %v6076_v25 = vpop.permute.xlu1 %677 }
  0xf1   : > { %11830 = vst [vmem:[#allocation40_spill] sm:$0xff] %v6076_v25  ;;  %v6078_v26 = vpop.permute.xlu0 %675 }
  0xf2   : > { %11831 = vst [vmem:[#allocation41_spill] sm:$0xff] %v6078_v26 }
  0xf5   : > { %898 = vrot.lane.b32.xlu2 %v5937_v6, %s5610_s27 }
  0xf6   : > { %896 = vrot.lane.b32.xlu1 %v5940_v7, %s5610_s27 }
  0xf7   : > { %894 = vrot.lane.b32.xlu0 %v5943_v8, %s5610_s27  ;;  %v6086_v27 = vpop.permute.xlu2 %736 }
  0xf8   : > { %v6088_v28 = vpop.permute.xlu1 %716 }
  0xf9   : > { %11832 = vst [vmem:[#allocation42_spill] sm:$0xff] %v6088_v28  ;;  %v6090_v29 = vpop.permute.xlu0 %714 }
  0xfa   : > { %11833 = vst [vmem:[#allocation43_spill] sm:$0xff] %v6090_v29 }
  0xfd   : > { %904 = vrot.lane.b32.xlu2 %v5952_v9, %s5610_s27 }
  0xfe   : > { %902 = vrot.lane.b32.xlu1 %v5955_v10, %s5610_s27 }
  0xff   : > { %900 = vrot.lane.b32.xlu0 %v5958_v11, %s5610_s27  ;;  %v6098_v30 = vpop.permute.xlu2 %774 }
 0x100   : > { %v6100_v31 = vpop.permute.xlu1 %722 }
 0x101   : > { %11834 = vst [vmem:[#allocation44_spill] sm:$0xff] %v6100_v31  ;;  %v6102_v32 = vpop.permute.xlu0 %720 }
 0x102   : > { %11835 = vst [vmem:[#allocation45_spill] sm:$0xff] %v6102_v32 }
 0x105   : > { %942 = vrot.lane.b32.xlu2 %v5910_v1, %s5611_s6 }
 0x106   : > { %940 = vrot.lane.b32.xlu1 %v5928_v5, %s5611_s6 }
 0x107   : > { %938 = vrot.lane.b32.xlu0 %v5913_v2, %s5611_s6  ;;  %v6110_v33 = vpop.permute.xlu2 %780 }
 0x108   : > { %v6112_v34 = vpop.permute.xlu1 %728 }
 0x109   : > { %11836 = vst [vmem:[#allocation46_spill] sm:$0xff] %v6112_v34  ;;  %v6114_v35 = vpop.permute.xlu0 %726 }
 0x10a   : > { %11837 = vst [vmem:[#allocation47_spill] sm:$0xff] %v6114_v35 }
 0x10d   : > { %948 = vrot.lane.b32.xlu2 %v5922_v3, %s5611_s6 }
 0x10e   : > { %946 = vrot.lane.b32.xlu1 %v5907_v0, %s5611_s6 }
 0x10f   : > { %944 = vrot.lane.b32.xlu0 %v5925_v4, %s5611_s6  ;;  %v6122_v36 = vpop.permute.xlu2 %786 }
 0x110   : > { %v6124_v37 = vpop.permute.xlu1 %734  ;;  %v803_v56 = vsel %vm794_vm0, %v6122_v36, %v6098_v30 }
 0x111   : > { %11838 = vst [vmem:[#allocation48_spill] sm:$0xff] %v6124_v37  ;;  %v6126_v38 = vpop.permute.xlu0 %732  ;;  %v818_v59 = vmul.f32 %v6182_v54, %v803_v56 }
 0x112   : > { %11839 = vst [vmem:[#allocation49_spill] sm:$0xff] %v6126_v38 }
 0x115   : > { %954 = vrot.lane.b32.xlu2 %v5937_v6, %s5611_s6 }
 0x116   : > { %952 = vrot.lane.b32.xlu1 %v5940_v7, %s5611_s6 }
 0x117   : > { %950 = vrot.lane.b32.xlu0 %v5943_v8, %s5611_s6  ;;  %v6134_v39 = vpop.permute.xlu2 %792 }
 0x118   : > { %v6136_v40 = vpop.permute.xlu1 %772 }
 0x119   : > { %v6138_v41 = vpop.permute.xlu0 %770 }
 0x11a   : > { %11840 = vst [vmem:[#allocation50_spill] sm:$0xff] %v6138_v41 }
 0x11d   : > { %960 = vrot.lane.b32.xlu2 %v5952_v9, %s5611_s6 }
 0x11e   : > { %958 = vrot.lane.b32.xlu1 %v5955_v10, %s5611_s6 }
 0x11f   : > { %956 = vrot.lane.b32.xlu0 %v5958_v11, %s5611_s6  ;;  %v6146_v42 = vpop.permute.xlu2 %830 }
 0x120   : > { %v6148_v43 = vpop.permute.xlu1 %778 }
 0x121   : > { %v6150_v44 = vpop.permute.xlu0 %776 }
 0x125   : > { %998 = vrot.lane.b32.xlu2 %v5910_v1, %s5612_s18 }
 0x126   : > { %996 = vrot.lane.b32.xlu1 %v5928_v5, %s5612_s18 }
 0x127   : > { %994 = vrot.lane.b32.xlu0 %v5913_v2, %s5612_s18  ;;  %v6158_v45 = vpop.permute.xlu2 %836 }
 0x128   : > { %v6160_v46 = vpop.permute.xlu1 %784 }
 0x129   : > { %v6162_v47 = vpop.permute.xlu0 %782  ;;  %v802_v58 = vsel %vm794_vm0, %v6160_v46, %v6136_v40 }
 0x12a   : > { %v801_v60 = vsel %vm794_vm0, %v6162_v47, %v6138_v41  ;;  %v816_v62 = vmul.f32 %v6182_v54, %v802_v58  ;;  %v749_v58 = vsel %vm738_vm1, %v6124_v37, %v6100_v31 }
 0x12d   : > { %1004 = vrot.lane.b32.xlu2 %v5922_v3, %s5612_s18 }
 0x12e   : > { %1002 = vrot.lane.b32.xlu1 %v5907_v0, %s5612_s18 }
 0x12f   : > { %1000 = vrot.lane.b32.xlu0 %v5925_v4, %s5612_s18  ;;  %v6175_v51 = vpop.permute.xlu2 %842 }
 0x130   : > { %v6177_v52 = vpop.permute.xlu1 %790 }
 0x131   : > { %v6179_v53 = vpop.permute.xlu0 %788 }
 0x132   : > { %v804_v55 = vsel %vm794_vm0, %v6179_v53, %v6150_v44 }
 0x133   : > { %v820_v57 = vmul.f32 %v6182_v54, %v804_v55  ;;  %v750_v55 = vsel %vm738_vm1, %v6086_v27, %v6062_v21 }
 0x135   : > { %1113 = vmatpush.msra.mxu0 %v820_v57  ;;  %1010 = vrot.lane.b32.xlu2 %v5937_v6, %s5612_s18  ;;  %v814_v57 = vmul.f32 %v6182_v54, %v801_v60  ;;  %v747_v60 = vsel %vm738_vm1, %v6074_v24, %v6050_v18 }
 0x136   : > { %1008 = vrot.lane.b32.xlu1 %v5940_v7, %s5612_s18 }
 0x137   : > { %1006 = vrot.lane.b32.xlu0 %v5943_v8, %s5612_s18  ;;  %1114 = vmatpush.msra.mxu0 %v818_v59  ;;  %v6212_v63 = vpop.permute.xlu2 %848  ;;  %v6224_v59 = vperm.slane %v6206_v61, 0 }
 0x138   : > { %v6214_v48 = vpop.permute.xlu1 %828 }
 0x139   : > { %1115 = vmatpush.msra.mxu0 %v816_v62  ;;  %v6220_v56 = vpop.permute.xlu0 %826  ;;  %11843 = vst [vmem:[#allocation53_spill] sm:$0xff] %v6224_v59  ;;  %v768_v41 = vmul.f32 %v6224_v59, %v750_v55  ;;  %v748_v62 = vsel %vm738_vm1, %v6126_v38, %v6102_v32  ;;  %v766_v21 = vmul.f32 %v6224_v59, %v749_v58 }
 0x13a   : > { %v764_v55 = vmul.f32 %v6224_v59, %v748_v62  ;;  %v746_v58 = vsel %vm738_vm1, %v6112_v34, %v6088_v28  ;;  %v762_v18 = vmul.f32 %v6224_v59, %v747_v60  ;;  %v6262_v62 = vld [vmem:[#allocation5] ss:$8 sm:$0x3] }
 0x13b   : > { %1116 = vmatpush.msra.mxu0 %v814_v57  ;;  %11844 = vst [vmem:[#allocation54_spill] sm:$0xff] %v6262_v62  ;;  %v760_v24 = vmul.f32 %v6224_v59, %v746_v58  ;;  %v6272_v28 = vperm.slane %v6262_v62, 0 }
 0x13d   : > { %1117 = vmatpush.msra.mxu0 %v768_v41  ;;  %1016 = vrot.lane.b32.xlu2 %v5952_v9, %s5612_s18  ;;  %11845 = vst [vmem:[#allocation55_spill] sm:$0xff] %v6272_v28 }
 0x13e   : > { %1014 = vrot.lane.b32.xlu1 %v5955_v10, %s5612_s18 }
 0x13f   : > { %1012 = vrot.lane.b32.xlu0 %v5958_v11, %s5612_s18  ;;  %1118 = vmatpush.msra.mxu0 %v766_v21  ;;  %v6247_v41 = vpop.permute.xlu2 %886  ;;  %v745_v21 = vsel %vm738_vm1, %v6114_v35, %v6090_v29 }
 0x140   : > { %v6249_v57 = vpop.permute.xlu1 %834  ;;  %v758_v60 = vmul.f32 %v6224_v59, %v745_v21  ;;  %v693_v59 = vsel %vm683_vm2, %v6078_v26, %v6052_v19 }
 0x141   : > { %1119 = vmatpush.msra.mxu0 %v764_v55  ;;  %v6255_v32 = vpop.permute.xlu0 %832  ;;  %v695_v55 = vsel %vm683_vm2, %v6038_v15, %v6022_v13 }
 0x143   : > { %1120 = vmatpush.msra.mxu0 %v762_v18  ;;  %v694_v18 = vsel %vm683_vm2, %v6076_v25, %v6014_v12  ;;  %v691_v25 = vsel %vm683_vm2, %v6064_v22, %v6054_v20 }
 0x144   : > { %v710_v12 = vmul.f32 %v6272_v28, %v694_v18 }
 0x145   : > { %1121 = vmatpush.msra.mxu0 %v760_v24  ;;  %1054 = vrot.lane.b32.xlu2 %v5910_v1, %s5613_s25  ;;  %v712_v24 = vmul.f32 %v6272_v28, %v695_v55  ;;  %v708_v55 = vmul.f32 %v6272_v28, %v693_v59  ;;  %v704_v59 = vmul.f32 %v6272_v28, %v691_v25 }
 0x146   : > { %1052 = vrot.lane.b32.xlu1 %v5928_v5, %s5613_s25 }
 0x147   : > { %1050 = vrot.lane.b32.xlu0 %v5913_v2, %s5613_s25  ;;  %1122 = vmatpush.msra.mxu0 %v758_v60  ;;  %v6285_v58 = vpop.permute.xlu2 %892  ;;  %v692_v60 = vsel %vm683_vm2, %v6030_v14, %v6040_v16 }
 0x148   : > { %v6287_v21 = vpop.permute.xlu1 %840 }
 0x149   : > { %1123 = vmatpush.msra.mxu0 %v712_v24  ;;  %v6293_v62 = vpop.permute.xlu0 %838  ;;  %v706_v24 = vmul.f32 %v6272_v28, %v692_v60 }
 0x14b   : > { %1124 = vmatpush.msra.mxu0 %v710_v12  ;;  %v690_v12 = vsel %vm683_vm2, %v6066_v23, %v6042_v17 }
 0x14c   : > { %v702_v20 = vmul.f32 %v6272_v28, %v690_v12  ;;  %v920_v28 = vld [vmem:[#allocation5 + $0x5] ss:$8 sm:$0x3] }
 0x14d   : > { %1125 = vmatpush.msra.mxu0 %v708_v55  ;;  %1060 = vrot.lane.b32.xlu2 %v5922_v3, %s5613_s25  ;;  %v6353_v16 = vperm.slane %v920_v28, 0  ;;  %v6355_v14 = vperm.slane %v920_v28, 1 }
 0x14e   : > { %1058 = vrot.lane.b32.xlu1 %v5907_v0, %s5613_s25 }
 0x14f   : > { %1056 = vrot.lane.b32.xlu0 %v5925_v4, %s5613_s25  ;;  %1126 = vmatpush.msra.mxu0 %v706_v24  ;;  %v6317_v18 = vpop.permute.xlu2 %898  ;;  %11846 = vst [vmem:[#allocation56_spill] sm:$0xff] %v6353_v16 }
 0x150   : > { %v6319_v60 = vpop.permute.xlu1 %846  ;;  %11847 = vst [vmem:[#allocation57_spill] sm:$0xff] %v6355_v14 }
 0x151   : > { %1127 = vmatpush.msra.mxu0 %v704_v59  ;;  %v6321_v55 = vpop.permute.xlu0 %844  ;;  %v861_v38 = vsel %vm850_vm4, %v6319_v60, %v6249_v57 }
 0x153   : > { %1128 = vmatpush.msra.mxu0 %v702_v20 }
 0x155   : > { %1066 = vrot.lane.b32.xlu2 %v5937_v6, %s5613_s25 }
 0x156   : > { %1064 = vrot.lane.b32.xlu1 %v5940_v7, %s5613_s25 }
 0x157   : > { %1062 = vrot.lane.b32.xlu0 %v5943_v8, %s5613_s25  ;;  %v6330_v25 = vpop.permute.xlu2 %904 }
 0x158   : > { %v885_v24 = vpop.permute.xlu1 %884 }
 0x159   : > { %v883_v17 = vpop.permute.xlu0 %882 }
 0x15d   : > { %1070 = vrot.lane.b32.xlu2 %v5955_v10, %s5613_s25 }
 0x15e   : > { %1072 = vrot.lane.b32.xlu1 %v5952_v9, %s5613_s25 }
 0x15f   : > { %1068 = vrot.lane.b32.xlu0 %v5958_v11, %s5613_s25  ;;  %v6338_v20 = vpop.permute.xlu2 %942 }
 0x160   : > { %v6340_v12 = vpop.permute.xlu1 %890 }
 0x161   : > { %v6342_v59 = vpop.permute.xlu0 %888 }
 0x165   : > { %1422 = vrot.lane.b32.xlu2 %v5925_v4, %s5614_s9 }
 0x166   : > { %1307 = vrot.lane.b32.xlu1 %v5928_v5, %s5615_s28 }
 0x167   : > { %1305 = vrot.lane.b32.xlu0 %v5913_v2, %s5615_s28  ;;  %v6350_v23 = vpop.permute.xlu2 %948 }
 0x168   : > { %v897_v22 = vpop.permute.xlu1 %896 }
 0x169   : > { %v895_v19 = vpop.permute.xlu0 %894  ;;  %v908_v26 = vsel %vm906_vm3, %v885_v24, %v897_v22  ;;  %v914_v13 = vsel %vm906_vm3, %v897_v22, %v885_v24  ;;  %v856_v24 = vsel %vm850_vm4, %v6158_v45, %v6212_v63 }
 0x16a   : > { %v928_v15 = vmul.f32 %v6353_v16, %v908_v26  ;;  %v929_v29 = vmul.f32 %v6355_v14, %v914_v13  ;;  %v907_v35 = vsel %vm906_vm3, %v883_v17, %v895_v19  ;;  %v913_v34 = vsel %vm906_vm3, %v895_v19, %v883_v17  ;;  %v864_v19 = vld [vmem:[#allocation5 + $0x3] ss:$8 sm:$0x3] }
 0x16b   : > { %v926_v28 = vmul.f32 %v6353_v16, %v907_v35  ;;  %v927_v22 = vmul.f32 %v6355_v14, %v913_v34  ;;  %v862_v35 = vsel %vm850_vm4, %v6212_v63, %v6158_v45  ;;  %v855_v63 = vsel %vm850_vm4, %v6249_v57, %v6319_v60 }
 0x16c   : > { %1136 = vmatpush.msra.mxu1 %v928_v15  ;;  %1228 = vmatpush.msrb.mxu0 %v929_v29 }
 0x16d   : > { %1542 = vrot.lane.b32.xlu2 %v5940_v7, %s5616_s1 }
 0x16e   : > { %1530 = vrot.lane.b32.xlu1 %v5928_v5, %s5616_s1  ;;  %1137 = vmatpush.msra.mxu1 %v926_v28  ;;  %v6412_v28 = vperm.slane %v864_v19, 0 }
 0x16f   : > { %1434 = vrot.lane.b32.xlu0 %v5958_v11, %s5614_s9  ;;  %1229 = vmatpush.msrb.mxu0 %v927_v22  ;;  %v6375_v13 = vpop.permute.xlu2 %954  ;;  %v6414_v22 = vperm.slane %v864_v19, 1  ;;  %v860_v19 = vsel %vm850_vm4, %v6321_v55, %v6255_v32 }
 0x170   : > { %v6377_v15 = vpop.permute.xlu1 %902  ;;  %1138 = vmatpush.msra.mxu1 %v5922_v3  ;;  %11848 = vst [vmem:[#allocation58_spill] sm:$0xff] %v6412_v28  ;;  %v880_v31 = vmul.f32 %v6412_v28, %v862_v35  ;;  %v878_v37 = vmul.f32 %v6412_v28, %v861_v38  ;;  %v854_v35 = vsel %vm850_vm4, %v6255_v32, %v6321_v55 }
 0x171   : > { %v6380_v17 = vpop.permute.xlu0 %900  ;;  %1230 = vmatpush.msrb.mxu0 %v5952_v9  ;;  %11849 = vst [vmem:[#allocation59_spill] sm:$0xff] %v6414_v22  ;;  %v881_v45 = vmul.f32 %v6414_v22, %v856_v24  ;;  %v879_v57 = vmul.f32 %v6414_v22, %v855_v63  ;;  %v876_v60 = vmul.f32 %v6412_v28, %v860_v19 }
 0x172   : > { %1139 = vmatpush.msra.mxu1 %v5907_v0  ;;  %v853_v55 = vsel %vm850_vm4, %v6146_v42, %v6175_v51  ;;  %v877_v24 = vmul.f32 %v6414_v22, %v854_v35  ;;  %v852_v19 = vsel %vm850_vm4, %v6214_v48, %v6287_v21  ;;  %v857_v35 = vsel %vm850_vm4, %v6293_v62, %v6220_v56 }
 0x173   : > { %1231 = vmatpush.msrb.mxu0 %v5955_v10 }
 0x174   : > { %1140 = vmatpush.msra.mxu1 %v5925_v4 }
 0x175   : > { %1232 = vmatpush.msrb.mxu0 %v5958_v11  ;;  %1528 = vrot.lane.b32.xlu2 %v5913_v2, %s5616_s1 }
 0x176   : > { %1432 = vrot.lane.b32.xlu1 %v5937_v6, %s5614_s9  ;;  %1141 = vmatpush.msra.mxu1 %v5910_v1 }
 0x177   : > { %1420 = vrot.lane.b32.xlu0 %v5910_v1, %s5614_s9  ;;  %1233 = vmatpush.msrb.mxu0 %v5937_v6  ;;  %v6395_v26 = vpop.permute.xlu2 %960 }
 0x178   : > { %v6397_v29 = vpop.permute.xlu1 %940  ;;  %1142 = vmatpush.msra.mxu1 %v5928_v5 }
 0x179   : > { %v6400_v34 = vpop.permute.xlu0 %938  ;;  %1234 = vmatpush.msrb.mxu0 %v5940_v7 }
 0x17a   : > { %1143 = vmatpush.msra.mxu1 %v5913_v2 }
 0x17b   : > { %1235 = vmatpush.msrb.mxu0 %v5943_v8 }
 0x17c   : > { %1144 = vmatpush.msra.mxu1 %v880_v31  ;;  %v859_v31 = vsel %vm850_vm4, %v6175_v51, %v6146_v42  ;;  %v875_v42 = vmul.f32 %v6414_v22, %v853_v55 }
 0x17d   : > { %1236 = vmatpush.msrb.mxu0 %v881_v45  ;;  %1430 = vrot.lane.b32.xlu2 %v5940_v7, %s5614_s9  ;;  %v874_v63 = vmul.f32 %v6412_v28, %v859_v31  ;;  %v873_v31 = vmul.f32 %v6414_v22, %v852_v19 }
 0x17e   : > { %1418 = vrot.lane.b32.xlu1 %v5928_v5, %s5614_s9  ;;  %1145 = vmatpush.msra.mxu1 %v878_v37  ;;  %v858_v37 = vsel %vm850_vm4, %v6287_v21, %v6214_v48  ;;  %v806_v48 = vsel %vm794_vm0, %v6134_v39, %v6110_v33  ;;  %v800_v21 = vsel %vm794_vm0, %v6110_v33, %v6134_v39 }
 0x17f   : > { %1540 = vrot.lane.b32.xlu0 %v5943_v8, %s5616_s1  ;;  %v6448_v38 = vpop.permute.xlu2 %998  ;;  %1237 = vmatpush.msrb.mxu0 %v879_v57  ;;  %v872_v51 = vmul.f32 %v6412_v28, %v858_v37  ;;  %v851_v57 = vsel %vm850_vm4, %v6220_v56, %v6293_v62  ;;  %v870_v56 = vmul.f32 %v6412_v28, %v857_v35  ;;  %v1032_v35 = vld [vmem:[#allocation5 + $0x7] ss:$8 sm:$0x3] }
 0x180   : > { %v6450_v32 = vpop.permute.xlu1 %946  ;;  %1146 = vmatpush.msra.mxu1 %v876_v60  ;;  %v871_v62 = vmul.f32 %v6414_v22, %v851_v57  ;;  %v6493_v60 = vperm.slane %v6170_v50, 1  ;;  %v805_v39 = vsel %vm794_vm0, %v6177_v52, %v6148_v43  ;;  %v799_v50 = vsel %vm794_vm0, %v6148_v43, %v6177_v52 }
 0x181   : > { %v6458_v45 = vpop.permute.xlu0 %944  ;;  %1238 = vmatpush.msrb.mxu0 %v877_v24  ;;  %v824_v24 = vmul.f32 %v6182_v54, %v806_v48  ;;  %v822_v19 = vmul.f32 %v6182_v54, %v805_v39  ;;  %v6532_v48 = vperm.slane %v1032_v35, 0 }
 0x182   : > { %1147 = vmatpush.msra.mxu1 %v874_v63  ;;  %11850 = vst [vmem:[#allocation60_spill] sm:$0xff] %v6493_v60  ;;  %v825_v37 = vmul.f32 %v6493_v60, %v800_v21  ;;  %v6534_v21 = vperm.slane %v1032_v35, 1 }
 0x183   : > { %1239 = vmatpush.msrb.mxu0 %v875_v42  ;;  %v823_v42 = vmul.f32 %v6493_v60, %v799_v50  ;;  %11851 = vst [vmem:[#allocation61_spill] sm:$0xff] %v6532_v48 }
 0x184   : > { %1148 = vmatpush.msra.mxu1 %v872_v51  ;;  %11852 = vst [vmem:[#allocation62_spill] sm:$0xff] %v6534_v21 }
 0x185   : > { %1240 = vmatpush.msrb.mxu0 %v873_v31  ;;  %1370 = vrot.lane.b32.xlu2 %v5922_v3, %s5617_s17 }
 0x186   : > { %1428 = vrot.lane.b32.xlu1 %v5943_v8, %s5614_s9  ;;  %1149 = vmatpush.msra.mxu1 %v870_v56 }
 0x187   : > { %1416 = vrot.lane.b32.xlu0 %v5913_v2, %s5614_s9  ;;  %v1005_v55 = vpop.permute.xlu2 %1004  ;;  %1241 = vmatpush.msrb.mxu0 %v871_v62 }
 0x188   : > { %v6499_v33 = vpop.permute.xlu1 %952  ;;  %1150 = vmatpush.msra.mxu1 %v824_v24 }
 0x189   : > { %v6511_v63 = vpop.permute.xlu0 %950  ;;  %1242 = vmatpush.msrb.mxu0 %v825_v37 }
 0x18a   : > { %1151 = vmatpush.msra.mxu1 %v822_v19 }
 0x18b   : > { %1243 = vmatpush.msrb.mxu0 %v823_v42 }
 0x18d   : > { %1662 = vrot.lane.b32.xlu2 %v5952_v9, %s5618_s24 }
 0x18e   : > { %1650 = vrot.lane.b32.xlu1 %v5922_v3, %s5618_s24 }
 0x18f   : > { %1382 = vrot.lane.b32.xlu0 %v5952_v9, %s5617_s17  ;;  %v1011_v43 = vpop.permute.xlu2 %1010 }
 0x190   : > { %v6521_v52 = vpop.permute.xlu1 %958  ;;  %v1021_v28 = vsel %vm1018_vm5, %v6448_v38, %v1011_v43 }
 0x191   : > { %v6523_v51 = vpop.permute.xlu0 %956 }
 0x195   : > { %1648 = vrot.lane.b32.xlu2 %v5907_v0, %s5618_s24 }
 0x196   : > { %1380 = vrot.lane.b32.xlu1 %v5955_v10, %s5617_s17 }
 0x197   : > { %1368 = vrot.lane.b32.xlu0 %v5907_v0, %s5617_s17  ;;  %v1017_v57 = vpop.permute.xlu2 %1016 }
 0x198   : > { %v997_v31 = vpop.permute.xlu1 %996  ;;  %v1024_v62 = vsel %vm1018_vm5, %v1005_v55, %v1017_v57  ;;  %v1030_v39 = vsel %vm1018_vm5, %v1017_v57, %v1005_v55 }
 0x199   : > { %v995_v56 = vpop.permute.xlu0 %994  ;;  %v1048_v50 = vmul.f32 %v6532_v48, %v1024_v62  ;;  %v1049_v24 = vmul.f32 %v6534_v21, %v1030_v39 }
 0x19b   : > { %1159 = vmatpush.msra.mxu2 %v1048_v50  ;;  %1251 = vmatpush.msrb.mxu1 %v1049_v24 }
 0x19d   : > { %1378 = vrot.lane.b32.xlu2 %v5958_v11, %s5617_s17 }
 0x19e   : > { %1366 = vrot.lane.b32.xlu1 %v5925_v4, %s5617_s17 }
 0x19f   : > { %1660 = vrot.lane.b32.xlu0 %v5955_v10, %s5618_s24  ;;  %v6548_v37 = vpop.permute.xlu2 %1054 }
 0x1a0   : > { %v1003_v19 = vpop.permute.xlu1 %1002 }
 0x1a1   : > { %v1001_v42 = vpop.permute.xlu0 %1000 }
 0x1a5   : > { %1364 = vrot.lane.b32.xlu2 %v5910_v1, %s5617_s17 }
 0x1a6   : > { %1658 = vrot.lane.b32.xlu1 %v5958_v11, %s5618_s24 }
 0x1a7   : > { %1646 = vrot.lane.b32.xlu0 %v5925_v4, %s5618_s24  ;;  %v6556_v55 = vpop.permute.xlu2 %1060 }
 0x1a8   : > { %v1009_v35 = vpop.permute.xlu1 %1008 }
 0x1a9   : > { %v1007_v57 = vpop.permute.xlu0 %1006 }
 0x1ad   : > { %1656 = vrot.lane.b32.xlu2 %v5937_v6, %s5618_s24 }
 0x1ae   : > { %1644 = vrot.lane.b32.xlu1 %v5910_v1, %s5618_s24 }
 0x1af   : > { %1376 = vrot.lane.b32.xlu0 %v5937_v6, %s5617_s17  ;;  %v6564_v11 = vpop.permute.xlu2 %1066 }
 0x1b0   : > { %v1015_v62 = vpop.permute.xlu1 %1014 }
 0x1b1   : > { %v1013_v39 = vpop.permute.xlu0 %1012  ;;  %v1023_v4 = vsel %vm1018_vm5, %v1003_v19, %v1015_v62  ;;  %v1029_v50 = vsel %vm1018_vm5, %v1015_v62, %v1003_v19  ;;  %v1027_v62 = vsel %vm1018_vm5, %v1011_v43, %v6448_v38  ;;  %v1019_v43 = vsel %vm1018_vm5, %v995_v56, %v1007_v57 }
 0x1b2   : > { %v1046_v24 = vmul.f32 %v6532_v48, %v1023_v4  ;;  %v1047_v1 = vmul.f32 %v6534_v21, %v1029_v50  ;;  %v1022_v22 = vsel %vm1018_vm5, %v1001_v42, %v1013_v39  ;;  %v1028_v6 = vsel %vm1018_vm5, %v1013_v39, %v1001_v42 }
 0x1b3   : > { %v1044_v54 = vmul.f32 %v6532_v48, %v1022_v22  ;;  %v1045_v19 = vmul.f32 %v6534_v21, %v1028_v6  ;;  %v1020_v4 = vsel %vm1018_vm5, %v997_v31, %v1009_v35  ;;  %v1026_v42 = vsel %vm1018_vm5, %v1009_v35, %v997_v31 }
 0x1b4   : > { %1160 = vmatpush.msra.mxu2 %v1046_v24  ;;  %1252 = vmatpush.msrb.mxu1 %v1047_v1  ;;  %v1042_v39 = vmul.f32 %v6532_v48, %v1021_v28  ;;  %v1043_v22 = vmul.f32 %v6534_v21, %v1027_v62  ;;  %v1025_v31 = vsel %vm1018_vm5, %v1007_v57, %v995_v56  ;;  %v976_v28 = vld [vmem:[#allocation5 + $0x6] ss:$8 sm:$0x3] }
 0x1b5   : > { %1482 = vrot.lane.b32.xlu2 %v5922_v3, %s5619_s3  ;;  %v1040_v3 = vmul.f32 %v6532_v48, %v1020_v4  ;;  %v1041_v50 = vmul.f32 %v6534_v21, %v1026_v42  ;;  %v968_v24 = vsel %vm962_vm6, %v6350_v23, %v6395_v26  ;;  %v1038_v56 = vmul.f32 %v6532_v48, %v1019_v43 }
 0x1b6   : > { %1161 = vmatpush.msra.mxu2 %v1044_v54  ;;  %1253 = vmatpush.msrb.mxu1 %v1045_v19  ;;  %v1039_v57 = vmul.f32 %v6534_v21, %v1025_v31  ;;  %v6615_v1 = vperm.slane %v976_v28, 0  ;;  %v974_v6 = vsel %vm962_vm6, %v6395_v26, %v6350_v23  ;;  %v967_v19 = vsel %vm962_vm6, %v6450_v32, %v6521_v52 }
 0x1b7   : > { %1374 = vrot.lane.b32.xlu1 %v5940_v7, %s5617_s17  ;;  %1362 = vrot.lane.b32.xlu0 %v5928_v5, %s5617_s17  ;;  %v6596_v54 = vpop.permute.xlu2 %1070  ;;  %v6626_v4 = vperm.slane %v976_v28, 1  ;;  %v973_v42 = vsel %vm962_vm6, %v6521_v52, %v6450_v32  ;;  %v966_v23 = vsel %vm962_vm6, %v6458_v45, %v6523_v51  ;;  %v971_v28 = vsel %vm962_vm6, %v6375_v13, %v6338_v20 }
 0x1b8   : > { %v6598_v38 = vpop.permute.xlu1 %1052  ;;  %1162 = vmatpush.msra.mxu2 %v1042_v39  ;;  %1254 = vmatpush.msrb.mxu1 %v1043_v22  ;;  %11853 = vst [vmem:[#allocation63_spill] sm:$0xff] %v6615_v1  ;;  %v992_v62 = vmul.f32 %v6615_v1, %v968_v24  ;;  %v990_v39 = vmul.f32 %v6615_v1, %v967_v19 }
 0x1b9   : > { %v6604_v35 = vpop.permute.xlu0 %1050  ;;  %11854 = vst [vmem:[#allocation64_spill] sm:$0xff] %v6626_v4  ;;  %v993_v26 = vmul.f32 %v6626_v4, %v974_v6  ;;  %v965_v22 = vsel %vm962_vm6, %v6338_v20, %v6375_v13  ;;  %v988_v31 = vmul.f32 %v6615_v1, %v966_v23  ;;  %v987_v20 = vmul.f32 %v6626_v4, %v971_v28 }
 0x1ba   : > { %1163 = vmatpush.msra.mxu2 %v1040_v3  ;;  %1255 = vmatpush.msrb.mxu1 %v1041_v50  ;;  %v964_v3 = vsel %vm962_vm6, %v6397_v29, %v6499_v33  ;;  %v970_v50 = vsel %vm962_vm6, %v6499_v33, %v6397_v29  ;;  %v963_v13 = vsel %vm962_vm6, %v6400_v34, %v6511_v63 }
 0x1bb   : > { %v969_v24 = vsel %vm962_vm6, %v6511_v63, %v6400_v34  ;;  %v984_v29 = vmul.f32 %v6615_v1, %v964_v3  ;;  %v985_v33 = vmul.f32 %v6626_v4, %v970_v50  ;;  %v912_v34 = vsel %vm906_vm3, %v6285_v58, %v6330_v25 }
 0x1bc   : > { %1164 = vmatpush.msra.mxu2 %v1038_v56  ;;  %1256 = vmatpush.msrb.mxu1 %v1039_v57  ;;  %v918_v63 = vsel %vm906_vm3, %v6330_v25, %v6285_v58  ;;  %v983_v6 = vmul.f32 %v6626_v4, %v969_v24  ;;  %v936_v58 = vmul.f32 %v6353_v16, %v912_v34 }
 0x1bd   : > { %1654 = vrot.lane.b32.xlu2 %v5940_v7, %s5618_s24  ;;  %v991_v7 = vmul.f32 %v6626_v4, %v973_v42  ;;  %v917_v42 = vsel %vm906_vm3, %v6377_v15, %v6340_v12  ;;  %v937_v25 = vmul.f32 %v6355_v14, %v918_v63  ;;  %v910_v23 = vsel %vm906_vm3, %v6342_v59, %v6380_v17  ;;  %v6791_v63 = vld [vmem:[%s5880_s11 + $0x30] sm:$0xff] }
 0x1be   : > { %1165 = vmatpush.msra.mxu2 %v992_v62  ;;  %1257 = vmatpush.msrb.mxu1 %v993_v26  ;;  %v911_v62 = vsel %vm906_vm3, %v6340_v12, %v6377_v15  ;;  %v909_v26 = vsel %vm906_vm3, %v6247_v41, %v6317_v18  ;;  %v935_v15 = vmul.f32 %v6355_v14, %v917_v42 }
 0x1bf   : > { %1642 = vrot.lane.b32.xlu1 %v5928_v5, %s5618_s24  ;;  %1494 = vrot.lane.b32.xlu0 %v5952_v9, %s5619_s3  ;;  %v6644_v32 = vpop.permute.xlu2 %1422  ;;  %v972_v5 = vsel %vm962_vm6, %v6523_v51, %v6458_v45  ;;  %v986_v51 = vmul.f32 %v6615_v1, %v965_v22  ;;  %v934_v12 = vmul.f32 %v6353_v16, %v911_v62  ;;  %v6803_v62 = vld [vmem:[%s5880_s11 + $0x50] sm:$0xff] }
 0x1c0   : > { %v6646_v52 = vpop.permute.xlu1 %1058  ;;  %1166 = vmatpush.msra.mxu2 %v990_v39  ;;  %1258 = vmatpush.msrb.mxu1 %v991_v7  ;;  %v989_v45 = vmul.f32 %v6626_v4, %v972_v5  ;;  %v916_v39 = vsel %vm906_vm3, %v6380_v17, %v6342_v59  ;;  %v1088_v5 = vld [vmem:[#allocation5 + $0x10] ss:$8 sm:$0x3]  ;;  %v932_v22 = vmul.f32 %v6353_v16, %v910_v23 }
 0x1c1   : > { %v6657_v43 = vpop.permute.xlu0 %1056  ;;  %v915_v7 = vsel %vm906_vm3, %v6317_v18, %v6247_v41  ;;  %v933_v59 = vmul.f32 %v6355_v14, %v916_v39  ;;  %v6743_v28 = vperm.slane %v1088_v5, 0  ;;  %v1083_v34 = vsel %vm1074_vm7, %v6564_v11, %v6548_v37 }
 0x1c2   : > { %1167 = vmatpush.msra.mxu2 %v988_v31  ;;  %1259 = vmatpush.msrb.mxu1 %v989_v45  ;;  %v930_v31 = vmul.f32 %v6353_v16, %v909_v26  ;;  %v6745_v45 = vperm.slane %v1088_v5, 1  ;;  %v6822_v26 = vld [vmem:[#allocation7 + $0x5] ss:$8 sm:$0x3] }
 0x1c3   : > { %11856 = vst [vmem:[#allocation66_spill] sm:$0xff] %v6743_v28  ;;  %v6836_v39 = vperm.slane %v6822_v26, 0 }
 0x1c4   : > { %1168 = vmatpush.msra.mxu2 %v986_v51  ;;  %1260 = vmatpush.msrb.mxu1 %v987_v20  ;;  %11857 = vst [vmem:[#allocation67_spill] sm:$0xff] %v6745_v45  ;;  %v1079_v51 = vsel %vm1074_vm7, %v6646_v52, %v6596_v54  ;;  %v1085_v20 = vsel %vm1074_vm7, %v6596_v54, %v6646_v52 }
 0x1c5   : > { %1480 = vrot.lane.b32.xlu2 %v5907_v0, %s5619_s3  ;;  %v982_v0 = vmul.f32 %v6615_v1, %v963_v13  ;;  %v1102_v13 = vmul.f32 %v6743_v28, %v1079_v51  ;;  %v1077_v52 = vsel %vm1074_vm7, %v6548_v37, %v6564_v11  ;;  %11859 = vst [vmem:[#allocation69_spill] sm:$0xff] %v6822_v26 }
 0x1c6   : > { %1169 = vmatpush.msra.mxu2 %v984_v29  ;;  %1261 = vmatpush.msrb.mxu1 %v985_v33  ;;  %v1103_v29 = vmul.f32 %v6745_v45, %v1085_v20  ;;  %v1098_v11 = vmul.f32 %v6743_v28, %v1077_v52  ;;  %11860 = vst [vmem:[#allocation70_spill] sm:$0xff] %v6836_v39  ;;  %v11866_v20 = vld [vmem:[#allocation44_spill] sm:$0xff]  ;;  %v11867_v52 = vld [vmem:[#allocation49_spill] sm:$0xff] }
 0x1c7   : > { %1372 = vrot.lane.b32.xlu1 %v5943_v8, %s5617_s17  ;;  %1360 = vrot.lane.b32.xlu0 %v5913_v2, %s5617_s17  ;;  %v6691_v56 = vpop.permute.xlu2 %1542  ;;  %s5620_s17 = smov 98  }
 0x1c8   : > { %11855 = vst [vmem:[#allocation65_spill] sm:$0xff] %v6691_v56  ;;  %v6693_v57 = vpop.permute.xlu1 %1064  ;;  %1170 = vmatpush.msra.mxu2 %v982_v0  ;;  %1262 = vmatpush.msrb.mxu1 %v983_v6 }
 0x1c9   : > { %v6705_v19 = vpop.permute.xlu0 %1062  ;;  %v1076_v6 = vsel %vm1074_vm7, %v6598_v38, %v6693_v57  ;;  %v1082_v42 = vsel %vm1074_vm7, %v6693_v57, %v6598_v38 }
 0x1ca   : > { %1171 = vmatpush.msra.mxu2 %v936_v58  ;;  %1263 = vmatpush.msrb.mxu1 %v937_v25  ;;  %v1099_v58 = vmul.f32 %v6745_v45, %v1083_v34  ;;  %v1075_v25 = vsel %vm1074_vm7, %v6604_v35, %v6705_v19  ;;  %v1096_v23 = vmul.f32 %v6743_v28, %v1076_v6 }
 0x1cb   : > { %v1081_v38 = vsel %vm1074_vm7, %v6705_v19, %v6604_v35  ;;  %v1094_v57 = vmul.f32 %v6743_v28, %v1075_v25  ;;  %v797_v35 = vsel %vm794_vm0, %v6098_v30, %v6122_v36  ;;  %v6846_v19 = vld [vmem:[%s5880_s11 + $0x58] sm:$0xff] }
 0x1cc   : > { %1172 = vmatpush.msra.mxu2 %v934_v12  ;;  %1264 = vmatpush.msrb.mxu1 %v935_v15  ;;  %v1097_v12 = vmul.f32 %v6745_v45, %v1082_v42  ;;  %v798_v15 = vsel %vm794_vm0, %v6150_v44, %v6179_v53  ;;  %v1095_v5 = vmul.f32 %v6745_v45, %v1081_v38  ;;  %v11870_v42 = vld [vmem:[#allocation33_spill] sm:$0xff] }
 0x1cd   : > { %1652 = vrot.lane.b32.xlu2 %v5943_v8, %s5618_s24  ;;  %v821_v44 = vmul.f32 %v6493_v60, %v798_v15  ;;  %v11873_v15 = vld [vmem:[#allocation47_spill] sm:$0xff] }
 0x1ce   : > { %1173 = vmatpush.msra.mxu2 %v932_v22  ;;  %1265 = vmatpush.msrb.mxu1 %v933_v59  ;;  %v6854_v22 = vld [vmem:[%s5880_s11 + $0x38] sm:$0xff] }
 0x1cf   : > { %1640 = vrot.lane.b32.xlu1 %v5913_v2, %s5618_s24  ;;  %1492 = vrot.lane.b32.xlu0 %v5955_v10, %s5619_s3  ;;  %v6749_v41 = vpop.permute.xlu2 %1528  ;;  %v931_v10 = vmul.f32 %v6355_v14, %v915_v7  ;;  %v796_v7 = vsel %vm794_vm0, %v6136_v40, %v6160_v46  ;;  %v6871_v59 = vld [vmem:[%s11490_s4 + $0x18] sm:$0xff]  ;;  %v11863_v46 = vld [vmem:[#allocation36_spill] sm:$0xff]  ;;  %s5624_s24 = smov 125  }
 0x1d0   : > { %v1073_v17 = vpop.permute.xlu1 %1072  ;;  %11858 = vst [vmem:[#allocation68_spill] sm:$0xff] %v6749_v41  ;;  %1174 = vmatpush.msra.mxu2 %v930_v31  ;;  %v817_v40 = vmul.f32 %v6493_v60, %v796_v7  ;;  %v744_v51 = vsel %vm738_vm1, %v11863_v46, %v6086_v27  ;;  %v6903_v27 = vld [vmem:[%s5880_s11 + $0x48] sm:$0xff] }
 0x1d1   : > { %v1069_v18 = vpop.permute.xlu0 %1068  ;;  %v1080_v2 = vsel %vm1074_vm7, %v6556_v55, %v1073_v17  ;;  %v1086_v8 = vsel %vm1074_vm7, %v1073_v17, %v6556_v55  ;;  %v651_v55 = vld [vmem:[%s11490_s4 + $0x10] sm:$0xff]  ;;  %1266 = vmatpush.msrb.mxu1 %v931_v10 }
 0x1d2   : > { %v1104_v3 = vmul.f32 %v6743_v28, %v1080_v2  ;;  %v1105_v50 = vmul.f32 %v6745_v45, %v1086_v8  ;;  %v1078_v24 = vsel %vm1074_vm7, %v6657_v43, %v1069_v18  ;;  %v1084_v54 = vsel %vm1074_vm7, %v1069_v18, %v6657_v43  ;;  %1175 = vmatmul.f32.vlgmr.msra.gmra.mxu2 %v651_v55  ;;  %v11862_v2 = vld [vmem:[#allocation50_spill] sm:$0xff] }
 0x1d3   : > { %v1100_v33 = vmul.f32 %v6743_v28, %v1078_v24  ;;  %v1101_v0 = vmul.f32 %v6745_v45, %v1084_v54  ;;  %v819_v18 = vmul.f32 %v6493_v60, %v797_v35  ;;  %v795_v8 = vsel %vm794_vm0, %v11862_v2, %v6162_v47  ;;  %v6895_v47 = vld [vmem:[%s11490_s4] sm:$0xff] }
 0x1d4   : > { %1192 = vmatpush.msra.mxu3 %v1104_v3  ;;  %1284 = vmatpush.msrb.mxu2 %v1105_v50  ;;  %v815_v10 = vmul.f32 %v6493_v60, %v795_v8  ;;  %v6890_v3 = vperm.slane %v6206_v61, 1  ;;  %v11865_v50 = vld [vmem:[#allocation48_spill] sm:$0xff]  ;;  %v6911_v24 = vld [vmem:[%s5880_s11 + $0x20] sm:$0xff] }
 0x1d5   : > { %1478 = vrot.lane.b32.xlu2 %v6791_v63, %s5619_s3  ;;  %v743_v55 = vsel %vm738_vm1, %v11866_v20, %v11865_v50  ;;  %1129 = vmatmul.f32.vlgmr.msra.gmra.mxu0 %v6895_v47  ;;  %v11880_v20 = vld [vmem:[#allocation40_spill] sm:$0xff] }
 0x1d6   : > { %1193 = vmatpush.msra.mxu3 %v1102_v13  ;;  %1285 = vmatpush.msrb.mxu2 %v1103_v29  ;;  %11864 = vst [vmem:[#allocation50_spill] sm:$0xff] %v6890_v3  ;;  %v769_v61 = vmul.f32 %v6890_v3, %v744_v51  ;;  %v6916_v29 = vld [vmem:[%s5880_s11 + $0x40] sm:$0xff]  ;;  %v767_v6 = vmul.f32 %v6890_v3, %v743_v55  ;;  %v11878_v51 = vld [vmem:[#allocation54_spill] sm:$0xff] }
 0x1d7   : > { %1327 = vrot.lane.b32.xlu1 %v5952_v9, %s5615_s28  ;;  %1315 = vrot.lane.b32.xlu0 %v6803_v62, %s5615_s28  ;;  %v6807_v9 = vpop.permute.xlu2 %1430  ;;  %v11881_v55 = vld [vmem:[#allocation27_spill] sm:$0xff] }
 0x1d8   : > { %v6795_v43 = vpop.permute.xlu1 %1307  ;;  %1194 = vmatpush.msra.mxu3 %v1100_v33  ;;  %1286 = vmatpush.msrb.mxu2 %v1101_v0  ;;  %v11868_v33 = vld [vmem:[#allocation45_spill] sm:$0xff] }
 0x1d9   : > { %v6809_v37 = vpop.permute.xlu0 %1305  ;;  %v742_v34 = vsel %vm738_vm1, %v11868_v33, %v11867_v52 }
 0x1da   : > { %1195 = vmatpush.msra.mxu3 %v1098_v11  ;;  %1287 = vmatpush.msrb.mxu2 %v1099_v58  ;;  %v11869_v11 = vld [vmem:[#allocation39_spill] sm:$0xff]  ;;  %v765_v25 = vmul.f32 %v6890_v3, %v742_v34  ;;  %v11882_v34 = vld [vmem:[#allocation41_spill] sm:$0xff] }
 0x1db   : > { %v741_v58 = vsel %vm738_vm1, %v11870_v42, %v11869_v11 }
 0x1dc   : > { %1196 = vmatpush.msra.mxu3 %v1096_v23  ;;  %1288 = vmatpush.msrb.mxu2 %v1097_v12  ;;  %v11871_v23 = vld [vmem:[#allocation46_spill] sm:$0xff] }
 0x1dd   : > { %1606 = vrot.lane.b32.xlu2 %v6846_v19, %s5620_s17  ;;  %v11872_v12 = vld [vmem:[#allocation42_spill] sm:$0xff] }
 0x1de   : > { %1197 = vmatpush.msra.mxu3 %v1094_v57  ;;  %1289 = vmatpush.msrb.mxu2 %v1095_v5  ;;  %v740_v38 = vsel %vm738_vm1, %v11872_v12, %v11871_v23  ;;  %v763_v57 = vmul.f32 %v6890_v3, %v741_v58  ;;  %v11874_v5 = vld [vmem:[#allocation43_spill] sm:$0xff]  ;;  %v11884_v58 = vld [vmem:[#allocation29_spill] sm:$0xff] }
 0x1df   : > { %1594 = vrot.lane.b32.xlu1 %v6803_v62, %s5620_s17  ;;  %1490 = vrot.lane.b32.xlu0 %v6854_v22, %s5619_s3  ;;  %v6874_v31 = vpop.permute.xlu2 %1370  ;;  %v739_v35 = vsel %vm738_vm1, %v11874_v5, %v11873_v15  ;;  %v11886_v5 = vld [vmem:[#allocation37_spill] sm:$0xff] }
 0x1e0   : > { %v6851_v53 = vpop.permute.xlu1 %1530  ;;  %1205 = vmatpush.msrb.mxu3 %v821_v44  ;;  %v761_v44 = vmul.f32 %v6890_v3, %v740_v38  ;;  %v759_v46 = vmul.f32 %v6890_v3, %v739_v35  ;;  %v6989_v38 = vld [vmem:[#allocation7 + $0x2] ss:$8 sm:$0x3] }
 0x1e1   : > { %11861 = vst [vmem:[#allocation71_spill] sm:$0xff] %v6851_v53  ;;  %v1554_v30 = vsel %vm1552_vm8, %v6851_v53, %v6691_v56  ;;  %v6862_v36 = vpop.permute.xlu0 %1434  ;;  %4941 = vmatmul.msk.f32.vlgmr.msra.gmra.mxu3 %vm1106_vm9, %v6871_v59  ;;  %v11887_v35 = vld [vmem:[#allocation35_spill] sm:$0xff] }
 0x1e2   : > { %v1574_v17 = vmul.f32 %v6836_v39, %v1554_v30  ;;  %1206 = vmatpush.msrb.mxu3 %v819_v18  ;;  %v6949_v30 = vld [vmem:[%s5880_s11 + $0x28] sm:$0xff] }
 0x1e3   : > { %v11876_v18 = vld [vmem:[#allocation28_spill] sm:$0xff] }
 0x1e4   : > { %1781 = vmatpush.msra.mxu2 %v1574_v17  ;;  %1207 = vmatpush.msrb.mxu3 %v817_v40  ;;  %v11875_v17 = vld [vmem:[#allocation30_spill] sm:$0xff] }
 0x1e5   : > { %1476 = vrot.lane.b32.xlu2 %v6911_v24, %s5619_s3  ;;  %v689_v2 = vsel %vm683_vm2, %v11876_v18, %v11875_v17 }
 0x1e6   : > { %1208 = vmatpush.msrb.mxu3 %v815_v10  ;;  %v6965_v10 = vperm.slane %v11878_v51, 1  ;;  %v11889_v51 = vld [vmem:[#allocation32_spill] sm:$0xff] }
 0x1e7   : > { %1325 = vrot.lane.b32.xlu1 %v6903_v27, %s5615_s28  ;;  %1313 = vrot.lane.b32.xlu0 %v6916_v29, %s5615_s28  ;;  %v6926_v0 = vpop.permute.xlu2 %1662 }
 0x1e8   : > { %v6908_v13 = vpop.permute.xlu1 %1432  ;;  %1209 = vmatpush.msrb.mxu3 %v769_v61  ;;  %11879 = vst [vmem:[#allocation48_spill] sm:$0xff] %v6965_v10  ;;  %v688_v61 = vsel %vm683_vm2, %v11881_v55, %v11880_v20  ;;  %v713_v52 = vmul.f32 %v6965_v10, %v689_v2  ;;  %v7016_v20 = vperm.slane %v6989_v38, 0 }
 0x1e9   : > { %v6920_v54 = vpop.permute.xlu0 %1420  ;;  %v711_v42 = vmul.f32 %v6965_v10, %v688_v61  ;;  %v7019_v61 = vld [vmem:[#allocation7 + $0x7] ss:$8 sm:$0x3] }
 0x1ea   : > { %1210 = vmatpush.msrb.mxu3 %v767_v6  ;;  %v11883_v6 = vld [vmem:[#allocation34_spill] sm:$0xff] }
 0x1eb   : > { %v687_v11 = vsel %vm683_vm2, %v11883_v6, %v11882_v34  ;;  %v1449_v6 = vsel %vm1440_vm10, %v6908_v13, %v6920_v54 }
 0x1ec   : > { %1211 = vmatpush.msrb.mxu3 %v765_v25  ;;  %v11885_v25 = vld [vmem:[#allocation31_spill] sm:$0xff]  ;;  %v709_v12 = vmul.f32 %v6965_v10, %v687_v11  ;;  %v7034_v11 = vperm.slane %v7019_v61, 0 }
 0x1ed   : > { %1604 = vrot.lane.b32.xlu2 %v6903_v27, %s5620_s17  ;;  %v686_v23 = vsel %vm683_vm2, %v11885_v25, %v11884_v58 }
 0x1ee   : > { %1212 = vmatpush.msrb.mxu3 %v763_v57  ;;  %v6992_v57 = vld [vmem:[%s5880_s11 + $0x10] sm:$0xff]  ;;  %v707_v2 = vmul.f32 %v6965_v10, %v686_v23  ;;  %v7049_v23 = vld [vmem:[%s5880_s11 + $0x18] sm:$0xff] }
 0x1ef   : > { %1592 = vrot.lane.b32.xlu1 %v6916_v29, %s5620_s17  ;;  %1488 = vrot.lane.b32.xlu0 %v6949_v30, %s5619_s3  ;;  %v6959_v8 = vpop.permute.xlu2 %1648 }
 0x1f0   : > { %v6953_v7 = vpop.permute.xlu1 %1418  ;;  %1213 = vmatpush.msrb.mxu3 %v761_v44  ;;  %v685_v44 = vsel %vm683_vm2, %v11887_v35, %v11886_v5 }
 0x1f1   : > { %v6961_v40 = vpop.permute.xlu0 %1540  ;;  %v705_v55 = vmul.f32 %v6965_v10, %v685_v44  ;;  %v1448_v25 = vsel %vm1440_vm10, %v6807_v9, %v6953_v7  ;;  %v1464_v44 = vmul.f32 %v7016_v20, %v1449_v6 }
 0x1f2   : > { %11877 = vst [vmem:[#allocation36_spill] sm:$0xff] %v6961_v40  ;;  %v1553_v50 = vsel %vm1552_vm8, %v6749_v41, %v6961_v40  ;;  %1214 = vmatpush.msrb.mxu3 %v759_v46  ;;  %v11888_v46 = vld [vmem:[#allocation38_spill] sm:$0xff]  ;;  %v7273_v41 = vld [vmem:[#allocation7 + $0x6] ss:$8 sm:$0x3] }
 0x1f3   : > { %v1572_v33 = vmul.f32 %v6836_v39, %v1553_v50  ;;  %v684_v50 = vsel %vm683_vm2, %v11889_v51, %v11888_v46  ;;  %11899 = vst [vmem:[#allocation30_spill] sm:$0xff] %v7273_v41 }
 0x1f4   : > { %1215 = vmatpush.msrb.mxu3 %v713_v52  ;;  %v1450_v52 = vsel %vm1440_vm10, %v6862_v36, %v6644_v32  ;;  %v703_v34 = vmul.f32 %v6965_v10, %v684_v50 }
 0x1f5   : > { %1782 = vmatpush.msra.mxu2 %v1572_v33  ;;  %1474 = vrot.lane.b32.xlu2 %v6992_v57, %s5619_s3  ;;  %v1398_v33 = vld [vmem:[#allocation7 + $0x1] ss:$8 sm:$0x3] }
 0x1f6   : > { %1216 = vmatpush.msrb.mxu3 %v711_v42  ;;  %v1466_v42 = vmul.f32 %v7016_v20, %v1450_v52  ;;  %v7040_v58 = vperm.slane %v1398_v33, 1  ;;  %v7072_v52 = vperm.slane %v1398_v33, 0 }
 0x1f7   : > { %1323 = vrot.lane.b32.xlu1 %v6854_v22, %s5615_s28  ;;  %1311 = vrot.lane.b32.xlu0 %v6791_v63, %s5615_s28  ;;  %v7005_v17 = vpop.permute.xlu2 %1378 }
 0x1f8   : > { %v6998_v15 = vpop.permute.xlu1 %1428  ;;  %1217 = vmatpush.msrb.mxu3 %v709_v12  ;;  %1783 = vmatpush.msra.mxu2 %v6803_v62 }
 0x1f9   : > { %v7007_v18 = vpop.permute.xlu0 %1416 }
 0x1fa   : > { %1218 = vmatpush.msrb.mxu3 %v707_v2  ;;  %1784 = vmatpush.msra.mxu2 %v6916_v29  ;;  %v1447_v46 = vsel %vm1440_vm10, %v6998_v15, %v7007_v18 }
 0x1fc   : > { %1219 = vmatpush.msrb.mxu3 %v705_v55  ;;  %1785 = vmatpush.msra.mxu2 %v6791_v63  ;;  %v1462_v55 = vmul.f32 %v7016_v20, %v1448_v25 }
 0x1fd   : > { %1602 = vrot.lane.b32.xlu2 %v6854_v22, %s5620_s17 }
 0x1fe   : > { %1220 = vmatpush.msrb.mxu3 %v703_v34  ;;  %1786 = vmatpush.msra.mxu2 %v6911_v24 }
 0x1ff   : > { %1590 = vrot.lane.b32.xlu1 %v6791_v63, %s5620_s17  ;;  %1486 = vrot.lane.b32.xlu0 %v7049_v23, %s5619_s3  ;;  %v7059_v35 = vpop.permute.xlu2 %1364 }
 0x200   : > { %v7053_v12 = vpop.permute.xlu1 %1650  ;;  %1758 = vmatpush.msra.mxu3 %v1466_v42  ;;  %1787 = vmatpush.msra.mxu2 %v6992_v57  ;;  %v1460_v42 = vmul.f32 %v7016_v20, %v1447_v46 }
 0x201   : > { %v1670_v5 = vsel %vm1664_vm11, %v7053_v12, %v6926_v0  ;;  %v1383_v2 = vpop.permute.xlu0 %1382 }
 0x202   : > { %v1694_v51 = vmul.f32 %v7034_v11, %v1670_v5  ;;  %v1390_v50 = vsel %vm1384_vm12, %v6874_v31, %v1383_v2  ;;  %1759 = vmatpush.msra.mxu3 %v1464_v44  ;;  %v1396_v6 = vsel %vm1384_vm12, %v1383_v2, %v6874_v31  ;;  %v7083_v5 = vld [vmem:[%s5880_s11] sm:$0xff] }
 0x203   : > { %v7076_v34 = vmul.f32 %v7040_v58, %v1390_v50  ;;  %1788 = vmatpush.msra.mxu2 %v7083_v5  ;;  %v1414_v33 = vmul.f32 %v7072_v52, %v1396_v6 }
 0x204   : > { %1804 = vmatpush.msra.mxu0 %v1694_v51  ;;  %1760 = vmatpush.msra.mxu3 %v1462_v55  ;;  %v7108_v55 = vld [vmem:[%s5880_s11 + $0x8] sm:$0xff] }
 0x205   : > { %1472 = vrot.lane.b32.xlu2 %v7083_v5, %s5619_s3 }
 0x206   : > { %1761 = vmatpush.msra.mxu3 %v1460_v42 }
 0x207   : > { %1321 = vrot.lane.b32.xlu1 %v6949_v30, %s5615_s28  ;;  %1309 = vrot.lane.b32.xlu0 %v6911_v24, %s5615_s28  ;;  %v7093_v25 = vpop.permute.xlu2 %1656 }
 0x208   : > { %v1381_v31 = vpop.permute.xlu1 %1380  ;;  %1762 = vmatpush.msra.mxu3 %v1414_v33 }
 0x209   : > { %v1369_v44 = vpop.permute.xlu0 %1368 }
 0x20a   : > { %v1389_v2 = vsel %vm1384_vm12, %v1369_v44, %v1381_v31  ;;  %v1395_v46 = vsel %vm1384_vm12, %v1381_v31, %v1369_v44 }
 0x20b   : > { %v1412_v51 = vmul.f32 %v7072_v52, %v1395_v46  ;;  %v7101_v50 = vmul.f32 %v7040_v58, %v1389_v2 }
 0x20d   : > { %1763 = vmatpush.msra.mxu3 %v1412_v51  ;;  %1600 = vrot.lane.b32.xlu2 %v6949_v30, %s5620_s17 }
 0x20f   : > { %1588 = vrot.lane.b32.xlu1 %v6911_v24, %s5620_s17  ;;  %1484 = vrot.lane.b32.xlu0 %v7108_v55, %s5619_s3  ;;  %v7118_v31 = vpop.permute.xlu2 %1482  ;;  %s5629_s3 = smov 3  }
 0x210   : > { %v1367_v6 = vpop.permute.xlu1 %1366  ;;  %11890 = vst [vmem:[#allocation44_spill] sm:$0xff] %v7118_v31 }
 0x211   : > { %v1388_v42 = vsel %vm1384_vm12, %v1367_v6, %v7005_v17  ;;  %v1394_v33 = vsel %vm1384_vm12, %v7005_v17, %v1367_v6  ;;  %v7120_v44 = vpop.permute.xlu0 %1660 }
 0x212   : > { %v1669_v2 = vsel %vm1664_vm11, %v6959_v8, %v7120_v44  ;;  %v1410_v46 = vmul.f32 %v7072_v52, %v1394_v33  ;;  %v7128_v51 = vmul.f32 %v7040_v58, %v1388_v42 }
 0x213   : > { %v1692_v10 = vmul.f32 %v7034_v11, %v1669_v2 }
 0x214   : > { %1764 = vmatpush.msra.mxu3 %v1410_v46 }
 0x215   : > { %1805 = vmatpush.msra.mxu0 %v1692_v10  ;;  %1438 = vrot.lane.b32.xlu2 %v6846_v19, %s5614_s9 }
 0x217   : > { %1426 = vrot.lane.b32.xlu1 %v6803_v62, %s5614_s9  ;;  %1319 = vrot.lane.b32.xlu0 %v7049_v23, %s5615_s28  ;;  %v7139_v6 = vpop.permute.xlu2 %1654 }
 0x218   : > { %v7137_v17 = vpop.permute.xlu1 %1658 }
 0x219   : > { %v7141_v33 = vpop.permute.xlu0 %1646 }
 0x21a   : > { %v1668_v10 = vsel %vm1664_vm11, %v7141_v33, %v7137_v17 }
 0x21b   : > { %v1690_v42 = vmul.f32 %v7034_v11, %v1668_v10 }
 0x21d   : > { %1806 = vmatpush.msra.mxu0 %v1690_v42  ;;  %1317 = vrot.lane.b32.xlu2 %v7108_v55, %s5615_s28  ;;  %s5622_s28 = smov 45  }
 0x21f   : > { %1598 = vrot.lane.b32.xlu1 %v7049_v23, %s5620_s17  ;;  %1586 = vrot.lane.b32.xlu0 %v6992_v57, %s5620_s17  ;;  %v7160_v3 = vpop.permute.xlu2 %1480 }
 0x220   : > { %v7154_v2 = vpop.permute.xlu1 %1644  ;;  %11891 = vst [vmem:[#allocation49_spill] sm:$0xff] %v7160_v3 }
 0x221   : > { %v1667_v46 = vsel %vm1664_vm11, %v7154_v2, %v7093_v25  ;;  %v1377_v10 = vpop.permute.xlu0 %1376 }
 0x222   : > { %v1387_v42 = vsel %vm1384_vm12, %v7059_v35, %v1377_v10  ;;  %v1393_v60 = vsel %vm1384_vm12, %v1377_v10, %v7059_v35  ;;  %v1688_v45 = vmul.f32 %v7034_v11, %v1667_v46 }
 0x223   : > { %v1408_v14 = vmul.f32 %v7072_v52, %v1393_v60  ;;  %v7171_v4 = vmul.f32 %v7040_v58, %v1387_v42  ;;  %v7189_v42 = vld [vmem:[#allocation7 + $0x3] ss:$8 sm:$0x3] }
 0x224   : > { %1807 = vmatpush.msra.mxu0 %v1688_v45  ;;  %11892 = vst [vmem:[#allocation45_spill] sm:$0xff] %v7189_v42  ;;  %v7195_v28 = vperm.slane %v7189_v42, 0 }
 0x225   : > { %1765 = vmatpush.msra.mxu3 %v1408_v14  ;;  %1584 = vrot.lane.b32.xlu2 %v7083_v5, %s5620_s17 }
 0x227   : > { %1436 = vrot.lane.b32.xlu1 %v6903_v27, %s5614_s9  ;;  %1424 = vrot.lane.b32.xlu0 %v6916_v29, %s5614_s9  ;;  %v7179_v35 = vpop.permute.xlu2 %1652  ;;  %s5621_s9 = smov 94  }
 0x229   : > { %v1375_v21 = vpop.permute.xlu1 %1374  ;;  %v1363_v46 = vpop.permute.xlu0 %1362 }
 0x22a   : > { %v1386_v60 = vsel %vm1384_vm12, %v1363_v46, %v1375_v21  ;;  %v1392_v45 = vsel %vm1384_vm12, %v1375_v21, %v1363_v46 }
 0x22b   : > { %v1406_v14 = vmul.f32 %v7072_v52, %v1392_v45  ;;  %v7187_v10 = vmul.f32 %v7040_v58, %v1386_v60 }
 0x22d   : > { %1766 = vmatpush.msra.mxu3 %v1406_v14  ;;  %1718 = vrot.lane.b32.xlu2 %v6846_v19, %s5621_s9 }
 0x22f   : > { %1706 = vrot.lane.b32.xlu1 %v6803_v62, %s5621_s9  ;;  %1596 = vrot.lane.b32.xlu0 %v7108_v55, %s5620_s17  ;;  %v7207_v60 = vpop.permute.xlu2 %1478  ;;  %s5627_s17 = smov 77  }
 0x230   : > { %11893 = vst [vmem:[#allocation39_spill] sm:$0xff] %v7207_v60 }
 0x231   : > { %v7199_v21 = vpop.permute.xlu1 %1642  ;;  %v7209_v45 = vpop.permute.xlu0 %1494 }
 0x232   : > { %v1666_v46 = vsel %vm1664_vm11, %v7199_v21, %v7139_v6  ;;  %11894 = vst [vmem:[#allocation33_spill] sm:$0xff] %v7209_v45  ;;  %v1508_v14 = vsel %vm1496_vm13, %v7209_v45, %v7118_v31 }
 0x233   : > { %v1686_v1 = vmul.f32 %v7034_v11, %v1666_v46  ;;  %v1526_v48 = vmul.f32 %v7195_v28, %v1508_v14 }
 0x235   : > { %1808 = vmatpush.msra.mxu0 %v1686_v1  ;;  %1789 = vmatpush.msra.mxu2 %v1526_v48 }
 0x236   : > { %1704 = vrot.lane.b32.xlu2 %v6916_v29, %s5621_s9 }
 0x237   : > { %1550 = vrot.lane.b32.xlu1 %v6846_v19, %s5616_s1  ;;  %1538 = vrot.lane.b32.xlu0 %v6803_v62, %s5616_s1  ;;  %v7223_v42 = vpop.permute.xlu2 %1606 }
 0x238   : > { %11895 = vst [vmem:[#allocation46_spill] sm:$0xff] %v7223_v42 }
 0x239   : > { %v1373_v16 = vpop.permute.xlu1 %1372  ;;  %v1361_v40 = vpop.permute.xlu0 %1360 }
 0x23a   : > { %v1385_v46 = vsel %vm1384_vm12, %v1361_v40, %v1373_v16  ;;  %v1391_v1 = vsel %vm1384_vm12, %v1373_v16, %v1361_v40  ;;  %vm1720_vm12 = vcmp.lt.s32.totalorder %v6164_v49, 94 }
 0x23b   : > { %v1404_v48 = vmul.f32 %v7072_v52, %v1391_v1  ;;  %v7231_v14 = vmul.f32 %v7040_v58, %v1385_v46 }
 0x23d   : > { %1767 = vmatpush.msra.mxu3 %v1404_v48  ;;  %v1342_v48 = vld [vmem:[#allocation7] ss:$8 sm:$0x3] }
 0x23e   : > { %2079 = vrot.lane.b32.xlu2 %v6854_v22, %s5622_s28  ;;  %v7260_v45 = vperm.slane %v1342_v48, 0 }
 0x23f   : > { %2067 = vrot.lane.b32.xlu1 %v6791_v63, %s5622_s28  ;;  %1716 = vrot.lane.b32.xlu0 %v6903_v27, %s5621_s9  ;;  %v7245_v40 = vpop.permute.xlu2 %1476 }
 0x240   : > { %11896 = vst [vmem:[#allocation42_spill] sm:$0xff] %v7245_v40 }
 0x241   : > { %v7239_v31 = vpop.permute.xlu1 %1640  ;;  %v7247_v58 = vpop.permute.xlu0 %1492 }
 0x242   : > { %v1665_v16 = vsel %vm1664_vm11, %v7239_v31, %v7179_v35  ;;  %11897 = vst [vmem:[#allocation47_spill] sm:$0xff] %v7247_v58  ;;  %v1507_v52 = vsel %vm1496_vm13, %v7247_v58, %v7160_v3  ;;  %v7264_v3 = vperm.slane %v1342_v48, 1  ;;  %v7282_v48 = vperm.slane %v7273_v41, 0 }
 0x243   : > { %v1684_v46 = vmul.f32 %v7034_v11, %v1665_v16  ;;  %v1524_v1 = vmul.f32 %v7195_v28, %v1507_v52 }
 0x245   : > { %1809 = vmatpush.msra.mxu0 %v1684_v46  ;;  %1790 = vmatpush.msra.mxu2 %v1524_v1 }
 0x246   : > { %1702 = vrot.lane.b32.xlu2 %v6791_v63, %s5621_s9 }
 0x247   : > { %1548 = vrot.lane.b32.xlu1 %v6903_v27, %s5616_s1  ;;  %1536 = vrot.lane.b32.xlu0 %v6916_v29, %s5616_s1  ;;  %v7266_v16 = vpop.permute.xlu2 %1604 }
 0x248   : > { %11898 = vst [vmem:[#allocation43_spill] sm:$0xff] %v7266_v16 }
 0x249   : > { %v1328_v11 = vpop.permute.xlu1 %1327  ;;  %v1316_v52 = vpop.permute.xlu0 %1315 }
 0x24a   : > { %v1335_v46 = vsel %vm1329_vm14, %v1316_v52, %v1328_v11  ;;  %v1341_v1 = vsel %vm1329_vm14, %v1328_v11, %v1316_v52 }
 0x24b   : > { %v1358_v58 = vmul.f32 %v7260_v45, %v1341_v1  ;;  %v7276_v56 = vmul.f32 %v7264_v3, %v1335_v46 }
 0x24d   : > { %11900 = vst [vmem:[#allocation28_spill] sm:$0xff] %v7276_v56  ;;  %1768 = vmatpush.msra.mxu3 %v1358_v58 }
 0x24e   : > { %2077 = vrot.lane.b32.xlu2 %v6949_v30, %s5622_s28 }
 0x24f   : > { %2065 = vrot.lane.b32.xlu1 %v6911_v24, %s5622_s28  ;;  %1714 = vrot.lane.b32.xlu0 %v6854_v22, %s5621_s9  ;;  %v7294_v52 = vpop.permute.xlu2 %1474 }
 0x250   : > { %11902 = vst [vmem:[#allocation40_spill] sm:$0xff] %v7294_v52 }
 0x251   : > { %v7288_v11 = vpop.permute.xlu1 %1594  ;;  %v7296_v46 = vpop.permute.xlu0 %1490 }
 0x252   : > { %11901 = vst [vmem:[#allocation54_spill] sm:$0xff] %v7288_v11  ;;  %v1614_v58 = vsel %vm1608_vm15, %v7288_v11, %v7223_v42  ;;  %v1506_v1 = vsel %vm1496_vm13, %v7296_v46, %v7207_v60 }
 0x253   : > { %11903 = vst [vmem:[#allocation27_spill] sm:$0xff] %v7296_v46  ;;  %v1638_v53 = vmul.f32 %v7282_v48, %v1614_v58  ;;  %v1522_v26 = vmul.f32 %v7195_v28, %v1506_v1 }
 0x255   : > { %1810 = vmatpush.msra.mxu0 %v1638_v53  ;;  %1791 = vmatpush.msra.mxu2 %v1522_v26 }
 0x256   : > { %1700 = vrot.lane.b32.xlu2 %v6911_v24, %s5621_s9 }
 0x257   : > { %1546 = vrot.lane.b32.xlu1 %v6854_v22, %s5616_s1  ;;  %1534 = vrot.lane.b32.xlu0 %v6791_v63, %s5616_s1  ;;  %v7310_v42 = vpop.permute.xlu2 %1602 }
 0x258   : > { %11904 = vst [vmem:[#allocation41_spill] sm:$0xff] %v7310_v42 }
 0x259   : > { %v1326_v39 = vpop.permute.xlu1 %1325  ;;  %v1314_v11 = vpop.permute.xlu0 %1313 }
 0x25a   : > { %v1334_v58 = vsel %vm1329_vm14, %v1314_v11, %v1326_v39  ;;  %v1340_v53 = vsel %vm1329_vm14, %v1326_v39, %v1314_v11 }
 0x25b   : > { %v1356_v26 = vmul.f32 %v7260_v45, %v1340_v53  ;;  %v7318_v1 = vmul.f32 %v7264_v3, %v1334_v58 }
 0x25d   : > { %11905 = vst [vmem:[#allocation34_spill] sm:$0xff] %v7318_v1  ;;  %1769 = vmatpush.msra.mxu3 %v1356_v26 }
 0x25e   : > { %2075 = vrot.lane.b32.xlu2 %v7049_v23, %s5622_s28 }
 0x25f   : > { %2063 = vrot.lane.b32.xlu1 %v6992_v57, %s5622_s28  ;;  %1712 = vrot.lane.b32.xlu0 %v6949_v30, %s5621_s9  ;;  %v7332_v11 = vpop.permute.xlu2 %1472 }
 0x260   : > { %11907 = vst [vmem:[#allocation31_spill] sm:$0xff] %v7332_v11 }
 0x261   : > { %v7326_v60 = vpop.permute.xlu1 %1592  ;;  %v7334_v58 = vpop.permute.xlu0 %1488 }
 0x262   : > { %11906 = vst [vmem:[#allocation29_spill] sm:$0xff] %v7326_v60  ;;  %v1613_v39 = vsel %vm1608_vm15, %v7326_v60, %v7266_v16  ;;  %v1505_v53 = vsel %vm1496_vm13, %v7334_v58, %v7245_v40  ;;  %v656_v16 = vld [vmem:[%s11490_s4 + $0x38] sm:$0xff] }
 0x263   : > { %11908 = vst [vmem:[#allocation37_spill] sm:$0xff] %v7334_v58  ;;  %v1636_v26 = vmul.f32 %v7282_v48, %v1613_v39  ;;  %v1520_v46 = vmul.f32 %v7195_v28, %v1505_v53  ;;  %4942 = vmatmul.msk.f32.gmra.mxu3 %vm1106_vm9, %v656_v16 }
 0x265   : > { %1811 = vmatpush.msra.mxu0 %v1636_v26  ;;  %1792 = vmatpush.msra.mxu2 %v1520_v46 }
 0x266   : > { %1698 = vrot.lane.b32.xlu2 %v6992_v57, %s5621_s9 }
 0x267   : > { %1544 = vrot.lane.b32.xlu1 %v6949_v30, %s5616_s1  ;;  %1532 = vrot.lane.b32.xlu0 %v6911_v24, %s5616_s1  ;;  %v7352_v39 = vpop.permute.xlu2 %1600 }
 0x269   : > { %v1324_v40 = vpop.permute.xlu1 %1323  ;;  %v1312_v53 = vpop.permute.xlu0 %1311 }
 0x26a   : > { %v1333_v46 = vsel %vm1329_vm14, %v1312_v53, %v1324_v40  ;;  %v1339_v26 = vsel %vm1329_vm14, %v1324_v40, %v1312_v53 }
 0x26b   : > { %v1354_v58 = vmul.f32 %v7260_v45, %v1339_v26  ;;  %v7360_v60 = vmul.f32 %v7264_v3, %v1333_v46  ;;  %1221 = vmatmul.f32.vlgmr.msrb.gmra.mxu3 %v6895_v47  ;;  %v7388_v47 = vld [vmem:[%s11490_s4 + $0x30] sm:$0xff] }
 0x26c   : > { %11913 = vst [vmem:[#allocation73_spill] sm:$0xff] %v7388_v47  ;;  %1178 = vmatmul.f32.gmra.mxu2 %v7388_v47 }
 0x26d   : > { %11909 = vst [vmem:[#allocation35_spill] sm:$0xff] %v7360_v60  ;;  %1770 = vmatpush.msra.mxu3 %v1354_v58 }
 0x26e   : > { %2073 = vrot.lane.b32.xlu2 %v7108_v55, %s5622_s28 }
 0x26f   : > { %2061 = vrot.lane.b32.xlu1 %v7083_v5, %s5622_s28  ;;  %1710 = vrot.lane.b32.xlu0 %v7049_v23, %s5621_s9  ;;  %v7375_v53 = vpop.permute.xlu2 %1438 }
 0x270   : > { %11911 = vst [vmem:[#allocation32_spill] sm:$0xff] %v7375_v53 }
 0x271   : > { %v7368_v1 = vpop.permute.xlu1 %1590  ;;  %v7377_v58 = vpop.permute.xlu0 %1486 }
 0x272   : > { %11910 = vst [vmem:[#allocation38_spill] sm:$0xff] %v7368_v1  ;;  %v1612_v40 = vsel %vm1608_vm15, %v7368_v1, %v7310_v42  ;;  %v1504_v46 = vsel %vm1496_vm13, %v7377_v58, %v7294_v52 }
 0x273   : > { %11912 = vst [vmem:[#allocation72_spill] sm:$0xff] %v7377_v58  ;;  %v1634_v26 = vmul.f32 %v7282_v48, %v1612_v40  ;;  %v1518_v60 = vmul.f32 %v7195_v28, %v1504_v46 }
 0x274   : > { %4943 = vmatmul.msk.f32.vlgmr.msrb.gmra.mxu2 %vm1106_vm9, %v6871_v59 }
 0x275   : > { %1812 = vmatpush.msra.mxu0 %v1634_v26  ;;  %1793 = vmatpush.msra.mxu2 %v1518_v60 }
 0x276   : > { %2015 = vrot.lane.b32.xlu2 %v6803_v62, %s5623_s8 }
 0x277   : > { %1708 = vrot.lane.b32.xlu1 %v7108_v55, %s5621_s9  ;;  %1696 = vrot.lane.b32.xlu0 %v7083_v5, %s5621_s9  ;;  %v1318_v46 = vpop.permute.xlu2 %1317  ;;  %s5628_s9 = smov 83  }
 0x278   : > { %v1330_v26 = vsel %vm1329_vm14, %v6809_v37, %v1318_v46  ;;  %v1336_v52 = vsel %vm1329_vm14, %v1318_v46, %v6809_v37  ;;  %v650_v46 = vld [vmem:[%s11490_s4 + $0x8] sm:$0xff] }
 0x279   : > { %v1322_v40 = vpop.permute.xlu1 %1321  ;;  %v1310_v60 = vpop.permute.xlu0 %1309  ;;  %v1348_v1 = vmul.f32 %v7260_v45, %v1336_v52  ;;  %v7413_v56 = vmul.f32 %v7264_v3, %v1330_v26  ;;  %1152 = vmatmul.f32.vlgmr.msra.gmra.mxu1 %v650_v46 }
 0x27a   : > { %v1332_v58 = vsel %vm1329_vm14, %v1310_v60, %v1322_v40  ;;  %v1338_v47 = vsel %vm1329_vm14, %v1322_v40, %v1310_v60 }
 0x27b   : > { %v1352_v42 = vmul.f32 %v7260_v45, %v1338_v47  ;;  %v7410_v41 = vmul.f32 %v7264_v3, %v1332_v58 }
 0x27c   : > { %4944 = vmatmul.msk.f32.gmra.mxu2 %vm1106_vm9, %v656_v16 }
 0x27d   : > { %1771 = vmatpush.msra.mxu3 %v1352_v42 }
 0x27e   : > { %2187 = vrot.lane.b32.xlu2 %v7049_v23, %s5624_s24 }
 0x27f   : > { %2175 = vrot.lane.b32.xlu1 %v6992_v57, %s5624_s24  ;;  %2027 = vrot.lane.b32.xlu0 %v6846_v19, %s5623_s8  ;;  %v7431_v58 = vpop.permute.xlu2 %1584 }
 0x281   : > { %v7423_v37 = vpop.permute.xlu1 %1588  ;;  %v7429_v52 = vpop.permute.xlu0 %1484 }
 0x282   : > { %v1611_v42 = vsel %vm1608_vm15, %v7423_v37, %v7352_v39  ;;  %v1503_v59 = vsel %vm1496_vm13, %v7429_v52, %v7332_v11  ;;  %v1443_v11 = vsel %vm1440_vm10, %v6920_v54, %v6908_v13 }
 0x283   : > { %v1632_v47 = vmul.f32 %v7282_v48, %v1611_v42  ;;  %v1516_v40 = vmul.f32 %v7195_v28, %v1503_v59  ;;  %v7458_v59 = vperm.slane %v6989_v38, 1 }
 0x285   : > { %1813 = vmatpush.msra.mxu0 %v1632_v47  ;;  %1794 = vmatpush.msra.mxu2 %v1516_v40 }
 0x286   : > { %2173 = vrot.lane.b32.xlu2 %v7083_v5, %s5624_s24 }
 0x287   : > { %2025 = vrot.lane.b32.xlu1 %v6903_v27, %s5623_s8  ;;  %2013 = vrot.lane.b32.xlu0 %v6916_v29, %s5623_s8  ;;  %v7455_v42 = vpop.permute.xlu2 %1718 }
 0x289   : > { %v7448_v60 = vpop.permute.xlu1 %1426  ;;  %v1320_v26 = vpop.permute.xlu0 %1319 }
 0x28a   : > { %11914 = vst [vmem:[#allocation74_spill] sm:$0xff] %v7448_v60  ;;  %v1452_v28 = vsel %vm1440_vm10, %v7375_v53, %v7448_v60  ;;  %v1331_v47 = vsel %vm1329_vm14, %v6795_v43, %v1320_v26  ;;  %v1337_v40 = vsel %vm1329_vm14, %v1320_v26, %v6795_v43  ;;  %v1444_v60 = vsel %vm1440_vm10, %v6644_v32, %v6862_v36  ;;  %v653_v43 = vld [vmem:[%s11490_s4 + $0x20] sm:$0xff] }
 0x28b   : > { %v1470_v16 = vmul.f32 %v7016_v20, %v1452_v28  ;;  %v1350_v53 = vmul.f32 %v7260_v45, %v1337_v40  ;;  %v7473_v38 = vmul.f32 %v7264_v3, %v1331_v47  ;;  %v1467_v28 = vmul.f32 %v7458_v59, %v1444_v60  ;;  %1224 = vmatmul.f32.gmra.mxu3 %v653_v43 }
 0x28c   : > { %v1442_v32 = vsel %vm1440_vm10, %v6953_v7, %v6807_v9  ;;  %v1465_v3 = vmul.f32 %v7458_v59, %v1443_v11  ;;  %1132 = vmatmul.f32.gmra.mxu0 %v653_v43  ;;  %v1671_v43 = vsel %vm1664_vm11, %v7179_v35, %v7239_v31  ;;  %v11920_v35 = vld [vmem:[#allocation29_spill] sm:$0xff]  ;;  %vm2197_vm14 = vcmp.lt.s32.totalorder %v6164_v49, 125 }
 0x28d   : > { %1795 = vmatpush.msra.mxu2 %v1470_v16  ;;  %1772 = vmatpush.msra.mxu3 %v1350_v53  ;;  %v1463_v7 = vmul.f32 %v7458_v59, %v1442_v32  ;;  %v1676_v53 = vsel %vm1664_vm11, %v6926_v0, %v7053_v12  ;;  %v7542_v0 = vld [vmem:[#allocation7 + $0x10] ss:$8 sm:$0x3] }
 0x28e   : > { %2307 = vrot.lane.b32.xlu2 %v6846_v19, %s5625_s23 }
 0x28f   : > { %2295 = vrot.lane.b32.xlu1 %v6803_v62, %s5625_s23  ;;  %2185 = vrot.lane.b32.xlu0 %v7108_v55, %s5624_s24  ;;  %v1441_v62 = vsel %vm1440_vm10, %v7007_v18, %v6998_v15  ;;  %v7511_v15 = vld [vmem:[#allocation10] sm:$0xff]  ;;  %v1681_v18 = vperm.slane %v7019_v61, 1 }
 0x290   : > { %1773 = vmatpush.msra.mxu3 %v1348_v1  ;;  %v7502_v9 = vpop.permute.xlu2 %1704  ;;  %v1461_v1 = vmul.f32 %v7458_v59, %v1441_v62  ;;  %v11918_v62 = vld [vmem:[#allocation46_spill] sm:$0xff] }
 0x291   : > { %v7491_v36 = vpop.permute.xlu1 %1598  ;;  %v7500_v13 = vpop.permute.xlu0 %1586  ;;  %v1695_v12 = vmul.f32 %v1681_v18, %v1676_v53  ;;  %v1685_v31 = vmul.f32 %v1681_v18, %v1671_v43 }
 0x292   : > { %1850 = vmatpush.msrb.mxu3 %v1467_v28  ;;  %v1610_v54 = vsel %vm1608_vm15, %v7500_v13, %v7491_v36  ;;  %v11915_v28 = vld [vmem:[#allocation28_spill] sm:$0xff] }
 0x293   : > { %v1630_v45 = vmul.f32 %v7282_v48, %v1610_v54  ;;  %1774 = vmatmul.f32.vlgmr.msra.gmra.mxu3 %v7511_v15  ;;  %v11919_v54 = vld [vmem:[#allocation34_spill] sm:$0xff] }
 0x294   : > { %1851 = vmatpush.msrb.mxu3 %v1465_v3  ;;  %1244 = vmatmul.f32.vlgmr.msrb.gmra.mxu0 %v650_v46  ;;  %v1674_v46 = vsel %vm1664_vm11, %v7137_v17, %v7141_v33  ;;  %v11917_v3 = vld [vmem:[#allocation54_spill] sm:$0xff] }
 0x295   : > { %1814 = vmatpush.msra.mxu0 %v1630_v45  ;;  %v1691_v17 = vmul.f32 %v1681_v18, %v1674_v46  ;;  %v11922_v45 = vld [vmem:[#allocation35_spill] sm:$0xff]  ;;  %v11925_v46 = vld [vmem:[#allocation70_spill] sm:$0xff] }
 0x296   : > { %1852 = vmatpush.msrb.mxu3 %v1463_v7  ;;  %2293 = vrot.lane.b32.xlu2 %v6916_v29, %s5625_s23 }
 0x297   : > { %2023 = vrot.lane.b32.xlu1 %v6854_v22, %s5623_s8  ;;  %2011 = vrot.lane.b32.xlu0 %v6791_v63, %s5623_s8 }
 0x298   : > { %1853 = vmatpush.msrb.mxu3 %v1461_v1  ;;  %v7530_v26 = vpop.permute.xlu2 %2079 }
 0x299   : > { %v7520_v11 = vpop.permute.xlu1 %1436  ;;  %v7528_v60 = vpop.permute.xlu0 %1424 }
 0x29a   : > { %1854 = vmatpush.msrb.mxu3 %v7076_v34  ;;  %v1451_v61 = vsel %vm1440_vm10, %v7520_v11, %v7528_v60  ;;  %v1675_v34 = vsel %vm1664_vm11, %v7120_v44, %v6959_v8  ;;  %v7552_v8 = vperm.slane %v7542_v0, 0 }
 0x29b   : > { %v1468_v47 = vmul.f32 %v7016_v20, %v1451_v61  ;;  %v1673_v20 = vsel %vm1664_vm11, %v7093_v25, %v7154_v2  ;;  %v1672_v25 = vsel %vm1664_vm11, %v7139_v6, %v7199_v21  ;;  %v11916_v21 = vld [vmem:[#allocation30_spill] sm:$0xff]  ;;  %vm2085_vm11 = vcmp.lt.s32.totalorder %v6164_v49, 45 }
 0x29c   : > { %1855 = vmatpush.msrb.mxu3 %v7101_v50  ;;  %v1693_v50 = vmul.f32 %v1681_v18, %v1675_v34  ;;  %v1689_v40 = vmul.f32 %v1681_v18, %v1673_v20  ;;  %v1687_v6 = vmul.f32 %v1681_v18, %v1672_v25  ;;  %v1625_v32 = vperm.slane %v11916_v21, 1  ;;  %v11924_v18 = vld [vmem:[#allocation41_spill] sm:$0xff]  ;;  %v7615_v20 = vld [vmem:[#allocation8 + $0x2] ss:$8 sm:$0x3] }
 0x29d   : > { %1796 = vmatpush.msra.mxu2 %v1468_v47  ;;  %v7629_v25 = vperm.slane %v7615_v20, 0 }
 0x29e   : > { %1856 = vmatpush.msrb.mxu3 %v7128_v51  ;;  %2021 = vrot.lane.b32.xlu2 %v6949_v30, %s5623_s8 }
 0x29f   : > { %1896 = vmatpush.msrb.mxu2 %v1695_v12  ;;  %2009 = vrot.lane.b32.xlu1 %v6911_v24, %s5623_s8  ;;  %11926 = vst [vmem:[#allocation28_spill] sm:$0xff] %v7629_v25 }
 0x2a0   : > { %1857 = vmatpush.msrb.mxu3 %v7171_v4  ;;  %2305 = vrot.lane.b32.xlu0 %v6903_v27, %s5625_s23  ;;  %v7571_v33 = vpop.permute.xlu2 %1702 }
 0x2a1   : > { %1897 = vmatpush.msrb.mxu2 %v1693_v50  ;;  %v7563_v4 = vpop.permute.xlu1 %1706  ;;  %v1597_v51 = vpop.permute.xlu0 %1596 }
 0x2a2   : > { %1858 = vmatpush.msrb.mxu3 %v7187_v10  ;;  %v1726_v44 = vsel %vm1720_vm12, %v7563_v4, %v7455_v42  ;;  %v1609_v10 = vsel %vm1608_vm15, %v7431_v58, %v1597_v51 }
 0x2a3   : > { %v1750_v2 = vmul.f32 %v7552_v8, %v1726_v44  ;;  %1898 = vmatpush.msrb.mxu2 %v1691_v17  ;;  %v1628_v16 = vmul.f32 %v7282_v48, %v1609_v10  ;;  %v11921_v48 = vld [vmem:[#allocation43_spill] sm:$0xff]  ;;  %v1617_v44 = vsel %vm1608_vm15, %v7352_v39, %v7423_v37  ;;  %v1615_v37 = vsel %vm1608_vm15, %v1597_v51, %v7431_v58  ;;  %v11927_v10 = vld [vmem:[#allocation69_spill] sm:$0xff] }
 0x2a4   : > { %1859 = vmatpush.msrb.mxu3 %v7231_v14  ;;  %v1620_v14 = vsel %vm1608_vm15, %v11918_v62, %v11917_v3  ;;  %v1619_v7 = vsel %vm1608_vm15, %v11921_v48, %v11920_v35  ;;  %v1633_v39 = vmul.f32 %v1625_v32, %v1617_v44 }
 0x2a5   : > { %1837 = vmatpush.msra.mxu1 %v1750_v2  ;;  %1899 = vmatpush.msrb.mxu2 %v1689_v40  ;;  %v1639_v61 = vmul.f32 %v1625_v32, %v1620_v14  ;;  %v7658_v40 = vperm.slane %v11927_v10, 1 }
 0x2a6   : > { %1860 = vmatpush.msrb.mxu3 %v11915_v28  ;;  %1815 = vmatpush.msra.mxu0 %v1628_v16  ;;  %v1629_v16 = vmul.f32 %v1625_v32, %v1615_v37 }
 0x2a7   : > { %1900 = vmatpush.msrb.mxu2 %v1687_v6  ;;  %2303 = vrot.lane.b32.xlu1 %v6854_v22, %s5625_s23  ;;  %v11923_v22 = vld [vmem:[#allocation38_spill] sm:$0xff] }
 0x2a8   : > { %1861 = vmatpush.msrb.mxu3 %v11919_v54  ;;  %2291 = vrot.lane.b32.xlu0 %v6791_v63, %s5625_s23  ;;  %v7605_v34 = vpop.permute.xlu2 %2077  ;;  %v1618_v47 = vsel %vm1608_vm15, %v11924_v18, %v11923_v22  ;;  %v1637_v63 = vmul.f32 %v1625_v32, %v1619_v7  ;;  %v7677_v54 = vld [vmem:[%s5880_s11 + $0x50] sm:$0xff] }
 0x2a9   : > { %v1551_v1 = vpop.permute.xlu1 %1550  ;;  %1901 = vmatpush.msrb.mxu2 %v1685_v31  ;;  %v1539_v53 = vpop.permute.xlu0 %1538  ;;  %2007 = vrot.lane.b32.xlu2 %v6992_v57, %s5623_s8  ;;  %v1635_v17 = vmul.f32 %v1625_v32, %v1618_v47 }
 0x2aa   : > { %1862 = vmatpush.msrb.mxu3 %v11922_v45  ;;  %v1558_v12 = vsel %vm1552_vm8, %v1539_v53, %v1551_v1  ;;  %v1564_v58 = vsel %vm1552_vm8, %v1551_v1, %v1539_v53  ;;  %v654_v1 = vld [vmem:[%s11490_s4 + $0x28] sm:$0xff] }
 0x2ab   : > { %1902 = vmatpush.msrb.mxu2 %v1639_v61  ;;  %v1582_v50 = vmul.f32 %v11925_v46, %v1558_v12  ;;  %1155 = vmatmul.f32.gmra.mxu1 %v654_v1 }
 0x2ac   : > { %1863 = vmatpush.msrb.mxu3 %v7410_v41  ;;  %v1616_v41 = vsel %vm1608_vm15, %v7491_v36, %v7500_v13  ;;  %1247 = vmatmul.f32.gmra.mxu0 %v654_v1  ;;  %vm2309_vm15 = vcmp.lt.s32.totalorder %v6164_v49, 80 }
 0x2ad   : > { %1903 = vmatpush.msrb.mxu2 %v1637_v63  ;;  %1816 = vmatpush.msra.mxu0 %v1582_v50  ;;  %v1631_v13 = vmul.f32 %v1625_v32, %v1616_v41  ;;  %v7721_v63 = vld [vmem:[%s5880_s11 + $0x58] sm:$0xff] }
 0x2ae   : > { %1864 = vmatpush.msrb.mxu3 %v7473_v38 }
 0x2af   : > { %1904 = vmatpush.msrb.mxu2 %v1635_v17  ;;  %2289 = vrot.lane.b32.xlu1 %v6911_v24, %s5625_s23 }
 0x2b0   : > { %1865 = vmatpush.msrb.mxu3 %v7413_v56  ;;  %2019 = vrot.lane.b32.xlu0 %v7049_v23, %s5623_s8  ;;  %v7648_v24 = vpop.permute.xlu2 %1700 }
 0x2b1   : > { %v7638_v38 = vpop.permute.xlu1 %2067  ;;  %1905 = vmatpush.msrb.mxu2 %v1633_v39  ;;  %v7644_v36 = vpop.permute.xlu0 %1716  ;;  %2301 = vrot.lane.b32.xlu2 %v6949_v30, %s5625_s23  ;;  %v1583_v30 = vmul.f32 %v7658_v40, %v1564_v58  ;;  %v1732_v58 = vsel %vm1720_vm12, %v7455_v42, %v7563_v4 }
 0x2b2   : > { %v2095_v56 = vsel %vm2085_vm11, %v7530_v26, %v7638_v38  ;;  %v1725_v2 = vsel %vm1720_vm12, %v7502_v9, %v7644_v36  ;;  %v1731_v42 = vsel %vm1720_vm12, %v7644_v36, %v7502_v9  ;;  %v7776_v36 = vld [vmem:[%s5880_s11 + $0x30] sm:$0xff] }
 0x2b3   : > { %v2111_v51 = vmul.f32 %v7629_v25, %v2095_v56  ;;  %1906 = vmatpush.msrb.mxu2 %v1631_v13  ;;  %v1748_v43 = vmul.f32 %v7552_v8, %v1725_v2  ;;  %v11928_v56 = vld [vmem:[#allocation73_spill] sm:$0xff]  ;;  %v7751_v2 = vld [vmem:[%s5880_s11 + $0x40] sm:$0xff] }
 0x2b5   : > { %2403 = vmatpush.msra.mxu3 %v2111_v51  ;;  %1907 = vmatpush.msrb.mxu2 %v1629_v16 }
 0x2b6   : > { %1838 = vmatpush.msra.mxu1 %v1748_v43 }
 0x2b7   : > { %1908 = vmatpush.msrb.mxu2 %v1583_v30  ;;  %2017 = vrot.lane.b32.xlu1 %v7108_v55, %s5623_s8 }
 0x2b8   : > { %2005 = vrot.lane.b32.xlu0 %v7083_v5, %s5623_s8  ;;  %v7668_v21 = vpop.permute.xlu2 %2075  ;;  %s5626_s8 = smov 51  }
 0x2b9   : > { %v1549_v28 = vpop.permute.xlu1 %1548  ;;  %v1537_v6 = vpop.permute.xlu0 %1536  ;;  %2287 = vrot.lane.b32.xlu2 %v6992_v57, %s5625_s23 }
 0x2ba   : > { %v1557_v32 = vsel %vm1552_vm8, %v1537_v6, %v1549_v28  ;;  %v1563_v3 = vsel %vm1552_vm8, %v1549_v28, %v1537_v6  ;;  %v7767_v28 = vld [vmem:[#allocation10 + $0x10] sm:$0xff] }
 0x2bb   : > { %v1580_v62 = vmul.f32 %v11925_v46, %v1557_v32  ;;  %v1581_v14 = vmul.f32 %v7658_v40, %v1563_v3 }
 0x2bd   : > { %1817 = vmatpush.msra.mxu0 %v1580_v62  ;;  %1909 = vmatpush.msrb.mxu2 %v1581_v14  ;;  %v7793_v14 = vld [vmem:[%s5880_s11 + $0x38] sm:$0xff] }
 0x2bf   : > { %1960 = vrot.lane.b32.xlu1 %v7677_v54, %s5626_s8 }
 0x2c0   : > { %2299 = vrot.lane.b32.xlu0 %v7049_v23, %s5625_s23  ;;  %v7691_v48 = vpop.permute.xlu2 %1698 }
 0x2c1   : > { %v7683_v57 = vpop.permute.xlu1 %2065  ;;  %v1715_v35 = vpop.permute.xlu0 %1714  ;;  %1972 = vrot.lane.b32.xlu2 %v6846_v19, %s5626_s8 }
 0x2c2   : > { %v2094_v31 = vsel %vm2085_vm11, %v7605_v34, %v7683_v57  ;;  %v1724_v7 = vsel %vm1720_vm12, %v7571_v33, %v1715_v35  ;;  %v1730_v6 = vsel %vm1720_vm12, %v1715_v35, %v7571_v33 }
 0x2c3   : > { %v2109_v45 = vmul.f32 %v7629_v25, %v2094_v31  ;;  %v1746_v23 = vmul.f32 %v7552_v8, %v1724_v7 }
 0x2c5   : > { %2404 = vmatpush.msra.mxu3 %v2109_v45  ;;  %1839 = vmatpush.msra.mxu1 %v1746_v23 }
 0x2c7   : > { %2297 = vrot.lane.b32.xlu1 %v7108_v55, %s5625_s23 }
 0x2c8   : > { %2285 = vrot.lane.b32.xlu0 %v7083_v5, %s5625_s23  ;;  %v7707_v61 = vpop.permute.xlu2 %2073  ;;  %v5181_v5 = vld [vmem:[%s11490_s4 + $0x10] sm:$0xff] }
 0x2c9   : > { %v1547_v19 = vpop.permute.xlu1 %1546  ;;  %v1535_v53 = vpop.permute.xlu0 %1534  ;;  %2351 = vrot.lane.b32.xlu2 %v7677_v54, %s5627_s17  ;;  %1267 = vmatmul.f32.vlgmr.msrb.gmra.mxu1 %v5181_v5 }
 0x2ca   : > { %v1556_v22 = vsel %vm1552_vm8, %v1535_v53, %v1547_v19  ;;  %v1562_v18 = vsel %vm1552_vm8, %v1547_v19, %v1535_v53 }
 0x2cb   : > { %v1578_v47 = vmul.f32 %v11925_v46, %v1556_v22  ;;  %v1579_v12 = vmul.f32 %v7658_v40, %v1562_v18  ;;  %v11930_v22 = vld [vmem:[#allocation65_spill] sm:$0xff] }
 0x2cd   : > { %1818 = vmatpush.msra.mxu0 %v1578_v47  ;;  %1910 = vmatpush.msrb.mxu2 %v1579_v12 }
 0x2cf   : > { %1958 = vrot.lane.b32.xlu1 %v6916_v29, %s5626_s8 }
 0x2d0   : > { %2363 = vrot.lane.b32.xlu0 %v7721_v63, %s5627_s17  ;;  %v7733_v41 = vpop.permute.xlu2 %2015 }
 0x2d1   : > { %v7725_v50 = vpop.permute.xlu1 %2063  ;;  %v1713_v17 = vpop.permute.xlu0 %1712  ;;  %1970 = vrot.lane.b32.xlu2 %v6903_v27, %s5626_s8  ;;  %1270 = vmatmul.f32.gmra.mxu1 %v11928_v56  ;;  %v1737_v27 = vperm.slane %v7542_v0, 1 }
 0x2d2   : > { %v2093_v44 = vsel %vm2085_vm11, %v7668_v21, %v7725_v50  ;;  %v1723_v29 = vsel %vm1720_vm12, %v7648_v24, %v1713_v17  ;;  %v1729_v9 = vsel %vm1720_vm12, %v1713_v17, %v7648_v24  ;;  %v11931_v17 = vld [vmem:[#allocation68_spill] sm:$0xff] }
 0x2d3   : > { %v2107_v39 = vmul.f32 %v7629_v25, %v2093_v44  ;;  %v1744_v37 = vmul.f32 %v7552_v8, %v1723_v29  ;;  %v1751_v30 = vmul.f32 %v1737_v27, %v1732_v58  ;;  %v1749_v32 = vmul.f32 %v1737_v27, %v1731_v42  ;;  %v11932_v29 = vld [vmem:[#allocation36_spill] sm:$0xff] }
 0x2d4   : > { %v1747_v3 = vmul.f32 %v1737_v27, %v1730_v6  ;;  %v1745_v45 = vmul.f32 %v1737_v27, %v1729_v9 }
 0x2d5   : > { %2405 = vmatpush.msra.mxu3 %v2107_v39  ;;  %1840 = vmatpush.msra.mxu1 %v1744_v37  ;;  %v1559_v39 = vsel %vm1552_vm8, %v11932_v29, %v11931_v17  ;;  %v2323_v29 = vld [vmem:[#allocation8 + $0x7] ss:$8 sm:$0x3] }
 0x2d7   : > { %2251 = vrot.lane.b32.xlu1 %v7721_v63, %s5628_s9 }
 0x2d8   : > { %2239 = vrot.lane.b32.xlu0 %v7677_v54, %s5628_s9  ;;  %v7755_v10 = vpop.permute.xlu2 %2187 }
 0x2d9   : > { %v1545_v13 = vpop.permute.xlu1 %1544  ;;  %v1533_v51 = vpop.permute.xlu0 %1532  ;;  %2349 = vrot.lane.b32.xlu2 %v7751_v2, %s5627_s17 }
 0x2da   : > { %v1555_v0 = vsel %vm1552_vm8, %v1533_v51, %v1545_v13  ;;  %v1561_v16 = vsel %vm1552_vm8, %v1545_v13, %v1533_v51  ;;  %v7828_v13 = vld [vmem:[#allocation8 + $0x5] ss:$8 sm:$0x3]  ;;  %v2043_v51 = vld [vmem:[#allocation8 + $0x1] ss:$8 sm:$0x3] }
 0x2db   : > { %v1576_v4 = vmul.f32 %v11925_v46, %v1555_v0  ;;  %v1577_v43 = vmul.f32 %v7658_v40, %v1561_v16  ;;  %v7782_v46 = vld [vmem:[%s5880_s11 + $0x48] sm:$0xff]  ;;  %v7831_v0 = vld [vmem:[#allocation10 + $0x18] sm:$0xff]  ;;  %v1573_v16 = vmul.f32 %v7658_v40, %v1559_v39  ;;  %v7836_v42 = vperm.slane %v7828_v13, 0 }
 0x2dd   : > { %1819 = vmatpush.msra.mxu0 %v1576_v4  ;;  %1911 = vmatpush.msrb.mxu2 %v1577_v43 }
 0x2de   : > { %1820 = vmatmul.f32.vlgmr.msra.gmra.mxu0 %v7767_v28 }
 0x2df   : > { %1929 = vmatpush.msrb.mxu0 %v1751_v30  ;;  %1956 = vrot.lane.b32.xlu1 %v7776_v36, %s5626_s8 }
 0x2e0   : > { %2361 = vrot.lane.b32.xlu0 %v7782_v46, %s5627_s17  ;;  %v7797_v31 = vpop.permute.xlu2 %2173 }
 0x2e1   : > { %1930 = vmatpush.msrb.mxu0 %v1749_v32  ;;  %v7786_v33 = vpop.permute.xlu1 %2061  ;;  %v1711_v62 = vpop.permute.xlu0 %1710  ;;  %1968 = vrot.lane.b32.xlu2 %v7793_v14, %s5626_s8 }
 0x2e2   : > { %v2092_v24 = vsel %vm2085_vm11, %v7707_v61, %v7786_v33  ;;  %v1722_v35 = vsel %vm1720_vm12, %v7691_v48, %v1711_v62  ;;  %v1728_v7 = vsel %vm1720_vm12, %v1711_v62, %v7691_v48  ;;  %v11929_v48 = vld [vmem:[#allocation71_spill] sm:$0xff]  ;;  %v7874_v62 = vld [vmem:[%s5880_s11 + $0x28] sm:$0xff] }
 0x2e3   : > { %1931 = vmatpush.msrb.mxu0 %v1747_v3  ;;  %v2105_v23 = vmul.f32 %v7629_v25, %v2092_v24  ;;  %v1742_v1 = vmul.f32 %v7552_v8, %v1722_v35  ;;  %v1743_v19 = vmul.f32 %v1737_v27, %v1728_v7  ;;  %v1560_v18 = vsel %vm1552_vm8, %v11930_v22, %v11929_v48  ;;  %v11933_v7 = vld [vmem:[#allocation45_spill] sm:$0xff] }
 0x2e4   : > { %v1575_v58 = vmul.f32 %v7658_v40, %v1560_v18  ;;  %vm2029_vm8 = vcmp.lt.s32.totalorder %v6164_v49, 48  ;;  %v7896_v18 = vld [vmem:[%s5880_s11 + $0x18] sm:$0xff] }
 0x2e5   : > { %1932 = vmatpush.msrb.mxu0 %v1745_v45  ;;  %2406 = vmatpush.msra.mxu3 %v2105_v23  ;;  %v1513_v45 = vperm.slane %v11933_v7, 1  ;;  %v11934_v23 = vld [vmem:[#allocation33_spill] sm:$0xff]  ;;  %v11943_v7 = vld [vmem:[#allocation40_spill] sm:$0xff] }
 0x2e6   : > { %1841 = vmatpush.msra.mxu1 %v1742_v1  ;;  %v11935_v1 = vld [vmem:[#allocation44_spill] sm:$0xff] }
 0x2e7   : > { %1933 = vmatpush.msrb.mxu0 %v1743_v19  ;;  %2139 = vrot.lane.b32.xlu1 %v7721_v63, %s5629_s3  ;;  %v1502_v19 = vsel %vm1496_vm13, %v11935_v1, %v11934_v23 }
 0x2e8   : > { %2127 = vrot.lane.b32.xlu0 %v7677_v54, %s5629_s3  ;;  %v7821_v44 = vpop.permute.xlu2 %2307 }
 0x2e9   : > { %v1709_v53 = vpop.permute.xlu1 %1708  ;;  %v1697_v47 = vpop.permute.xlu0 %1696  ;;  %2237 = vrot.lane.b32.xlu2 %v7751_v2, %s5628_s9 }
 0x2ea   : > { %v1721_v12 = vsel %vm1720_vm12, %v1697_v47, %v1709_v53  ;;  %v1727_v5 = vsel %vm1720_vm12, %v1709_v53, %v1697_v47  ;;  %v11936_v47 = vld [vmem:[#allocation47_spill] sm:$0xff]  ;;  %vm2253_vm12 = vcmp.lt.s32.totalorder %v6164_v49, 83 }
 0x2eb   : > { %v1740_v37 = vmul.f32 %v7552_v8, %v1721_v12  ;;  %v1741_v56 = vmul.f32 %v1737_v27, %v1727_v5  ;;  %v7841_v8 = vperm.slane %v2043_v51, 0  ;;  %v7845_v27 = vperm.slane %v2043_v51, 1  ;;  %v11937_v12 = vld [vmem:[#allocation49_spill] sm:$0xff]  ;;  %v11939_v51 = vld [vmem:[#allocation39_spill] sm:$0xff] }
 0x2ec   : > { %v1501_v5 = vsel %vm1496_vm13, %v11937_v12, %v11936_v47  ;;  %v11945_v47 = vld [vmem:[#allocation31_spill] sm:$0xff] }
 0x2ed   : > { %1842 = vmatpush.msra.mxu1 %v1740_v37  ;;  %1934 = vmatpush.msrb.mxu0 %v1741_v56  ;;  %v1527_v56 = vmul.f32 %v1513_v45, %v1502_v19  ;;  %v1497_v12 = vsel %vm1496_vm13, %v11945_v47, %v7429_v52  ;;  %v1445_v52 = vsel %vm1440_vm10, %v7528_v60, %v7520_v11  ;;  %v7970_v11 = vld [vmem:[%s5880_s11 + $0x10] sm:$0xff] }
 0x2ee   : > { %4945 = vmatmul.msk.f32.vlgmr.msra.gmra.mxu1 %vm1106_vm9, %v7831_v0 }
 0x2ef   : > { %1873 = vmatpush.msrb.mxu1 %v1575_v58  ;;  %2347 = vrot.lane.b32.xlu1 %v7776_v36, %s5627_s17  ;;  %v11938_v58 = vld [vmem:[#allocation27_spill] sm:$0xff] }
 0x2f0   : > { %2249 = vrot.lane.b32.xlu0 %v7782_v46, %s5628_s9  ;;  %v7865_v9 = vpop.permute.xlu2 %2293 }
 0x2f1   : > { %1874 = vmatpush.msrb.mxu1 %v1573_v16  ;;  %v7849_v40 = vpop.permute.xlu1 %2175  ;;  %v2028_v43 = vpop.permute.xlu0 %2027  ;;  %2359 = vrot.lane.b32.xlu2 %v7793_v14, %s5627_s17  ;;  %v1500_v16 = vsel %vm1496_vm13, %v11939_v51, %v11938_v58  ;;  %v11946_v58 = vld [vmem:[#allocation32_spill] sm:$0xff]  ;;  %v11947_v51 = vld [vmem:[#allocation74_spill] sm:$0xff] }
 0x2f2   : > { %v2199_v4 = vsel %vm2197_vm14, %v7849_v40, %v7755_v10  ;;  %v2035_v6 = vsel %vm2029_vm8, %v7733_v41, %v2028_v43  ;;  %v2041_v32 = vsel %vm2029_vm8, %v2028_v43, %v7733_v41  ;;  %v7879_v41 = vld [vmem:[%s5880_s11 + $0x20] sm:$0xff]  ;;  %v7915_v43 = vperm.slane %v2323_v29, 1 }
 0x2f3   : > { %v2219_v30 = vmul.f32 %v7836_v42, %v2199_v4  ;;  %1875 = vmatpush.msrb.mxu1 %v7721_v63  ;;  %v2059_v3 = vmul.f32 %v7841_v8, %v2041_v32  ;;  %v7869_v24 = vmul.f32 %v7845_v27, %v2035_v6  ;;  %v1525_v4 = vmul.f32 %v1513_v45, %v1501_v5  ;;  %v11941_v6 = vld [vmem:[#allocation42_spill] sm:$0xff] }
 0x2f5   : > { %1876 = vmatpush.msrb.mxu1 %v7782_v46  ;;  %2426 = vmatpush.msra.mxu0 %v2219_v30  ;;  %v11940_v30 = vld [vmem:[#allocation37_spill] sm:$0xff] }
 0x2f6   : > { %2407 = vmatpush.msra.mxu3 %v2059_v3  ;;  %v1499_v32 = vsel %vm1496_vm13, %v11941_v6, %v11940_v30  ;;  %v1523_v3 = vmul.f32 %v1513_v45, %v1500_v16  ;;  %v1446_v16 = vsel %vm1440_vm10, %v11947_v51, %v11946_v58  ;;  %v7958_v30 = vperm.slane %v2323_v29, 0 }
 0x2f7   : > { %1877 = vmatpush.msrb.mxu1 %v7793_v14  ;;  %1966 = vrot.lane.b32.xlu1 %v7874_v62, %s5626_s8  ;;  %v1469_v29 = vmul.f32 %v7458_v59, %v1445_v52  ;;  %vm1974_vm10 = vcmp.lt.s32.totalorder %v6164_v49, 51 }
 0x2f8   : > { %1954 = vrot.lane.b32.xlu0 %v7879_v41, %s5626_s8  ;;  %v7904_v39 = vpop.permute.xlu2 %2021 }
 0x2f9   : > { %1878 = vmatpush.msrb.mxu1 %v7874_v62  ;;  %v2026_v35 = vpop.permute.xlu1 %2025  ;;  %v2014_v53 = vpop.permute.xlu0 %2013  ;;  %2125 = vrot.lane.b32.xlu2 %v7751_v2, %s5629_s3 }
 0x2fa   : > { %v2034_v48 = vsel %vm2029_vm8, %v2014_v53, %v2026_v35  ;;  %v2040_v22 = vsel %vm2029_vm8, %v2026_v35, %v2014_v53  ;;  %v11942_v35 = vld [vmem:[#allocation72_spill] sm:$0xff] }
 0x2fb   : > { %1879 = vmatpush.msrb.mxu1 %v7896_v18  ;;  %v2057_v17 = vmul.f32 %v7841_v8, %v2040_v22  ;;  %v7907_v37 = vmul.f32 %v7845_v27, %v2034_v48  ;;  %v1498_v23 = vsel %vm1496_vm13, %v11943_v7, %v11942_v35  ;;  %v1521_v22 = vmul.f32 %v1513_v45, %v1499_v32 }
 0x2fc   : > { %v1471_v32 = vmul.f32 %v7458_v59, %v1446_v16  ;;  %vm2365_vm13 = vcmp.lt.s32.totalorder %v6164_v49, 77 }
 0x2fd   : > { %1880 = vmatpush.msrb.mxu1 %v7108_v55  ;;  %2408 = vmatpush.msra.mxu3 %v2057_v17 }
 0x2ff   : > { %1881 = vmatpush.msrb.mxu1 %v1527_v56  ;;  %2235 = vrot.lane.b32.xlu1 %v7776_v36, %s5628_s9  ;;  %v1519_v56 = vmul.f32 %v1513_v45, %v1498_v23 }
 0x300   : > { %2137 = vrot.lane.b32.xlu0 %v7782_v46, %s5629_s3 }
 0x301   : > { %1882 = vmatpush.msrb.mxu1 %v1525_v4  ;;  %v2296_v55 = vpop.permute.xlu1 %2295  ;;  %v7932_v19 = vpop.permute.xlu0 %2185  ;;  %2247 = vrot.lane.b32.xlu2 %v7793_v14, %s5628_s9  ;;  %v1517_v4 = vmul.f32 %v1513_v45, %v1497_v12 }
 0x302   : > { %v2321_v1 = vsel %vm2309_vm15, %v7821_v44, %v2296_v55  ;;  %v2198_v48 = vsel %vm2197_vm14, %v7797_v31, %v7932_v19  ;;  %v2315_v6 = vsel %vm2309_vm15, %v2296_v55, %v7821_v44 }
 0x303   : > { %v7937_v53 = vmul.f32 %v7915_v43, %v2321_v1  ;;  %1883 = vmatpush.msrb.mxu1 %v1523_v3  ;;  %v2217_v5 = vmul.f32 %v7836_v42, %v2198_v48  ;;  %v7948_v17 = vpop.permute.xlu2 %2007  ;;  %v2339_v55 = vmul.f32 %v7958_v30, %v2315_v6 }
 0x305   : > { %11944 = vst [vmem:[#allocation30_spill] sm:$0xff] %v7937_v53  ;;  %1884 = vmatpush.msrb.mxu1 %v1521_v22  ;;  %2427 = vmatpush.msra.mxu0 %v2217_v5  ;;  %v8007_v5 = vld [vmem:[%s5880_s11] sm:$0xff] }
 0x307   : > { %1885 = vmatpush.msrb.mxu1 %v1519_v56  ;;  %2357 = vrot.lane.b32.xlu1 %v7874_v62, %s5627_s17 }
 0x308   : > { %2428 = vmatpush.msra.mxu0 %v7677_v54  ;;  %2345 = vrot.lane.b32.xlu0 %v7879_v41, %s5627_s17 }
 0x309   : > { %1886 = vmatpush.msrb.mxu1 %v1517_v4  ;;  %v2024_v45 = vpop.permute.xlu1 %2023  ;;  %v2012_v3 = vpop.permute.xlu0 %2011  ;;  %1952 = vrot.lane.b32.xlu2 %v7970_v11, %s5626_s8 }
 0x30a   : > { %2429 = vmatpush.msra.mxu0 %v7751_v2  ;;  %v2033_v60 = vsel %vm2029_vm8, %v2012_v3, %v2024_v45  ;;  %v2039_v44 = vsel %vm2029_vm8, %v2024_v45, %v2012_v3 }
 0x30b   : > { %1887 = vmatpush.msrb.mxu1 %v1471_v32  ;;  %v2055_v35 = vmul.f32 %v7841_v8, %v2039_v44  ;;  %v2302_v7 = vpop.permute.xlu2 %2301  ;;  %v7984_v23 = vmul.f32 %v7845_v27, %v2033_v60  ;;  %v8039_v44 = vld [vmem:[%s5880_s11 + $0x8] sm:$0xff] }
 0x30c   : > { %2430 = vmatpush.msra.mxu0 %v7776_v36 }
 0x30d   : > { %1888 = vmatpush.msrb.mxu1 %v1469_v29  ;;  %2409 = vmatpush.msra.mxu3 %v2055_v35 }
 0x30e   : > { %2431 = vmatpush.msra.mxu0 %v7879_v41 }
 0x30f   : > { %2449 = vmatpush.msra.mxu1 %v2339_v55  ;;  %2123 = vrot.lane.b32.xlu1 %v7776_v36, %s5629_s3 }
 0x310   : > { %1964 = vrot.lane.b32.xlu0 %v7896_v18, %s5626_s8  ;;  %2432 = vmatpush.msra.mxu0 %v7970_v11 }
 0x311   : > { %v2010_v59 = vpop.permute.xlu1 %2009  ;;  %2135 = vrot.lane.b32.xlu2 %v7793_v14, %s5629_s3 }
 0x312   : > { %v2306_v1 = vpop.permute.xlu0 %2305  ;;  %v2032_v48 = vsel %vm2029_vm8, %v2010_v59, %v7904_v39  ;;  %v2038_v22 = vsel %vm2029_vm8, %v7904_v39, %v2010_v59  ;;  %2433 = vmatpush.msra.mxu0 %v8007_v5 }
 0x313   : > { %v2314_v47 = vsel %vm2309_vm15, %v7865_v9, %v2306_v1  ;;  %v2320_v12 = vsel %vm2309_vm15, %v2306_v1, %v7865_v9  ;;  %v2053_v56 = vmul.f32 %v7841_v8, %v2038_v22  ;;  %v2288_v51 = vpop.permute.xlu2 %2287  ;;  %v8013_v16 = vmul.f32 %v7845_v27, %v2032_v48 }
 0x314   : > { %v2337_v58 = vmul.f32 %v7958_v30, %v2314_v47  ;;  %v8016_v39 = vmul.f32 %v7915_v43, %v2320_v12  ;;  %v8057_v12 = vld [vmem:[#allocation10 + $0x8] sm:$0xff] }
 0x315   : > { %2410 = vmatpush.msra.mxu3 %v2053_v56  ;;  %1797 = vmatmul.f32.vlgmr.msra.gmra.mxu2 %v8057_v12 }
 0x316   : > { %11948 = vst [vmem:[#allocation54_spill] sm:$0xff] %v8016_v39  ;;  %2450 = vmatpush.msra.mxu1 %v2337_v58 }
 0x317   : > { %2245 = vrot.lane.b32.xlu1 %v7874_v62, %s5628_s9 }
 0x318   : > { %2233 = vrot.lane.b32.xlu0 %v7879_v41, %s5628_s9 }
 0x319   : > { %v2304_v9 = vpop.permute.xlu1 %2303  ;;  %2343 = vrot.lane.b32.xlu2 %v7970_v11, %s5627_s17 }
 0x31a   : > { %v2292_v4 = vpop.permute.xlu0 %2291 }
 0x31b   : > { %v2313_v52 = vsel %vm2309_vm15, %v2292_v4, %v2304_v9  ;;  %v2319_v6 = vsel %vm2309_vm15, %v2304_v9, %v2292_v4  ;;  %v8028_v45 = vpop.permute.xlu2 %1972 }
 0x31c   : > { %v2335_v32 = vmul.f32 %v7958_v30, %v2313_v52  ;;  %v8032_v3 = vmul.f32 %v7915_v43, %v2319_v6 }
 0x31e   : > { %11949 = vst [vmem:[#allocation46_spill] sm:$0xff] %v8032_v3  ;;  %2451 = vmatpush.msra.mxu1 %v2335_v32  ;;  %v8079_v32 = vld [vmem:[#allocation8] ss:$8 sm:$0x3] }
 0x31f   : > { %1950 = vrot.lane.b32.xlu1 %v8007_v5, %s5626_s8 }
 0x320   : > { %2355 = vrot.lane.b32.xlu0 %v7896_v18, %s5627_s17 }
 0x321   : > { %v2290_v60 = vpop.permute.xlu1 %2289  ;;  %1962 = vrot.lane.b32.xlu2 %v8039_v44, %s5626_s8  ;;  %s12361_s8 = sld [smem:[#allocation138_spill]] }
 0x322   : > { %v2312_v29 = vsel %vm2309_vm15, %v2290_v60, %v2302_v7  ;;  %v2318_v55 = vsel %vm2309_vm15, %v2302_v7, %v2290_v60  ;;  %v2020_v35 = vpop.permute.xlu0 %2019 }
 0x323   : > { %v2031_v59 = vsel %vm2029_vm8, %v7948_v17, %v2020_v35  ;;  %v2037_v1 = vsel %vm2029_vm8, %v2020_v35, %v7948_v17  ;;  %v2333_v48 = vmul.f32 %v7958_v30, %v2312_v29  ;;  %v8054_v22 = vpop.permute.xlu2 %2351  ;;  %v8063_v7 = vmul.f32 %v7915_v43, %v2318_v55 }
 0x324   : > { %11950 = vst [vmem:[#allocation34_spill] sm:$0xff] %v8054_v22  ;;  %v2051_v47 = vmul.f32 %v7841_v8, %v2037_v1  ;;  %v8060_v56 = vmul.f32 %v7845_v27, %v2031_v59  ;;  %v8088_v29 = vperm.slane %v8079_v32, 0 }
 0x325   : > { %11951 = vst [vmem:[#allocation29_spill] sm:$0xff] %v8063_v7  ;;  %2452 = vmatpush.msra.mxu1 %v2333_v48 }
 0x326   : > { %2411 = vmatpush.msra.mxu3 %v2051_v47 }
 0x327   : > { %2133 = vrot.lane.b32.xlu1 %v7874_v62, %s5629_s3 }
 0x328   : > { %2121 = vrot.lane.b32.xlu0 %v7879_v41, %s5629_s3 }
 0x329   : > { %v2018_v17 = vpop.permute.xlu1 %2017  ;;  %2231 = vrot.lane.b32.xlu2 %v7970_v11, %s5628_s9 }
 0x32a   : > { %v2006_v58 = vpop.permute.xlu0 %2005 }
 0x32b   : > { %v2030_v9 = vsel %vm2029_vm8, %v2006_v58, %v2018_v17  ;;  %v2036_v4 = vsel %vm2029_vm8, %v2018_v17, %v2006_v58  ;;  %v8076_v52 = vpop.permute.xlu2 %1970  ;;  %vm2141_vm8 = vcmp.lt.s32.totalorder %v6164_v49, 3 }
 0x32c   : > { %v2049_v6 = vmul.f32 %v7841_v8, %v2036_v4  ;;  %v8082_v60 = vmul.f32 %v7845_v27, %v2030_v9 }
 0x32e   : > { %2412 = vmatpush.msra.mxu3 %v2049_v6 }
 0x32f   : > { %2341 = vrot.lane.b32.xlu1 %v8007_v5, %s5627_s17 }
 0x330   : > { %2243 = vrot.lane.b32.xlu0 %v7896_v18, %s5628_s9 }
 0x331   : > { %v8092_v55 = vpop.permute.xlu1 %1960  ;;  %2353 = vrot.lane.b32.xlu2 %v8039_v44, %s5627_s17 }
 0x332   : > { %v1986_v8 = vsel %vm1974_vm10, %v8028_v45, %v8092_v55  ;;  %v2300_v27 = vpop.permute.xlu0 %2299 }
 0x333   : > { %v2311_v35 = vsel %vm2309_vm15, %v2288_v51, %v2300_v27  ;;  %v2317_v59 = vsel %vm2309_vm15, %v2300_v27, %v2288_v51  ;;  %v2003_v1 = vmul.f32 %v8088_v29, %v1986_v8  ;;  %v8105_v48 = vpop.permute.xlu2 %2349 }
 0x334   : > { %11952 = vst [vmem:[#allocation43_spill] sm:$0xff] %v8105_v48  ;;  %v2331_v47 = vmul.f32 %v7958_v30, %v2311_v35  ;;  %v8109_v17 = vmul.f32 %v7915_v43, %v2317_v59  ;;  %v8127_v35 = vld [vmem:[#allocation8 + $0x10] ss:$8 sm:$0x3] }
 0x335   : > { %2413 = vmatpush.msra.mxu3 %v2003_v1  ;;  %11955 = vst [vmem:[#allocation41_spill] sm:$0xff] %v8127_v35 }
 0x336   : > { %11953 = vst [vmem:[#allocation35_spill] sm:$0xff] %v8109_v17  ;;  %2453 = vmatpush.msra.mxu1 %v2331_v47 }
 0x337   : > { %2131 = vrot.lane.b32.xlu1 %v7896_v18, %s5629_s3 }
 0x338   : > { %2119 = vrot.lane.b32.xlu0 %v7970_v11, %s5629_s3  ;;  %v8135_v11 = vperm.slane %v8127_v35, 0 }
 0x339   : > { %v2298_v58 = vpop.permute.xlu1 %2297  ;;  %2229 = vrot.lane.b32.xlu2 %v8007_v5, %s5628_s9 }
 0x33a   : > { %v2286_v51 = vpop.permute.xlu0 %2285 }
 0x33b   : > { %v2310_v9 = vsel %vm2309_vm15, %v2286_v51, %v2298_v58  ;;  %v2316_v4 = vsel %vm2309_vm15, %v2298_v58, %v2286_v51  ;;  %v8121_v6 = vpop.permute.xlu2 %1968  ;;  %v8155_v51 = vld [vmem:[#allocation8 + $0x6] ss:$8 sm:$0x3] }
 0x33c   : > { %v2329_v8 = vmul.f32 %v7958_v30, %v2310_v9  ;;  %v8125_v27 = vmul.f32 %v7915_v43, %v2316_v4  ;;  %11958 = vst [vmem:[#allocation73_spill] sm:$0xff] %v8155_v51  ;;  %v8163_v9 = vperm.slane %v8155_v51, 0 }
 0x33e   : > { %11954 = vst [vmem:[#allocation38_spill] sm:$0xff] %v8125_v27  ;;  %2454 = vmatpush.msra.mxu1 %v2329_v8 }
 0x33f   : > { %2117 = vrot.lane.b32.xlu1 %v8007_v5, %s5629_s3 }
 0x340   : > { %2241 = vrot.lane.b32.xlu0 %v8039_v44, %s5628_s9  ;;  %s12054_s9 = sld [smem:[#allocation133_spill]] }
 0x341   : > { %v8137_v59 = vpop.permute.xlu1 %1958  ;;  %2129 = vrot.lane.b32.xlu2 %v8039_v44, %s5629_s3 }
 0x342   : > { %v1985_v43 = vsel %vm1974_vm10, %v8076_v52, %v8137_v59  ;;  %v8145_v30 = vpop.permute.xlu0 %2363 }
 0x343   : > { %11956 = vst [vmem:[#allocation70_spill] sm:$0xff] %v8145_v30  ;;  %v2371_v5 = vsel %vm2365_vm13, %v8054_v22, %v8145_v30  ;;  %v2001_v1 = vmul.f32 %v8088_v29, %v1985_v43  ;;  %v8152_v47 = vpop.permute.xlu2 %2237  ;;  %v2587_v22 = vld [vmem:[%s11493_s7] sm:$0xff] }
 0x344   : > { %11957 = vst [vmem:[#allocation69_spill] sm:$0xff] %v8152_v47  ;;  %v2395_v58 = vmul.f32 %v8135_v11, %v2371_v5 }
 0x345   : > { %2414 = vmatpush.msra.mxu3 %v2001_v1 }
 0x346   : > { %2482 = vmatpush.msra.mxu2 %v2395_v58  ;;  %v5630_v58 = vmov 0  }
 0x347   : > { %2195 = vrot.lane.b32.xlu1 %v7721_v63, %s5624_s24  ;;  %5165 = vset.pattern.permute.xlu0 %v5630_v58 }
 0x348   : > { %2183 = vrot.lane.b32.xlu0 %v7677_v54, %s5624_s24  ;;  %5166 = vset.pattern.permute.xlu1 %v5630_v58 }
 0x349   : > { %v8165_v4 = vpop.permute.xlu1 %2251  ;;  %2071 = vrot.lane.b32.xlu2 %v7677_v54, %s5622_s28 }
 0x34a   : > { %11959 = vst [vmem:[#allocation71_spill] sm:$0xff] %v8165_v4  ;;  %v8169_v8 = vpop.permute.xlu0 %2239  ;;  %5167 = vset.pattern.permute.xlu2 %v5630_v58 }
 0x34b   : > { %11960 = vst [vmem:[#allocation65_spill] sm:$0xff] %v8169_v8  ;;  %v2259_v43 = vsel %vm2253_vm12, %v8169_v8, %v8165_v4  ;;  %v8175_v5 = vpop.permute.xlu2 %2359  ;;  %v8200_v8 = vld [vmem:[#allocation8 + $0x3] ss:$8 sm:$0x3] }
 0x34c   : > { %11961 = vst [vmem:[#allocation68_spill] sm:$0xff] %v8175_v5  ;;  %v2283_v1 = vmul.f32 %v8163_v9, %v2259_v43  ;;  %v8208_v58 = vperm.slane %v8200_v8, 0 }
 0x34e   : > { %2455 = vmatpush.msra.mxu1 %v2283_v1 }
 0x34f   : > { %2181 = vrot.lane.b32.xlu1 %v7751_v2, %s5624_s24 }
 0x350   : > { %2083 = vrot.lane.b32.xlu0 %v7721_v63, %s5622_s28 }
 0x351   : > { %v8182_v54 = vpop.permute.xlu1 %1956  ;;  %2193 = vrot.lane.b32.xlu2 %v7782_v46, %s5624_s24 }
 0x352   : > { %v1984_v43 = vsel %vm1974_vm10, %v8121_v6, %v8182_v54  ;;  %v8190_v1 = vpop.permute.xlu0 %2361 }
 0x353   : > { %11962 = vst [vmem:[#allocation36_spill] sm:$0xff] %v8190_v1  ;;  %v2370_v27 = vsel %vm2365_vm13, %v8105_v48, %v8190_v1  ;;  %v1999_v17 = vmul.f32 %v8088_v29, %v1984_v43  ;;  %v8197_v7 = vpop.permute.xlu2 %2125 }
 0x354   : > { %v2393_v4 = vmul.f32 %v8135_v11, %v2370_v27 }
 0x355   : > { %2415 = vmatpush.msra.mxu3 %v1999_v17 }
 0x356   : > { %2483 = vmatpush.msra.mxu2 %v2393_v4 }
 0x357   : > { %2081 = vrot.lane.b32.xlu1 %v7782_v46, %s5622_s28 }
 0x358   : > { %2069 = vrot.lane.b32.xlu0 %v7751_v2, %s5622_s28 }
 0x359   : > { %v8210_v43 = vpop.permute.xlu1 %2139  ;;  %2179 = vrot.lane.b32.xlu2 %v7776_v36, %s5624_s24 }
 0x35a   : > { %v8214_v17 = vpop.permute.xlu0 %2127 }
 0x35b   : > { %v2153_v27 = vsel %vm2141_vm8, %v8210_v43, %v8214_v17  ;;  %v8220_v4 = vpop.permute.xlu2 %2247 }
 0x35c   : > { %11963 = vst [vmem:[#allocation45_spill] sm:$0xff] %v8220_v4  ;;  %v2171_v2 = vmul.f32 %v8208_v58, %v2153_v27 }
 0x35e   : > { %2434 = vmatpush.msra.mxu0 %v2171_v2 }
 0x35f   : > { %2177 = vrot.lane.b32.xlu1 %v7879_v41, %s5624_s24 }
 0x360   : > { %2191 = vrot.lane.b32.xlu0 %v7793_v14, %s5624_s24 }
 0x361   : > { %v8227_v1 = vpop.permute.xlu1 %2347  ;;  %2189 = vrot.lane.b32.xlu2 %v7874_v62, %s5624_s24 }
 0x362   : > { %11964 = vst [vmem:[#allocation33_spill] sm:$0xff] %v8227_v1  ;;  %v2369_v36 = vsel %vm2365_vm13, %v8227_v1, %v8175_v5  ;;  %v8235_v48 = vpop.permute.xlu0 %2249  ;;  %v2588_v5 = vld [vmem:[%s11493_s7 + $0x8] sm:$0xff] }
 0x363   : > { %11965 = vst [vmem:[#allocation44_spill] sm:$0xff] %v8235_v48  ;;  %v2258_v41 = vsel %vm2253_vm12, %v8152_v47, %v8235_v48  ;;  %v2391_v27 = vmul.f32 %v8135_v11, %v2369_v36  ;;  %v8242_v2 = vpop.permute.xlu2 %1952 }
 0x364   : > { %11966 = vst [vmem:[#allocation47_spill] sm:$0xff] %v8242_v2  ;;  %v2281_v30 = vmul.f32 %v8163_v9, %v2258_v41 }
 0x365   : > { %2484 = vmatpush.msra.mxu2 %v2391_v27  ;;  %v1301_v27 = vld [vmem:[#allocation10 + $0x20] sm:$0xff] }
 0x366   : > { %2456 = vmatpush.msra.mxu1 %v2281_v30  ;;  %1777 = vmatmul.f32.gmra.mxu3 %v1301_v27 }
 0x367   : > { %2595 = vperm.xlu1 %5166, %v2587_v22  }
 0x368   : > { %2600 = vperm.xlu0 %5165, %v2588_v5  }
 0x369   : > { %v8251_v1 = vpop.permute.xlu1 %1966 }
 0x36a   : > { %v8253_v48 = vpop.permute.xlu0 %1954 }
 0x36b   : > { %v1983_v36 = vsel %vm1974_vm10, %v8251_v1, %v8253_v48  ;;  %v8260_v47 = vpop.permute.xlu2 %2135 }
 0x36c   : > { %v1997_v41 = vmul.f32 %v8088_v29, %v1983_v36 }
 0x36e   : > { %2416 = vmatpush.msra.mxu3 %v1997_v41 }
 0x36f   : > { %1866 = vmatmul.f32.vlgmr.msrb.gmra.mxu3 %v7511_v15 }
 0x371   : > { %v8262_v51 = vpop.permute.xlu1 %2235 }
 0x372   : > { %11967 = vst [vmem:[#allocation49_spill] sm:$0xff] %v8262_v51  ;;  %v2257_v22 = vsel %vm2253_vm12, %v8262_v51, %v8220_v4  ;;  %v8268_v30 = vpop.permute.xlu0 %2137 }
 0x373   : > { %v2152_v5 = vsel %vm2141_vm8, %v8268_v30, %v8197_v7  ;;  %v2279_v36 = vmul.f32 %v8163_v9, %v2257_v22  ;;  %v8276_v35 = vpop.permute.xlu2 %2343  ;;  %v8288_v22 = vld [vmem:[#allocation10 + $0x28] sm:$0xff] }
 0x374   : > { %v2169_v41 = vmul.f32 %v8208_v58, %v2152_v5  ;;  %1800 = vmatmul.f32.gmra.mxu2 %v8288_v22 }
 0x375   : > { %2457 = vmatpush.msra.mxu1 %v2279_v36 }
 0x376   : > { %2435 = vmatpush.msra.mxu0 %v2169_v41 }
 0x377   : > { %1869 = vmatmul.f32.gmra.mxu3 %v1301_v27 }
 0x379   : > { %v8279_v3 = vpop.permute.xlu1 %2357 }
 0x37a   : > { %11968 = vst [vmem:[#allocation27_spill] sm:$0xff] %v8279_v3  ;;  %v8281_v4 = vpop.permute.xlu0 %2345 }
 0x37b   : > { %11969 = vst [vmem:[#allocation39_spill] sm:$0xff] %v8281_v4  ;;  %v2368_v51 = vsel %vm2365_vm13, %v8281_v4, %v8279_v3  ;;  %v8293_v15 = vpop.permute.xlu2 %1962 }
 0x37c   : > { %v2389_v39 = vmul.f32 %v8135_v11, %v2368_v51  ;;  %1912 = vmatmul.f32.vlgmr.msrb.gmra.mxu2 %v7767_v28  ;;  %v2205_v28 = vsel %vm2197_vm14, %v7755_v10, %v7849_v40 }
 0x37e   : > { %2485 = vmatpush.msra.mxu2 %v2389_v39 }
 0x381   : > { %v8291_v5 = vpop.permute.xlu1 %2123 }
 0x382   : > { %v2151_v36 = vsel %vm2141_vm8, %v8260_v47, %v8291_v5  ;;  %v8299_v41 = vpop.permute.xlu0 %1964 }
 0x383   : > { %v1982_v39 = vsel %vm1974_vm10, %v8299_v41, %v8242_v2  ;;  %v2167_v51 = vmul.f32 %v8208_v58, %v2151_v36  ;;  %v8316_v25 = vpop.permute.xlu2 %2231  ;;  %v8320_v36 = vperm.slane %v7828_v13, 1  ;;  %v2204_v13 = vsel %vm2197_vm14, %v7932_v19, %v7797_v31 }
 0x384   : > { %v1995_v27 = vmul.f32 %v8088_v29, %v1982_v39 }
 0x385   : > { %2436 = vmatpush.msra.mxu0 %v2167_v51  ;;  %v2220_v40 = vmul.f32 %v8320_v36, %v2205_v28  ;;  %v2589_v28 = vld [vmem:[%s11493_s7 + $0x10] sm:$0xff] }
 0x386   : > { %2417 = vmatpush.msra.mxu3 %v1995_v27  ;;  %2605 = vperm.xlu0 %5165, %v2589_v28  }
 0x389   : > { %v8308_v3 = vpop.permute.xlu1 %2245 }
 0x38a   : > { %11970 = vst [vmem:[#allocation37_spill] sm:$0xff] %v8308_v3  ;;  %v8310_v4 = vpop.permute.xlu0 %2233 }
 0x38b   : > { %11971 = vst [vmem:[#allocation42_spill] sm:$0xff] %v8310_v4  ;;  %v2256_v53 = vsel %vm2253_vm12, %v8310_v4, %v8308_v3  ;;  %v8345_v3 = vpop.permute.xlu2 %2353  ;;  %v2218_v4 = vmul.f32 %v8320_v36, %v2204_v13 }
 0x38c   : > { %v2277_v2 = vmul.f32 %v8163_v9, %v2256_v53 }
 0x38e   : > { %2458 = vmatpush.msra.mxu1 %v2277_v2 }
 0x391   : > { %v8326_v39 = vpop.permute.xlu1 %1950 }
 0x392   : > { %v1981_v51 = vsel %vm1974_vm10, %v8293_v15, %v8326_v39  ;;  %v8332_v27 = vpop.permute.xlu0 %2355 }
 0x393   : > { %11972 = vst [vmem:[#allocation72_spill] sm:$0xff] %v8332_v27  ;;  %v2367_v53 = vsel %vm2365_vm13, %v8276_v35, %v8332_v27  ;;  %v1993_v10 = vmul.f32 %v8088_v29, %v1981_v51  ;;  %v1303_v51 = vld [vmem:[#allocation10 + $0x30] sm:$0xff]  ;;  %v8357_v13 = vpop.permute.xlu2 %2229 }
 0x394   : > { %v2387_v2 = vmul.f32 %v8135_v11, %v2367_v53  ;;  %1823 = vmatmul.f32.gmra.mxu0 %v1303_v51  ;;  %1915 = vmatmul.f32.gmra.mxu2 %v1303_v51 }
 0x395   : > { %2418 = vmatpush.msra.mxu3 %v1993_v10 }
 0x396   : > { %2486 = vmatpush.msra.mxu2 %v2387_v2 }
 0x397   : > { %2518 = vmatpush.msrb.mxu3 %v2220_v40 }
 0x399   : > { %2519 = vmatpush.msrb.mxu3 %v2218_v4  ;;  %v2134_v31 = vpop.permute.xlu1 %2133  ;;  %v1304_v4 = vld [vmem:[#allocation10 + $0x38] sm:$0xff] }
 0x39a   : > { %v2122_v19 = vpop.permute.xlu0 %2121  ;;  %4946 = vmatmul.msk.f32.gmra.mxu1 %vm1106_vm9, %v1304_v4 }
 0x39b   : > { %2520 = vmatpush.msrb.mxu3 %v7721_v63  ;;  %v2150_v27 = vsel %vm2141_vm8, %v2134_v31, %v2122_v19  ;;  %v8360_v63 = vperm.slane %v7615_v20, 1  ;;  %v2147_v20 = vsel %vm2141_vm8, %v8214_v17, %v8210_v43  ;;  %v2146_v17 = vsel %vm2141_vm8, %v8197_v7, %v8268_v30  ;;  %v2130_v10 = vpop.permute.xlu2 %2129 }
 0x39c   : > { %v2165_v29 = vmul.f32 %v8208_v58, %v2150_v27  ;;  %v2158_v27 = vperm.slane %v8200_v8, 1  ;;  %4947 = vmatmul.msk.f32.vlgmr.msrb.gmra.mxu0 %vm1106_vm9, %v7831_v0 }
 0x39d   : > { %2521 = vmatpush.msrb.mxu3 %v7782_v46  ;;  %v2089_v46 = vsel %vm2085_vm11, %v7638_v38, %v7530_v26  ;;  %v2088_v26 = vsel %vm2085_vm11, %v7683_v57, %v7605_v34  ;;  %v2087_v34 = vsel %vm2085_vm11, %v7725_v50, %v7668_v21  ;;  %v2144_v21 = vsel %vm2141_vm8, %v2122_v19, %v2134_v31  ;;  %v8425_v19 = vld [vmem:[#allocation11] sm:$0xff] }
 0x39e   : > { %2437 = vmatpush.msra.mxu0 %v2165_v29  ;;  %v2112_v43 = vmul.f32 %v8360_v63, %v2089_v46  ;;  %v2172_v57 = vmul.f32 %v2158_v27, %v2147_v20  ;;  %v2110_v7 = vmul.f32 %v8360_v63, %v2088_v26  ;;  %v2170_v30 = vmul.f32 %v2158_v27, %v2146_v17  ;;  %v2590_v20 = vld [vmem:[%s11493_s7 + $0x18] sm:$0xff] }
 0x39f   : > { %2522 = vmatpush.msrb.mxu3 %v7793_v14  ;;  %v2108_v50 = vmul.f32 %v8360_v63, %v2087_v34  ;;  %v2166_v2 = vmul.f32 %v2158_v27, %v2144_v21  ;;  %v1990_v26 = vperm.slane %v8079_v32, 1  ;;  %2610 = vperm.xlu1 %5166, %v2590_v20   ;;  %v1153_v34 = vpop.f32.mrf.mxu1  ;;  %v11975_v20 = vld [vmem:[#allocation30_spill] sm:$0xff] }
 0x3a0   : > { %2419 = vmatmul.f32.vlgmr.msra.gmra.mxu3 %v8425_v19 }
 0x3a1   : > { %2523 = vmatpush.msrb.mxu3 %v7874_v62  ;;  %v8368_v14 = vpop.permute.xlu1 %2341 }
 0x3a2   : > { %v2366_v62 = vsel %vm2365_vm13, %v8368_v14, %v8345_v3  ;;  %v8379_v53 = vpop.permute.xlu0 %2243  ;;  %1889 = vmatmul.f32.vlgmr.msrb.gmra.mxu1 %v8057_v12 }
 0x3a3   : > { %2524 = vmatpush.msrb.mxu3 %v7896_v18  ;;  %v2255_v38 = vsel %vm2253_vm12, %v8316_v25, %v8379_v53  ;;  %v2385_v8 = vmul.f32 %v8135_v11, %v2366_v62  ;;  %v2145_v11 = vsel %vm2141_vm8, %v8291_v5, %v8260_v47 }
 0x3a4   : > { %v2275_v18 = vmul.f32 %v8163_v9, %v2255_v38  ;;  %v2168_v5 = vmul.f32 %v2158_v27, %v2145_v11  ;;  %4948 = vmatmul.msk.f32.gmra.mxu0 %vm1106_vm9, %v1304_v4  ;;  %v2072_v4 = vpop.permute.xlu2 %2071 }
 0x3a5   : > { %2525 = vmatpush.msrb.mxu3 %v8039_v44  ;;  %2487 = vmatpush.msra.mxu2 %v2385_v8  ;;  %v2086_v44 = vsel %vm2085_vm11, %v7786_v33, %v7707_v61  ;;  %v8484_v8 = vld [vmem:[#allocation11 + $0x38] sm:$0xff] }
 0x3a6   : > { %2459 = vmatpush.msra.mxu1 %v2275_v18  ;;  %v2106_v61 = vmul.f32 %v8360_v63, %v2086_v44 }
 0x3a7   : > { %2495 = vmatpush.msrb.mxu2 %v2112_v43  ;;  %2526 = vmatpush.msrb.mxu3 %v2172_v57  ;;  %v11973_v43 = vld [vmem:[#allocation47_spill] sm:$0xff]  ;;  %v1975_v57 = vsel %vm1974_vm10, %v8326_v39, %v8293_v15 }
 0x3a8   : > { %v1976_v17 = vsel %vm1974_vm10, %v11973_v43, %v8299_v41 }
 0x3a9   : > { %2496 = vmatpush.msrb.mxu2 %v2110_v7  ;;  %2527 = vmatpush.msrb.mxu3 %v2170_v30  ;;  %v2132_v47 = vpop.permute.xlu1 %2131  ;;  %v1996_v11 = vmul.f32 %v1990_v26, %v1976_v17  ;;  %v1994_v30 = vmul.f32 %v1990_v26, %v1975_v57  ;;  %v11980_v57 = vld [vmem:[#allocation34_spill] sm:$0xff] }
 0x3aa   : > { %v2120_v40 = vpop.permute.xlu0 %2119  ;;  %1892 = vmatmul.f32.gmra.mxu1 %v8288_v22 }
 0x3ab   : > { %2497 = vmatpush.msrb.mxu2 %v2108_v50  ;;  %v2143_v33 = vsel %vm2141_vm8, %v2120_v40, %v2132_v47  ;;  %v2149_v0 = vsel %vm2141_vm8, %v2132_v47, %v2120_v40  ;;  %2528 = vmatpush.msrb.mxu3 %v2168_v5  ;;  %v11974_v50 = vld [vmem:[#allocation28_spill] sm:$0xff] }
 0x3ac   : > { %v2163_v31 = vmul.f32 %v8208_v58, %v2149_v0  ;;  %v2164_v12 = vmul.f32 %v2158_v27, %v2143_v33  ;;  %v8490_v18 = vpop.permute.xlu2 %2193  ;;  %v1156_v33 = vpop.f32.mrf.mxu1 }
 0x3ad   : > { %2498 = vmatpush.msrb.mxu2 %v2106_v61  ;;  %2529 = vmatpush.msrb.mxu3 %v2166_v2 }
 0x3ae   : > { %2438 = vmatpush.msra.mxu0 %v2163_v31 }
 0x3af   : > { %2499 = vmatpush.msrb.mxu2 %v7869_v24  ;;  %2530 = vmatpush.msrb.mxu3 %v2164_v12 }
 0x3b1   : > { %2500 = vmatpush.msrb.mxu2 %v7907_v37  ;;  %v2118_v29 = vpop.permute.xlu1 %2117 }
 0x3b2   : > { %v2142_v28 = vsel %vm2141_vm8, %v2118_v29, %v2130_v10  ;;  %v2148_v51 = vsel %vm2141_vm8, %v2130_v10, %v2118_v29  ;;  %v8434_v46 = vpop.permute.xlu0 %2241 }
 0x3b3   : > { %2501 = vmatpush.msrb.mxu2 %v7984_v23  ;;  %v2254_v24 = vsel %vm2253_vm12, %v8357_v13, %v8434_v46  ;;  %v2161_v37 = vmul.f32 %v8208_v58, %v2148_v51  ;;  %v2162_v22 = vmul.f32 %v2158_v27, %v2142_v28  ;;  %v8448_v23 = vld [vmem:[#allocation11 + $0x18] sm:$0xff]  ;;  %v1980_v58 = vsel %vm1974_vm10, %v8092_v55, %v8028_v45 }
 0x3b4   : > { %v2273_v62 = vmul.f32 %v8163_v9, %v2254_v24  ;;  %4949 = vmatmul.msk.f32.vlgmr.msra.gmra.mxu2 %vm1106_vm9, %v8448_v23  ;;  %v2004_v32 = vmul.f32 %v1990_v26, %v1980_v58  ;;  %v8462_v9 = vld [vmem:[#allocation11 + $0x20] sm:$0xff]  ;;  %v1978_v45 = vsel %vm1974_vm10, %v8182_v54, %v8121_v6  ;;  %v8511_v61 = vpop.permute.xlu2 %2179  ;;  %v1943_v24 = vld [vmem:[#allocation11 + $0x8] sm:$0xff]  ;;  %v1268_v58 = vpop.f32.mrf.mxu1 }
 0x3b5   : > { %2502 = vmatpush.msrb.mxu2 %v8013_v16  ;;  %2439 = vmatpush.msra.mxu0 %v2161_v37  ;;  %v1979_v16 = vsel %vm1974_vm10, %v8137_v59, %v8076_v52  ;;  %v8473_v59 = vpop.f32.mrf.mxu3  ;;  %v2000_v38 = vmul.f32 %v1990_v26, %v1978_v45 }
 0x3b6   : > { %2531 = vmatpush.msrb.mxu3 %v2162_v22  ;;  %2460 = vmatpush.msra.mxu1 %v2273_v62  ;;  %v2002_v52 = vmul.f32 %v1990_v26, %v1979_v16 }
 0x3b7   : > { %2503 = vmatpush.msrb.mxu2 %v8060_v56  ;;  %v1130_v56 = vpop.f32.mrf.mxu0  ;;  %2422 = vmatmul.f32.gmra.mxu3 %v8462_v9 }
 0x3b8   : > { %v1154_v37 = vadd.f32 %v1153_v34, %v1130_v56  ;;  %v11979_v34 = vld [vmem:[#allocation73_spill] sm:$0xff] }
 0x3b9   : > { %2504 = vmatpush.msrb.mxu2 %v8082_v60  ;;  %v8468_v55 = vpop.permute.xlu1 %2195  ;;  %v1977_v60 = vsel %vm1974_vm10, %v8253_v48, %v8251_v1  ;;  %v1176_v1 = vpop.f32.mrf.mxu2 }
 0x3ba   : > { %v8471_v27 = vpop.permute.xlu0 %2183  ;;  %v1998_v48 = vmul.f32 %v1990_v26, %v1977_v60 }
 0x3bb   : > { %2505 = vmatpush.msrb.mxu2 %v2004_v32  ;;  %v2203_v6 = vsel %vm2197_vm14, %v8471_v27, %v8468_v55 }
 0x3bc   : > { %v2227_v54 = vmul.f32 %v7836_v42, %v2203_v6  ;;  %4950 = vmatmul.msk.f32.gmra.mxu2 %vm1106_vm9, %v8484_v8  ;;  %v8524_v62 = vpop.permute.xlu2 %2189  ;;  %v11977_v6 = vld [vmem:[#allocation46_spill] sm:$0xff] }
 0x3bd   : > { %2506 = vmatpush.msrb.mxu2 %v2002_v52  ;;  %v1202_v40 = vpop.f32.mrf.mxu3  ;;  %v1177_v52 = vadd.f32 %v1176_v1, %v1154_v37  ;;  %v11981_v1 = vld [vmem:[#allocation70_spill] sm:$0xff] }
 0x3be   : > { %2461 = vmatpush.msra.mxu1 %v2227_v54  ;;  %v11978_v54 = vld [vmem:[#allocation41_spill] sm:$0xff] }
 0x3bf   : > { %2507 = vmatpush.msrb.mxu2 %v2000_v38  ;;  %v1133_v10 = vpop.f32.mrf.mxu0  ;;  %v8544_v38 = vperm.slane %v11978_v54, 1 }
 0x3c0   : > { %v1157_v26 = vadd.f32 %v1156_v33, %v1133_v10  ;;  %v11985_v10 = vld [vmem:[#allocation43_spill] sm:$0xff]  ;;  %v11986_v33 = vld [vmem:[#allocation36_spill] sm:$0xff] }
 0x3c1   : > { %2508 = vmatpush.msrb.mxu2 %v1998_v48  ;;  %v8498_v7 = vpop.permute.xlu1 %2181  ;;  %v1179_v0 = vpop.f32.mrf.mxu2  ;;  %v8549_v48 = vperm.slane %v11979_v34, 1  ;;  %v11996_v34 = vld [vmem:[#allocation39_spill] sm:$0xff] }
 0x3c2   : > { %v2202_v41 = vsel %vm2197_vm14, %v8498_v7, %v8490_v18  ;;  %v2084_v44 = vpop.permute.xlu0 %2083 }
 0x3c3   : > { %2509 = vmatpush.msrb.mxu2 %v1996_v11  ;;  %v2091_v21 = vsel %vm2085_vm11, %v2072_v4, %v2084_v44  ;;  %v2097_v15 = vsel %vm2085_vm11, %v2084_v44, %v2072_v4  ;;  %v2225_v39 = vmul.f32 %v7836_v42, %v2202_v41  ;;  %v2377_v11 = vsel %vm2365_vm13, %v11981_v1, %v11980_v57  ;;  %v11982_v41 = vld [vmem:[#allocation65_spill] sm:$0xff]  ;;  %v11983_v44 = vld [vmem:[#allocation71_spill] sm:$0xff] }
 0x3c4   : > { %v2115_v47 = vmul.f32 %v11974_v50, %v2097_v15  ;;  %v2116_v5 = vmul.f32 %v8360_v63, %v2091_v21  ;;  %v11984_v21 = vld [vmem:[#allocation29_spill] sm:$0xff]  ;;  %v1947_v15 = vld [vmem:[#allocation11 + $0x28] sm:$0xff]  ;;  %v11997_v57 = vld [vmem:[#allocation27_spill] sm:$0xff] }
 0x3c5   : > { %2510 = vmatpush.msrb.mxu2 %v1994_v30  ;;  %2462 = vmatpush.msra.mxu1 %v2225_v39  ;;  %v1222_v22 = vpop.f32.mrf.mxu3  ;;  %v2265_v30 = vsel %vm2253_vm12, %v11983_v44, %v11982_v41  ;;  %v2374_v1 = vsel %vm2365_vm13, %v11997_v57, %v11996_v34  ;;  %v11999_v44 = vld [vmem:[#allocation42_spill] sm:$0xff] }
 0x3c6   : > { %2440 = vmatpush.msra.mxu0 %v2115_v47  ;;  %2532 = vmatpush.msrb.mxu3 %v2116_v5 }
 0x3c7   : > { %2511 = vmatmul.f32.vlgmr.msrb.gmra.mxu2 %v8425_v19  ;;  %v1245_v4 = vpop.f32.mrf.mxu0  ;;  %v2592_v19 = vld [vmem:[%s11493_s7 + $0x28] sm:$0xff] }
 0x3c8   : > { %2620 = vperm.xlu2 %5167, %v2592_v19   ;;  %v1246_v39 = vadd.f32 %v1245_v4, %v1222_v22  ;;  %v2284_v22 = vmul.f32 %v8549_v48, %v2265_v30  ;;  %v11991_v19 = vld [vmem:[#allocation68_spill] sm:$0xff]  ;;  %v12000_v30 = vld [vmem:[#allocation37_spill] sm:$0xff] }
 0x3c9   : > { %v2082_v2 = vpop.permute.xlu1 %2081  ;;  %v8526_v16 = vpop.f32.mrf.mxu2 }
 0x3ca   : > { %v2070_v31 = vpop.permute.xlu0 %2069 }
 0x3cb   : > { %v2090_v12 = vsel %vm2085_vm11, %v2070_v31, %v2082_v2  ;;  %v2096_v29 = vsel %vm2085_vm11, %v2082_v2, %v2070_v31  ;;  %v11987_v2 = vld [vmem:[#allocation35_spill] sm:$0xff] }
 0x3cc   : > { %v2113_v28 = vmul.f32 %v11974_v50, %v2096_v29  ;;  %v2114_v51 = vmul.f32 %v8360_v63, %v2090_v12  ;;  %v11976_v63 = vld [vmem:[#allocation54_spill] sm:$0xff]  ;;  %v1200_v50 = vadd.f32 %v8473_v59, %v1177_v52  ;;  %v2591_v29 = vld [vmem:[%s11493_s7 + $0x20] sm:$0xff]  ;;  %v1271_v59 = vpop.f32.mrf.mxu1 }
 0x3cd   : > { %v1225_v47 = vpop.f32.mrf.mxu3 }
 0x3ce   : > { %2441 = vmatpush.msra.mxu0 %v2113_v28  ;;  %2533 = vmatpush.msrb.mxu3 %v2114_v51  ;;  %v2396_v28 = vmul.f32 %v8544_v38, %v2377_v11  ;;  %v11988_v51 = vld [vmem:[#allocation69_spill] sm:$0xff] }
 0x3cf   : > { %2534 = vmatmul.f32.vlgmr.msrb.gmra.mxu3 %v1943_v24  ;;  %2442 = vmatmul.f32.vlgmr.msra.gmra.mxu0 %v1943_v24  ;;  %v1248_v5 = vpop.f32.mrf.mxu0  ;;  %v11989_v24 = vld [vmem:[#allocation44_spill] sm:$0xff] }
 0x3d0   : > { %2541 = vmatpush.msrb.mxu0 %v11975_v20  ;;  %2514 = vmatmul.f32.gmra.mxu2 %v8462_v9  ;;  %v1180_v9 = vadd.f32 %v1179_v0, %v1157_v26  ;;  %v2376_v0 = vsel %vm2365_vm13, %v11986_v33, %v11985_v10  ;;  %v1249_v12 = vadd.f32 %v1248_v5, %v1225_v47  ;;  %v11992_v26 = vld [vmem:[#allocation38_spill] sm:$0xff] }
 0x3d1   : > { %v8530_v32 = vpop.permute.xlu1 %2177  ;;  %v2264_v37 = vsel %vm2253_vm12, %v11989_v24, %v11988_v51  ;;  %v1294_v4 = vpop.f32.mrf.mxu2  ;;  %v2394_v54 = vmul.f32 %v8544_v38, %v2376_v0  ;;  %2615 = vperm.xlu2 %5167, %v2591_v29   ;;  %v2261_v10 = vsel %vm2253_vm12, %v8379_v53, %v8316_v25  ;;  %v2390_v33 = vmul.f32 %v8544_v38, %v2374_v1  ;;  %v1948_v0 = vld [vmem:[#allocation11 + $0x30] sm:$0xff]  ;;  %v12003_v1 = vld [vmem:[#allocation56_spill] sm:$0xff] }
 0x3d2   : > { %2542 = vmatpush.msrb.mxu0 %v11976_v63  ;;  %v8532_v45 = vpop.permute.xlu0 %2191  ;;  %v2200_v56 = vsel %vm2197_vm14, %v8530_v32, %v8524_v62  ;;  %v1203_v31 = vadd.f32 %v1202_v40, %v1180_v9  ;;  %v11990_v40 = vld [vmem:[#allocation33_spill] sm:$0xff]  ;;  %v1269_v63 = vadd.f32 %v1268_v58, %v1246_v39  ;;  %v1272_v52 = vadd.f32 %v1271_v59, %v1249_v12  ;;  %v12001_v39 = vld [vmem:[#allocation72_spill] sm:$0xff] }
 0x3d3   : > { %v2201_v60 = vsel %vm2197_vm14, %v8511_v61, %v8532_v45  ;;  %v2221_v17 = vmul.f32 %v7836_v42, %v2200_v56  ;;  %v2375_v20 = vsel %vm2365_vm13, %v11991_v19, %v11990_v40  ;;  %v2282_v58 = vmul.f32 %v8549_v48, %v2264_v37 }
 0x3d4   : > { %2543 = vmatpush.msrb.mxu0 %v11977_v6  ;;  %v2223_v43 = vmul.f32 %v7836_v42, %v2201_v60  ;;  %v8561_v42 = vld [vmem:[#allocation11 + $0x10] sm:$0xff]  ;;  %v1295_v41 = vadd.f32 %v1294_v4, %v1272_v52  ;;  %v1292_v5 = vadd.f32 %v8526_v16, %v1269_v63  ;;  %v2260_v16 = vsel %vm2253_vm12, %v8434_v46, %v8357_v13 }
 0x3d5   : > { %v11993_v60 = vld [vmem:[#allocation49_spill] sm:$0xff]  ;;  %v2276_v53 = vmul.f32 %v8549_v48, %v2261_v10  ;;  %v2274_v13 = vmul.f32 %v8549_v48, %v2260_v16  ;;  %v2208_v46 = vsel %vm2197_vm14, %v8490_v18, %v8498_v7  ;;  %v2206_v18 = vsel %vm2197_vm14, %v8524_v62, %v8530_v32  ;;  %v1844_v32 = vpop.f32.mrf.mxu1 }
 0x3d6   : > { %2544 = vmatpush.msrb.mxu0 %v11984_v21  ;;  %2463 = vmatpush.msra.mxu1 %v2223_v43  ;;  %v11994_v6 = vld [vmem:[#allocation45_spill] sm:$0xff]  ;;  %v2262_v21 = vsel %vm2253_vm12, %v12000_v30, %v11999_v44 }
 0x3d7   : > { %2537 = vmatmul.f32.gmra.mxu3 %v1947_v15  ;;  %2445 = vmatmul.f32.gmra.mxu0 %v1947_v15  ;;  %v2263_v9 = vsel %vm2253_vm12, %v11994_v6, %v11993_v60  ;;  %v2392_v15 = vmul.f32 %v8544_v38, %v2375_v20 }
 0x3d8   : > { %2545 = vmatpush.msrb.mxu0 %v11987_v2  ;;  %2464 = vmatpush.msra.mxu1 %v2221_v17  ;;  %v2280_v47 = vmul.f32 %v8549_v48, %v2263_v9 }
 0x3d9   : > { %2465 = vmatmul.f32.vlgmr.msra.gmra.mxu1 %v8561_v42  ;;  %v2596_v56 = vpop.permute.xlu1 %2595 }
 0x3da   : > { %2546 = vmatpush.msrb.mxu0 %v11992_v26  ;;  %2574 = vmatpush.msrb.mxu1 %v2396_v28  ;;  %v2601_v43 = vpop.permute.xlu0 %2600  ;;  %v8588_v17 = vadd.f32 %v2596_v56, %v1200_v50  ;;  %v2373_v50 = vsel %vm2365_vm13, %v12001_v39, %v8276_v35  ;;  %v2372_v35 = vsel %vm2365_vm13, %v8345_v3, %v8368_v14 }
 0x3db   : > { %v8595_v11 = vadd.f32 %v2601_v43, %v1203_v31  ;;  %v8617_v2 = vadd.f32 %v2601_v43, %v1295_v41  ;;  %v2278_v31 = vmul.f32 %v8549_v48, %v2262_v21  ;;  %v2388_v25 = vmul.f32 %v8544_v38, %v2373_v50  ;;  %v1821_v48 = vpop.f32.mrf.mxu0 }
 0x3dc   : > { %11995 = vst [vmem:[#allocation40_spill] sm:$0xff] %v8588_v17  ;;  %2547 = vmatpush.msrb.mxu0 %v2284_v22  ;;  %2575 = vmatpush.msrb.mxu1 %v2394_v54  ;;  %v8630_v12 = vadd.f32 %v2596_v56, %v1292_v5  ;;  %v2209_v3 = vsel %vm2197_vm14, %v8468_v55, %v8471_v27 }
 0x3dd   : > { %11998 = vst [vmem:[#allocation31_spill] sm:$0xff] %v8595_v11  ;;  %2827 = vrot.lane.b32.xlu0 %v8588_v17, %s5610_s27  ;;  %2829 = vrot.lane.b32.xlu1 %v8595_v11, %s5610_s27  ;;  %v2386_v14 = vmul.f32 %v8544_v38, %v2372_v35  ;;  %v2228_v29 = vmul.f32 %v8320_v36, %v2209_v3 }
 0x3de   : > { %2548 = vmatpush.msrb.mxu0 %v2282_v58  ;;  %2576 = vmatpush.msrb.mxu1 %v2392_v15  ;;  %v2207_v55 = vsel %vm2197_vm14, %v8532_v45, %v8511_v61  ;;  %v2226_v27 = vmul.f32 %v8320_v36, %v2208_v46  ;;  %v2222_v38 = vmul.f32 %v8320_v36, %v2206_v18  ;;  %v1798_v61 = vpop.f32.mrf.mxu2  ;;  %v1775_v45 = vpop.f32.mrf.mxu3 }
 0x3df   : > { %2841 = vrot.lane.b32.xlu2 %v8617_v2, %s5610_s27  ;;  %v2224_v7 = vmul.f32 %v8320_v36, %v2207_v55 }
 0x3e0   : > { %2549 = vmatpush.msrb.mxu0 %v2280_v47  ;;  %2577 = vmatpush.msrb.mxu1 %v2390_v33  ;;  %v1799_v33 = vadd.f32 %v1798_v61, %v1775_v45 }
 0x3e1   : > { %2468 = vmatmul.f32.gmra.mxu1 %v1948_v0 }
 0x3e2   : > { %2550 = vmatpush.msrb.mxu0 %v2278_v31  ;;  %2578 = vmatpush.msrb.mxu1 %v2388_v25  ;;  %v1822_v25 = vadd.f32 %v1821_v48, %v1799_v33 }
 0x3e4   : > { %2551 = vmatpush.msrb.mxu0 %v2276_v53  ;;  %2579 = vmatpush.msrb.mxu1 %v2386_v14  ;;  %v1845_v55 = vadd.f32 %v1844_v32, %v1822_v25 }
 0x3e5   : > { %2839 = vrot.lane.b32.xlu1 %v8630_v12, %s5610_s27 }
 0x3e6   : > { %2552 = vmatpush.msrb.mxu0 %v2274_v13 }
 0x3e8   : > { %2553 = vmatpush.msrb.mxu0 %v2228_v29 }
 0x3e9   : > { %4951 = vmatmul.msk.f32.vlgmr.msrb.gmra.mxu1 %vm1106_vm9, %v8448_v23  ;;  %v1778_v59 = vpop.f32.mrf.mxu3 }
 0x3ea   : > { %2554 = vmatpush.msrb.mxu0 %v2226_v27 }
 0x3ec   : > { %2555 = vmatpush.msrb.mxu0 %v2224_v7 }
 0x3ee   : > { %2556 = vmatpush.msrb.mxu0 %v2222_v38 }
 0x3ef   : > { %2557 = vmatmul.f32.vlgmr.msrb.gmra.mxu0 %v8561_v42 }
 0x3f1   : > { %4952 = vmatmul.msk.f32.gmra.mxu1 %vm1106_vm9, %v8484_v8 }
 0x3f2   : > { %v8669_v8 = vpop.f32.mrf.mxu3 }
 0x3f7   : > { %2560 = vmatmul.f32.gmra.mxu0 %v1948_v0  ;;  %v1801_v62 = vpop.f32.mrf.mxu2 }
 0x3f8   : > { %v1802_v28 = vadd.f32 %v1801_v62, %v1778_v59  ;;  %v8677_v60 = vpop.permute.xlu0 %2605 }
 0x3f9   : > { %v8713_v38 = vadd.f32 %v8677_v60, %v1845_v55 }
 0x3fa   : > { %v1870_v26 = vpop.f32.mrf.mxu3 }
 0x3fb   : > { %12008 = vst [vmem:[#allocation54_spill] sm:$0xff] %v8713_v38 }
 0x3ff   : > { %v8673_v40 = vpop.f32.mrf.mxu2 }
 0x411   : > { %v1824_v51 = vpop.f32.mrf.mxu0  ;;  %v2611_v22 = vpop.permute.xlu1 %2610 }
 0x412   : > { %v1825_v24 = vadd.f32 %v1824_v51, %v1802_v28 }
 0x417   : > { %v1847_v23 = vpop.f32.mrf.mxu1  ;;  %v1916_v56 = vpop.f32.mrf.mxu2 }
 0x418   : > { %v1848_v37 = vadd.f32 %v1847_v23, %v1825_v24 }
 0x419   : > { %v8671_v4 = vpop.f32.mrf.mxu0 }
 0x41a   : > { %v8663_v36 = vadd.f32 %v2611_v22, %v1848_v37 }
 0x41c   : > { %12002 = vst [vmem:[#allocation32_spill] sm:$0xff] %v8663_v36  ;;  %2737 = vrot.lane.b32.xlu1 %v8663_v36, %s5608_s22 }
 0x41f   : > { %v8675_v19 = vpop.f32.mrf.mxu1 }
 0x421   : > { %v1939_v63 = vpop.f32.mrf.mxu0 }
 0x422   : > { %v8667_v42 = vpop.permute.xlu2 %2620 }
 0x423   : > { %v2420_v9 = vpop.f32.mrf.mxu3 }
 0x427   : > { %v1893_v52 = vpop.f32.mrf.mxu1 }
 0x428   : > { %v1894_v31 = vadd.f32 %v1893_v52, %v1870_v26 }
 0x42a   : > { %v1917_v14 = vadd.f32 %v1916_v56, %v1894_v31 }
 0x42b   : > { %v2616_v20 = vpop.permute.xlu2 %2615 }
 0x42c   : > { %v1940_v18 = vadd.f32 %v1939_v63, %v1917_v14 }
 0x42e   : > { %v8716_v45 = vadd.f32 %v2611_v22, %v1940_v18 }
 0x437   : > { %v2489_v34 = vpop.f32.mrf.mxu2 }
 0x439   : > { %v8679_v6 = vpop.permute.xlu2 %2841 }
 0x43a   : > { %v2423_v21 = vpop.f32.mrf.mxu3 }
 0x43f   : > { %v2492_v47 = vpop.f32.mrf.mxu2 }
 0x44a   : > { %v2512_v46 = vpop.f32.mrf.mxu2 }
 0x44c   : > { %v2443_v54 = vpop.f32.mrf.mxu0 }
 0x44d   : > { %v2444_v50 = vadd.f32 %v2443_v54, %v2420_v9 }
 0x44f   : > { %v8681_v43 = vpop.permute.xlu1 %2829  ;;  %v8691_v41 = vpop.permute.xlu0 %2827 }
 0x450   : > { %v2852_v57 = vsel %vm906_vm3, %v8681_v43, %v8679_v6 }
 0x451   : > { %v8688_v58 = vmul.f32 %v2852_v57, %v12003_v1 }
 0x452   : > { %v2535_v29 = vpop.f32.mrf.mxu3 }
 0x453   : > { %12004 = vst [vmem:[#allocation74_spill] sm:$0xff] %v8688_v58  ;;  %3068 = vmatpush.msra.mxu2 %v8688_v58  ;;  %v2536_v7 = vadd.f32 %v2535_v29, %v2512_v46  ;;  %v2515_v32 = vpop.f32.mrf.mxu2 }
 0x454   : > { %v2446_v15 = vpop.f32.mrf.mxu0 }
 0x455   : > { %v2447_v10 = vadd.f32 %v2446_v15, %v2423_v21 }
 0x456   : > { %v2466_v44 = vpop.f32.mrf.mxu1 }
 0x457   : > { %v8693_v30 = vpop.permute.xlu1 %2839  ;;  %v2467_v0 = vadd.f32 %v2466_v44, %v2444_v50 }
 0x458   : > { %v2851_v39 = vsel %vm906_vm3, %v8691_v41, %v8693_v30 }
 0x459   : > { %v8700_v5 = vmul.f32 %v2851_v39, %v12003_v1  ;;  %v2490_v53 = vadd.f32 %v2489_v34, %v2467_v0 }
 0x45a   : > { %v2538_v59 = vpop.f32.mrf.mxu3 }
 0x45b   : > { %12005 = vst [vmem:[#allocation47_spill] sm:$0xff] %v8700_v5  ;;  %3069 = vmatpush.msra.mxu2 %v8700_v5  ;;  %v8706_v27 = vadd.f32 %v2616_v20, %v2490_v53  ;;  %v2539_v24 = vadd.f32 %v2538_v59, %v2515_v32 }
 0x45d   : > { %12007 = vst [vmem:[#allocation30_spill] sm:$0xff] %v8706_v27 }
 0x45e   : > { %v2469_v35 = vpop.f32.mrf.mxu1 }
 0x45f   : > { %v2470_v16 = vadd.f32 %v2469_v35, %v2447_v10 }
 0x461   : > { %v2493_v3 = vadd.f32 %v2492_v47, %v2470_v16  ;;  %v12013_v47 = vld [vmem:[#allocation61_spill] sm:$0xff] }
 0x463   : > { %v8704_v13 = vadd.f32 %v8667_v42, %v2493_v3 }
 0x465   : > { %12006 = vst [vmem:[#allocation28_spill] sm:$0xff] %v8704_v13  ;;  %2933 = vrot.lane.b32.xlu2 %v8704_v13, %s5612_s18  ;;  %3070 = vmatpush.msra.mxu2 %v8704_v13 }
 0x466   : > { %v2581_v61 = vpop.f32.mrf.mxu1 }
 0x467   : > { %3071 = vmatpush.msra.mxu2 %v8706_v27 }
 0x469   : > { %3072 = vmatpush.msra.mxu2 %v8663_v36 }
 0x46b   : > { %3073 = vmatpush.msra.mxu2 %v8713_v38 }
 0x46c   : > { %v2558_v48 = vpop.f32.mrf.mxu0 }
 0x46d   : > { %v2559_v62 = vadd.f32 %v2558_v48, %v2536_v7  ;;  %2749 = vrot.lane.b32.xlu2 %v8716_v45, %s5608_s22  ;;  %3074 = vmatpush.msra.mxu2 %v8595_v11 }
 0x46e   : > { %v2584_v37 = vpop.f32.mrf.mxu1 }
 0x46f   : > { %v2582_v28 = vadd.f32 %v2581_v61, %v2559_v62  ;;  %3075 = vmatpush.msra.mxu2 %v8588_v17 }
 0x471   : > { %v8723_v51 = vadd.f32 %v2616_v20, %v2582_v28  ;;  %v1891_v20 = vadd.f32 %v8675_v19, %v8669_v8 }
 0x473   : > { %2943 = vrot.lane.b32.xlu1 %v8723_v51, %s5612_s18  ;;  %v1914_v56 = vadd.f32 %v8673_v40, %v1891_v20 }
 0x474   : > { %v2561_v23 = vpop.f32.mrf.mxu0 }
 0x475   : > { %v2562_v22 = vadd.f32 %v2561_v23, %v2539_v24  ;;  %2735 = vrot.lane.b32.xlu2 %v8713_v38, %s5608_s22 }
 0x477   : > { %v2585_v26 = vadd.f32 %v2584_v37, %v2562_v22 }
 0x479   : > { %v8730_v63 = vadd.f32 %v8667_v42, %v2585_v26  ;;  %v1937_v42 = vadd.f32 %v8671_v4, %v1914_v56 }
 0x47b   : > { %2945 = vrot.lane.b32.xlu0 %v8730_v63, %s5612_s18  ;;  %2929 = vrot.lane.b32.xlu1 %v8663_v36, %s5612_s18  ;;  %v8749_v52 = vadd.f32 %v8677_v60, %v1937_v42  ;;  %v12009_v60 = vld [vmem:[#allocation52_spill] sm:$0xff] }
 0x47d   : > { %2941 = vrot.lane.b32.xlu2 %v8716_v45, %s5612_s18 }
 0x483   : > { %2931 = vrot.lane.b32.xlu0 %v8706_v27, %s5612_s18  ;;  %2745 = vrot.lane.b32.xlu1 %v8617_v2, %s5608_s22 }
 0x485   : > { %2927 = vrot.lane.b32.xlu2 %v8713_v38, %s5612_s18 }
 0x48b   : > { %2731 = vrot.lane.b32.xlu1 %v8588_v17, %s5608_s22  ;;  %2747 = vrot.lane.b32.xlu0 %v8749_v52, %s5608_s22 }
 0x48d   : > { %2743 = vrot.lane.b32.xlu2 %v8630_v12, %s5608_s22 }
 0x48e   : > { %v8801_v4 = vpop.permute.xlu1 %2737 }
 0x493   : > { %2937 = vrot.lane.b32.xlu1 %v8617_v2, %s5612_s18  ;;  %2733 = vrot.lane.b32.xlu0 %v8595_v11, %s5608_s22 }
 0x495   : > { %2693 = vrot.lane.b32.xlu2 %v8704_v13, %s5607_s21 }
 0x49b   : > { %2923 = vrot.lane.b32.xlu1 %v8588_v17, %s5612_s18  ;;  %2939 = vrot.lane.b32.xlu0 %v8749_v52, %s5612_s18 }
 0x49d   : > { %2935 = vrot.lane.b32.xlu2 %v8630_v12, %s5612_s18 }
 0x4a3   : > { %2703 = vrot.lane.b32.xlu1 %v8723_v51, %s5607_s21  ;;  %2925 = vrot.lane.b32.xlu0 %v8595_v11, %s5612_s18 }
 0x4a5   : > { %2885 = vrot.lane.b32.xlu2 %v8704_v13, %s5611_s6 }
 0x4ab   : > { %2689 = vrot.lane.b32.xlu1 %v8663_v36, %s5607_s21  ;;  %2705 = vrot.lane.b32.xlu0 %v8730_v63, %s5607_s21 }
 0x4ad   : > { %2701 = vrot.lane.b32.xlu2 %v8716_v45, %s5607_s21 }
 0x4b3   : > { %2801 = vrot.lane.b32.xlu1 %v8730_v63, %s5609_s26  ;;  %2691 = vrot.lane.b32.xlu0 %v8706_v27, %s5607_s21 }
 0x4b5   : > { %2883 = vrot.lane.b32.xlu2 %v8706_v27, %s5611_s6 }
 0x4bb   : > { %2897 = vrot.lane.b32.xlu0 %v8730_v63, %s5611_s6  ;;  %2687 = vrot.lane.b32.xlu1 %v8713_v38, %s5607_s21 }
 0x4bd   : > { %2699 = vrot.lane.b32.xlu2 %v8749_v52, %s5607_s21 }
 0x4bf   : > { %v8793_v8 = vpop.permute.xlu2 %2933 }
 0x4c3   : > { %2789 = vrot.lane.b32.xlu0 %v8704_v13, %s5609_s26  ;;  %2799 = vrot.lane.b32.xlu1 %v8723_v51, %s5609_s26 }
 0x4c5   : > { %2881 = vrot.lane.b32.xlu2 %v8663_v36, %s5611_s6 }
 0x4c7   : > { %v8803_v40 = vpop.permute.xlu2 %2749 }
 0x4c8   : > { %v2764_v19 = vsel %vm794_vm0, %v8803_v40, %v8801_v4 }
 0x4c9   : > { %v8810_v9 = vmul.f32 %v2764_v19, %v12009_v60 }
 0x4cb   : > { %12010 = vst [vmem:[#allocation46_spill] sm:$0xff] %v8810_v9  ;;  %2895 = vrot.lane.b32.xlu0 %v8723_v51, %s5611_s6  ;;  %2685 = vrot.lane.b32.xlu1 %v8595_v11, %s5607_s21 }
 0x4cc   : > { %3045 = vmatpush.msra.mxu1 %v8810_v9 }
 0x4cd   : > { %2697 = vrot.lane.b32.xlu2 %v8617_v2, %s5607_s21 }
 0x4cf   : > { %v8819_v54 = vpop.permute.xlu2 %2735 }
 0x4d0   : > { %12011 = vst [vmem:[#allocation41_spill] sm:$0xff] %v8819_v54 }
 0x4d3   : > { %2787 = vrot.lane.b32.xlu0 %v8706_v27, %s5609_s26  ;;  %2797 = vrot.lane.b32.xlu1 %v8716_v45, %s5609_s26 }
 0x4d5   : > { %2879 = vrot.lane.b32.xlu2 %v8713_v38, %s5611_s6 }
 0x4d7   : > { %v8827_v34 = vpop.permute.xlu2 %2941 }
 0x4db   : > { %2893 = vrot.lane.b32.xlu0 %v8716_v45, %s5611_s6  ;;  %2683 = vrot.lane.b32.xlu1 %v8588_v17, %s5607_s21 }
 0x4dd   : > { %2695 = vrot.lane.b32.xlu2 %v8630_v12, %s5607_s21 }
 0x4df   : > { %v8835_v57 = vpop.permute.xlu2 %2927 }
 0x4e3   : > { %2785 = vrot.lane.b32.xlu0 %v8663_v36, %s5609_s26  ;;  %2795 = vrot.lane.b32.xlu1 %v8749_v52, %s5609_s26 }
 0x4e5   : > { %v8841_v44 = vpop.permute.xlu1 %2943  ;;  %2877 = vrot.lane.b32.xlu2 %v8595_v11, %s5611_s6 }
 0x4e7   : > { %v8845_v21 = vpop.permute.xlu2 %2743 }
 0x4e8   : > { %12012 = vst [vmem:[#allocation73_spill] sm:$0xff] %v8845_v21 }
 0x4eb   : > { %2891 = vrot.lane.b32.xlu0 %v8749_v52, %s5611_s6  ;;  %2645 = vrot.lane.b32.xlu1 %v8704_v13, %s5606_s13 }
 0x4ed   : > { %v8851_v15 = vpop.permute.xlu1 %2929  ;;  %v8853_v39 = vpop.permute.xlu0 %2945  ;;  %2657 = vrot.lane.b32.xlu2 %v8730_v63, %s5606_s13 }
 0x4ee   : > { %v2952_v50 = vsel %vm1018_vm5, %v8793_v8, %v8853_v39  ;;  %v2950_v16 = vsel %vm1018_vm5, %v8851_v15, %v8827_v34 }
 0x4ef   : > { %v8862_v10 = vmul.f32 %v2952_v50, %v12013_v47  ;;  %v8864_v33 = vpop.permute.xlu2 %2693  ;;  %v8892_v3 = vmul.f32 %v2950_v16, %v12013_v47 }
 0x4f0   : > { %12015 = vst [vmem:[#allocation70_spill] sm:$0xff] %v8864_v33 }
 0x4f1   : > { %12014 = vst [vmem:[#allocation34_spill] sm:$0xff] %v8862_v10  ;;  %3091 = vmatpush.msra.mxu3 %v8862_v10 }
 0x4f2   : > { %12018 = vst [vmem:[#allocation29_spill] sm:$0xff] %v8892_v3 }
 0x4f3   : > { %2783 = vrot.lane.b32.xlu0 %v8713_v38, %s5609_s26  ;;  %2793 = vrot.lane.b32.xlu1 %v8617_v2, %s5609_s26 }
 0x4f5   : > { %v8871_v0 = vpop.permute.xlu1 %2745  ;;  %v8873_v35 = vpop.permute.xlu0 %2931  ;;  %2875 = vrot.lane.b32.xlu2 %v8588_v17, %s5611_s6 }
 0x4f6   : > { %12016 = vst [vmem:[#allocation65_spill] sm:$0xff] %v8871_v0  ;;  %v2951_v31 = vsel %vm1018_vm5, %v8873_v35, %v8841_v44 }
 0x4f7   : > { %v8886_v25 = vmul.f32 %v2951_v31, %v12013_v47  ;;  %v8888_v53 = vpop.permute.xlu2 %2935 }
 0x4f9   : > { %12017 = vst [vmem:[#allocation71_spill] sm:$0xff] %v8886_v25  ;;  %3092 = vmatpush.msra.mxu3 %v8886_v25 }
 0x4fb   : > { %2889 = vrot.lane.b32.xlu0 %v8617_v2, %s5611_s6  ;;  %2643 = vrot.lane.b32.xlu1 %v8706_v27, %s5606_s13 }
 0x4fc   : > { %3093 = vmatpush.msra.mxu3 %v8892_v3 }
 0x4fd   : > { %v8899_v14 = vpop.permute.xlu1 %2731  ;;  %v8901_v46 = vpop.permute.xlu0 %2747  ;;  %2655 = vrot.lane.b32.xlu2 %v8723_v51, %s5606_s13 }
 0x4fe   : > { %12019 = vst [vmem:[#allocation43_spill] sm:$0xff] %v8899_v14  ;;  %v2763_v29 = vsel %vm794_vm0, %v8901_v46, %v8819_v54  ;;  %v2761_v62 = vsel %vm794_vm0, %v8845_v21, %v8899_v14 }
 0x4ff   : > { %12020 = vst [vmem:[#allocation36_spill] sm:$0xff] %v8901_v46  ;;  %v8910_v55 = vmul.f32 %v2763_v29, %v12009_v60  ;;  %v8912_v18 = vpop.permute.xlu2 %2885  ;;  %v8940_v28 = vmul.f32 %v2761_v62, %v12009_v60  ;;  %v12079_v46 = vld [vmem:[#allocation62_spill] sm:$0xff] }
 0x501   : > { %12021 = vst [vmem:[#allocation35_spill] sm:$0xff] %v8910_v55  ;;  %3046 = vmatpush.msra.mxu1 %v8910_v55 }
 0x502   : > { %12025 = vst [vmem:[#allocation68_spill] sm:$0xff] %v8940_v28 }
 0x503   : > { %2781 = vrot.lane.b32.xlu0 %v8595_v11, %s5609_s26  ;;  %2791 = vrot.lane.b32.xlu1 %v8630_v12, %s5609_s26 }
 0x505   : > { %v8919_v7 = vpop.permute.xlu1 %2937  ;;  %v8921_v61 = vpop.permute.xlu0 %2733  ;;  %2837 = vrot.lane.b32.xlu2 %v8704_v13, %s5610_s27 }
 0x506   : > { %12022 = vst [vmem:[#allocation69_spill] sm:$0xff] %v8921_v61  ;;  %v2762_v48 = vsel %vm794_vm0, %v8871_v0, %v8921_v61  ;;  %v2958_v0 = vsel %vm1018_vm5, %v8853_v39, %v8793_v8  ;;  %v9357_v8 = vld [vmem:[#allocation13 + $0x8] sm:$0xff]  ;;  %v2956_v39 = vsel %vm1018_vm5, %v8827_v34, %v8851_v15 }
 0x507   : > { %v8934_v32 = vmul.f32 %v2762_v48, %v12009_v60  ;;  %v8936_v59 = vpop.permute.xlu2 %2701 }
 0x508   : > { %12024 = vst [vmem:[#allocation33_spill] sm:$0xff] %v8936_v59 }
 0x509   : > { %12023 = vst [vmem:[#allocation44_spill] sm:$0xff] %v8934_v32  ;;  %3047 = vmatpush.msra.mxu1 %v8934_v32 }
 0x50b   : > { %2887 = vrot.lane.b32.xlu0 %v8630_v12, %s5611_s6  ;;  %2641 = vrot.lane.b32.xlu1 %v8663_v36, %s5606_s13 }
 0x50c   : > { %3048 = vmatpush.msra.mxu1 %v8940_v28 }
 0x50d   : > { %v8947_v24 = vpop.permute.xlu1 %2923  ;;  %v8949_v23 = vpop.permute.xlu0 %2939  ;;  %2653 = vrot.lane.b32.xlu2 %v8716_v45, %s5606_s13 }
 0x50e   : > { %v2949_v37 = vsel %vm1018_vm5, %v8835_v57, %v8949_v23  ;;  %v2947_v19 = vsel %vm1018_vm5, %v8947_v24, %v8888_v53 }
 0x50f   : > { %v8958_v22 = vmul.f32 %v2949_v37, %v12013_v47  ;;  %v8960_v26 = vpop.permute.xlu2 %2883  ;;  %v8988_v16 = vmul.f32 %v2947_v19, %v12013_v47  ;;  %v12033_v37 = vld [vmem:[#allocation53_spill] sm:$0xff] }
 0x511   : > { %12026 = vst [vmem:[#allocation38_spill] sm:$0xff] %v8958_v22  ;;  %3094 = vmatpush.msra.mxu3 %v8958_v22 }
 0x512   : > { %12030 = vst [vmem:[#allocation27_spill] sm:$0xff] %v8988_v16 }
 0x513   : > { %2779 = vrot.lane.b32.xlu0 %v8588_v17, %s5609_s26  ;;  %2753 = vrot.lane.b32.xlu1 %v8730_v63, %s5608_s22 }
 0x515   : > { %v8967_v20 = vpop.permute.xlu1 %2703  ;;  %v8969_v56 = vpop.permute.xlu0 %2925  ;;  %2835 = vrot.lane.b32.xlu2 %v8706_v27, %s5610_s27 }
 0x516   : > { %12027 = vst [vmem:[#allocation49_spill] sm:$0xff] %v8967_v20  ;;  %v2948_v42 = vsel %vm1018_vm5, %v8969_v56, %v8919_v7  ;;  %v2954_v34 = vsel %vm1018_vm5, %v8919_v7, %v8969_v56 }
 0x517   : > { %v8982_v50 = vmul.f32 %v2948_v42, %v12013_v47  ;;  %v8984_v31 = vpop.permute.xlu2 %2699 }
 0x518   : > { %12029 = vst [vmem:[#allocation39_spill] sm:$0xff] %v8984_v31 }
 0x519   : > { %12028 = vst [vmem:[#allocation45_spill] sm:$0xff] %v8982_v50  ;;  %3095 = vmatpush.msra.mxu3 %v8982_v50 }
 0x51b   : > { %2849 = vrot.lane.b32.xlu0 %v8730_v63, %s5610_s27  ;;  %2639 = vrot.lane.b32.xlu1 %v8713_v38, %s5606_s13 }
 0x51c   : > { %3096 = vmatpush.msra.mxu3 %v8988_v16 }
 0x51d   : > { %v8995_v29 = vpop.permute.xlu1 %2689  ;;  %v8997_v48 = vpop.permute.xlu0 %2705  ;;  %2651 = vrot.lane.b32.xlu2 %v8749_v52, %s5606_s13 }
 0x51e   : > { %12031 = vst [vmem:[#allocation42_spill] sm:$0xff] %v8995_v29  ;;  %v2718_v62 = vsel %vm738_vm1, %v8997_v48, %v8864_v33  ;;  %v2716_v50 = vsel %vm738_vm1, %v8936_v59, %v8995_v29 }
 0x51f   : > { %12032 = vst [vmem:[#allocation37_spill] sm:$0xff] %v8997_v48  ;;  %v9006_v42 = vmul.f32 %v2718_v62, %v12033_v37  ;;  %v9008_v19 = vpop.permute.xlu2 %2881  ;;  %v9036_v28 = vmul.f32 %v2716_v50, %v12033_v37 }
 0x521   : > { %12034 = vst [vmem:[#allocation72_spill] sm:$0xff] %v9006_v42  ;;  %3049 = vmatpush.msra.mxu1 %v9006_v42 }
 0x522   : > { %12038 = vst [vmem:[#allocation78_spill] sm:$0xff] %v9036_v28 }
 0x523   : > { %2741 = vrot.lane.b32.xlu0 %v8704_v13, %s5608_s22  ;;  %2751 = vrot.lane.b32.xlu1 %v8723_v51, %s5608_s22 }
 0x525   : > { %v9015_v47 = vpop.permute.xlu1 %2801  ;;  %v9017_v16 = vpop.permute.xlu0 %2691  ;;  %2833 = vrot.lane.b32.xlu2 %v8663_v36, %s5610_s27 }
 0x526   : > { %12035 = vst [vmem:[#allocation75_spill] sm:$0xff] %v9017_v16  ;;  %v2717_v62 = vsel %vm738_vm1, %v8967_v20, %v9017_v16 }
 0x527   : > { %v9030_v42 = vmul.f32 %v2717_v62, %v12033_v37  ;;  %v9032_v22 = vpop.permute.xlu2 %2697 }
 0x528   : > { %12037 = vst [vmem:[#allocation77_spill] sm:$0xff] %v9032_v22 }
 0x529   : > { %12036 = vst [vmem:[#allocation76_spill] sm:$0xff] %v9030_v42  ;;  %3050 = vmatpush.msra.mxu1 %v9030_v42 }
 0x52b   : > { %2847 = vrot.lane.b32.xlu0 %v8723_v51, %s5610_s27  ;;  %2981 = vrot.lane.b32.xlu1 %v8704_v13, %s5613_s25 }
 0x52c   : > { %3051 = vmatpush.msra.mxu1 %v9036_v28  ;;  %v12041_v28 = vld [vmem:[#allocation63_spill] sm:$0xff] }
 0x52d   : > { %v9043_v3 = vpop.permute.xlu1 %2687  ;;  %v9045_v32 = vpop.permute.xlu0 %2897  ;;  %2993 = vrot.lane.b32.xlu2 %v8730_v63, %s5613_s25 }
 0x52e   : > { %12039 = vst [vmem:[#allocation79_spill] sm:$0xff] %v9043_v3  ;;  %v2715_v62 = vsel %vm738_vm1, %v8984_v31, %v9043_v3  ;;  %v2904_v50 = vsel %vm962_vm6, %v8912_v18, %v9045_v32 }
 0x52f   : > { %v9058_v42 = vmul.f32 %v2715_v62, %v12033_v37  ;;  %v9061_v13 = vmul.f32 %v2904_v50, %v12041_v28  ;;  %v9063_v25 = vpop.permute.xlu2 %2879  ;;  %v12043_v50 = vld [vmem:[#allocation58_spill] sm:$0xff] }
 0x531   : > { %12040 = vst [vmem:[#allocation80_spill] sm:$0xff] %v9058_v42  ;;  %3052 = vmatpush.msra.mxu1 %v9058_v42  ;;  %3097 = vmatpush.msra.mxu3 %v9061_v13 }
 0x532   : > { %12042 = vst [vmem:[#allocation81_spill] sm:$0xff] %v9061_v13 }
 0x533   : > { %2739 = vrot.lane.b32.xlu0 %v8706_v27, %s5608_s22  ;;  %2649 = vrot.lane.b32.xlu1 %v8617_v2, %s5606_s13 }
 0x535   : > { %v9071_v5 = vpop.permute.xlu1 %2799  ;;  %v9073_v55 = vpop.permute.xlu0 %2789  ;;  %2831 = vrot.lane.b32.xlu2 %v8713_v38, %s5610_s27 }
 0x536   : > { %v2814_v62 = vsel %vm850_vm4, %v9015_v47, %v9073_v55 }
 0x537   : > { %v9082_v42 = vmul.f32 %v2814_v62, %v12043_v50  ;;  %v9084_v13 = vpop.permute.xlu2 %2695 }
 0x538   : > { %12045 = vst [vmem:[#allocation83_spill] sm:$0xff] %v9084_v13 }
 0x539   : > { %12044 = vst [vmem:[#allocation82_spill] sm:$0xff] %v9082_v42  ;;  %3076 = vmatpush.msra.mxu2 %v9082_v42 }
 0x53b   : > { %2845 = vrot.lane.b32.xlu0 %v8716_v45, %s5610_s27  ;;  %2979 = vrot.lane.b32.xlu1 %v8706_v27, %s5613_s25 }
 0x53d   : > { %v9091_v10 = vpop.permute.xlu1 %2685  ;;  %v9093_v58 = vpop.permute.xlu0 %2895  ;;  %2991 = vrot.lane.b32.xlu2 %v8723_v51, %s5613_s25 }
 0x53e   : > { %12046 = vst [vmem:[#allocation84_spill] sm:$0xff] %v9091_v10  ;;  %v2714_v62 = vsel %vm738_vm1, %v9032_v22, %v9091_v10  ;;  %v2903_v42 = vsel %vm962_vm6, %v8960_v26, %v9093_v58 }
 0x53f   : > { %v9106_v9 = vmul.f32 %v2714_v62, %v12033_v37  ;;  %v9109_v27 = vmul.f32 %v2903_v42, %v12041_v28  ;;  %v2878_v3 = vpop.permute.xlu2 %2877 }
 0x541   : > { %12047 = vst [vmem:[#allocation85_spill] sm:$0xff] %v9106_v9  ;;  %3053 = vmatpush.msra.mxu1 %v9106_v9  ;;  %3098 = vmatpush.msra.mxu3 %v9109_v27 }
 0x542   : > { %12048 = vst [vmem:[#allocation86_spill] sm:$0xff] %v9109_v27 }
 0x543   : > { %2637 = vrot.lane.b32.xlu0 %v8595_v11, %s5606_s13  ;;  %2647 = vrot.lane.b32.xlu1 %v8630_v12, %s5606_s13 }
 0x545   : > { %v9117_v10 = vpop.permute.xlu1 %2797  ;;  %v9119_v22 = vpop.permute.xlu0 %2787  ;;  %2977 = vrot.lane.b32.xlu2 %v8663_v36, %s5613_s25 }
 0x546   : > { %v2813_v42 = vsel %vm850_vm4, %v9071_v5, %v9119_v22 }
 0x547   : > { %v9128_v62 = vmul.f32 %v2813_v42, %v12043_v50  ;;  %v2658_v9 = vpop.permute.xlu2 %2657 }
 0x549   : > { %12049 = vst [vmem:[#allocation87_spill] sm:$0xff] %v9128_v62  ;;  %3077 = vmatpush.msra.mxu2 %v9128_v62 }
 0x54b   : > { %2843 = vrot.lane.b32.xlu0 %v8749_v52, %s5610_s27  ;;  %2975 = vrot.lane.b32.xlu1 %v8713_v38, %s5613_s25 }
 0x54d   : > { %v9135_v27 = vpop.permute.xlu1 %2683  ;;  %v9137_v31 = vpop.permute.xlu0 %2893  ;;  %2987 = vrot.lane.b32.xlu2 %v8749_v52, %s5613_s25 }
 0x54e   : > { %12050 = vst [vmem:[#allocation88_spill] sm:$0xff] %v9135_v27  ;;  %v2713_v36 = vsel %vm738_vm1, %v9084_v13, %v9135_v27  ;;  %v2902_v42 = vsel %vm962_vm6, %v9008_v19, %v9137_v31 }
 0x54f   : > { %v9150_v62 = vmul.f32 %v2713_v36, %v12033_v37  ;;  %v9153_v38 = vmul.f32 %v2902_v42, %v12041_v28  ;;  %v9157_v29 = vpop.permute.xlu2 %2875  ;;  %v3027_v37 = vld [vmem:[%s12054_s9] sm:$0xff] }
 0x551   : > { %12051 = vst [vmem:[#allocation89_spill] sm:$0xff] %v9150_v62  ;;  %3054 = vmatpush.msra.mxu1 %v9150_v62  ;;  %3099 = vmatpush.msra.mxu3 %v9153_v38  ;;  %v3028_v62 = vld [vmem:[%s12054_s9 + $0x8] sm:$0x1] }
 0x552   : > { %12052 = vst [vmem:[#allocation90_spill] sm:$0xff] %v9153_v38 }
 0x553   : > { %2635 = vrot.lane.b32.xlu0 %v8588_v17, %s5606_s13  ;;  %2985 = vrot.lane.b32.xlu1 %v8617_v2, %s5613_s25 }
 0x555   : > { %v2796_v27 = vpop.permute.xlu1 %2795  ;;  %v9163_v13 = vpop.permute.xlu0 %2785  ;;  %2971 = vrot.lane.b32.xlu2 %v8588_v17, %s5613_s25 }
 0x556   : > { %v2812_v36 = vsel %vm850_vm4, %v9117_v10, %v9163_v13 }
 0x557   : > { %v9172_v42 = vmul.f32 %v2812_v36, %v12043_v50  ;;  %v2656_v38 = vpop.permute.xlu2 %2655 }
 0x559   : > { %12053 = vst [vmem:[#allocation91_spill] sm:$0xff] %v9172_v42  ;;  %3078 = vmatpush.msra.mxu2 %v9172_v42  ;;  %v12056_v42 = vld [vmem:[#allocation55_spill] sm:$0xff] }
 0x55b   : > { %2989 = vrot.lane.b32.xlu0 %v8716_v45, %s5613_s25  ;;  %3031 = vperm.xlu1 %5166, %v3027_v37  }
 0x55d   : > { %v2646_v59 = vpop.permute.xlu1 %2645  ;;  %v9183_v17 = vpop.permute.xlu0 %2891  ;;  %3036 = vperm.xlu2 %5167, %v3028_v62  }
 0x55e   : > { %v9187_v36 = vsel %vm683_vm2, %v2646_v59, %v2658_v9  ;;  %v2670_v16 = vsel %vm683_vm2, %v2658_v9, %v2646_v59  ;;  %v2901_v37 = vsel %vm962_vm6, %v9063_v25, %v9183_v17 }
 0x55f   : > { %12055 = vst [vmem:[#allocation92_spill] sm:$0xff] %v9187_v36  ;;  %v9196_v20 = vmul.f32 %v2670_v16, %v12056_v42  ;;  %v9199_v33 = vmul.f32 %v2901_v37, %v12041_v28  ;;  %v9205_v36 = vpop.permute.xlu2 %2837 }
 0x561   : > { %12057 = vst [vmem:[#allocation93_spill] sm:$0xff] %v9196_v20  ;;  %3055 = vmatpush.msra.mxu1 %v9196_v20  ;;  %3100 = vmatpush.msra.mxu3 %v9199_v33 }
 0x562   : > { %12058 = vst [vmem:[#allocation94_spill] sm:$0xff] %v9199_v33 }
 0x563   : > { %2973 = vrot.lane.b32.xlu0 %v8595_v11, %s5613_s25 }
 0x565   : > { %v2794_v9 = vpop.permute.xlu1 %2793  ;;  %v2784_v59 = vpop.permute.xlu0 %2783 }
 0x566   : > { %v9209_v62 = vsel %vm850_vm4, %v2784_v59, %v2796_v27  ;;  %v2811_v16 = vsel %vm850_vm4, %v2796_v27, %v2784_v59 }
 0x567   : > { %12059 = vst [vmem:[#allocation95_spill] sm:$0xff] %v9209_v62  ;;  %v9214_v37 = vmul.f32 %v2811_v16, %v12043_v50  ;;  %v2654_v14 = vpop.permute.xlu2 %2653  ;;  %v9355_v62 = vmul.f32 %v2958_v0, %v12079_v46 }
 0x569   : > { %12060 = vst [vmem:[#allocation96_spill] sm:$0xff] %v9214_v37  ;;  %3079 = vmatpush.msra.mxu2 %v9214_v37 }
 0x56b   : > { %2983 = vrot.lane.b32.xlu0 %v8630_v12, %s5613_s25 }
 0x56d   : > { %v2644_v20 = vpop.permute.xlu1 %2643  ;;  %v2890_v33 = vpop.permute.xlu0 %2889 }
 0x56e   : > { %v9221_v11 = vsel %vm683_vm2, %v2644_v20, %v2656_v38  ;;  %v2669_v48 = vsel %vm683_vm2, %v2656_v38, %v2644_v20  ;;  %v2900_v27 = vsel %vm962_vm6, %v2878_v3, %v2890_v33  ;;  %v9229_v59 = vsel %vm962_vm6, %v2890_v33, %v2878_v3 }
 0x56f   : > { %12061 = vst [vmem:[#allocation97_spill] sm:$0xff] %v9221_v11  ;;  %v9232_v16 = vmul.f32 %v2669_v48, %v12056_v42  ;;  %v9235_v37 = vmul.f32 %v2900_v27, %v12041_v28  ;;  %v9249_v48 = vpop.permute.xlu2 %2835 }
 0x571   : > { %12062 = vst [vmem:[#allocation98_spill] sm:$0xff] %v9232_v16  ;;  %3056 = vmatpush.msra.mxu1 %v9232_v16  ;;  %3101 = vmatpush.msra.mxu3 %v9235_v37 }
 0x572   : > { %12063 = vst [vmem:[#allocation99_spill] sm:$0xff] %v9235_v37 }
 0x575   : > { %v2792_v11 = vpop.permute.xlu1 %2791  ;;  %v2782_v38 = vpop.permute.xlu0 %2781 }
 0x576   : > { %v9241_v20 = vsel %vm850_vm4, %v2782_v38, %v2794_v9  ;;  %v2810_v33 = vsel %vm850_vm4, %v2794_v9, %v2782_v38 }
 0x577   : > { %12064 = vst [vmem:[#allocation100_spill] sm:$0xff] %v9241_v20  ;;  %v9246_v3 = vmul.f32 %v2810_v33, %v12043_v50 }
 0x579   : > { %12065 = vst [vmem:[#allocation101_spill] sm:$0xff] %v9246_v3  ;;  %3080 = vmatpush.msra.mxu2 %v9246_v3  ;;  %v2652_v3 = vpop.permute.xlu2 %2651 }
 0x57d   : > { %v2642_v27 = vpop.permute.xlu1 %2641  ;;  %v9251_v16 = vpop.permute.xlu0 %2887 }
 0x57e   : > { %v9255_v37 = vsel %vm683_vm2, %v2642_v27, %v2654_v14  ;;  %v2668_v21 = vsel %vm683_vm2, %v2654_v14, %v2642_v27  ;;  %v2899_v9 = vsel %vm962_vm6, %v9157_v29, %v9251_v16 }
 0x57f   : > { %12066 = vst [vmem:[#allocation102_spill] sm:$0xff] %v9255_v37  ;;  %v9264_v38 = vmul.f32 %v2668_v21, %v12056_v42  ;;  %v9267_v33 = vmul.f32 %v2899_v9, %v12041_v28 }
 0x581   : > { %12067 = vst [vmem:[#allocation103_spill] sm:$0xff] %v9264_v38  ;;  %3057 = vmatpush.msra.mxu1 %v9264_v38  ;;  %3102 = vmatpush.msra.mxu3 %v9267_v33  ;;  %v9283_v38 = vpop.permute.xlu2 %2833 }
 0x582   : > { %12068 = vst [vmem:[#allocation104_spill] sm:$0xff] %v9267_v33 }
 0x585   : > { %v2754_v37 = vpop.permute.xlu1 %2753  ;;  %v2780_v61 = vpop.permute.xlu0 %2779 }
 0x586   : > { %v9273_v14 = vsel %vm850_vm4, %v2780_v61, %v2792_v11  ;;  %v2809_v27 = vsel %vm850_vm4, %v2792_v11, %v2780_v61 }
 0x587   : > { %12069 = vst [vmem:[#allocation105_spill] sm:$0xff] %v9273_v14  ;;  %v9278_v21 = vmul.f32 %v2809_v27, %v12043_v50 }
 0x589   : > { %12070 = vst [vmem:[#allocation106_spill] sm:$0xff] %v9278_v21  ;;  %3081 = vmatpush.msra.mxu2 %v9278_v21 }
 0x58d   : > { %v2640_v9 = vpop.permute.xlu1 %2639  ;;  %v9281_v28 = vpop.permute.xlu0 %2849 }
 0x58e   : > { %v9287_v33 = vsel %vm683_vm2, %v2640_v9, %v2652_v3  ;;  %v2667_v14 = vsel %vm683_vm2, %v2652_v3, %v2640_v9  ;;  %v2856_v11 = vsel %vm906_vm3, %v9205_v36, %v9281_v28 }
 0x58f   : > { %12071 = vst [vmem:[#allocation107_spill] sm:$0xff] %v9287_v33  ;;  %v9296_v61 = vmul.f32 %v2667_v14, %v12056_v42  ;;  %v9299_v27 = vmul.f32 %v2856_v11, %v12003_v1  ;;  %v9312_v14 = vpop.permute.xlu2 %2993 }
 0x591   : > { %12072 = vst [vmem:[#allocation108_spill] sm:$0xff] %v9296_v61  ;;  %3058 = vmatpush.msra.mxu1 %v9296_v61  ;;  %3103 = vmatpush.msra.mxu3 %v9299_v27 }
 0x592   : > { %12073 = vst [vmem:[#allocation109_spill] sm:$0xff] %v9299_v27 }
 0x595   : > { %v2752_v50 = vpop.permute.xlu1 %2751  ;;  %v2742_v21 = vpop.permute.xlu0 %2741 }
 0x596   : > { %v9305_v3 = vsel %vm794_vm0, %v2742_v21, %v2754_v37  ;;  %v2766_v9 = vsel %vm794_vm0, %v2754_v37, %v2742_v21  ;;  %v12076_v21 = vld [vmem:[#allocation66_spill] sm:$0xff] }
 0x597   : > { %12074 = vst [vmem:[#allocation110_spill] sm:$0xff] %v9305_v3  ;;  %v9310_v33 = vmul.f32 %v2766_v9, %v12009_v60 }
 0x599   : > { %12075 = vst [vmem:[#allocation111_spill] sm:$0xff] %v9310_v33  ;;  %3082 = vmatpush.msra.mxu2 %v9310_v33  ;;  %v9335_v33 = vpop.permute.xlu2 %2831 }
 0x59d   : > { %v9315_v11 = vpop.permute.xlu1 %2981  ;;  %v9317_v61 = vpop.permute.xlu0 %2847 }
 0x59e   : > { %v3000_v27 = vsel %vm1074_vm7, %v9315_v11, %v9312_v14  ;;  %v2855_v37 = vsel %vm906_vm3, %v9249_v48, %v9317_v61 }
 0x59f   : > { %v9328_v9 = vmul.f32 %v3000_v27, %v12076_v21  ;;  %v9331_v3 = vmul.f32 %v2855_v37, %v12003_v1 }
 0x5a1   : > { %12077 = vst [vmem:[#allocation112_spill] sm:$0xff] %v9328_v9  ;;  %3104 = vmatpush.msra.mxu3 %v9331_v3  ;;  %3124 = vmatpush.msra.mxu0 %v9328_v9  ;;  %v2992_v0 = vpop.permute.xlu2 %2991 }
 0x5a2   : > { %12078 = vst [vmem:[#allocation113_spill] sm:$0xff] %v9331_v3  ;;  %v2957_v3 = vsel %vm1018_vm5, %v8841_v44, %v8873_v35  ;;  %v2955_v44 = vsel %vm1018_vm5, %v8949_v23, %v8835_v57  ;;  %v9375_v35 = vmul.f32 %v2956_v39, %v12079_v46  ;;  %v9402_v39 = vmul.f32 %v2954_v34, %v12079_v46  ;;  %v12080_v34 = vld [vmem:[#allocation64_spill] sm:$0xff] }
 0x5a3   : > { %v9388_v23 = vmul.f32 %v2955_v44, %v12079_v46  ;;  %v2910_v44 = vsel %vm962_vm6, %v9045_v32, %v8912_v18  ;;  %v2908_v32 = vsel %vm962_vm6, %v9137_v31, %v9008_v19 }
 0x5a4   : > { %v9423_v18 = vmul.f32 %v2910_v44, %v12080_v34  ;;  %v9448_v19 = vmul.f32 %v2908_v32, %v12080_v34  ;;  %v2862_v44 = vsel %vm906_vm3, %v9281_v28, %v9205_v36  ;;  %v2861_v28 = vsel %vm906_vm3, %v9317_v61, %v9249_v48 }
 0x5a5   : > { %v2650_v20 = vpop.permute.xlu1 %2649  ;;  %v2740_v54 = vpop.permute.xlu0 %2739 }
 0x5a6   : > { %v9343_v27 = vsel %vm794_vm0, %v2740_v54, %v2752_v50  ;;  %v2765_v37 = vsel %vm794_vm0, %v2752_v50, %v2740_v54  ;;  %v9366_v54 = vmul.f32 %v2957_v3, %v12079_v46  ;;  %12081 = vst [vmem:[#allocation114_spill] sm:$0xff] %v9448_v19 }
 0x5a7   : > { %v9352_v9 = vmul.f32 %v2765_v37, %v12009_v60  ;;  %v2953_v37 = vsel %vm1018_vm5, %v8888_v53, %v8947_v24  ;;  %v9404_v60 = vld [vmem:[#allocation13 + $0x28] sm:$0x1]  ;;  %v2909_v24 = vsel %vm962_vm6, %v9093_v58, %v8960_v26 }
 0x5a8   : > { %v9414_v53 = vmul.f32 %v2953_v37, %v12079_v46  ;;  %v9437_v26 = vmul.f32 %v2909_v24, %v12080_v34  ;;  %v2907_v37 = vsel %vm962_vm6, %v9183_v17, %v9063_v25  ;;  %v2905_v17 = vsel %vm962_vm6, %v9251_v16, %v9157_v29  ;;  %v12085_v16 = vld [vmem:[#allocation57_spill] sm:$0xff] }
 0x5a9   : > { %3083 = vmatpush.msra.mxu2 %v9352_v9  ;;  %v9461_v25 = vmul.f32 %v9229_v59, %v12080_v34  ;;  %v3006_v24 = vsel %vm1074_vm7, %v9312_v14, %v9315_v11  ;;  %v9489_v14 = vmul.f32 %v2862_v44, %v12085_v16  ;;  %v12087_v11 = vld [vmem:[#allocation67_spill] sm:$0xff]  ;;  %v9502_v61 = vmul.f32 %v2861_v28, %v12085_v16 }
 0x5aa   : > { %3084 = vmatmul.f32.vlgmr.msra.gmra.mxu2 %v9357_v8  ;;  %v9534_v28 = vld [vmem:[#allocation13] sm:$0xff] }
 0x5ab   : > { %3183 = vmatpush.msrb.mxu2 %v9355_v62  ;;  %12083 = vst [vmem:[#allocation116_spill] sm:$0xff] %v9461_v25 }
 0x5ac   : > { %12086 = vst [vmem:[#allocation118_spill] sm:$0xff] %v9489_v14 }
 0x5ad   : > { %3184 = vmatpush.msrb.mxu2 %v9366_v54  ;;  %v2980_v15 = vpop.permute.xlu1 %2979  ;;  %v2846_v50 = vpop.permute.xlu0 %2845  ;;  %12088 = vst [vmem:[#allocation119_spill] sm:$0xff] %v9502_v61 }
 0x5ae   : > { %v2999_v3 = vsel %vm1074_vm7, %v2980_v15, %v2992_v0  ;;  %v2854_v57 = vsel %vm906_vm3, %v9283_v38, %v2846_v50  ;;  %v3005_v36 = vsel %vm1074_vm7, %v2992_v0, %v2980_v15  ;;  %v2978_v15 = vpop.permute.xlu2 %2977 }
 0x5af   : > { %3185 = vmatpush.msrb.mxu2 %v9375_v35  ;;  %v9395_v7 = vmul.f32 %v2999_v3, %v12076_v21  ;;  %v9398_v56 = vmul.f32 %v2854_v57, %v12003_v1  ;;  %v9505_v0 = vmul.f32 %v3005_v36, %v12087_v11 }
 0x5b1   : > { %3186 = vmatpush.msrb.mxu2 %v9388_v23  ;;  %3105 = vmatpush.msra.mxu3 %v9398_v56 }
 0x5b2   : > { %3125 = vmatpush.msra.mxu0 %v9395_v7  ;;  %3087 = vmatmul.f32.gmra.mxu2 %v9404_v60 }
 0x5b3   : > { %3187 = vmatpush.msrb.mxu2 %v9402_v39 }
 0x5b5   : > { %3188 = vmatpush.msrb.mxu2 %v9414_v53  ;;  %v2638_v3 = vpop.permute.xlu0 %2637  ;;  %v9498_v48 = vpop.permute.xlu1 %2647 }
 0x5b6   : > { %v9431_v57 = vsel %vm683_vm2, %v2638_v3, %v2650_v20  ;;  %v2666_v58 = vsel %vm683_vm2, %v2650_v20, %v2638_v3  ;;  %v9453_v20 = vmul.f32 %v2907_v37, %v12080_v34  ;;  %v9473_v3 = vmul.f32 %v2905_v17, %v12080_v34  ;;  %v3021_v37 = vld [vmem:[#allocation13 + $0x10] sm:$0xff] }
 0x5b7   : > { %3189 = vmatpush.msrb.mxu2 %v9423_v18  ;;  %v9444_v31 = vmul.f32 %v2666_v58, %v12056_v42  ;;  %v9492_v58 = vmul.f32 %v3006_v24, %v12087_v11  ;;  %v2860_v17 = vsel %vm906_vm3, %v2846_v50, %v9283_v38  ;;  %v2858_v24 = vsel %vm906_vm3, %v8679_v6, %v8681_v43  ;;  %v3025_v43 = vld [vmem:[#allocation13 + $0x30] sm:$0x1] }
 0x5b8   : > { %12082 = vst [vmem:[#allocation115_spill] sm:$0xff] %v9453_v20  ;;  %v9513_v38 = vmul.f32 %v2860_v17, %v12085_v16  ;;  %v2857_v6 = vsel %vm906_vm3, %v8693_v30, %v8691_v41  ;;  %v9542_v36 = vmul.f32 %v2858_v24, %v12085_v16 }
 0x5b9   : > { %3190 = vmatpush.msrb.mxu2 %v9437_v26  ;;  %3059 = vmatpush.msra.mxu1 %v9444_v31  ;;  %12084 = vst [vmem:[#allocation117_spill] sm:$0xff] %v9473_v3 }
 0x5ba   : > { %12089 = vst [vmem:[#allocation120_spill] sm:$0xff] %v9513_v38 }
 0x5bb   : > { %3191 = vmatpush.msrb.mxu2 %v9448_v19  ;;  %v12146_v19 = vld [vmem:[#allocation28_spill] sm:$0xff] }
 0x5bd   : > { %3192 = vmatpush.msrb.mxu2 %v9453_v20  ;;  %v2844_v32 = vpop.permute.xlu0 %2843  ;;  %v2976_v17 = vpop.permute.xlu1 %2975 }
 0x5be   : > { %v2853_v29 = vsel %vm906_vm3, %v9335_v33, %v2844_v32  ;;  %v2859_v44 = vsel %vm906_vm3, %v2844_v32, %v9335_v33 }
 0x5bf   : > { %3193 = vmatpush.msrb.mxu2 %v9461_v25  ;;  %v9486_v59 = vmul.f32 %v2853_v29, %v12003_v1  ;;  %v9524_v29 = vmul.f32 %v2859_v44, %v12085_v16  ;;  %v9548_v44 = vmul.f32 %v2857_v6, %v12085_v16  ;;  %v9566_v16 = vld [vmem:[#allocation13 + $0x20] sm:$0x1] }
 0x5c1   : > { %3194 = vmatpush.msrb.mxu2 %v9473_v3  ;;  %3106 = vmatpush.msra.mxu3 %v9486_v59  ;;  %12090 = vst [vmem:[#allocation121_spill] sm:$0xff] %v9524_v29  ;;  %v12119_v3 = vld [vmem:[#allocation42_spill] sm:$0xff] }
 0x5c2   : > { %3107 = vmatmul.f32.vlgmr.msra.gmra.mxu3 %v3021_v37 }
 0x5c3   : > { %3195 = vmatpush.msrb.mxu2 %v9489_v14  ;;  %3216 = vmatpush.msrb.mxu3 %v9492_v58 }
 0x5c5   : > { %3196 = vmatpush.msrb.mxu2 %v9502_v61  ;;  %3217 = vmatpush.msrb.mxu3 %v9505_v0  ;;  %v9517_v50 = vpop.permute.xlu0 %2635  ;;  %v12101_v61 = vld [vmem:[#allocation60_spill] sm:$0xff] }
 0x5c6   : > { %v2665_v33 = vsel %vm683_vm2, %v9498_v48, %v9517_v50 }
 0x5c7   : > { %3197 = vmatpush.msrb.mxu2 %v9513_v38  ;;  %v9532_v32 = vmul.f32 %v2665_v33, %v12056_v42  ;;  %v2988_v33 = vpop.permute.xlu2 %2987 }
 0x5c8   : > { %v2997_v30 = vsel %vm1074_vm7, %v2976_v17, %v2988_v33  ;;  %v3003_v34 = vsel %vm1074_vm7, %v2988_v33, %v2976_v17  ;;  %v2986_v17 = vpop.permute.xlu1 %2985 }
 0x5c9   : > { %3198 = vmatpush.msrb.mxu2 %v9524_v29  ;;  %3060 = vmatpush.msra.mxu1 %v9532_v32  ;;  %v9569_v42 = vmul.f32 %v2997_v30, %v12076_v21  ;;  %v3022_v29 = vld [vmem:[#allocation13 + $0x18] sm:$0xff] }
 0x5ca   : > { %3199 = vmatmul.f32.vlgmr.msrb.gmra.mxu2 %v3021_v37  ;;  %3061 = vmatmul.f32.vlgmr.msra.gmra.mxu1 %v9534_v28 }
 0x5cb   : > { %3160 = vmatpush.msrb.mxu1 %v9542_v36  ;;  %3110 = vmatmul.f32.gmra.mxu3 %v3025_v43 }
 0x5cd   : > { %3161 = vmatpush.msrb.mxu1 %v9548_v44  ;;  %v2990_v41 = vpop.permute.xlu0 %2989 }
 0x5ce   : > { %v2998_v24 = vsel %vm1074_vm7, %v2978_v15, %v2990_v41  ;;  %v3004_v37 = vsel %vm1074_vm7, %v2990_v41, %v2978_v15  ;;  %v9574_v15 = vmul.f32 %v3003_v34, %v12087_v11  ;;  %v2808_v34 = vsel %vm850_vm4, %v9073_v55, %v9015_v47  ;;  %v12092_v47 = vld [vmem:[#allocation59_spill] sm:$0xff] }
 0x5cf   : > { %v9560_v6 = vmul.f32 %v2998_v24, %v12076_v21  ;;  %v9563_v46 = vmul.f32 %v3004_v37, %v12087_v11  ;;  %3162 = vmatpush.msrb.mxu1 %v8730_v63  ;;  %v2807_v37 = vsel %vm850_vm4, %v9119_v22, %v9071_v5  ;;  %v9604_v55 = vmul.f32 %v2808_v34, %v12092_v47  ;;  %v2972_v5 = vpop.permute.xlu2 %2971 }
 0x5d0   : > { %v2758_v34 = vsel %vm794_vm0, %v8801_v4, %v8803_v40  ;;  %v12099_v4 = vld [vmem:[#allocation36_spill] sm:$0xff]  ;;  %v12100_v40 = vld [vmem:[#allocation41_spill] sm:$0xff] }
 0x5d1   : > { %3163 = vmatpush.msrb.mxu1 %v8723_v51  ;;  %3126 = vmatpush.msra.mxu0 %v9560_v6  ;;  %12093 = vst [vmem:[#allocation123_spill] sm:$0xff] %v9604_v55  ;;  %v2757_v38 = vsel %vm794_vm0, %v12100_v40, %v12099_v4 }
 0x5d2   : > { %3218 = vmatpush.msrb.mxu3 %v9563_v46  ;;  %3064 = vmatmul.f32.gmra.mxu1 %v9566_v16  ;;  %v9664_v40 = vmul.f32 %v2757_v38, %v12101_v61  ;;  %v12112_v38 = vld [vmem:[#allocation37_spill] sm:$0xff] }
 0x5d3   : > { %3164 = vmatpush.msrb.mxu1 %v8716_v45  ;;  %3127 = vmatpush.msra.mxu0 %v9569_v42 }
 0x5d4   : > { %3219 = vmatpush.msrb.mxu3 %v9574_v15  ;;  %3202 = vmatmul.f32.gmra.mxu2 %v3025_v43 }
 0x5d5   : > { %3165 = vmatpush.msrb.mxu1 %v8749_v52  ;;  %v2974_v33 = vpop.permute.xlu0 %2973 }
 0x5d6   : > { %v2996_v41 = vsel %vm1074_vm7, %v2974_v33, %v2986_v17  ;;  %v3002_v30 = vsel %vm1074_vm7, %v2986_v17, %v2974_v33  ;;  %v2806_v17 = vsel %vm850_vm4, %v9163_v13, %v9117_v10  ;;  %v9613_v33 = vmul.f32 %v2807_v37, %v12092_v47 }
 0x5d7   : > { %v9591_v24 = vmul.f32 %v2996_v41, %v12076_v21  ;;  %v9594_v43 = vmul.f32 %v3002_v30, %v12087_v11  ;;  %3166 = vmatpush.msrb.mxu1 %v8617_v2  ;;  %v9617_v41 = vmul.f32 %v2806_v17, %v12092_v47  ;;  %v12096_v30 = vld [vmem:[#allocation95_spill] sm:$0xff] }
 0x5d8   : > { %12094 = vst [vmem:[#allocation124_spill] sm:$0xff] %v9613_v33  ;;  %v9629_v37 = vmul.f32 %v12096_v30, %v12092_v47 }
 0x5d9   : > { %12091 = vst [vmem:[#allocation122_spill] sm:$0xff] %v9594_v43  ;;  %3167 = vmatpush.msrb.mxu1 %v8630_v12  ;;  %3128 = vmatpush.msra.mxu0 %v9591_v24 }
 0x5da   : > { %3220 = vmatpush.msrb.mxu3 %v9594_v43  ;;  %12095 = vst [vmem:[#allocation125_spill] sm:$0xff] %v9617_v41 }
 0x5db   : > { %3168 = vmatpush.msrb.mxu1 %v9604_v55  ;;  %12097 = vst [vmem:[#allocation95_spill] sm:$0xff] %v9629_v37 }
 0x5dd   : > { %3169 = vmatpush.msrb.mxu1 %v9613_v33  ;;  %v2984_v22 = vpop.permute.xlu0 %2983 }
 0x5de   : > { %v2995_v13 = vsel %vm1074_vm7, %v2972_v5, %v2984_v22  ;;  %v3001_v10 = vsel %vm1074_vm7, %v2984_v22, %v2972_v5  ;;  %v9643_v5 = vmul.f32 %v2758_v34, %v12101_v61  ;;  %v12102_v22 = vld [vmem:[#allocation100_spill] sm:$0xff]  ;;  %v12106_v34 = vld [vmem:[#allocation105_spill] sm:$0xff] }
 0x5df   : > { %v9632_v1 = vmul.f32 %v2995_v13, %v12076_v21  ;;  %v9635_v17 = vmul.f32 %v3001_v10, %v12087_v11  ;;  %3170 = vmatpush.msrb.mxu1 %v9617_v41  ;;  %v9647_v30 = vmul.f32 %v12102_v22, %v12092_v47  ;;  %v12104_v13 = vld [vmem:[#allocation65_spill] sm:$0xff]  ;;  %v9659_v4 = vmul.f32 %v12106_v34, %v12092_v47  ;;  %v12109_v21 = vld [vmem:[#allocation43_spill] sm:$0xff]  ;;  %v12113_v47 = vld [vmem:[#allocation70_spill] sm:$0xff] }
 0x5e0   : > { %v12105_v10 = vld [vmem:[#allocation69_spill] sm:$0xff] }
 0x5e1   : > { %12098 = vst [vmem:[#allocation126_spill] sm:$0xff] %v9635_v17  ;;  %3171 = vmatpush.msrb.mxu1 %v9629_v37  ;;  %3129 = vmatpush.msra.mxu0 %v9632_v1  ;;  %v2756_v11 = vsel %vm794_vm0, %v12105_v10, %v12104_v13  ;;  %v12108_v22 = vld [vmem:[#allocation73_spill] sm:$0xff]  ;;  %v12110_v10 = vld [vmem:[#allocation110_spill] sm:$0xff]  ;;  %v12125_v37 = vld [vmem:[#allocation88_spill] sm:$0xff] }
 0x5e2   : > { %12103 = vst [vmem:[#allocation36_spill] sm:$0xff] %v9647_v30  ;;  %3221 = vmatpush.msrb.mxu3 %v9635_v17  ;;  %4953 = vmatmul.msk.f32.vlgmr.msra.gmra.mxu0 %vm1106_vm9, %v3022_v29  ;;  %v2755_v13 = vsel %vm794_vm0, %v12109_v21, %v12108_v22  ;;  %v9673_v14 = vmul.f32 %v12110_v10, %v12101_v61  ;;  %v3026_v22 = vld [vmem:[#allocation13 + $0x38] sm:$0x1]  ;;  %v12115_v10 = vld [vmem:[#allocation49_spill] sm:$0xff]  ;;  %v12143_v17 = vld [vmem:[#allocation47_spill] sm:$0xff] }
 0x5e3   : > { %12107 = vst [vmem:[#allocation41_spill] sm:$0xff] %v9659_v4  ;;  %3137 = vmatpush.msrb.mxu0 %v9643_v5  ;;  %3172 = vmatpush.msrb.mxu1 %v9647_v30  ;;  %v9678_v34 = vmul.f32 %v2756_v11, %v12101_v61  ;;  %v2712_v30 = vsel %vm738_vm1, %v12113_v47, %v12112_v38  ;;  %v12116_v11 = vld [vmem:[#allocation75_spill] sm:$0xff]  ;;  %v12117_v47 = vld [vmem:[#allocation50_spill] sm:$0xff]  ;;  %v12118_v38 = vld [vmem:[#allocation33_spill] sm:$0xff] }
 0x5e4   : > { %4955 = vmatmul.msk.f32.vlgmr.msrb.gmra.mxu3 %vm1106_vm9, %v3022_v29  ;;  %12111 = vst [vmem:[#allocation100_spill] sm:$0xff] %v9673_v14  ;;  %v9686_v21 = vmul.f32 %v9343_v27, %v12101_v61  ;;  %v9691_v29 = vmul.f32 %v2755_v13, %v12101_v61  ;;  %v9700_v27 = vmul.f32 %v2712_v30, %v12117_v47  ;;  %v12123_v61 = vld [vmem:[#allocation84_spill] sm:$0xff] }
 0x5e5   : > { %3138 = vmatpush.msrb.mxu0 %v9664_v40  ;;  %3173 = vmatpush.msrb.mxu1 %v9659_v4  ;;  %v2711_v4 = vsel %vm738_vm1, %v12116_v11, %v12115_v10  ;;  %v12120_v10 = vld [vmem:[#allocation39_spill] sm:$0xff] }
 0x5e6   : > { %12114 = vst [vmem:[#allocation65_spill] sm:$0xff] %v9686_v21  ;;  %v9710_v13 = vmul.f32 %v2711_v4, %v12117_v47  ;;  %v12121_v11 = vld [vmem:[#allocation79_spill] sm:$0xff] }
 0x5e7   : > { %3139 = vmatpush.msrb.mxu0 %v9678_v34  ;;  %3174 = vmatpush.msrb.mxu1 %v9673_v14  ;;  %v2710_v14 = vsel %vm738_vm1, %v12119_v3, %v12118_v38  ;;  %v2709_v30 = vsel %vm738_vm1, %v12121_v11, %v12120_v10  ;;  %v12122_v38 = vld [vmem:[#allocation77_spill] sm:$0xff]  ;;  %v12128_v10 = vld [vmem:[#allocation48_spill] sm:$0xff] }
 0x5e8   : > { %v9719_v3 = vmul.f32 %v2710_v14, %v12117_v47  ;;  %v9727_v4 = vmul.f32 %v2709_v30, %v12117_v47  ;;  %v12129_v11 = vld [vmem:[#allocation92_spill] sm:$0xff] }
 0x5e9   : > { %3140 = vmatpush.msrb.mxu0 %v9691_v29  ;;  %3175 = vmatpush.msrb.mxu1 %v9686_v21  ;;  %v12124_v21 = vld [vmem:[#allocation83_spill] sm:$0xff]  ;;  %v9744_v30 = vmul.f32 %v12129_v11, %v12128_v10  ;;  %v2659_v11 = vsel %vm683_vm2, %v9517_v50, %v9498_v48 }
 0x5ea   : > { %4954 = vmatmul.msk.f32.gmra.mxu0 %vm1106_vm9, %v3026_v22  ;;  %3176 = vmatmul.f32.vlgmr.msrb.gmra.mxu1 %v9357_v8  ;;  %v2708_v8 = vsel %vm738_vm1, %v12123_v61, %v12122_v38  ;;  %v12133_v38 = vld [vmem:[#allocation102_spill] sm:$0xff] }
 0x5eb   : > { %3141 = vmatpush.msrb.mxu0 %v9700_v27  ;;  %v9735_v14 = vmul.f32 %v2708_v8, %v12117_v47  ;;  %12130 = vst [vmem:[#allocation73_spill] sm:$0xff] %v9744_v30  ;;  %v12135_v8 = vld [vmem:[#allocation107_spill] sm:$0xff] }
 0x5ec   : > { %4956 = vmatmul.msk.f32.gmra.mxu3 %vm1106_vm9, %v3026_v22  ;;  %v2707_v22 = vsel %vm738_vm1, %v12125_v37, %v12124_v21  ;;  %v12131_v37 = vld [vmem:[#allocation97_spill] sm:$0xff] }
 0x5ed   : > { %3142 = vmatpush.msrb.mxu0 %v9710_v13  ;;  %12126 = vst [vmem:[#allocation69_spill] sm:$0xff] %v9735_v14  ;;  %v9740_v61 = vmul.f32 %v2707_v22, %v12117_v47  ;;  %v9749_v21 = vmul.f32 %v12131_v37, %v12128_v10  ;;  %v9759_v22 = vmul.f32 %v12135_v8, %v12128_v10  ;;  %v9778_v47 = vpop.permute.xlu1 %3031 }
 0x5ee   : > { %v9768_v37 = vmul.f32 %v9431_v57, %v12128_v10 }
 0x5ef   : > { %3143 = vmatpush.msrb.mxu0 %v9719_v3  ;;  %12127 = vst [vmem:[#allocation105_spill] sm:$0xff] %v9740_v61 }
 0x5f0   : > { %12132 = vst [vmem:[#allocation43_spill] sm:$0xff] %v9749_v21 }
 0x5f1   : > { %3144 = vmatpush.msrb.mxu0 %v9727_v4  ;;  %12136 = vst [vmem:[#allocation37_spill] sm:$0xff] %v9759_v22 }
 0x5f2   : > { %3179 = vmatmul.f32.gmra.mxu1 %v9404_v60  ;;  %v9754_v60 = vmul.f32 %v12133_v38, %v12128_v10  ;;  %12137 = vst [vmem:[#allocation70_spill] sm:$0xff] %v9768_v37  ;;  %v9772_v38 = vmul.f32 %v2659_v11, %v12128_v10 }
 0x5f3   : > { %3145 = vmatpush.msrb.mxu0 %v9735_v14 }
 0x5f4   : > { %12134 = vst [vmem:[#allocation110_spill] sm:$0xff] %v9754_v60 }
 0x5f5   : > { %3146 = vmatpush.msrb.mxu0 %v9740_v61  ;;  %12138 = vst [vmem:[#allocation49_spill] sm:$0xff] %v9772_v38  ;;  %v12144_v61 = vld [vmem:[#allocation71_spill] sm:$0xff] }
 0x5f7   : > { %3147 = vmatpush.msrb.mxu0 %v9744_v30 }
 0x5f9   : > { %3148 = vmatpush.msrb.mxu0 %v9749_v21 }
 0x5fb   : > { %3149 = vmatpush.msrb.mxu0 %v9754_v60  ;;  %v9781_v60 = vpop.permute.xlu2 %3036 }
 0x5fd   : > { %3150 = vmatpush.msrb.mxu0 %v9759_v22 }
 0x5ff   : > { %3151 = vmatpush.msrb.mxu0 %v9768_v37 }
 0x601   : > { %3152 = vmatpush.msrb.mxu0 %v9772_v38 }
 0x602   : > { %3153 = vmatmul.f32.vlgmr.msrb.gmra.mxu0 %v9534_v28 }
 0x60a   : > { %3156 = vmatmul.f32.gmra.mxu0 %v9566_v16 }
 0x62d   : > { %v3085_v48 = vpop.f32.mrf.mxu2 }
 0x635   : > { %v3088_v37 = vpop.f32.mrf.mxu2 }
 0x645   : > { %v3108_v50 = vpop.f32.mrf.mxu3 }
 0x647   : > { %v3062_v8 = vpop.f32.mrf.mxu1 }
 0x648   : > { %v3063_v57 = vadd.f32 %v3062_v8, %v9778_v47 }
 0x64a   : > { %v3086_v49 = vadd.f32 %v3085_v48, %v3063_v57  ;;  %v12139_v57 = vld [vmem:[#allocation46_spill] sm:$0xff] }
 0x64c   : > { %v3109_v11 = vadd.f32 %v3108_v50, %v3086_v49  ;;  %v12140_v49 = vld [vmem:[#allocation74_spill] sm:$0xff] }
 0x64d   : > { %v12141_v50 = vld [vmem:[#allocation34_spill] sm:$0xff] }
 0x64e   : > { %v3111_v48 = vpop.f32.mrf.mxu3 }
 0x64f   : > { %v3065_v22 = vpop.f32.mrf.mxu1 }
 0x650   : > { %v3066_v10 = vadd.f32 %v3065_v22, %v9781_v60 }
 0x652   : > { %v3089_v28 = vadd.f32 %v3088_v37, %v3066_v10  ;;  %v12142_v37 = vld [vmem:[#allocation35_spill] sm:$0xff] }
 0x654   : > { %v3112_v10 = vadd.f32 %v3111_v48, %v3089_v28  ;;  %v12147_v48 = vld [vmem:[#allocation29_spill] sm:$0xff] }
 0x65f   : > { %v3131_v38 = vpop.f32.mrf.mxu0 }
 0x660   : > { %v9784_v21 = vadd.f32 %v3131_v38, %v3109_v11 }
 0x662   : > { %v9787_v16 = vperm.slane %v9784_v21, 2  ;;  %v9790_v25 = vperm.slane %v9784_v21, 5  ;;  %v3327_v8 = vperm.slane %v9784_v21, 7  ;;  %v3285_v38 = vperm.slane %v9784_v21, 4 }
 0x664   : > { %v3265_v41 = vmul.f32 %v9787_v16, %v12139_v57  ;;  %v3303_v22 = vmul.f32 %v9790_v25, %v12140_v49  ;;  %v3339_v30 = vmul.f32 %v3327_v8, %v12141_v50  ;;  %v3263_v11 = vmul.f32 %v9787_v16, %v12142_v37  ;;  %v12145_v49 = vld [vmem:[#allocation44_spill] sm:$0xff] }
 0x665   : > { %v3301_v20 = vmul.f32 %v9790_v25, %v12143_v17  ;;  %v3337_v57 = vmul.f32 %v3327_v8, %v12144_v61  ;;  %v3261_v50 = vmul.f32 %v9787_v16, %v12145_v49  ;;  %v3297_v28 = vmul.f32 %v3285_v38, %v12146_v19  ;;  %v12148_v17 = vld [vmem:[#allocation68_spill] sm:$0xff]  ;;  %v12149_v61 = vld [vmem:[#allocation30_spill] sm:$0xff] }
 0x666   : > { %3397 = vmatpush.msra.mxu3 %v3265_v41  ;;  %3432 = vmatpush.msra.mxu0 %v3303_v22  ;;  %v3243_v41 = vperm.slane %v9784_v21, 1  ;;  %v3335_v22 = vmul.f32 %v3327_v8, %v12147_v48  ;;  %v12152_v49 = vld [vmem:[#allocation32_spill] sm:$0xff] }
 0x667   : > { %3467 = vmatpush.msra.mxu1 %v3339_v30  ;;  %v3134_v33 = vpop.f32.mrf.mxu0  ;;  %v3259_v30 = vmul.f32 %v9787_v16, %v12148_v17  ;;  %v3293_v55 = vmul.f32 %v3285_v38, %v12152_v49  ;;  %v12155_v48 = vld [vmem:[#allocation76_spill] sm:$0xff]  ;;  %v12159_v49 = vld [vmem:[#allocation31_spill] sm:$0xff] }
 0x668   : > { %v3135_v43 = vadd.f32 %v3134_v33, %v3112_v10  ;;  %3398 = vmatpush.msra.mxu3 %v3263_v11  ;;  %3433 = vmatpush.msra.mxu0 %v3301_v20  ;;  %v3295_v33 = vmul.f32 %v3285_v38, %v12149_v61  ;;  %v12150_v20 = vld [vmem:[#allocation38_spill] sm:$0xff]  ;;  %v12151_v11 = vld [vmem:[#allocation72_spill] sm:$0xff]  ;;  %v3253_v17 = vmul.f32 %v3243_v41, %v12155_v48 }
 0x669   : > { %3468 = vmatpush.msra.mxu1 %v3337_v57  ;;  %v3333_v10 = vmul.f32 %v3327_v8, %v12150_v20  ;;  %v3255_v19 = vmul.f32 %v3243_v41, %v12151_v11  ;;  %v12153_v57 = vld [vmem:[#allocation112_spill] sm:$0xff]  ;;  %v12158_v11 = vld [vmem:[#allocation78_spill] sm:$0xff] }
 0x66a   : > { %v3341_v37 = vperm.slane %v3135_v43, 0  ;;  %3399 = vmatpush.msra.mxu3 %v3261_v50  ;;  %3434 = vmatpush.msra.mxu0 %v3297_v28  ;;  %v12154_v43 = vld [vmem:[#allocation45_spill] sm:$0xff]  ;;  %v3313_v28 = vperm.slane %v9784_v21, 6 }
 0x66b   : > { %3469 = vmatpush.msra.mxu1 %v3335_v22  ;;  %v3331_v50 = vmul.f32 %v3327_v8, %v12154_v43  ;;  %v12156_v22 = vld [vmem:[#allocation54_spill] sm:$0xff]  ;;  %v3271_v43 = vperm.slane %v9784_v21, 3 }
 0x66c   : > { %3400 = vmatpush.msra.mxu3 %v3259_v30  ;;  %3435 = vmatpush.msra.mxu0 %v3295_v33  ;;  %v3353_v14 = vmul.f32 %v3341_v37, %v12153_v57  ;;  %v3291_v61 = vmul.f32 %v3285_v38, %v12156_v22  ;;  %v12157_v30 = vld [vmem:[#allocation27_spill] sm:$0xff]  ;;  %v3351_v20 = vmul.f32 %v3341_v37, %v9395_v7 }
 0x66d   : > { %3470 = vmatpush.msra.mxu1 %v3333_v10  ;;  %v3329_v33 = vmul.f32 %v3327_v8, %v12157_v30  ;;  %v3251_v10 = vmul.f32 %v3243_v41, %v12158_v11  ;;  %v3289_v57 = vmul.f32 %v3285_v38, %v12159_v49  ;;  %v3349_v48 = vmul.f32 %v3341_v37, %v9560_v6  ;;  %v12164_v30 = vld [vmem:[#allocation85_spill] sm:$0xff] }
 0x66e   : > { %3401 = vmatpush.msra.mxu3 %v3255_v19  ;;  %3436 = vmatpush.msra.mxu0 %v3293_v55  ;;  %v12160_v55 = vld [vmem:[#allocation81_spill] sm:$0xff]  ;;  %v3229_v6 = vperm.slane %v9784_v21, 0 }
 0x66f   : > { %3471 = vmatpush.msra.mxu1 %v3331_v50  ;;  %3512 = vmatpush.msra.mxu2 %v3353_v14  ;;  %v3325_v19 = vmul.f32 %v3313_v28, %v12160_v55  ;;  %v12161_v14 = vld [vmem:[#allocation80_spill] sm:$0xff]  ;;  %v12170_v21 = vld [vmem:[#allocation93_spill] sm:$0xff] }
 0x670   : > { %3402 = vmatpush.msra.mxu3 %v3253_v17  ;;  %3437 = vmatpush.msra.mxu0 %v3291_v61  ;;  %v3249_v8 = vmul.f32 %v3243_v41, %v12161_v14  ;;  %v12162_v50 = vld [vmem:[#allocation40_spill] sm:$0xff]  ;;  %v12163_v17 = vld [vmem:[#allocation86_spill] sm:$0xff]  ;;  %v3347_v61 = vmul.f32 %v3341_v37, %v9569_v42 }
 0x671   : > { %3472 = vmatpush.msra.mxu1 %v3329_v33  ;;  %3513 = vmatpush.msra.mxu2 %v3351_v20  ;;  %v3287_v7 = vmul.f32 %v3285_v38, %v12162_v50  ;;  %v3323_v22 = vmul.f32 %v3313_v28, %v12163_v17  ;;  %v3247_v33 = vmul.f32 %v3243_v41, %v12164_v30  ;;  %v12165_v20 = vld [vmem:[#allocation82_spill] sm:$0xff] }
 0x672   : > { %3403 = vmatpush.msra.mxu3 %v3251_v10  ;;  %3438 = vmatpush.msra.mxu0 %v3289_v57  ;;  %v3283_v11 = vmul.f32 %v3271_v43, %v12165_v20  ;;  %v12166_v10 = vld [vmem:[#allocation90_spill] sm:$0xff]  ;;  %v3345_v38 = vmul.f32 %v3341_v37, %v9591_v24  ;;  %v12167_v57 = vld [vmem:[#allocation89_spill] sm:$0xff]  ;;  %v3241_v50 = vmul.f32 %v3229_v6, %v12170_v21  ;;  %v12172_v24 = vld [vmem:[#allocation99_spill] sm:$0xff] }
 0x673   : > { %3473 = vmatpush.msra.mxu1 %v3325_v19  ;;  %3514 = vmatpush.msra.mxu2 %v3349_v48  ;;  %v3321_v49 = vmul.f32 %v3313_v28, %v12166_v10  ;;  %v3245_v55 = vmul.f32 %v3243_v41, %v12167_v57  ;;  %v12168_v19 = vld [vmem:[#allocation87_spill] sm:$0xff]  ;;  %v12169_v48 = vld [vmem:[#allocation94_spill] sm:$0xff]  ;;  %v3317_v41 = vmul.f32 %v3313_v28, %v12172_v24  ;;  %v12178_v57 = vld [vmem:[#allocation109_spill] sm:$0xff] }
 0x674   : > { %3404 = vmatpush.msra.mxu3 %v3249_v8  ;;  %3439 = vmatpush.msra.mxu0 %v3287_v7  ;;  %v3281_v42 = vmul.f32 %v3271_v43, %v12168_v19  ;;  %v3319_v14 = vmul.f32 %v3313_v28, %v12169_v48  ;;  %v3343_v8 = vmul.f32 %v3341_v37, %v9632_v1  ;;  %v12171_v7 = vld [vmem:[#allocation91_spill] sm:$0xff]  ;;  %v12175_v1 = vld [vmem:[#allocation104_spill] sm:$0xff]  ;;  %v3177_v19 = vpop.f32.mrf.mxu1  ;;  %v12181_v21 = vld [vmem:[#allocation113_spill] sm:$0xff] }
 0x675   : > { %3474 = vmatpush.msra.mxu1 %v3323_v22  ;;  %3515 = vmatpush.msra.mxu2 %v3347_v61  ;;  %v3279_v17 = vmul.f32 %v3271_v43, %v12171_v7  ;;  %v9842_v22 = vld [vmem:[#allocation14 + $0x18] sm:$0xff]  ;;  %v3315_v37 = vmul.f32 %v3313_v28, %v12175_v1  ;;  %v3200_v7 = vpop.f32.mrf.mxu2  ;;  %v3233_v24 = vmul.f32 %v3229_v6, %v9444_v31 }
 0x676   : > { %3405 = vmatpush.msra.mxu3 %v3247_v33  ;;  %3440 = vmatpush.msra.mxu0 %v3283_v11  ;;  %v12173_v61 = vld [vmem:[#allocation98_spill] sm:$0xff]  ;;  %v12174_v33 = vld [vmem:[#allocation96_spill] sm:$0xff]  ;;  %v12176_v11 = vld [vmem:[#allocation103_spill] sm:$0xff]  ;;  %v3231_v1 = vmul.f32 %v3229_v6, %v9532_v32  ;;  %v3305_v31 = vmul.f32 %v9790_v25, %v9486_v59 }
 0x677   : > { %3475 = vmatpush.msra.mxu1 %v3321_v49  ;;  %3516 = vmatpush.msra.mxu2 %v3345_v38  ;;  %v3239_v30 = vmul.f32 %v3229_v6, %v12173_v61  ;;  %v3277_v20 = vmul.f32 %v3271_v43, %v12174_v33  ;;  %v3237_v10 = vmul.f32 %v3229_v6, %v12176_v11  ;;  %v12177_v49 = vld [vmem:[#allocation101_spill] sm:$0xff]  ;;  %v3223_v33 = vpop.f32.mrf.mxu3  ;;  %v9873_v11 = vld [vmem:[#allocation14 + $0x8] sm:$0xff] }
 0x678   : > { %3406 = vmatpush.msra.mxu3 %v3245_v55  ;;  %3441 = vmatpush.msra.mxu0 %v3281_v42  ;;  %v3275_v38 = vmul.f32 %v3271_v43, %v12177_v49  ;;  %v3311_v55 = vmul.f32 %v9790_v25, %v12178_v57  ;;  %v12179_v42 = vld [vmem:[#allocation108_spill] sm:$0xff] }
 0x679   : > { %3476 = vmatpush.msra.mxu1 %v3319_v14  ;;  %3517 = vmatpush.msra.mxu2 %v3343_v8  ;;  %v3235_v48 = vmul.f32 %v3229_v6, %v12179_v42  ;;  %v12180_v14 = vld [vmem:[#allocation106_spill] sm:$0xff] }
 0x67a   : > { %3407 = vmatpush.msra.mxu3 %v3241_v50  ;;  %3442 = vmatpush.msra.mxu0 %v3279_v17  ;;  %v3273_v28 = vmul.f32 %v3271_v43, %v12180_v14  ;;  %v3309_v50 = vmul.f32 %v9790_v25, %v12181_v21  ;;  %v3307_v43 = vmul.f32 %v9790_v25, %v9398_v56  ;;  %v9902_v14 = vld [vmem:[#allocation14 + $0x20] sm:$0xff] }
 0x67b   : > { %3477 = vmatpush.msra.mxu1 %v3317_v41  ;;  %4957 = vmatmul.msk.f32.vlgmr.msra.gmra.mxu2 %vm1106_vm9, %v9842_v22  ;;  %v12182_v41 = vld [vmem:[#allocation111_spill] sm:$0xff] }
 0x67c   : > { %3408 = vmatpush.msra.mxu3 %v3239_v30  ;;  %3443 = vmatpush.msra.mxu0 %v3277_v20  ;;  %v3269_v61 = vmul.f32 %v9787_v16, %v12182_v41  ;;  %v9862_v30 = vld [vmem:[#allocation14 + $0x38] sm:$0xff]  ;;  %v3180_v59 = vpop.f32.mrf.mxu1  ;;  %v9930_v41 = vld [vmem:[#allocation14 + $0x28] sm:$0xff] }
 0x67d   : > { %3478 = vmatpush.msra.mxu1 %v3315_v37  ;;  %v9869_v37 = vld [vmem:[#allocation14] sm:$0xff]  ;;  %v3203_v57 = vpop.f32.mrf.mxu2 }
 0x67e   : > { %3409 = vmatpush.msra.mxu3 %v3237_v10  ;;  %3444 = vmatpush.msra.mxu0 %v3275_v38  ;;  %v9875_v10 = vld [vmem:[#allocation14 + $0x10] sm:$0xff]  ;;  %v9892_v38 = vld [vmem:[#allocation14 + $0x58] sm:$0xff] }
 0x67f   : > { %v3154_v8 = vpop.f32.mrf.mxu0  ;;  %3479 = vmatpush.msra.mxu1 %v3311_v55 }
 0x680   : > { %v3155_v17 = vadd.f32 %v3154_v8, %v9778_v47  ;;  %3410 = vmatpush.msra.mxu3 %v3235_v48  ;;  %3445 = vmatpush.msra.mxu0 %v3273_v28  ;;  %v3267_v47 = vmul.f32 %v9787_v16, %v9352_v9  ;;  %v3226_v28 = vpop.f32.mrf.mxu3 }
 0x681   : > { %3480 = vmatpush.msra.mxu1 %v3309_v50  ;;  %v9910_v50 = vld [vmem:[#allocation14 + $0x30] sm:$0xff] }
 0x682   : > { %v3178_v20 = vadd.f32 %v3177_v19, %v3155_v17  ;;  %3411 = vmatpush.msra.mxu3 %v3233_v24  ;;  %3446 = vmatpush.msra.mxu0 %v3269_v61 }
 0x683   : > { %3481 = vmatpush.msra.mxu1 %v3307_v43  ;;  %4958 = vmatmul.msk.f32.gmra.mxu2 %vm1106_vm9, %v9862_v30 }
 0x684   : > { %v3201_v56 = vadd.f32 %v3200_v7, %v3178_v20  ;;  %3412 = vmatpush.msra.mxu3 %v3231_v1  ;;  %3447 = vmatpush.msra.mxu0 %v3267_v47  ;;  %v9970_v1 = vld [vmem:[#allocation14 + $0x48] sm:$0xff] }
 0x685   : > { %3482 = vmatpush.msra.mxu1 %v3305_v31  ;;  %3413 = vmatmul.f32.vlgmr.msra.gmra.mxu3 %v9869_v37 }
 0x686   : > { %v9880_v9 = vadd.f32 %v3223_v33, %v3201_v56  ;;  %3448 = vmatmul.f32.vlgmr.msra.gmra.mxu0 %v9873_v11  ;;  %3483 = vmatmul.f32.vlgmr.msra.gmra.mxu1 %v9875_v10 }
 0x687   : > { %v3157_v25 = vpop.f32.mrf.mxu0 }
 0x688   : > { %v3158_v32 = vadd.f32 %v3157_v25, %v9781_v60  ;;  %v9886_v16 = vperm.slane %v9880_v9, 2  ;;  %v9889_v6 = vperm.slane %v9880_v9, 5  ;;  %v3328_v49 = vperm.slane %v9880_v9, 7  ;;  %v9977_v25 = vld [vmem:[#allocation14 + $0x60] sm:$0xff] }
 0x689   : > { %v9895_v55 = vperm.slane %v9880_v9, 4 }
 0x68a   : > { %v3181_v19 = vadd.f32 %v3180_v59, %v3158_v32  ;;  %v3266_v42 = vmul.f32 %v9886_v16, %v9643_v5  ;;  %v3304_v60 = vmul.f32 %v9889_v6, %v9542_v36  ;;  %v3340_v48 = vmul.f32 %v3328_v49, %v9355_v62  ;;  %v9982_v59 = vld [vmem:[#allocation14 + $0x50] sm:$0xff]  ;;  %v9984_v32 = vld [vmem:[#allocation14 + $0x78] sm:$0xff] }
 0x68b   : > { %4959 = vmatmul.msk.f32.gmra.mxu2 %vm1106_vm9, %v9892_v38  ;;  %v3264_v21 = vmul.f32 %v9886_v16, %v9664_v40  ;;  %v3302_v5 = vmul.f32 %v9889_v6, %v9548_v44  ;;  %v3338_v62 = vmul.f32 %v3328_v49, %v9366_v54  ;;  %v3262_v7 = vmul.f32 %v9886_v16, %v9678_v34 }
 0x68c   : > { %v3204_v8 = vadd.f32 %v3203_v57, %v3181_v19  ;;  %3537 = vmatpush.msrb.mxu2 %v3266_v42  ;;  %3572 = vmatpush.msrb.mxu3 %v3304_v60  ;;  %v3298_v17 = vmul.f32 %v9895_v55, %v8730_v63  ;;  %v9919_v40 = vperm.slane %v9880_v9, 1  ;;  %v3336_v44 = vmul.f32 %v3328_v49, %v9375_v35  ;;  %v12187_v57 = vld [vmem:[#allocation105_spill] sm:$0xff]  ;;  %v12188_v19 = vld [vmem:[#allocation124_spill] sm:$0xff]  ;;  %v12189_v60 = vld [vmem:[#allocation115_spill] sm:$0xff] }
 0x68d   : > { %3607 = vmatpush.msrb.mxu0 %v3340_v48  ;;  %3416 = vmatmul.f32.gmra.mxu3 %v9902_v14  ;;  %v3260_v54 = vmul.f32 %v9886_v16, %v9691_v29  ;;  %v3296_v34 = vmul.f32 %v9895_v55, %v8723_v51  ;;  %v3334_v63 = vmul.f32 %v3328_v49, %v9388_v23  ;;  %v9939_v51 = vld [vmem:[#allocation14 + $0x40] sm:$0xff]  ;;  %v9943_v23 = vperm.slane %v9880_v9, 6 }
 0x68e   : > { %v3227_v36 = vadd.f32 %v3226_v28, %v3204_v8  ;;  %3538 = vmatpush.msrb.mxu2 %v3264_v21  ;;  %3573 = vmatpush.msrb.mxu3 %v3302_v5  ;;  %v3256_v35 = vmul.f32 %v9919_v40, %v9700_v27  ;;  %v3294_v29 = vmul.f32 %v9895_v55, %v8716_v45  ;;  %v12190_v28 = vld [vmem:[#allocation126_spill] sm:$0xff]  ;;  %v12191_v8 = vld [vmem:[#allocation73_spill] sm:$0xff] }
 0x68f   : > { %3608 = vmatpush.msrb.mxu0 %v3338_v62  ;;  %3486 = vmatmul.f32.gmra.mxu1 %v9910_v50  ;;  %v3332_v43 = vmul.f32 %v3328_v49, %v9402_v39  ;;  %v3254_v27 = vmul.f32 %v9919_v40, %v9710_v13  ;;  %v3330_v45 = vmul.f32 %v3328_v49, %v9414_v53  ;;  %v3272_v53 = vperm.slane %v9880_v9, 3  ;;  %v12192_v5 = vld [vmem:[#allocation125_spill] sm:$0xff] }
 0x690   : > { %v9923_v24 = vperm.slane %v3227_v36, 0  ;;  %3539 = vmatpush.msrb.mxu2 %v3262_v7  ;;  %3574 = vmatpush.msrb.mxu3 %v3298_v17  ;;  %v3252_v33 = vmul.f32 %v9919_v40, %v9719_v3  ;;  %v3290_v20 = vmul.f32 %v9895_v55, %v8617_v2  ;;  %v3288_v3 = vmul.f32 %v9895_v55, %v8630_v12  ;;  %v12185_v12 = vld [vmem:[#allocation114_spill] sm:$0xff]  ;;  %v12193_v36 = vld [vmem:[#allocation116_spill] sm:$0xff]  ;;  %v12194_v17 = vld [vmem:[#allocation43_spill] sm:$0xff] }
 0x691   : > { %3609 = vmatpush.msrb.mxu0 %v3336_v44  ;;  %v3324_v2 = vmul.f32 %v9943_v23, %v9437_v26  ;;  %v3322_v56 = vmul.f32 %v9943_v23, %v12185_v12  ;;  %v12186_v26 = vld [vmem:[#allocation122_spill] sm:$0xff]  ;;  %v3230_v49 = vperm.slane %v9880_v9, 0  ;;  %v3282_v42 = vmul.f32 %v3272_v53, %v12188_v19  ;;  %v12195_v44 = vld [vmem:[#allocation95_spill] sm:$0xff] }
 0x692   : > { %3540 = vmatpush.msrb.mxu2 %v3260_v54  ;;  %3575 = vmatpush.msrb.mxu3 %v3296_v34  ;;  %v3354_v61 = vmul.f32 %v9923_v24, %v9492_v58  ;;  %v3292_v58 = vmul.f32 %v9895_v55, %v8749_v52  ;;  %v3352_v39 = vmul.f32 %v9923_v24, %v9505_v0  ;;  %v12196_v34 = vld [vmem:[#allocation117_spill] sm:$0xff]  ;;  %v3375_v19 = vld [vmem:[#allocation14 + $0xa0] sm:$0xff] }
 0x693   : > { %3610 = vmatpush.msrb.mxu0 %v3334_v63  ;;  %v3326_v52 = vmul.f32 %v9943_v23, %v9423_v18  ;;  %v3350_v13 = vmul.f32 %v9923_v24, %v9563_v46  ;;  %v3250_v0 = vmul.f32 %v9919_v40, %v9727_v4  ;;  %v3348_v18 = vmul.f32 %v9923_v24, %v9574_v15  ;;  %v12183_v46 = vld [vmem:[#allocation69_spill] sm:$0xff]  ;;  %v12184_v4 = vld [vmem:[#allocation123_spill] sm:$0xff]  ;;  %v3368_v63 = vld [vmem:[#allocation14 + $0x68] sm:$0xff] }
 0x694   : > { %3451 = vmatmul.f32.gmra.mxu0 %v9930_v41  ;;  %3541 = vmatpush.msrb.mxu2 %v3256_v35  ;;  %v3248_v47 = vmul.f32 %v9919_v40, %v12183_v46  ;;  %v3284_v31 = vmul.f32 %v3272_v53, %v12184_v4  ;;  %v3346_v15 = vmul.f32 %v9923_v24, %v12186_v26  ;;  %v12197_v35 = vld [vmem:[#allocation110_spill] sm:$0xff]  ;;  %v12205_v4 = vld [vmem:[#allocation120_spill] sm:$0xff] }
 0x695   : > { %3576 = vmatpush.msrb.mxu3 %v3294_v29  ;;  %3611 = vmatpush.msrb.mxu0 %v3332_v43  ;;  %v3246_v55 = vmul.f32 %v9919_v40, %v12187_v57  ;;  %v3320_v48 = vmul.f32 %v9943_v23, %v12189_v60  ;;  %v3344_v9 = vmul.f32 %v9923_v24, %v12190_v28  ;;  %v12198_v29 = vld [vmem:[#allocation36_spill] sm:$0xff]  ;;  %v12204_v46 = vld [vmem:[#allocation70_spill] sm:$0xff] }
 0x696   : > { %3652 = vmatpush.msrb.mxu1 %v3354_v61  ;;  %3419 = vmatmul.f32.gmra.mxu3 %v9939_v51  ;;  %v3242_v21 = vmul.f32 %v3230_v49, %v12191_v8  ;;  %v3280_v62 = vmul.f32 %v3272_v53, %v12192_v5  ;;  %v3318_v7 = vmul.f32 %v9943_v23, %v12193_v36  ;;  %v3378_v60 = vld [vmem:[#allocation14 + $0xb8] sm:$0xff] }
 0x697   : > { %3542 = vmatpush.msrb.mxu2 %v3254_v27  ;;  %3577 = vmatpush.msrb.mxu3 %v3292_v58  ;;  %v3240_v40 = vmul.f32 %v3230_v49, %v12194_v17  ;;  %v3278_v54 = vmul.f32 %v3272_v53, %v12195_v44  ;;  %v3316_v24 = vmul.f32 %v9943_v23, %v12196_v34  ;;  %v12199_v27 = vld [vmem:[#allocation118_spill] sm:$0xff] }
 0x698   : > { %3612 = vmatpush.msrb.mxu0 %v3330_v45  ;;  %3653 = vmatpush.msrb.mxu1 %v3352_v39  ;;  %v3238_v61 = vmul.f32 %v3230_v49, %v12197_v35  ;;  %v3276_v43 = vmul.f32 %v3272_v53, %v12198_v29  ;;  %v3312_v58 = vmul.f32 %v9889_v6, %v12199_v27  ;;  %v3371_v45 = vld [vmem:[#allocation14 + $0x80] sm:$0xff]  ;;  %v3369_v39 = vld [vmem:[#allocation14 + $0x70] sm:$0xff] }
 0x699   : > { %3543 = vmatpush.msrb.mxu2 %v3252_v33  ;;  %3578 = vmatpush.msrb.mxu3 %v3290_v20  ;;  %v3374_v33 = vld [vmem:[#allocation14 + $0x98] sm:$0xff]  ;;  %v12200_v20 = vld [vmem:[#allocation41_spill] sm:$0xff] }
 0x69a   : > { %3613 = vmatpush.msrb.mxu0 %v3326_v52  ;;  %3654 = vmatpush.msrb.mxu1 %v3350_v13  ;;  %v3274_v23 = vmul.f32 %v3272_v53, %v12200_v20  ;;  %v12201_v52 = vld [vmem:[#allocation37_spill] sm:$0xff]  ;;  %v3308_v53 = vmul.f32 %v9889_v6, %v12205_v4 }
 0x69b   : > { %3544 = vmatpush.msrb.mxu2 %v3250_v0  ;;  %3579 = vmatpush.msrb.mxu3 %v3288_v3  ;;  %v3236_v13 = vmul.f32 %v3230_v49, %v12201_v52  ;;  %v12202_v0 = vld [vmem:[#allocation119_spill] sm:$0xff] }
 0x69c   : > { %3614 = vmatpush.msrb.mxu0 %v3324_v2  ;;  %3655 = vmatpush.msrb.mxu1 %v3348_v18  ;;  %v3310_v3 = vmul.f32 %v9889_v6, %v12202_v0  ;;  %v12203_v2 = vld [vmem:[#allocation100_spill] sm:$0xff] }
 0x69d   : > { %3454 = vmatmul.f32.gmra.mxu0 %v9970_v1  ;;  %3545 = vmatpush.msrb.mxu2 %v3248_v47  ;;  %v3270_v18 = vmul.f32 %v9886_v16, %v12203_v2  ;;  %v3234_v47 = vmul.f32 %v3230_v49, %v12204_v46 }
 0x69e   : > { %3580 = vmatpush.msrb.mxu3 %v3284_v31  ;;  %3615 = vmatpush.msrb.mxu0 %v3322_v56  ;;  %v12206_v31 = vld [vmem:[#allocation65_spill] sm:$0xff] }
 0x69f   : > { %3656 = vmatpush.msrb.mxu1 %v3346_v15  ;;  %3422 = vmatmul.f32.gmra.mxu3 %v9977_v25  ;;  %v3268_v12 = vmul.f32 %v9886_v16, %v12206_v31  ;;  %v12207_v56 = vld [vmem:[#allocation49_spill] sm:$0xff]  ;;  %v3376_v16 = vld [vmem:[#allocation14 + $0xa8] sm:$0xff] }
 0x6a0   : > { %3489 = vmatmul.f32.gmra.mxu1 %v9982_v59  ;;  %4960 = vmatmul.msk.f32.gmra.mxu2 %vm1106_vm9, %v9984_v32  ;;  %v3232_v26 = vmul.f32 %v3230_v49, %v12207_v56  ;;  %v12208_v15 = vld [vmem:[#allocation121_spill] sm:$0xff] }
 0x6a1   : > { %3546 = vmatpush.msrb.mxu2 %v3246_v55  ;;  %3581 = vmatpush.msrb.mxu3 %v3282_v42  ;;  %v3306_v57 = vmul.f32 %v9889_v6, %v12208_v15  ;;  %v3372_v55 = vld [vmem:[#allocation14 + $0x88] sm:$0xff]  ;;  %v3373_v42 = vld [vmem:[#allocation14 + $0x90] sm:$0xff] }
 0x6a2   : > { %3616 = vmatpush.msrb.mxu0 %v3320_v48  ;;  %3657 = vmatpush.msrb.mxu1 %v3344_v9  ;;  %v3377_v48 = vld [vmem:[#allocation14 + $0xb0] sm:$0xff] }
 0x6a3   : > { %3547 = vmatpush.msrb.mxu2 %v3242_v21  ;;  %3582 = vmatpush.msrb.mxu3 %v3280_v62 }
 0x6a4   : > { %3617 = vmatpush.msrb.mxu0 %v3318_v7 }
 0x6a5   : > { %3548 = vmatpush.msrb.mxu2 %v3240_v40  ;;  %3583 = vmatpush.msrb.mxu3 %v3278_v54 }
 0x6a6   : > { %3618 = vmatpush.msrb.mxu0 %v3316_v24 }
 0x6a7   : > { %3457 = vmatmul.f32.gmra.mxu0 %v3368_v63  ;;  %3549 = vmatpush.msrb.mxu2 %v3238_v61 }
 0x6a8   : > { %3584 = vmatpush.msrb.mxu3 %v3276_v43  ;;  %3619 = vmatpush.msrb.mxu0 %v3312_v58 }
 0x6a9   : > { %3425 = vmatmul.f32.gmra.mxu3 %v3371_v45  ;;  %3492 = vmatmul.f32.gmra.mxu1 %v3369_v39 }
 0x6aa   : > { %4961 = vmatmul.msk.f32.gmra.mxu2 %vm1106_vm9, %v3374_v33  ;;  %3585 = vmatpush.msrb.mxu3 %v3274_v23 }
 0x6ab   : > { %3550 = vmatpush.msrb.mxu2 %v3236_v13  ;;  %3620 = vmatpush.msrb.mxu0 %v3310_v3 }
 0x6ac   : > { %3586 = vmatpush.msrb.mxu3 %v3270_v18 }
 0x6ad   : > { %3551 = vmatpush.msrb.mxu2 %v3234_v47  ;;  %3621 = vmatpush.msrb.mxu0 %v3308_v53 }
 0x6ae   : > { %3587 = vmatpush.msrb.mxu3 %v3268_v12 }
 0x6af   : > { %3552 = vmatpush.msrb.mxu2 %v3232_v26  ;;  %3622 = vmatpush.msrb.mxu0 %v3306_v57 }
 0x6b0   : > { %3460 = vmatmul.f32.gmra.mxu0 %v3372_v55 }
 0x6b1   : > { %3428 = vmatmul.f32.gmra.mxu3 %v3375_v19  ;;  %3495 = vmatmul.f32.gmra.mxu1 %v3373_v42 }
 0x6b2   : > { %4962 = vmatmul.msk.f32.gmra.mxu2 %vm1106_vm9, %v3378_v60 }
 0x6b8   : > { %3463 = vmatmul.f32.gmra.mxu0 %v3376_v16 }
 0x6b9   : > { %3498 = vmatmul.f32.gmra.mxu1 %v3377_v48  ;;  %3588 = vmatmul.f32.vlgmr.msrb.gmra.mxu3 %v9873_v11 }
 0x6ba   : > { %3553 = vmatmul.f32.vlgmr.msrb.gmra.mxu2 %v9869_v37 }
 0x6c0   : > { %3623 = vmatmul.f32.vlgmr.msrb.gmra.mxu0 %v9875_v10 }
 0x6c1   : > { %3591 = vmatmul.f32.gmra.mxu3 %v9930_v41  ;;  %4963 = vmatmul.msk.f32.vlgmr.msrb.gmra.mxu1 %vm1106_vm9, %v9842_v22 }
 0x6c2   : > { %3556 = vmatmul.f32.gmra.mxu2 %v9902_v14 }
 0x6c8   : > { %3626 = vmatmul.f32.gmra.mxu0 %v9910_v50 }
 0x6c9   : > { %3594 = vmatmul.f32.gmra.mxu3 %v9970_v1  ;;  %4964 = vmatmul.msk.f32.gmra.mxu1 %vm1106_vm9, %v9862_v30 }
 0x6ca   : > { %3559 = vmatmul.f32.gmra.mxu2 %v9939_v51 }
 0x6d0   : > { %3629 = vmatmul.f32.gmra.mxu0 %v9982_v59 }
 0x6d1   : > { %3597 = vmatmul.f32.gmra.mxu3 %v3368_v63  ;;  %4965 = vmatmul.msk.f32.gmra.mxu1 %vm1106_vm9, %v9892_v38 }
 0x6d2   : > { %3562 = vmatmul.f32.gmra.mxu2 %v9977_v25 }
 0x6d8   : > { %3632 = vmatmul.f32.gmra.mxu0 %v3369_v39 }
 0x6d9   : > { %3600 = vmatmul.f32.gmra.mxu3 %v3372_v55  ;;  %4966 = vmatmul.msk.f32.gmra.mxu1 %vm1106_vm9, %v9984_v32 }
 0x6da   : > { %3565 = vmatmul.f32.gmra.mxu2 %v3371_v45 }
 0x6e0   : > { %3635 = vmatmul.f32.gmra.mxu0 %v3373_v42 }
 0x6e1   : > { %3603 = vmatmul.f32.gmra.mxu3 %v3376_v16  ;;  %4967 = vmatmul.msk.f32.gmra.mxu1 %vm1106_vm9, %v3374_v33 }
 0x6e2   : > { %3568 = vmatmul.f32.gmra.mxu2 %v3375_v19 }
 0x6e8   : > { %3638 = vmatmul.f32.gmra.mxu0 %v3377_v48 }
 0x6e9   : > { %4968 = vmatmul.msk.f32.gmra.mxu1 %vm1106_vm9, %v3378_v60 }
 0x6fe   : > { %v3519_v22 = vpop.f32.mrf.mxu2 }
 0x703   : > { %v3449_v30 = vpop.f32.mrf.mxu0  ;;  %v3484_v11 = vpop.f32.mrf.mxu1 }
 0x706   : > { %v3522_v10 = vpop.f32.mrf.mxu2 }
 0x708   : > { %v3414_v37 = vpop.f32.mrf.mxu3 }
 0x709   : > { %v3450_v20 = vadd.f32 %v3449_v30, %v3414_v37 }
 0x70b   : > { %v3485_v3 = vadd.f32 %v3484_v11, %v3450_v20 }
 0x70c   : > { %v3487_v14 = vpop.f32.mrf.mxu1 }
 0x70d   : > { %v10058_v47 = vadd.f32 %v3519_v22, %v3485_v3 }
 0x70e   : > { %v3525_v41 = vpop.f32.mrf.mxu2 }
 0x70f   : > { %12212 = vst [vmem:[#allocation39_spill] sm:$0xff] %v10058_v47 }
 0x710   : > { %v3417_v6 = vpop.f32.mrf.mxu3 }
 0x711   : > { %v3452_v38 = vpop.f32.mrf.mxu0 }
 0x712   : > { %v3453_v4 = vadd.f32 %v3452_v38, %v3417_v6 }
 0x714   : > { %v3488_v15 = vadd.f32 %v3487_v14, %v3453_v4  ;;  %v12221_v4 = vld [vmem:[#allocation56_spill] sm:$0xff] }
 0x716   : > { %v10066_v60 = vadd.f32 %v3522_v10, %v3488_v15 }
 0x718   : > { %12214 = vst [vmem:[#allocation77_spill] sm:$0xff] %v10066_v60 }
 0x719   : > { %v3420_v50 = vpop.f32.mrf.mxu3 }
 0x71a   : > { %v3455_v51 = vpop.f32.mrf.mxu0 }
 0x71b   : > { %v3456_v1 = vadd.f32 %v3455_v51, %v3420_v50 }
 0x71d   : > { %v3490_v25 = vpop.f32.mrf.mxu1 }
 0x71e   : > { %v3491_v59 = vadd.f32 %v3490_v25, %v3456_v1 }
 0x720   : > { %v10046_v32 = vadd.f32 %v3525_v41, %v3491_v59 }
 0x722   : > { %12209 = vst [vmem:[#allocation75_spill] sm:$0xff] %v10046_v32  ;;  %3777 = vrot.lane.b32.xlu2 %v10046_v32, %s5608_s22  ;;  %v3423_v49 = vpop.f32.mrf.mxu3 }
 0x723   : > { %v3528_v28 = vpop.f32.mrf.mxu2 }
 0x724   : > { %v3458_v9 = vpop.f32.mrf.mxu0 }
 0x725   : > { %v3459_v8 = vadd.f32 %v3458_v9, %v3423_v49 }
 0x726   : > { %v3493_v21 = vpop.f32.mrf.mxu1 }
 0x727   : > { %v3494_v5 = vadd.f32 %v3493_v21, %v3459_v8 }
 0x729   : > { %v10050_v62 = vadd.f32 %v3528_v28, %v3494_v5 }
 0x72b   : > { %12210 = vst [vmem:[#allocation33_spill] sm:$0xff] %v10050_v62  ;;  %3779 = vrot.lane.b32.xlu0 %v10050_v62, %s5608_s22 }
 0x72c   : > { %v3426_v36 = vpop.f32.mrf.mxu3 }
 0x72d   : > { %v3461_v7 = vpop.f32.mrf.mxu0  ;;  %v3531_v17 = vpop.f32.mrf.mxu2 }
 0x72e   : > { %v3496_v40 = vpop.f32.mrf.mxu1  ;;  %v3462_v48 = vadd.f32 %v3461_v7, %v3426_v36 }
 0x730   : > { %v3497_v10 = vadd.f32 %v3496_v40, %v3462_v48 }
 0x732   : > { %v10078_v14 = vadd.f32 %v3531_v17, %v3497_v10 }
 0x734   : > { %v3429_v44 = vpop.f32.mrf.mxu3  ;;  %12216 = vst [vmem:[#allocation83_spill] sm:$0xff] %v10078_v14 }
 0x735   : > { %v3464_v54 = vpop.f32.mrf.mxu0  ;;  %v3534_v34 = vpop.f32.mrf.mxu2 }
 0x736   : > { %v3499_v24 = vpop.f32.mrf.mxu1  ;;  %v3465_v38 = vadd.f32 %v3464_v54, %v3429_v44 }
 0x738   : > { %v3500_v1 = vadd.f32 %v3499_v24, %v3465_v38 }
 0x73a   : > { %v10086_v9 = vadd.f32 %v3534_v34, %v3500_v1 }
 0x73c   : > { %v3589_v63 = vpop.f32.mrf.mxu3  ;;  %12217 = vst [vmem:[#allocation88_spill] sm:$0xff] %v10086_v9 }
 0x73d   : > { %v3554_v35 = vpop.f32.mrf.mxu2  ;;  %v3624_v61 = vpop.f32.mrf.mxu0 }
 0x73e   : > { %v3659_v29 = vpop.f32.mrf.mxu1  ;;  %v3590_v31 = vadd.f32 %v3589_v63, %v3554_v35 }
 0x740   : > { %v3625_v19 = vadd.f32 %v3624_v61, %v3590_v31 }
 0x742   : > { %v10070_v22 = vadd.f32 %v3659_v29, %v3625_v19 }
 0x744   : > { %v3592_v43 = vpop.f32.mrf.mxu3  ;;  %12215 = vst [vmem:[#allocation84_spill] sm:$0xff] %v10070_v22 }
 0x745   : > { %v3557_v27 = vpop.f32.mrf.mxu2  ;;  %v3627_v58 = vpop.f32.mrf.mxu0 }
 0x746   : > { %v3593_v45 = vadd.f32 %v3592_v43, %v3557_v27  ;;  %v3662_v39 = vpop.f32.mrf.mxu1 }
 0x748   : > { %v3628_v33 = vadd.f32 %v3627_v58, %v3593_v45 }
 0x74a   : > { %v10054_v23 = vadd.f32 %v3662_v39, %v3628_v33  ;;  %v12219_v39 = vld [vmem:[#allocation52_spill] sm:$0xff] }
 0x74c   : > { %12211 = vst [vmem:[#allocation42_spill] sm:$0xff] %v10054_v23  ;;  %3883 = vrot.lane.b32.xlu2 %v10054_v23, %s5610_s27  ;;  %v3595_v52 = vpop.f32.mrf.mxu3 }
 0x74d   : > { %v3560_v13 = vpop.f32.mrf.mxu2  ;;  %v3630_v0 = vpop.f32.mrf.mxu0 }
 0x74e   : > { %v3596_v2 = vadd.f32 %v3595_v52, %v3560_v13  ;;  %v3665_v18 = vpop.f32.mrf.mxu1 }
 0x750   : > { %v3631_v46 = vadd.f32 %v3630_v0, %v3596_v2 }
 0x752   : > { %v10060_v53 = vadd.f32 %v3665_v18, %v3631_v46 }
 0x754   : > { %12213 = vst [vmem:[#allocation79_spill] sm:$0xff] %v10060_v53  ;;  %3789 = vrot.lane.b32.xlu0 %v10060_v53, %s5608_s22  ;;  %3869 = vrot.lane.b32.xlu2 %v10058_v47, %s5610_s27  ;;  %v3598_v12 = vpop.f32.mrf.mxu3 }
 0x755   : > { %v3563_v56 = vpop.f32.mrf.mxu2  ;;  %v3633_v26 = vpop.f32.mrf.mxu0 }
 0x756   : > { %v3599_v57 = vadd.f32 %v3598_v12, %v3563_v56  ;;  %v3668_v55 = vpop.f32.mrf.mxu1 }
 0x758   : > { %v3634_v42 = vadd.f32 %v3633_v26, %v3599_v57 }
 0x75a   : > { %v10068_v16 = vadd.f32 %v3668_v55, %v3634_v42 }
 0x75c   : > { %3791 = vrot.lane.b32.xlu1 %v10068_v16, %s5608_s22  ;;  %3775 = vrot.lane.b32.xlu0 %v10066_v60, %s5608_s22  ;;  %v3601_v30 = vpop.f32.mrf.mxu3 }
 0x75d   : > { %3785 = vrot.lane.b32.xlu2 %v10070_v22, %s5608_s22  ;;  %v3566_v37 = vpop.f32.mrf.mxu2  ;;  %v3636_v11 = vpop.f32.mrf.mxu0 }
 0x75e   : > { %v3671_v6 = vpop.f32.mrf.mxu1  ;;  %v3602_v49 = vadd.f32 %v3601_v30, %v3566_v37 }
 0x760   : > { %v3637_v21 = vadd.f32 %v3636_v11, %v3602_v49 }
 0x762   : > { %v10096_v5 = vadd.f32 %v3671_v6, %v3637_v21 }
 0x764   : > { %3871 = vrot.lane.b32.xlu1 %v10066_v60, %s5610_s27  ;;  %3881 = vrot.lane.b32.xlu0 %v10070_v22, %s5610_s27  ;;  %v3604_v50 = vpop.f32.mrf.mxu3 }
 0x765   : > { %3733 = vrot.lane.b32.xlu2 %v10078_v14, %s5607_s21  ;;  %v3569_v41 = vpop.f32.mrf.mxu2  ;;  %v3639_v51 = vpop.f32.mrf.mxu0 }
 0x766   : > { %v3605_v25 = vadd.f32 %v3604_v50, %v3569_v41  ;;  %v3674_v59 = vpop.f32.mrf.mxu1 }
 0x768   : > { %v3640_v28 = vadd.f32 %v3639_v51, %v3605_v25 }
 0x76a   : > { %v10088_v8 = vadd.f32 %v3674_v59, %v3640_v28  ;;  %v12225_v59 = vld [vmem:[#allocation53_spill] sm:$0xff] }
 0x76c   : > { %3787 = vrot.lane.b32.xlu1 %v10054_v23, %s5608_s22  ;;  %3735 = vrot.lane.b32.xlu0 %v10086_v9, %s5607_s21 }
 0x76d   : > { %3987 = vrot.lane.b32.xlu2 %v10088_v8, %s5612_s18 }
 0x774   : > { %3773 = vrot.lane.b32.xlu1 %v10058_v47, %s5608_s22  ;;  %3745 = vrot.lane.b32.xlu0 %v10096_v5, %s5607_s21 }
 0x775   : > { %3973 = vrot.lane.b32.xlu2 %v10078_v14, %s5612_s18 }
 0x77c   : > { %3747 = vrot.lane.b32.xlu1 %v10088_v8, %s5607_s21  ;;  %3731 = vrot.lane.b32.xlu0 %v10050_v62, %s5607_s21  ;;  %v3778_v36 = vpop.permute.xlu2 %3777 }
 0x77d   : > { %3741 = vrot.lane.b32.xlu2 %v10060_v53, %s5607_s21 }
 0x784   : > { %3975 = vrot.lane.b32.xlu1 %v10086_v9, %s5612_s18  ;;  %3985 = vrot.lane.b32.xlu0 %v10096_v5, %s5612_s18 }
 0x785   : > { %3727 = vrot.lane.b32.xlu2 %v10066_v60, %s5607_s21 }
 0x78c   : > { %3743 = vrot.lane.b32.xlu1 %v10068_v16, %s5607_s21  ;;  %3971 = vrot.lane.b32.xlu0 %v10050_v62, %s5612_s18 }
 0x78d   : > { %3981 = vrot.lane.b32.xlu2 %v10060_v53, %s5612_s18 }
 0x794   : > { %3729 = vrot.lane.b32.xlu1 %v10046_v32, %s5607_s21  ;;  %3739 = vrot.lane.b32.xlu0 %v10054_v23, %s5607_s21 }
 0x795   : > { %3831 = vrot.lane.b32.xlu2 %v10086_v9, %s5609_s26 }
 0x79c   : > { %3983 = vrot.lane.b32.xlu1 %v10068_v16, %s5612_s18  ;;  %3725 = vrot.lane.b32.xlu0 %v10058_v47, %s5607_s21 }
 0x79d   : > { %3979 = vrot.lane.b32.xlu2 %v10054_v23, %s5612_s18  ;;  %v3780_v44 = vpop.permute.xlu0 %3779 }
 0x7a4   : > { %3969 = vrot.lane.b32.xlu1 %v10046_v32, %s5612_s18  ;;  %3843 = vrot.lane.b32.xlu0 %v10088_v8, %s5609_s26 }
 0x7a5   : > { %3829 = vrot.lane.b32.xlu2 %v10078_v14, %s5609_s26 }
 0x7a6   : > { %v3884_v7 = vpop.permute.xlu2 %3883 }
 0x7ac   : > { %3737 = vrot.lane.b32.xlu1 %v10070_v22, %s5607_s21  ;;  %3687 = vrot.lane.b32.xlu0 %v10086_v9, %s5606_s13 }
 0x7ad   : > { %3977 = vrot.lane.b32.xlu2 %v10070_v22, %s5612_s18 }
 0x7ae   : > { %v3870_v17 = vpop.permute.xlu2 %3869 }
 0x7b4   : > { %3967 = vrot.lane.b32.xlu1 %v10066_v60, %s5612_s18  ;;  %3841 = vrot.lane.b32.xlu0 %v10096_v5, %s5609_s26 }
 0x7b5   : > { %3827 = vrot.lane.b32.xlu2 %v10050_v62, %s5609_s26 }
 0x7b7   : > { %v3786_v40 = vpop.permute.xlu2 %3785 }
 0x7bc   : > { %3699 = vrot.lane.b32.xlu1 %v10088_v8, %s5606_s13  ;;  %3685 = vrot.lane.b32.xlu0 %v10078_v14, %s5606_s13 }
 0x7bd   : > { %3939 = vrot.lane.b32.xlu2 %v10088_v8, %s5611_s6 }
 0x7bf   : > { %v10158_v54 = vpop.permute.xlu2 %3733 }
 0x7c4   : > { %3965 = vrot.lane.b32.xlu1 %v10058_v47, %s5612_s18  ;;  %3839 = vrot.lane.b32.xlu0 %v10068_v16, %s5609_s26  ;;  %s11426_s18 = scalar_lea.vmem [#allocation19], %s4996_s5  ;;  %s4997_s5 = smul.u32 96, %s5731_s20 }
 0x7c5   : > { %3825 = vrot.lane.b32.xlu2 %v10046_v32, %s5609_s26  ;;  %s4756_s1 = sshll.u32 %s11426_s18, 4  ;;  %s4744_s20 = scalar_lea.sflag [#allocation4], %s5874_s10  ;;  %s4757_s1 = int_to_ptr.vmem [resolvable:$true] %s4756_s1 }
 0x7c6   : > { %v3790_v34 = vpop.permute.xlu0 %3789  ;;  %s4755_s17 = scalar_lea.hbm %s12361_s8, %s4997_s5 }
 0x7c7   : > { %v10168_v63 = vsel %vm794_vm0, %v3778_v36, %v3790_v34  ;;  %v10170_v35 = vpop.permute.xlu2 %3987  ;;  %v3805_v43 = vsel %vm794_vm0, %v3790_v34, %v3778_v36 }
 0x7c8   : > { %v10192_v20 = vmul.f32 %v3805_v43, %v12219_v39 }
 0x7ca   : > { %12220 = vst [vmem:[#allocation92_spill] sm:$0xff] %v10192_v20 }
 0x7cc   : > { %3697 = vrot.lane.b32.xlu1 %v10096_v5, %s5606_s13  ;;  %3683 = vrot.lane.b32.xlu0 %v10050_v62, %s5606_s13 }
 0x7cd   : > { %3937 = vrot.lane.b32.xlu2 %v10096_v5, %s5611_s6 }
 0x7ce   : > { %v3792_v61 = vpop.permute.xlu1 %3791  ;;  %v3776_v29 = vpop.permute.xlu0 %3775 }
 0x7cf   : > { %v10182_v27 = vsel %vm794_vm0, %v3780_v44, %v3792_v61  ;;  %v3806_v58 = vsel %vm794_vm0, %v3792_v61, %v3780_v44  ;;  %v10186_v45 = vpop.permute.xlu2 %3973 }
 0x7d0   : > { %v10189_v33 = vmul.f32 %v3806_v58, %v12219_v39 }
 0x7d2   : > { %4087 = vmatpush.msra.mxu2 %v10189_v33 }
 0x7d4   : > { %4088 = vmatpush.msra.mxu2 %v10192_v20  ;;  %3927 = vrot.lane.b32.xlu1 %v10086_v9, %s5611_s6 }
 0x7d5   : > { %3823 = vrot.lane.b32.xlu2 %v10066_v60, %s5609_s26  ;;  %3837 = vrot.lane.b32.xlu0 %v10060_v53, %s5609_s26 }
 0x7d6   : > { %v3872_v52 = vpop.permute.xlu1 %3871  ;;  %v3882_v13 = vpop.permute.xlu0 %3881 }
 0x7d7   : > { %v3894_v0 = vsel %vm906_vm3, %v3872_v52, %v3884_v7  ;;  %v10206_v3 = vsel %vm906_vm3, %v3884_v7, %v3872_v52  ;;  %v10208_v2 = vpop.permute.xlu2 %3741  ;;  %v3893_v18 = vsel %vm906_vm3, %v3870_v17, %v3882_v13  ;;  %v10214_v46 = vsel %vm906_vm3, %v3882_v13, %v3870_v17 }
 0x7d8   : > { %v10217_v31 = vmul.f32 %v3894_v0, %v12221_v4  ;;  %v10220_v12 = vmul.f32 %v3893_v18, %v12221_v4 }
 0x7da   : > { %12222 = vst [vmem:[#allocation97_spill] sm:$0xff] %v10220_v12  ;;  %4110 = vmatpush.msra.mxu3 %v10217_v31 }
 0x7dc   : > { %4111 = vmatpush.msra.mxu3 %v10220_v12  ;;  %3695 = vrot.lane.b32.xlu1 %v10068_v16, %s5606_s13 }
 0x7dd   : > { %3935 = vrot.lane.b32.xlu2 %v10068_v16, %s5611_s6  ;;  %3681 = vrot.lane.b32.xlu0 %v10046_v32, %s5606_s13 }
 0x7de   : > { %v3788_v56 = vpop.permute.xlu1 %3787  ;;  %v3736_v26 = vpop.permute.xlu0 %3735  ;;  %4112 = vmatpush.msra.mxu3 %v10086_v9 }
 0x7df   : > { %v10233_v15 = vsel %vm794_vm0, %v3776_v29, %v3788_v56  ;;  %v3804_v57 = vsel %vm794_vm0, %v3788_v56, %v3776_v29  ;;  %v10237_v55 = vpop.permute.xlu2 %3727 }
 0x7e0   : > { %v10240_v19 = vmul.f32 %v3804_v57, %v12219_v39  ;;  %4113 = vmatpush.msra.mxu3 %v10078_v14 }
 0x7e2   : > { %12223 = vst [vmem:[#allocation102_spill] sm:$0xff] %v10240_v19  ;;  %4089 = vmatpush.msra.mxu2 %v10240_v19  ;;  %4114 = vmatpush.msra.mxu3 %v10050_v62 }
 0x7e4   : > { %3925 = vrot.lane.b32.xlu1 %v10078_v14, %s5611_s6  ;;  %4115 = vmatpush.msra.mxu3 %v10046_v32 }
 0x7e5   : > { %3821 = vrot.lane.b32.xlu2 %v10058_v47, %s5609_s26  ;;  %3835 = vrot.lane.b32.xlu0 %v10054_v23, %s5609_s26 }
 0x7e6   : > { %v3774_v42 = vpop.permute.xlu1 %3773  ;;  %v3746_v48 = vpop.permute.xlu0 %3745  ;;  %4116 = vmatpush.msra.mxu3 %v10066_v60 }
 0x7e7   : > { %v10255_v30 = vsel %vm794_vm0, %v3774_v42, %v3786_v40  ;;  %v3803_v37 = vsel %vm794_vm0, %v3786_v40, %v3774_v42  ;;  %v10259_v11 = vpop.permute.xlu2 %3981  ;;  %v10264_v6 = vsel %vm738_vm1, %v10158_v54, %v3746_v48  ;;  %v3759_v41 = vsel %vm738_vm1, %v3746_v48, %v10158_v54  ;;  %v12228_v54 = vld [vmem:[#allocation61_spill] sm:$0xff] }
 0x7e8   : > { %v10267_v10 = vmul.f32 %v3803_v37, %v12219_v39  ;;  %4117 = vmatpush.msra.mxu3 %v10058_v47  ;;  %v10290_v28 = vmul.f32 %v3759_v41, %v12225_v59 }
 0x7ea   : > { %12224 = vst [vmem:[#allocation107_spill] sm:$0xff] %v10267_v10  ;;  %4090 = vmatpush.msra.mxu2 %v10267_v10 }
 0x7eb   : > { %12227 = vst [vmem:[#allocation74_spill] sm:$0xff] %v10290_v28 }
 0x7ec   : > { %3693 = vrot.lane.b32.xlu1 %v10060_v53, %s5606_s13 }
 0x7ed   : > { %3933 = vrot.lane.b32.xlu2 %v10060_v53, %s5611_s6  ;;  %3679 = vrot.lane.b32.xlu0 %v10066_v60, %s5606_s13 }
 0x7ee   : > { %v3748_v38 = vpop.permute.xlu1 %3747  ;;  %v3732_v50 = vpop.permute.xlu0 %3731 }
 0x7ef   : > { %v10282_v51 = vsel %vm738_vm1, %v3736_v26, %v3748_v38  ;;  %v3760_v1 = vsel %vm738_vm1, %v3748_v38, %v3736_v26  ;;  %v3832_v25 = vpop.permute.xlu2 %3831 }
 0x7f0   : > { %v10287_v49 = vmul.f32 %v3760_v1, %v12225_v59 }
 0x7f2   : > { %12226 = vst [vmem:[#allocation46_spill] sm:$0xff] %v10287_v49  ;;  %4091 = vmatpush.msra.mxu2 %v10287_v49 }
 0x7f4   : > { %3923 = vrot.lane.b32.xlu1 %v10050_v62, %s5611_s6  ;;  %4092 = vmatpush.msra.mxu2 %v10290_v28 }
 0x7f5   : > { %3783 = vrot.lane.b32.xlu2 %v10086_v9, %s5608_s22  ;;  %3833 = vrot.lane.b32.xlu0 %v10070_v22, %s5609_s26  ;;  %s12249_s26 = sld [smem:[#allocation136_spill]] }
 0x7f6   : > { %v3976_v21 = vpop.permute.xlu1 %3975  ;;  %v3986_v36 = vpop.permute.xlu0 %3985 }
 0x7f7   : > { %v3994_v7 = vsel %vm1018_vm5, %v3976_v21, %v10170_v35  ;;  %v10306_v17 = vsel %vm1018_vm5, %v10170_v35, %v3976_v21  ;;  %v3993_v40 = vsel %vm1018_vm5, %v10186_v45, %v3986_v36  ;;  %v10314_v44 = vsel %vm1018_vm5, %v3986_v36, %v10186_v45  ;;  %v10319_v61 = vpop.permute.xlu2 %3979 }
 0x7f8   : > { %v10317_v34 = vmul.f32 %v3994_v7, %v12228_v54  ;;  %v10322_v29 = vmul.f32 %v3993_v40, %v12228_v54 }
 0x7fa   : > { %12229 = vst [vmem:[#allocation34_spill] sm:$0xff] %v10317_v34  ;;  %4133 = vmatpush.msra.mxu0 %v10317_v34  ;;  %v10705_v34 = vld [vmem:[#allocation16 + $0x20] sm:$0x1] }
 0x7fb   : > { %12230 = vst [vmem:[#allocation35_spill] sm:$0xff] %v10322_v29  ;;  %v4070_v49 = vld [vmem:[%s12249_s26 + $0x8] sm:$0x1] }
 0x7fc   : > { %3691 = vrot.lane.b32.xlu1 %v10054_v23, %s5606_s13  ;;  %4134 = vmatpush.msra.mxu0 %v10322_v29  ;;  %v10665_v29 = vld [vmem:[#allocation16] sm:$0xff] }
 0x7fd   : > { %3931 = vrot.lane.b32.xlu2 %v10054_v23, %s5611_s6  ;;  %3677 = vrot.lane.b32.xlu0 %v10058_v47, %s5606_s13 }
 0x7fe   : > { %v3744_v35 = vpop.permute.xlu1 %3743  ;;  %v3972_v43 = vpop.permute.xlu0 %3971 }
 0x7ff   : > { %v10334_v58 = vsel %vm738_vm1, %v3732_v50, %v3744_v35  ;;  %v3758_v45 = vsel %vm738_vm1, %v3744_v35, %v3732_v50  ;;  %v3830_v13 = vpop.permute.xlu2 %3829 }
 0x800   : > { %v10339_v52 = vmul.f32 %v3758_v45, %v12225_v59 }
 0x802   : > { %12231 = vst [vmem:[#allocation47_spill] sm:$0xff] %v10339_v52  ;;  %4093 = vmatpush.msra.mxu2 %v10339_v52 }
 0x804   : > { %3921 = vrot.lane.b32.xlu1 %v10046_v32, %s5611_s6 }
 0x805   : > { %3917 = vrot.lane.b32.xlu2 %v10058_v47, %s5611_s6  ;;  %3795 = vrot.lane.b32.xlu0 %v10088_v8, %s5608_s22 }
 0x806   : > { %v3730_v0 = vpop.permute.xlu1 %3729  ;;  %v3740_v18 = vpop.permute.xlu0 %3739 }
 0x807   : > { %v10351_v56 = vsel %vm738_vm1, %v3730_v0, %v10208_v2  ;;  %v3757_v26 = vsel %vm738_vm1, %v10208_v2, %v3730_v0  ;;  %v10359_v57 = vsel %vm738_vm1, %v10237_v55, %v3740_v18  ;;  %v3756_v42 = vsel %vm738_vm1, %v3740_v18, %v10237_v55  ;;  %v10374_v2 = vpop.permute.xlu2 %3977  ;;  %v12236_v18 = vld [vmem:[#allocation58_spill] sm:$0xff] }
 0x808   : > { %v10365_v48 = vmul.f32 %v3757_v26, %v12225_v59  ;;  %v10368_v37 = vmul.f32 %v3756_v42, %v12225_v59 }
 0x80a   : > { %12232 = vst [vmem:[#allocation71_spill] sm:$0xff] %v10365_v48  ;;  %4094 = vmatpush.msra.mxu2 %v10365_v48 }
 0x80b   : > { %12233 = vst [vmem:[#allocation44_spill] sm:$0xff] %v10368_v37 }
 0x80c   : > { %3689 = vrot.lane.b32.xlu1 %v10070_v22, %s5606_s13  ;;  %4095 = vmatpush.msra.mxu2 %v10368_v37 }
 0x80d   : > { %4035 = vrot.lane.b32.xlu2 %v10088_v8, %s5613_s25  ;;  %3781 = vrot.lane.b32.xlu0 %v10078_v14, %s5608_s22 }
 0x80e   : > { %v3984_v55 = vpop.permute.xlu1 %3983  ;;  %v3726_v38 = vpop.permute.xlu0 %3725 }
 0x80f   : > { %v3992_v50 = vsel %vm1018_vm5, %v3972_v43, %v3984_v55  ;;  %v10384_v41 = vsel %vm1018_vm5, %v3984_v55, %v3972_v43  ;;  %v3828_v7 = vpop.permute.xlu2 %3827 }
 0x810   : > { %v10387_v1 = vmul.f32 %v3992_v50, %v12228_v54 }
 0x812   : > { %12234 = vst [vmem:[#allocation28_spill] sm:$0xff] %v10387_v1  ;;  %4135 = vmatpush.msra.mxu0 %v10387_v1 }
 0x814   : > { %3919 = vrot.lane.b32.xlu1 %v10066_v60, %s5611_s6 }
 0x815   : > { %4021 = vrot.lane.b32.xlu2 %v10078_v14, %s5613_s25  ;;  %3929 = vrot.lane.b32.xlu0 %v10070_v22, %s5611_s6 }
 0x816   : > { %v3970_v21 = vpop.permute.xlu1 %3969  ;;  %v3844_v36 = vpop.permute.xlu0 %3843 }
 0x817   : > { %v3991_v40 = vsel %vm1018_vm5, %v3970_v21, %v10259_v11  ;;  %v10402_v35 = vsel %vm1018_vm5, %v10259_v11, %v3970_v21  ;;  %v10406_v43 = vsel %vm850_vm4, %v3832_v25, %v3844_v36  ;;  %v3856_v45 = vsel %vm850_vm4, %v3844_v36, %v3832_v25  ;;  %v3940_v21 = vpop.permute.xlu2 %3939 }
 0x818   : > { %v10411_v0 = vmul.f32 %v3991_v40, %v12228_v54  ;;  %v10414_v26 = vmul.f32 %v3856_v45, %v12236_v18 }
 0x81a   : > { %12235 = vst [vmem:[#allocation29_spill] sm:$0xff] %v10411_v0  ;;  %4118 = vmatpush.msra.mxu3 %v10414_v26  ;;  %4136 = vmatpush.msra.mxu0 %v10411_v0 }
 0x81b   : > { %12237 = vst [vmem:[#allocation68_spill] sm:$0xff] %v10414_v26 }
 0x81c   : > { %3793 = vrot.lane.b32.xlu1 %v10096_v5, %s5608_s22  ;;  %s5525_s22 = scalar_lea.hbm %s12361_s8, 192 }
 0x81d   : > { %3889 = vrot.lane.b32.xlu2 %v10096_v5, %s5610_s27  ;;  %3879 = vrot.lane.b32.xlu0 %v10086_v9, %s5610_s27 }
 0x81e   : > { %v3738_v11 = vpop.permute.xlu1 %3737  ;;  %v3688_v25 = vpop.permute.xlu0 %3687 }
 0x81f   : > { %v10426_v42 = vsel %vm738_vm1, %v3726_v38, %v3738_v11  ;;  %v3755_v55 = vsel %vm738_vm1, %v3738_v11, %v3726_v38  ;;  %v3826_v26 = vpop.permute.xlu2 %3825 }
 0x820   : > { %v10431_v50 = vmul.f32 %v3755_v55, %v12225_v59 }
 0x822   : > { %12238 = vst [vmem:[#allocation30_spill] sm:$0xff] %v10431_v50  ;;  %4096 = vmatpush.msra.mxu2 %v10431_v50 }
 0x824   : > { %4023 = vrot.lane.b32.xlu1 %v10086_v9, %s5613_s25 }
 0x825   : > { %3875 = vrot.lane.b32.xlu2 %v10050_v62, %s5610_s27  ;;  %4033 = vrot.lane.b32.xlu0 %v10096_v5, %s5613_s25 }
 0x826   : > { %v3968_v36 = vpop.permute.xlu1 %3967  ;;  %v3842_v40 = vpop.permute.xlu0 %3841 }
 0x827   : > { %v3990_v38 = vsel %vm1018_vm5, %v3968_v36, %v10319_v61  ;;  %v10446_v59 = vsel %vm1018_vm5, %v10319_v61, %v3968_v36  ;;  %v10450_v45 = vsel %vm850_vm4, %v3830_v13, %v3842_v40  ;;  %v3855_v11 = vsel %vm850_vm4, %v3842_v40, %v3830_v13 }
 0x828   : > { %v10455_v55 = vmul.f32 %v3990_v38, %v12228_v54  ;;  %v10458_v50 = vmul.f32 %v3855_v11, %v12236_v18  ;;  %v12241_v38 = vld [vmem:[#allocation55_spill] sm:$0xff] }
 0x82a   : > { %12239 = vst [vmem:[#allocation38_spill] sm:$0xff] %v10455_v55  ;;  %4119 = vmatpush.msra.mxu3 %v10458_v50  ;;  %4137 = vmatpush.msra.mxu0 %v10455_v55 }
 0x82b   : > { %12240 = vst [vmem:[#allocation72_spill] sm:$0xff] %v10458_v50  ;;  %v3938_v50 = vpop.permute.xlu2 %3937 }
 0x82c   : > { %3891 = vrot.lane.b32.xlu1 %v10088_v8, %s5610_s27 }
 0x82d   : > { %4029 = vrot.lane.b32.xlu2 %v10060_v53, %s5613_s25  ;;  %4019 = vrot.lane.b32.xlu0 %v10050_v62, %s5613_s25 }
 0x82e   : > { %v3700_v61 = vpop.permute.xlu1 %3699  ;;  %v3686_v13 = vpop.permute.xlu0 %3685 }
 0x82f   : > { %v10470_v36 = vsel %vm683_vm2, %v3688_v25, %v3700_v61  ;;  %v3712_v40 = vsel %vm683_vm2, %v3700_v61, %v3688_v25 }
 0x830   : > { %v10475_v11 = vmul.f32 %v3712_v40, %v12241_v38 }
 0x832   : > { %12242 = vst [vmem:[#allocation32_spill] sm:$0xff] %v10475_v11  ;;  %4097 = vmatpush.msra.mxu2 %v10475_v11 }
 0x834   : > { %3877 = vrot.lane.b32.xlu1 %v10078_v14, %s5610_s27 }
 0x835   : > { %4015 = vrot.lane.b32.xlu2 %v10066_v60, %s5613_s25  ;;  %3887 = vrot.lane.b32.xlu0 %v10068_v16, %s5610_s27 }
 0x836   : > { %v3966_v37 = vpop.permute.xlu1 %3965  ;;  %v3840_v48 = vpop.permute.xlu0 %3839 }
 0x837   : > { %v3989_v25 = vsel %vm1018_vm5, %v3966_v37, %v10374_v2  ;;  %v10490_v61 = vsel %vm1018_vm5, %v10374_v2, %v3966_v37  ;;  %v10494_v40 = vsel %vm850_vm4, %v3828_v7, %v3840_v48  ;;  %v3854_v11 = vsel %vm850_vm4, %v3840_v48, %v3828_v7 }
 0x838   : > { %v10499_v60 = vmul.f32 %v3989_v25, %v12228_v54  ;;  %v10502_v52 = vmul.f32 %v3854_v11, %v12236_v18  ;;  %v3824_v54 = vpop.permute.xlu2 %3823 }
 0x83a   : > { %12243 = vst [vmem:[#allocation112_spill] sm:$0xff] %v10499_v60  ;;  %4120 = vmatpush.msra.mxu3 %v10502_v52  ;;  %4138 = vmatpush.msra.mxu0 %v10499_v60 }
 0x83b   : > { %12244 = vst [vmem:[#allocation45_spill] sm:$0xff] %v10502_v52 }
 0x83c   : > { %4031 = vrot.lane.b32.xlu1 %v10068_v16, %s5613_s25 }
 0x83d   : > { %4025 = vrot.lane.b32.xlu2 %v10070_v22, %s5613_s25  ;;  %3873 = vrot.lane.b32.xlu0 %v10046_v32, %s5610_s27 }
 0x83e   : > { %v3698_v48 = vpop.permute.xlu1 %3697  ;;  %v3684_v37 = vpop.permute.xlu0 %3683 }
 0x83f   : > { %v10514_v2 = vsel %vm683_vm2, %v3686_v13, %v3698_v48  ;;  %v3711_v7 = vsel %vm683_vm2, %v3698_v48, %v3686_v13  ;;  %v12246_v48 = vld [vmem:[#allocation63_spill] sm:$0xff] }
 0x840   : > { %v10519_v11 = vmul.f32 %v3711_v7, %v12241_v38  ;;  %v3936_v28 = vpop.permute.xlu2 %3935 }
 0x842   : > { %12245 = vst [vmem:[#allocation76_spill] sm:$0xff] %v10519_v11  ;;  %4098 = vmatpush.msra.mxu2 %v10519_v11 }
 0x844   : > { %4017 = vrot.lane.b32.xlu1 %v10046_v32, %s5613_s25 }
 0x845   : > { %4027 = vrot.lane.b32.xlu0 %v10054_v23, %s5613_s25 }
 0x846   : > { %v3928_v25 = vpop.permute.xlu1 %3927 }
 0x847   : > { %v3946_v52 = vsel %vm962_vm6, %v3928_v25, %v3940_v21  ;;  %v10530_v60 = vsel %vm962_vm6, %v3940_v21, %v3928_v25  ;;  %v3838_v13 = vpop.permute.xlu0 %3837  ;;  %v4069_v21 = vld [vmem:[%s12249_s26] sm:$0xff] }
 0x848   : > { %v10533_v7 = vmul.f32 %v3946_v52, %v12246_v48  ;;  %v10537_v11 = vsel %vm850_vm4, %v3826_v26, %v3838_v13  ;;  %v3853_v32 = vsel %vm850_vm4, %v3838_v13, %v3826_v26 }
 0x849   : > { %v10542_v55 = vmul.f32 %v3853_v32, %v12236_v18 }
 0x84a   : > { %12247 = vst [vmem:[#allocation54_spill] sm:$0xff] %v10533_v7  ;;  %4139 = vmatpush.msra.mxu0 %v10533_v7 }
 0x84b   : > { %12248 = vst [vmem:[#allocation27_spill] sm:$0xff] %v10542_v55  ;;  %4121 = vmatpush.msra.mxu3 %v10542_v55  ;;  %v3822_v55 = vpop.permute.xlu2 %3821 }
 0x84c   : > { %3885 = vrot.lane.b32.xlu1 %v10060_v53, %s5610_s27 }
 0x84d   : > { %4073 = vperm.xlu0 %5165, %v4069_v21  }
 0x84e   : > { %v3696_v52 = vpop.permute.xlu1 %3695 }
 0x84f   : > { %v10553_v26 = vsel %vm683_vm2, %v3684_v37, %v3696_v52  ;;  %v3710_v32 = vsel %vm683_vm2, %v3696_v52, %v3684_v37  ;;  %v10557_v25 = vpop.permute.xlu0 %3681 }
 0x850   : > { %v10560_v13 = vmul.f32 %v3710_v32, %v12241_v38 }
 0x852   : > { %12250 = vst [vmem:[#allocation78_spill] sm:$0xff] %v10560_v13  ;;  %4099 = vmatpush.msra.mxu2 %v10560_v13 }
 0x854   : > { %4013 = vrot.lane.b32.xlu1 %v10058_v47, %s5613_s25 }
 0x856   : > { %v3926_v21 = vpop.permute.xlu1 %3925 }
 0x857   : > { %v3945_v7 = vsel %vm962_vm6, %v3926_v21, %v3938_v50  ;;  %v10569_v62 = vsel %vm962_vm6, %v3938_v50, %v3926_v21  ;;  %v3836_v37 = vpop.permute.xlu0 %3835  ;;  %v3934_v50 = vpop.permute.xlu2 %3933 }
 0x858   : > { %v10572_v52 = vmul.f32 %v3945_v7, %v12246_v48  ;;  %v10576_v32 = vsel %vm850_vm4, %v3824_v54, %v3836_v37  ;;  %v3852_v13 = vsel %vm850_vm4, %v3836_v37, %v3824_v54 }
 0x859   : > { %v10581_v47 = vmul.f32 %v3852_v13, %v12236_v18 }
 0x85a   : > { %12251 = vst [vmem:[#allocation31_spill] sm:$0xff] %v10572_v52  ;;  %4140 = vmatpush.msra.mxu0 %v10572_v52 }
 0x85b   : > { %12252 = vst [vmem:[#allocation81_spill] sm:$0xff] %v10581_v47  ;;  %4122 = vmatpush.msra.mxu3 %v10581_v47 }
 0x85c   : > { %4078 = vperm.xlu1 %5166, %v4070_v49  }
 0x85e   : > { %v10588_v7 = vpop.permute.xlu1 %3693 }
 0x85f   : > { %v3709_v54 = vsel %vm683_vm2, %v10588_v7, %v10557_v25  ;;  %v10594_v21 = vpop.permute.xlu0 %3679  ;;  %v10600_v52 = vpop.permute.xlu2 %3783 }
 0x860   : > { %v10597_v13 = vmul.f32 %v3709_v54, %v12241_v38 }
 0x862   : > { %12253 = vst [vmem:[#allocation80_spill] sm:$0xff] %v10597_v13  ;;  %4100 = vmatpush.msra.mxu2 %v10597_v13 }
 0x866   : > { %v3924_v37 = vpop.permute.xlu1 %3923 }
 0x867   : > { %v3944_v49 = vsel %vm962_vm6, %v3924_v37, %v3936_v28  ;;  %v10606_v47 = vsel %vm962_vm6, %v3936_v28, %v3924_v37  ;;  %v3834_v0 = vpop.permute.xlu0 %3833 }
 0x868   : > { %v10609_v14 = vmul.f32 %v3944_v49, %v12246_v48  ;;  %v10613_v54 = vsel %vm850_vm4, %v3822_v55, %v3834_v0  ;;  %v3851_v13 = vsel %vm850_vm4, %v3834_v0, %v3822_v55  ;;  %v3932_v0 = vpop.permute.xlu2 %3931 }
 0x869   : > { %v10618_v10 = vmul.f32 %v3851_v13, %v12236_v18 }
 0x86a   : > { %12254 = vst [vmem:[#allocation40_spill] sm:$0xff] %v10609_v14  ;;  %4141 = vmatpush.msra.mxu0 %v10609_v14 }
 0x86b   : > { %12255 = vst [vmem:[#allocation86_spill] sm:$0xff] %v10618_v10  ;;  %4123 = vmatpush.msra.mxu3 %v10618_v10 }
 0x86e   : > { %v10622_v28 = vpop.permute.xlu1 %3691 }
 0x86f   : > { %v3708_v37 = vsel %vm683_vm2, %v10622_v28, %v10594_v21  ;;  %v10628_v49 = vpop.permute.xlu0 %3677 }
 0x870   : > { %v10631_v1 = vmul.f32 %v3708_v37, %v12241_v38  ;;  %v3918_v9 = vpop.permute.xlu2 %3917 }
 0x872   : > { %12256 = vst [vmem:[#allocation85_spill] sm:$0xff] %v10631_v1  ;;  %4101 = vmatpush.msra.mxu2 %v10631_v1 }
 0x876   : > { %v3922_v18 = vpop.permute.xlu1 %3921 }
 0x877   : > { %v3943_v55 = vsel %vm962_vm6, %v3922_v18, %v3934_v50  ;;  %v10638_v13 = vsel %vm962_vm6, %v3934_v50, %v3922_v18  ;;  %v10640_v10 = vpop.permute.xlu0 %3795 }
 0x878   : > { %v10643_v14 = vmul.f32 %v3943_v55, %v12246_v48  ;;  %v3808_v37 = vsel %vm794_vm0, %v10640_v10, %v10600_v52  ;;  %v10678_v12 = vpop.permute.xlu2 %4035 }
 0x879   : > { %v10650_v1 = vmul.f32 %v3808_v37, %v12219_v39  ;;  %v12260_v37 = vld [vmem:[#allocation60_spill] sm:$0xff] }
 0x87a   : > { %12257 = vst [vmem:[#allocation82_spill] sm:$0xff] %v10643_v14  ;;  %4142 = vmatpush.msra.mxu0 %v10643_v14  ;;  %v10669_v14 = vmul.f32 %v10182_v27, %v12260_v37 }
 0x87b   : > { %12258 = vst [vmem:[#allocation90_spill] sm:$0xff] %v10650_v1  ;;  %4124 = vmatpush.msra.mxu3 %v10650_v1  ;;  %v10675_v1 = vmul.f32 %v10168_v63, %v12260_v37 }
 0x87c   : > { %12261 = vst [vmem:[#allocation87_spill] sm:$0xff] %v10669_v14 }
 0x87d   : > { %12262 = vst [vmem:[#allocation94_spill] sm:$0xff] %v10675_v1 }
 0x87e   : > { %v10654_v50 = vpop.permute.xlu1 %3689 }
 0x87f   : > { %v3707_v18 = vsel %vm683_vm2, %v10654_v50, %v10628_v49  ;;  %v10660_v55 = vpop.permute.xlu0 %3781 }
 0x880   : > { %v10663_v19 = vmul.f32 %v3707_v18, %v12241_v38  ;;  %v10682_v38 = vmul.f32 %v10233_v15, %v12260_v37 }
 0x882   : > { %12259 = vst [vmem:[#allocation89_spill] sm:$0xff] %v10663_v19  ;;  %4102 = vmatpush.msra.mxu2 %v10663_v19 }
 0x883   : > { %4103 = vmatmul.f32.vlgmr.msra.gmra.mxu2 %v10665_v29  ;;  %12263 = vst [vmem:[#allocation93_spill] sm:$0xff] %v10682_v38 }
 0x884   : > { %4179 = vmatpush.msrb.mxu2 %v10669_v14  ;;  %v10693_v14 = vmul.f32 %v10255_v30, %v12260_v37 }
 0x886   : > { %4180 = vmatpush.msrb.mxu2 %v10675_v1  ;;  %v3920_v27 = vpop.permute.xlu1 %3919  ;;  %12264 = vst [vmem:[#allocation91_spill] sm:$0xff] %v10693_v14 }
 0x887   : > { %v3942_v18 = vsel %vm962_vm6, %v3920_v27, %v3932_v0  ;;  %v10689_v19 = vsel %vm962_vm6, %v3932_v0, %v3920_v27  ;;  %v3930_v63 = vpop.permute.xlu0 %3929  ;;  %v12265_v0 = vld [vmem:[#allocation50_spill] sm:$0xff] }
 0x888   : > { %v10696_v20 = vmul.f32 %v3942_v18, %v12246_v48  ;;  %v3941_v15 = vsel %vm962_vm6, %v3918_v9, %v3930_v63  ;;  %v10702_v1 = vsel %vm962_vm6, %v3930_v63, %v3918_v9  ;;  %4181 = vmatpush.msrb.mxu2 %v10682_v38  ;;  %v10709_v27 = vmul.f32 %v10282_v51, %v12265_v0  ;;  %v10730_v18 = vpop.permute.xlu2 %4021 }
 0x889   : > { %v10712_v30 = vmul.f32 %v3941_v15, %v12246_v48  ;;  %v10719_v9 = vmul.f32 %v10264_v6, %v12265_v0  ;;  %v10725_v51 = vmul.f32 %v10334_v58, %v12265_v0  ;;  %v10740_v15 = vmul.f32 %v10351_v56, %v12265_v0 }
 0x88a   : > { %12266 = vst [vmem:[#allocation99_spill] sm:$0xff] %v10709_v27  ;;  %4182 = vmatpush.msrb.mxu2 %v10693_v14  ;;  %4143 = vmatpush.msra.mxu0 %v10696_v20  ;;  %v10754_v38 = vmul.f32 %v10359_v57, %v12265_v0  ;;  %v10765_v56 = vmul.f32 %v10426_v42, %v12265_v0 }
 0x88b   : > { %4106 = vmatmul.f32.gmra.mxu2 %v10705_v34  ;;  %12267 = vst [vmem:[#allocation98_spill] sm:$0xff] %v10719_v9 }
 0x88c   : > { %4183 = vmatpush.msrb.mxu2 %v10709_v27  ;;  %4144 = vmatpush.msra.mxu0 %v10712_v30  ;;  %12268 = vst [vmem:[#allocation96_spill] sm:$0xff] %v10725_v51  ;;  %v12270_v27 = vld [vmem:[#allocation57_spill] sm:$0xff] }
 0x88d   : > { %12269 = vst [vmem:[#allocation104_spill] sm:$0xff] %v10740_v15  ;;  %v10750_v14 = vmul.f32 %v10206_v3, %v12270_v27  ;;  %v12273_v3 = vld [vmem:[#allocation48_spill] sm:$0xff] }
 0x88e   : > { %4184 = vmatpush.msrb.mxu2 %v10719_v9  ;;  %v10728_v48 = vpop.permute.xlu1 %3793  ;;  %v10746_v9 = vld [vmem:[#allocation16 + $0x8] sm:$0xff]  ;;  %12271 = vst [vmem:[#allocation103_spill] sm:$0xff] %v10754_v38  ;;  %v10771_v57 = vmul.f32 %v10470_v36, %v12273_v3  ;;  %v10785_v0 = vmul.f32 %v10514_v2, %v12273_v3 }
 0x88f   : > { %v3807_v6 = vsel %vm794_vm0, %v10728_v48, %v10660_v55  ;;  %v10736_v63 = vpop.permute.xlu0 %3879  ;;  %12272 = vst [vmem:[#allocation101_spill] sm:$0xff] %v10765_v56  ;;  %v10802_v2 = vld [vmem:[#allocation16 + $0x28] sm:$0x1] }
 0x890   : > { %v10743_v58 = vmul.f32 %v3807_v6, %v12219_v39  ;;  %4185 = vmatpush.msrb.mxu2 %v10725_v51  ;;  %v10761_v39 = vmul.f32 %v10214_v46, %v12270_v27  ;;  %12274 = vst [vmem:[#allocation109_spill] sm:$0xff] %v10771_v57  ;;  %v10799_v51 = vpop.permute.xlu2 %3889 }
 0x891   : > { %12275 = vst [vmem:[#allocation108_spill] sm:$0xff] %v10785_v0 }
 0x892   : > { %4186 = vmatpush.msrb.mxu2 %v10740_v15  ;;  %4125 = vmatpush.msra.mxu3 %v10743_v58  ;;  %v3703_v15 = vsel %vm683_vm2, %v10557_v25, %v10588_v7 }
 0x893   : > { %4126 = vmatmul.f32.vlgmr.msra.gmra.mxu3 %v10746_v9  ;;  %v10819_v7 = vmul.f32 %v3703_v15, %v12273_v3 }
 0x894   : > { %4187 = vmatpush.msrb.mxu2 %v10754_v38  ;;  %4202 = vmatpush.msrb.mxu3 %v10750_v14  ;;  %v12276_v38 = vld [vmem:[#allocation66_spill] sm:$0xff] }
 0x895   : > { %12278 = vst [vmem:[#allocation113_spill] sm:$0xff] %v10819_v7 }
 0x896   : > { %4188 = vmatpush.msrb.mxu2 %v10765_v56  ;;  %4203 = vmatpush.msrb.mxu3 %v10761_v39  ;;  %v10775_v6 = vpop.permute.xlu1 %4023 }
 0x897   : > { %v4042_v46 = vsel %vm1074_vm7, %v10775_v6, %v10678_v12  ;;  %v10781_v42 = vpop.permute.xlu0 %4033 }
 0x898   : > { %v10788_v36 = vmul.f32 %v4042_v46, %v12276_v38  ;;  %v4041_v56 = vsel %vm1074_vm7, %v10730_v18, %v10781_v42  ;;  %4189 = vmatpush.msrb.mxu2 %v10771_v57  ;;  %4204 = vmatpush.msrb.mxu3 %v10088_v8  ;;  %v10806_v46 = vmul.f32 %v10553_v26, %v12273_v3 }
 0x899   : > { %v3702_v57 = vsel %vm683_vm2, %v10594_v21, %v10622_v28  ;;  %v10815_v25 = vmul.f32 %v4041_v56, %v12276_v38  ;;  %v3701_v26 = vsel %vm683_vm2, %v10628_v49, %v10654_v50 }
 0x89a   : > { %12277 = vst [vmem:[#allocation106_spill] sm:$0xff] %v10806_v46  ;;  %4190 = vmatpush.msrb.mxu2 %v10785_v0  ;;  %4166 = vmatpush.msra.mxu1 %v10788_v36  ;;  %v10830_v21 = vmul.f32 %v3702_v57, %v12273_v3  ;;  %v10843_v49 = vmul.f32 %v3701_v26, %v12273_v3  ;;  %v12281_v57 = vld [vmem:[#allocation59_spill] sm:$0xff] }
 0x89b   : > { %4205 = vmatpush.msrb.mxu3 %v10096_v5  ;;  %v10862_v3 = vmul.f32 %v10450_v45, %v12281_v57 }
 0x89c   : > { %4129 = vmatmul.f32.gmra.mxu3 %v10802_v2  ;;  %4191 = vmatpush.msrb.mxu2 %v10806_v46  ;;  %12279 = vst [vmem:[#allocation111_spill] sm:$0xff] %v10830_v21  ;;  %v10856_v46 = vpop.permute.xlu2 %3875 }
 0x89d   : > { %4206 = vmatpush.msrb.mxu3 %v10068_v16  ;;  %4167 = vmatpush.msra.mxu1 %v10815_v25  ;;  %12280 = vst [vmem:[#allocation69_spill] sm:$0xff] %v10843_v49 }
 0x89e   : > { %4192 = vmatpush.msrb.mxu2 %v10819_v7  ;;  %v10833_v28 = vpop.permute.xlu1 %3891  ;;  %v10854_v7 = vmul.f32 %v10406_v43, %v12281_v57  ;;  %12283 = vst [vmem:[#allocation114_spill] sm:$0xff] %v10862_v3 }
 0x89f   : > { %4207 = vmatpush.msrb.mxu3 %v10060_v53  ;;  %v3898_v15 = vsel %vm906_vm3, %v10736_v63, %v10833_v28  ;;  %v10840_v56 = vpop.permute.xlu0 %4019 }
 0x8a0   : > { %v10846_v50 = vmul.f32 %v3898_v15, %v12221_v4  ;;  %4193 = vmatpush.msrb.mxu2 %v10830_v21  ;;  %12282 = vst [vmem:[#allocation123_spill] sm:$0xff] %v10854_v7  ;;  %v10869_v15 = vmul.f32 %v10494_v40, %v12281_v57  ;;  %v10887_v40 = vmul.f32 %v10537_v11, %v12281_v57 }
 0x8a1   : > { %4208 = vmatpush.msrb.mxu3 %v10054_v23  ;;  %v3802_v11 = vsel %vm794_vm0, %v10600_v52, %v10640_v10  ;;  %v4047_v23 = vsel %vm1074_vm7, %v10781_v42, %v10730_v18  ;;  %v12292_v42 = vld [vmem:[#allocation64_spill] sm:$0xff] }
 0x8a2   : > { %4194 = vmatpush.msrb.mxu2 %v10843_v49  ;;  %4145 = vmatpush.msra.mxu0 %v10846_v50  ;;  %12284 = vst [vmem:[#allocation122_spill] sm:$0xff] %v10869_v15 }
 0x8a3   : > { %4209 = vmatpush.msrb.mxu3 %v10070_v22  ;;  %4195 = vmatmul.f32.vlgmr.msrb.gmra.mxu2 %v10665_v29  ;;  %12285 = vst [vmem:[#allocation105_spill] sm:$0xff] %v10887_v40  ;;  %v4064_v22 = vld [vmem:[#allocation16 + $0x18] sm:$0xff] }
 0x8a5   : > { %4210 = vmatpush.msrb.mxu3 %v10854_v7 }
 0x8a6   : > { %v10865_v26 = vpop.permute.xlu1 %3877 }
 0x8a7   : > { %4211 = vmatpush.msrb.mxu3 %v10862_v3  ;;  %v3897_v43 = vsel %vm906_vm3, %v10865_v26, %v10799_v51  ;;  %v10876_v29 = vpop.permute.xlu0 %3887 }
 0x8a8   : > { %v10879_v45 = vmul.f32 %v3897_v43, %v12221_v4  ;;  %v3896_v49 = vsel %vm906_vm3, %v10856_v46, %v10876_v29  ;;  %v10896_v43 = vmul.f32 %v10576_v32, %v12281_v57  ;;  %v3801_v32 = vsel %vm794_vm0, %v10660_v55, %v10728_v48 }
 0x8a9   : > { %4212 = vmatpush.msrb.mxu3 %v10869_v15  ;;  %v10891_v21 = vmul.f32 %v3896_v49, %v12221_v4  ;;  %v10907_v49 = vmul.f32 %v10613_v54, %v12281_v57  ;;  %v4030_v15 = vpop.permute.xlu2 %4029  ;;  %v10927_v57 = vmul.f32 %v3801_v32, %v12260_v37 }
 0x8aa   : > { %4146 = vmatpush.msra.mxu0 %v10879_v45  ;;  %12286 = vst [vmem:[#allocation124_spill] sm:$0xff] %v10896_v43 }
 0x8ab   : > { %4213 = vmatpush.msrb.mxu3 %v10887_v40  ;;  %4198 = vmatmul.f32.gmra.mxu2 %v10705_v34  ;;  %12287 = vst [vmem:[#allocation115_spill] sm:$0xff] %v10907_v49  ;;  %v10915_v40 = vmul.f32 %v3802_v11, %v12260_v37 }
 0x8ac   : > { %4147 = vmatpush.msra.mxu0 %v10891_v21  ;;  %12289 = vst [vmem:[#allocation73_spill] sm:$0xff] %v10927_v57 }
 0x8ad   : > { %4214 = vmatpush.msrb.mxu3 %v10896_v43  ;;  %12288 = vst [vmem:[#allocation126_spill] sm:$0xff] %v10915_v40 }
 0x8ae   : > { %v4032_v34 = vpop.permute.xlu1 %4031 }
 0x8af   : > { %4215 = vmatpush.msrb.mxu3 %v10907_v49  ;;  %v4040_v10 = vsel %vm1074_vm7, %v10840_v56, %v4032_v34  ;;  %v10921_v52 = vpop.permute.xlu0 %3873 }
 0x8b0   : > { %v10924_v54 = vmul.f32 %v4040_v10, %v12276_v38 }
 0x8b1   : > { %4216 = vmatpush.msrb.mxu3 %v10915_v40  ;;  %v4016_v48 = vpop.permute.xlu2 %4015  ;;  %v10955_v40 = vld [vmem:[#allocation16 + $0x10] sm:$0xff] }
 0x8b2   : > { %4168 = vmatpush.msra.mxu1 %v10924_v54 }
 0x8b3   : > { %4217 = vmatpush.msrb.mxu3 %v10927_v57 }
 0x8b4   : > { %4218 = vmatmul.f32.vlgmr.msrb.gmra.mxu3 %v10746_v9 }
 0x8b6   : > { %v4018_v55 = vpop.permute.xlu1 %4017 }
 0x8b7   : > { %v4039_v11 = vsel %vm1074_vm7, %v4018_v55, %v4030_v15  ;;  %v4028_v49 = vpop.permute.xlu0 %4027  ;;  %v4045_v18 = vsel %vm1074_vm7, %v4030_v15, %v4018_v55  ;;  %v11039_v55 = vmul.f32 %v10606_v47, %v12292_v42  ;;  %v11058_v47 = vmul.f32 %v10689_v19, %v12292_v42 }
 0x8b8   : > { %v10936_v10 = vmul.f32 %v4039_v11, %v12276_v38  ;;  %v4038_v37 = vsel %vm1074_vm7, %v4016_v48, %v4028_v49  ;;  %v3903_v19 = vsel %vm906_vm3, %v10799_v51, %v10865_v26 }
 0x8b9   : > { %v10941_v32 = vmul.f32 %v4038_v37, %v12276_v38  ;;  %v12290_v37 = vld [vmem:[#allocation62_spill] sm:$0xff] }
 0x8ba   : > { %4169 = vmatpush.msra.mxu1 %v10936_v10  ;;  %v10959_v43 = vmul.f32 %v10306_v17, %v12290_v37  ;;  %v4048_v17 = vsel %vm1074_vm7, %v10678_v12, %v10775_v6  ;;  %v10993_v12 = vmul.f32 %v10446_v59, %v12290_v37  ;;  %v12291_v6 = vld [vmem:[#allocation67_spill] sm:$0xff] }
 0x8bb   : > { %v10996_v53 = vmul.f32 %v4048_v17, %v12291_v6  ;;  %v11009_v59 = vmul.f32 %v4047_v23, %v12291_v6  ;;  %v4044_v23 = vsel %vm1074_vm7, %v4028_v49, %v4016_v48  ;;  %v11031_v15 = vmul.f32 %v4045_v18, %v12291_v6 }
 0x8bc   : > { %4221 = vmatmul.f32.gmra.mxu3 %v10802_v2  ;;  %4170 = vmatpush.msra.mxu1 %v10941_v32  ;;  %v10965_v2 = vmul.f32 %v10314_v44, %v12290_v37  ;;  %v10981_v44 = vmul.f32 %v10402_v35, %v12290_v37  ;;  %v4046_v35 = vsel %vm1074_vm7, %v4032_v34, %v10840_v56 }
 0x8bd   : > { %v11020_v56 = vmul.f32 %v4046_v35, %v12291_v6  ;;  %v11042_v49 = vmul.f32 %v4044_v23, %v12291_v6 }
 0x8be   : > { %v10946_v9 = vpop.permute.xlu1 %3885 }
 0x8bf   : > { %v3895_v11 = vsel %vm906_vm3, %v10921_v52, %v10946_v9  ;;  %v3901_v51 = vsel %vm906_vm3, %v10946_v9, %v10921_v52 }
 0x8c0   : > { %v10953_v57 = vmul.f32 %v3895_v11, %v12221_v4  ;;  %v10970_v4 = vmul.f32 %v10384_v41, %v12290_v37  ;;  %v4026_v11 = vpop.permute.xlu2 %4025  ;;  %v4067_v41 = vld [vmem:[#allocation16 + $0x30] sm:$0x1]  ;;  %v11097_v26 = vmul.f32 %v3901_v51, %v12270_v27 }
 0x8c2   : > { %4148 = vmatpush.msra.mxu0 %v10953_v57  ;;  %12293 = vst [vmem:[#allocation125_spill] sm:$0xff] %v11097_v26 }
 0x8c3   : > { %4149 = vmatmul.f32.vlgmr.msra.gmra.mxu0 %v10955_v40 }
 0x8c4   : > { %4225 = vmatpush.msrb.mxu0 %v10959_v43 }
 0x8c6   : > { %4226 = vmatpush.msrb.mxu0 %v10965_v2  ;;  %v4014_v3 = vpop.permute.xlu1 %4013 }
 0x8c7   : > { %v4037_v7 = vsel %vm1074_vm7, %v4014_v3, %v4026_v11  ;;  %v4043_v34 = vsel %vm1074_vm7, %v4026_v11, %v4014_v3  ;;  %v11068_v3 = vmul.f32 %v10702_v1, %v12292_v42  ;;  %v11085_v1 = vmul.f32 %v3903_v19, %v12270_v27 }
 0x8c8   : > { %v10984_v0 = vmul.f32 %v4037_v7, %v12276_v38  ;;  %4227 = vmatpush.msrb.mxu0 %v10970_v4  ;;  %v11006_v38 = vmul.f32 %v10490_v61, %v12290_v37  ;;  %v11017_v7 = vmul.f32 %v10530_v60, %v12292_v42  ;;  %v11028_v61 = vmul.f32 %v10569_v62, %v12292_v42  ;;  %v4068_v60 = vld [vmem:[#allocation16 + $0x38] sm:$0x1] }
 0x8c9   : > { %v11049_v62 = vmul.f32 %v10638_v13, %v12292_v42  ;;  %v11052_v48 = vmul.f32 %v4043_v34, %v12291_v6  ;;  %v3904_v13 = vsel %vm906_vm3, %v10833_v28, %v10736_v63  ;;  %v3902_v63 = vsel %vm906_vm3, %v10876_v29, %v10856_v46  ;;  %v11103_v46 = vpop.permute.xlu0 %4073 }
 0x8ca   : > { %4228 = vmatpush.msrb.mxu0 %v10981_v44  ;;  %4171 = vmatpush.msra.mxu1 %v10984_v0  ;;  %v11076_v37 = vmul.f32 %v3904_v13, %v12270_v27  ;;  %v11093_v28 = vmul.f32 %v3902_v63, %v12270_v27  ;;  %v12294_v63 = vld [vmem:[#allocation34_spill] sm:$0xff] }
 0x8cb   : > { %4152 = vmatmul.f32.gmra.mxu0 %v4067_v41  ;;  %4969 = vmatmul.msk.f32.vlgmr.msra.gmra.mxu1 %vm1106_vm9, %v4064_v22 }
 0x8cc   : > { %4229 = vmatpush.msrb.mxu0 %v10993_v12  ;;  %4258 = vmatpush.msrb.mxu1 %v10996_v53 }
 0x8ce   : > { %4230 = vmatpush.msrb.mxu0 %v11006_v38  ;;  %4259 = vmatpush.msrb.mxu1 %v11009_v59  ;;  %v11106_v6 = vpop.permute.xlu1 %4078 }
 0x8d0   : > { %4231 = vmatpush.msrb.mxu0 %v11017_v7  ;;  %4260 = vmatpush.msrb.mxu1 %v11020_v56 }
 0x8d2   : > { %4232 = vmatpush.msrb.mxu0 %v11028_v61  ;;  %4261 = vmatpush.msrb.mxu1 %v11031_v15 }
 0x8d3   : > { %4970 = vmatmul.msk.f32.gmra.mxu1 %vm1106_vm9, %v4068_v60 }
 0x8d4   : > { %4233 = vmatpush.msrb.mxu0 %v11039_v55  ;;  %4262 = vmatpush.msrb.mxu1 %v11042_v49 }
 0x8d6   : > { %4234 = vmatpush.msrb.mxu0 %v11049_v62  ;;  %4263 = vmatpush.msrb.mxu1 %v11052_v48 }
 0x8d8   : > { %4235 = vmatpush.msrb.mxu0 %v11058_v47 }
 0x8da   : > { %4236 = vmatpush.msrb.mxu0 %v11068_v3 }
 0x8db   : > { %4971 = vmatmul.msk.f32.vlgmr.msrb.gmra.mxu1 %vm1106_vm9, %v4064_v22 }
 0x8dc   : > { %4237 = vmatpush.msrb.mxu0 %v11076_v37 }
 0x8de   : > { %4238 = vmatpush.msrb.mxu0 %v11085_v1 }
 0x8e0   : > { %4239 = vmatpush.msrb.mxu0 %v11093_v28 }
 0x8e2   : > { %4240 = vmatpush.msrb.mxu0 %v11097_v26 }
 0x8e3   : > { %4241 = vmatmul.f32.vlgmr.msrb.gmra.mxu0 %v10955_v40  ;;  %4972 = vmatmul.msk.f32.gmra.mxu1 %vm1106_vm9, %v4068_v60 }
 0x8eb   : > { %4244 = vmatmul.f32.gmra.mxu0 %v4067_v41 }
 0x906   : > { %v4104_v22 = vpop.f32.mrf.mxu2 }
 0x907   : > { %v4105_v52 = vadd.f32 %v4104_v22, %v11103_v46 }
 0x90e   : > { %v4107_v11 = vpop.f32.mrf.mxu2 }
 0x90f   : > { %v4108_v40 = vadd.f32 %v4107_v11, %v11106_v6 }
 0x916   : > { %v4127_v24 = vpop.f32.mrf.mxu3 }
 0x917   : > { %v4128_v9 = vadd.f32 %v4127_v24, %v4105_v52 }
 0x91f   : > { %v4130_v35 = vpop.f32.mrf.mxu3 }
 0x920   : > { %v4131_v60 = vadd.f32 %v4130_v35, %v4108_v40 }
 0x940   : > { %v4150_v29 = vpop.f32.mrf.mxu0 }
 0x941   : > { %v4151_v27 = vadd.f32 %v4150_v29, %v4128_v9  ;;  %v12295_v29 = vld [vmem:[#allocation92_spill] sm:$0xff]  ;;  %v12296_v9 = vld [vmem:[#allocation97_spill] sm:$0xff] }
 0x948   : > { %v4173_v17 = vpop.f32.mrf.mxu1  ;;  %v4153_v34 = vpop.f32.mrf.mxu0 }
 0x949   : > { %v11108_v18 = vadd.f32 %v4173_v17, %v4151_v27  ;;  %v4154_v24 = vadd.f32 %v4153_v34, %v4131_v60  ;;  %v12297_v17 = vld [vmem:[#allocation35_spill] sm:$0xff] }
 0x94b   : > { %v11112_v41 = vperm.slane %v11108_v18, 2  ;;  %v11115_v42 = vperm.slane %v11108_v18, 5  ;;  %v4369_v23 = vperm.slane %v11108_v18, 7  ;;  %v4327_v22 = vperm.slane %v11108_v18, 4 }
 0x94c   : > { %v4285_v34 = vperm.slane %v11108_v18, 1 }
 0x94d   : > { %v4307_v13 = vmul.f32 %v11112_v41, %v10189_v33  ;;  %v4345_v19 = vmul.f32 %v11115_v42, %v10217_v31  ;;  %v4381_v51 = vmul.f32 %v4369_v23, %v12294_v63  ;;  %v4305_v52 = vmul.f32 %v11112_v41, %v12295_v29  ;;  %v12298_v31 = vld [vmem:[#allocation102_spill] sm:$0xff]  ;;  %v12299_v63 = vld [vmem:[#allocation88_spill] sm:$0xff] }
 0x94e   : > { %v4343_v11 = vmul.f32 %v11115_v42, %v12296_v9  ;;  %v4379_v33 = vmul.f32 %v4369_v23, %v12297_v17  ;;  %v4303_v40 = vmul.f32 %v11112_v41, %v12298_v31  ;;  %v4339_v60 = vmul.f32 %v4327_v22, %v12299_v63  ;;  %v12302_v17 = vld [vmem:[#allocation83_spill] sm:$0xff]  ;;  %v12305_v63 = vld [vmem:[#allocation33_spill] sm:$0xff] }
 0x94f   : > { %4439 = vmatpush.msra.mxu1 %v4307_v13  ;;  %4474 = vmatpush.msra.mxu2 %v4345_v19  ;;  %v12300_v13 = vld [vmem:[#allocation28_spill] sm:$0xff]  ;;  %v4335_v26 = vmul.f32 %v4327_v22, %v12305_v63  ;;  %v12311_v63 = vld [vmem:[#allocation77_spill] sm:$0xff] }
 0x950   : > { %4509 = vmatpush.msra.mxu3 %v4381_v51  ;;  %v4176_v27 = vpop.f32.mrf.mxu1  ;;  %v4377_v19 = vmul.f32 %v4369_v23, %v12300_v13  ;;  %v12301_v51 = vld [vmem:[#allocation107_spill] sm:$0xff]  ;;  %v12307_v13 = vld [vmem:[#allocation74_spill] sm:$0xff] }
 0x951   : > { %v4177_v35 = vadd.f32 %v4176_v27, %v4154_v24  ;;  %4440 = vmatpush.msra.mxu1 %v4305_v52  ;;  %4475 = vmatpush.msra.mxu2 %v4343_v11  ;;  %v4301_v9 = vmul.f32 %v11112_v41, %v12301_v51  ;;  %v4337_v24 = vmul.f32 %v4327_v22, %v12302_v17  ;;  %v12303_v52 = vld [vmem:[#allocation29_spill] sm:$0xff]  ;;  %v12304_v27 = vld [vmem:[#allocation46_spill] sm:$0xff]  ;;  %v12308_v51 = vld [vmem:[#allocation75_spill] sm:$0xff] }
 0x952   : > { %4510 = vmatpush.msra.mxu3 %v4379_v33  ;;  %v4375_v11 = vmul.f32 %v4369_v23, %v12303_v52  ;;  %v4297_v31 = vmul.f32 %v4285_v34, %v12304_v27  ;;  %v4333_v17 = vmul.f32 %v4327_v22, %v12308_v51 }
 0x953   : > { %v4383_v29 = vperm.slane %v4177_v35, 0  ;;  %4441 = vmatpush.msra.mxu1 %v4303_v40  ;;  %4476 = vmatpush.msra.mxu2 %v4339_v60  ;;  %v12306_v35 = vld [vmem:[#allocation38_spill] sm:$0xff]  ;;  %v11143_v60 = vperm.slane %v11108_v18, 6 }
 0x954   : > { %4511 = vmatpush.msra.mxu3 %v4377_v19  ;;  %v4373_v40 = vmul.f32 %v4369_v23, %v12306_v35  ;;  %v4295_v19 = vmul.f32 %v4285_v34, %v12307_v13  ;;  %v4331_v35 = vmul.f32 %v4327_v22, %v12311_v63  ;;  %v12312_v13 = vld [vmem:[#allocation54_spill] sm:$0xff] }
 0x955   : > { %4442 = vmatpush.msra.mxu1 %v4301_v9  ;;  %4477 = vmatpush.msra.mxu2 %v4337_v24  ;;  %v4395_v33 = vmul.f32 %v4383_v29, %v10788_v36  ;;  %v4196_v9 = vpop.f32.mrf.mxu2  ;;  %v12309_v24 = vld [vmem:[#allocation112_spill] sm:$0xff]  ;;  %v4393_v27 = vmul.f32 %v4383_v29, %v10815_v25  ;;  %v12310_v36 = vld [vmem:[#allocation47_spill] sm:$0xff] }
 0x956   : > { %4512 = vmatpush.msra.mxu3 %v4375_v11  ;;  %v4371_v52 = vmul.f32 %v4369_v23, %v12309_v24  ;;  %v4293_v11 = vmul.f32 %v4285_v34, %v12310_v36  ;;  %v12313_v25 = vld [vmem:[#allocation71_spill] sm:$0xff]  ;;  %v4389_v36 = vmul.f32 %v4383_v29, %v10936_v10 }
 0x957   : > { %4443 = vmatpush.msra.mxu1 %v4297_v31  ;;  %4478 = vmatpush.msra.mxu2 %v4335_v26  ;;  %v11152_v31 = vperm.slane %v11108_v18, 3  ;;  %v4219_v26 = vpop.f32.mrf.mxu3  ;;  %v4291_v23 = vmul.f32 %v4285_v34, %v12313_v25  ;;  %v12320_v25 = vld [vmem:[#allocation72_spill] sm:$0xff] }
 0x958   : > { %4513 = vmatpush.msra.mxu3 %v4373_v40  ;;  %4554 = vmatpush.msra.mxu0 %v4395_v33  ;;  %v4367_v40 = vmul.f32 %v11143_v60, %v12312_v13  ;;  %v4391_v33 = vmul.f32 %v4383_v29, %v10924_v54  ;;  %v12317_v54 = vld [vmem:[#allocation68_spill] sm:$0xff]  ;;  %v4265_v10 = vpop.f32.mrf.mxu1 }
 0x959   : > { %4444 = vmatpush.msra.mxu1 %v4295_v19  ;;  %4479 = vmatpush.msra.mxu2 %v4333_v17  ;;  %v12314_v19 = vld [vmem:[#allocation39_spill] sm:$0xff] }
 0x95a   : > { %4514 = vmatpush.msra.mxu3 %v4371_v52  ;;  %4555 = vmatpush.msra.mxu0 %v4393_v27  ;;  %v4329_v51 = vmul.f32 %v4327_v22, %v12314_v19  ;;  %v12315_v17 = vld [vmem:[#allocation31_spill] sm:$0xff]  ;;  %v4197_v52 = vadd.f32 %v4196_v9, %v11103_v46  ;;  %v12316_v27 = vld [vmem:[#allocation44_spill] sm:$0xff]  ;;  %v12319_v46 = vld [vmem:[#allocation30_spill] sm:$0xff] }
 0x95b   : > { %4445 = vmatpush.msra.mxu1 %v4293_v11  ;;  %4480 = vmatpush.msra.mxu2 %v4331_v35  ;;  %v4365_v24 = vmul.f32 %v11143_v60, %v12315_v17  ;;  %v4289_v63 = vmul.f32 %v4285_v34, %v12316_v27  ;;  %v4325_v11 = vmul.f32 %v11152_v31, %v12317_v54  ;;  %v11167_v35 = vperm.slane %v11108_v18, 0  ;;  %v12318_v22 = vld [vmem:[#allocation40_spill] sm:$0xff]  ;;  %v12321_v18 = vld [vmem:[#allocation82_spill] sm:$0xff] }
 0x95c   : > { %4515 = vmatpush.msra.mxu3 %v4367_v40  ;;  %4556 = vmatpush.msra.mxu0 %v4391_v33  ;;  %v4363_v13 = vmul.f32 %v11143_v60, %v12318_v22  ;;  %v4387_v40 = vmul.f32 %v4383_v29, %v10941_v32  ;;  %v4220_v33 = vadd.f32 %v4219_v26, %v4197_v52  ;;  %v12322_v26 = vld [vmem:[#allocation32_spill] sm:$0xff]  ;;  %v12323_v52 = vld [vmem:[#allocation45_spill] sm:$0xff]  ;;  %v12325_v22 = vld [vmem:[#allocation27_spill] sm:$0xff] }
 0x95d   : > { %4446 = vmatpush.msra.mxu1 %v4291_v23  ;;  %4481 = vmatpush.msra.mxu2 %v4329_v51  ;;  %v4287_v9 = vmul.f32 %v4285_v34, %v12319_v46  ;;  %v4323_v23 = vmul.f32 %v11152_v31, %v12320_v25  ;;  %v4361_v51 = vmul.f32 %v11143_v60, %v12321_v18  ;;  %v4199_v34 = vpop.f32.mrf.mxu2 }
 0x95e   : > { %4516 = vmatpush.msra.mxu3 %v4365_v24  ;;  %4557 = vmatpush.msra.mxu0 %v4389_v36  ;;  %v4385_v17 = vmul.f32 %v4383_v29, %v10984_v0  ;;  %v11178_v24 = vld [vmem:[#allocation17 + $0x18] sm:$0xff]  ;;  %v4283_v36 = vmul.f32 %v11167_v35, %v12322_v26  ;;  %v4321_v27 = vmul.f32 %v11152_v31, %v12323_v52  ;;  %v12324_v0 = vld [vmem:[#allocation76_spill] sm:$0xff]  ;;  %v12331_v52 = vld [vmem:[#allocation85_spill] sm:$0xff] }
 0x95f   : > { %4447 = vmatpush.msra.mxu1 %v4289_v63  ;;  %4482 = vmatpush.msra.mxu2 %v4325_v11  ;;  %v4359_v63 = vmul.f32 %v11143_v60, %v10696_v20  ;;  %v4281_v29 = vmul.f32 %v11167_v35, %v12324_v0  ;;  %v4222_v11 = vpop.f32.mrf.mxu3  ;;  %v4200_v20 = vadd.f32 %v4199_v34, %v11106_v6  ;;  %v11214_v34 = vld [vmem:[#allocation17 + $0x38] sm:$0xff] }
 0x960   : > { %v4242_v19 = vpop.f32.mrf.mxu0  ;;  %4517 = vmatpush.msra.mxu3 %v4363_v13  ;;  %4558 = vmatpush.msra.mxu0 %v4387_v40  ;;  %v4319_v13 = vmul.f32 %v11152_v31, %v12325_v22  ;;  %v4357_v40 = vmul.f32 %v11143_v60, %v10712_v30  ;;  %v12328_v30 = vld [vmem:[#allocation87_spill] sm:$0xff]  ;;  %v12329_v60 = vld [vmem:[#allocation80_spill] sm:$0xff]  ;;  %v4349_v22 = vmul.f32 %v11115_v42, %v10891_v21 }
 0x961   : > { %v4243_v32 = vadd.f32 %v4242_v19, %v4220_v33  ;;  %4448 = vmatpush.msra.mxu1 %v4287_v9  ;;  %4483 = vmatpush.msra.mxu2 %v4323_v23  ;;  %v12327_v9 = vld [vmem:[#allocation81_spill] sm:$0xff]  ;;  %v4353_v23 = vmul.f32 %v11115_v42, %v10846_v50  ;;  %v4223_v19 = vadd.f32 %v4222_v11, %v4200_v20 }
 0x962   : > { %4518 = vmatpush.msra.mxu3 %v4361_v51  ;;  %4559 = vmatpush.msra.mxu0 %v4385_v17  ;;  %v4317_v25 = vmul.f32 %v11152_v31, %v12327_v9  ;;  %v4277_v18 = vmul.f32 %v11167_v35, %v12329_v60  ;;  %v4268_v17 = vpop.f32.mrf.mxu1  ;;  %v4309_v9 = vmul.f32 %v11112_v41, %v10743_v58 }
 0x963   : > { %v11186_v54 = vadd.f32 %v4265_v10, %v4243_v32  ;;  %4973 = vmatmul.msk.f32.vlgmr.msra.gmra.mxu0 %vm1106_vm9, %v11178_v24  ;;  %4449 = vmatpush.msra.mxu1 %v4283_v36  ;;  %v12326_v10 = vld [vmem:[#allocation78_spill] sm:$0xff]  ;;  %v4351_v36 = vmul.f32 %v11115_v42, %v10879_v45 }
 0x964   : > { %4484 = vmatpush.msra.mxu2 %v4321_v27  ;;  %4519 = vmatpush.msra.mxu3 %v4359_v63  ;;  %v4279_v33 = vmul.f32 %v11167_v35, %v12326_v10  ;;  %v12330_v32 = vld [vmem:[#allocation86_spill] sm:$0xff]  ;;  %v4275_v27 = vmul.f32 %v11167_v35, %v12331_v52  ;;  %v12335_v10 = vld [vmem:[#allocation93_spill] sm:$0xff] }
 0x965   : > { %4450 = vmatpush.msra.mxu1 %v4281_v29  ;;  %v11200_v46 = vperm.slane %v11186_v54, 2  ;;  %v4315_v26 = vmul.f32 %v11152_v31, %v12330_v32  ;;  %v12332_v63 = vld [vmem:[#allocation94_spill] sm:$0xff]  ;;  %v11223_v31 = vperm.slane %v11186_v54, 5  ;;  %v11232_v20 = vperm.slane %v11186_v54, 7 }
 0x966   : > { %4485 = vmatpush.msra.mxu2 %v4319_v13  ;;  %4520 = vmatpush.msra.mxu3 %v4357_v40  ;;  %v12333_v29 = vld [vmem:[#allocation90_spill] sm:$0xff]  ;;  %v12334_v13 = vld [vmem:[#allocation89_spill] sm:$0xff] }
 0x967   : > { %4451 = vmatpush.msra.mxu1 %v4279_v33  ;;  %v4308_v6 = vmul.f32 %v11200_v46, %v12328_v30  ;;  %v4306_v0 = vmul.f32 %v11200_v46, %v12332_v63  ;;  %v4311_v11 = vmul.f32 %v11112_v41, %v12333_v29  ;;  %v4273_v40 = vmul.f32 %v11167_v35, %v12334_v13  ;;  %v11251_v41 = vld [vmem:[#allocation17 + $0x10] sm:$0xff]  ;;  %v12341_v29 = vld [vmem:[#allocation103_spill] sm:$0xff] }
 0x968   : > { %v4245_v51 = vpop.f32.mrf.mxu0  ;;  %4486 = vmatpush.msra.mxu2 %v4317_v25  ;;  %4521 = vmatpush.msra.mxu3 %v4353_v23  ;;  %v4304_v33 = vmul.f32 %v11200_v46, %v12335_v10  ;;  %v11238_v25 = vld [vmem:[#allocation17 + $0x8] sm:$0xff]  ;;  %v11241_v23 = vperm.slane %v11186_v54, 1  ;;  %v4347_v35 = vmul.f32 %v11115_v42, %v10953_v57  ;;  %v4346_v58 = vmul.f32 %v11223_v31, %v10750_v14  ;;  %v12337_v42 = vld [vmem:[#allocation99_spill] sm:$0xff] }
 0x969   : > { %v4246_v50 = vadd.f32 %v4245_v51, %v4223_v19  ;;  %4579 = vmatpush.msrb.mxu0 %v4308_v6  ;;  %4452 = vmatpush.msra.mxu1 %v4277_v18  ;;  %v12336_v19 = vld [vmem:[#allocation91_spill] sm:$0xff]  ;;  %v4382_v6 = vmul.f32 %v11232_v20, %v10959_v43  ;;  %v11261_v57 = vperm.slane %v11186_v54, 4  ;;  %v4344_v18 = vmul.f32 %v11223_v31, %v10761_v39 }
 0x96a   : > { %4487 = vmatpush.msra.mxu2 %v4315_v26  ;;  %4522 = vmatpush.msra.mxu3 %v4351_v36  ;;  %v4302_v30 = vmul.f32 %v11200_v46, %v12336_v19  ;;  %v4298_v14 = vmul.f32 %v11241_v23, %v12337_v42  ;;  %v4380_v43 = vmul.f32 %v11232_v20, %v10965_v2  ;;  %v11270_v51 = vld [vmem:[#allocation17] sm:$0xff]  ;;  %v12339_v36 = vld [vmem:[#allocation96_spill] sm:$0xff]  ;;  %v4272_v10 = vperm.slane %v11186_v54, 0 }
 0x96b   : > { %v4269_v45 = vadd.f32 %v4268_v17, %v4246_v50  ;;  %4974 = vmatmul.msk.f32.gmra.mxu0 %vm1106_vm9, %v11214_v34  ;;  %4453 = vmatpush.msra.mxu1 %v4275_v27  ;;  %v12338_v17 = vld [vmem:[#allocation98_spill] sm:$0xff]  ;;  %v4340_v39 = vmul.f32 %v11261_v57, %v10088_v8  ;;  %v4378_v2 = vmul.f32 %v11232_v20, %v10970_v4  ;;  %v12340_v27 = vld [vmem:[#allocation104_spill] sm:$0xff]  ;;  %v11327_v13 = vld [vmem:[#allocation17 + $0x20] sm:$0xff]  ;;  %v4314_v19 = vperm.slane %v11186_v54, 3 }
 0x96c   : > { %4580 = vmatpush.msrb.mxu0 %v4306_v0  ;;  %4488 = vmatpush.msra.mxu2 %v4311_v11  ;;  %v4296_v32 = vmul.f32 %v11241_v23, %v12338_v17  ;;  %v4294_v50 = vmul.f32 %v11241_v23, %v12339_v36  ;;  %v4338_v8 = vmul.f32 %v11261_v57, %v10096_v5  ;;  %v11313_v0 = vld [vmem:[#allocation17 + $0x30] sm:$0xff]  ;;  %v11365_v36 = vld [vmem:[#allocation17 + $0x98] sm:$0xff] }
 0x96d   : > { %v11243_v21 = vperm.slane %v4269_v45, 0  ;;  %4523 = vmatpush.msra.mxu3 %v4349_v22  ;;  %4454 = vmatpush.msra.mxu1 %v4273_v40  ;;  %v4376_v52 = vmul.f32 %v11232_v20, %v10981_v44  ;;  %v4292_v63 = vmul.f32 %v11241_v23, %v12340_v27  ;;  %v4336_v5 = vmul.f32 %v11261_v57, %v10068_v16  ;;  %v12342_v45 = vld [vmem:[#allocation79_spill] sm:$0xff]  ;;  %v11329_v40 = vld [vmem:[#allocation17 + $0x78] sm:$0xff] }
 0x96e   : > { %4581 = vmatpush.msrb.mxu0 %v4304_v33  ;;  %4489 = vmatpush.msra.mxu2 %v4309_v9  ;;  %v4374_v44 = vmul.f32 %v11232_v20, %v10993_v12  ;;  %v4290_v11 = vmul.f32 %v11241_v23, %v12341_v29  ;;  %v4334_v16 = vmul.f32 %v11261_v57, %v12342_v45  ;;  %v4356_v22 = vperm.slane %v11186_v54, 6  ;;  %v12343_v33 = vld [vmem:[#allocation101_spill] sm:$0xff]  ;;  %v12348_v54 = vld [vmem:[#allocation123_spill] sm:$0xff] }
 0x96f   : > { %4524 = vmatpush.msra.mxu3 %v4347_v35  ;;  %4490 = vmatmul.f32.vlgmr.msra.gmra.mxu2 %v11238_v25  ;;  %v11258_v60 = vmul.f32 %v11243_v21, %v10996_v53  ;;  %v11272_v53 = vld [vmem:[#allocation17 + $0x58] sm:$0xff]  ;;  %v11286_v26 = vmul.f32 %v11243_v21, %v11009_v59  ;;  %v11297_v4 = vmul.f32 %v11243_v21, %v11020_v56  ;;  %v11299_v59 = vld [vmem:[#allocation17 + $0x28] sm:$0xff]  ;;  %v12353_v27 = vld [vmem:[#allocation111_spill] sm:$0xff] }
 0x970   : > { %4582 = vmatpush.msrb.mxu0 %v4302_v30  ;;  %4614 = vmatpush.msrb.mxu1 %v4346_v58  ;;  %v11311_v56 = vmul.f32 %v11243_v21, %v11031_v15  ;;  %v4372_v12 = vmul.f32 %v11232_v20, %v11006_v38  ;;  %v11325_v15 = vmul.f32 %v11243_v21, %v11042_v49  ;;  %v12344_v38 = vld [vmem:[#allocation42_spill] sm:$0xff]  ;;  %v12345_v30 = vld [vmem:[#allocation109_spill] sm:$0xff]  ;;  %v12346_v58 = vld [vmem:[#allocation84_spill] sm:$0xff] }
 0x971   : > { %4649 = vmatpush.msrb.mxu2 %v4382_v6  ;;  %4525 = vmatmul.f32.vlgmr.msra.gmra.mxu3 %v11251_v41  ;;  %v4288_v9 = vmul.f32 %v11241_v23, %v12343_v33  ;;  %v4332_v20 = vmul.f32 %v11261_v57, %v12344_v38  ;;  %v4368_v49 = vmul.f32 %v4356_v22, %v11017_v7  ;;  %v12347_v7 = vld [vmem:[#allocation108_spill] sm:$0xff]  ;;  %v12355_v45 = vld [vmem:[#allocation69_spill] sm:$0xff]  ;;  %v12357_v38 = vld [vmem:[#allocation115_spill] sm:$0xff] }
 0x972   : > { %4583 = vmatpush.msrb.mxu0 %v4298_v14  ;;  %4615 = vmatpush.msrb.mxu1 %v4344_v18  ;;  %v11344_v35 = vmul.f32 %v11243_v21, %v11052_v48  ;;  %v4284_v23 = vmul.f32 %v4272_v10, %v12345_v30  ;;  %v4330_v6 = vmul.f32 %v11261_v57, %v12346_v58  ;;  %v11352_v14 = vld [vmem:[#allocation17 + $0x48] sm:$0xff]  ;;  %v12349_v57 = vld [vmem:[#allocation106_spill] sm:$0xff] }
 0x973   : > { %4650 = vmatpush.msrb.mxu2 %v4380_v43  ;;  %4988 = vmatpush.msrb.mxu3 %v11258_v60  ;;  %v4366_v42 = vmul.f32 %v4356_v22, %v11028_v61  ;;  %v4282_v48 = vmul.f32 %v4272_v10, %v12347_v7  ;;  %v4326_v21 = vmul.f32 %v4314_v19, %v12348_v54  ;;  %v11357_v43 = vld [vmem:[#allocation17 + $0x50] sm:$0xff]  ;;  %v12350_v61 = vld [vmem:[#allocation114_spill] sm:$0xff]  ;;  %v4414_v58 = vld [vmem:[#allocation17 + $0x88] sm:$0xff] }
 0x974   : > { %4455 = vmatmul.f32.vlgmr.msra.gmra.mxu1 %v11270_v51  ;;  %4975 = vmatmul.msk.f32.gmra.mxu0 %vm1106_vm9, %v11272_v53  ;;  %v4364_v18 = vmul.f32 %v4356_v22, %v11039_v55  ;;  %v4280_v17 = vmul.f32 %v4272_v10, %v12349_v57  ;;  %v12351_v55 = vld [vmem:[#allocation113_spill] sm:$0xff]  ;;  %v4358_v29 = vmul.f32 %v4356_v22, %v11068_v3 }
 0x975   : > { %4584 = vmatpush.msrb.mxu0 %v4296_v32  ;;  %4616 = vmatpush.msrb.mxu1 %v4340_v39  ;;  %v4324_v32 = vmul.f32 %v4314_v19, %v12350_v61  ;;  %v4362_v39 = vmul.f32 %v4356_v22, %v11049_v62  ;;  %v4360_v62 = vmul.f32 %v4356_v22, %v11058_v47  ;;  %v5195_v61 = vld [vmem:[%s5880_s11 + $0x20] sm:$0xff] }
 0x976   : > { %4651 = vmatpush.msrb.mxu2 %v4378_v2  ;;  %4989 = vmatpush.msrb.mxu3 %v11286_v26  ;;  %v11363_v2 = vld [vmem:[#allocation17 + $0x40] sm:$0xff]  ;;  %v4354_v47 = vmul.f32 %v11223_v31, %v11076_v37  ;;  %v4316_v3 = vmul.f32 %v4314_v19, %v12357_v38  ;;  %v4352_v22 = vmul.f32 %v11223_v31, %v11085_v1  ;;  %v12359_v1 = vld [vmem:[#allocation73_spill] sm:$0xff] }
 0x977   : > { %4585 = vmatpush.msrb.mxu0 %v4294_v50  ;;  %4617 = vmatpush.msrb.mxu1 %v4338_v8  ;;  %v4278_v50 = vmul.f32 %v4272_v10, %v12351_v55  ;;  %v12352_v8 = vld [vmem:[#allocation122_spill] sm:$0xff]  ;;  %v4350_v30 = vmul.f32 %v11223_v31, %v11093_v28  ;;  %v4413_v28 = vld [vmem:[#allocation17 + $0x80] sm:$0xff] }
 0x978   : > { %4652 = vmatpush.msrb.mxu2 %v4376_v52  ;;  %4990 = vmatpush.msrb.mxu3 %v11297_v4  ;;  %v4322_v52 = vmul.f32 %v4314_v19, %v12352_v8 }
 0x979   : > { %4493 = vmatmul.f32.gmra.mxu2 %v11299_v59  ;;  %4586 = vmatpush.msrb.mxu0 %v4292_v63  ;;  %v4276_v63 = vmul.f32 %v4272_v10, %v12353_v27 }
 0x97a   : > { %4618 = vmatpush.msrb.mxu1 %v4336_v5  ;;  %4653 = vmatpush.msrb.mxu2 %v4374_v44  ;;  %v12354_v5 = vld [vmem:[#allocation105_spill] sm:$0xff] }
 0x97b   : > { %4991 = vmatpush.msrb.mxu3 %v11311_v56  ;;  %4587 = vmatpush.msrb.mxu0 %v4290_v11  ;;  %v4320_v44 = vmul.f32 %v4314_v19, %v12354_v5  ;;  %v11377_v11 = vld [vmem:[#allocation17 + $0x68] sm:$0xff] }
 0x97c   : > { %4528 = vmatmul.f32.gmra.mxu3 %v11313_v0  ;;  %4619 = vmatpush.msrb.mxu1 %v4334_v16  ;;  %v4274_v16 = vmul.f32 %v4272_v10, %v12355_v45  ;;  %v4420_v10 = vld [vmem:[#allocation17 + $0xb8] sm:$0xff] }
 0x97d   : > { %4654 = vmatpush.msrb.mxu2 %v4372_v12  ;;  %4992 = vmatpush.msrb.mxu3 %v11325_v15  ;;  %v12356_v12 = vld [vmem:[#allocation124_spill] sm:$0xff] }
 0x97e   : > { %4458 = vmatmul.f32.gmra.mxu1 %v11327_v13  ;;  %4976 = vmatmul.msk.f32.gmra.mxu0 %vm1106_vm9, %v11329_v40  ;;  %v4318_v33 = vmul.f32 %v4314_v19, %v12356_v12  ;;  %v4310_v19 = vmul.f32 %v11200_v46, %v12359_v1 }
 0x97f   : > { %4588 = vmatpush.msrb.mxu0 %v4288_v9  ;;  %4620 = vmatpush.msrb.mxu1 %v4332_v20  ;;  %v4411_v9 = vld [vmem:[#allocation17 + $0x70] sm:$0xff]  ;;  %v4409_v20 = vld [vmem:[#allocation17 + $0x60] sm:$0xff] }
 0x980   : > { %4655 = vmatpush.msrb.mxu2 %v4368_v49  ;;  %4993 = vmatpush.msrb.mxu3 %v11344_v35  ;;  %v12358_v49 = vld [vmem:[#allocation126_spill] sm:$0xff] }
 0x981   : > { %4589 = vmatpush.msrb.mxu0 %v4284_v23  ;;  %4621 = vmatpush.msrb.mxu1 %v4330_v6  ;;  %v4312_v37 = vmul.f32 %v11200_v46, %v12358_v49  ;;  %v4415_v6 = vld [vmem:[#allocation17 + $0x90] sm:$0xff]  ;;  %v4418_v46 = vld [vmem:[#allocation17 + $0xa8] sm:$0xff] }
 0x982   : > { %4656 = vmatpush.msrb.mxu2 %v4366_v42 }
 0x983   : > { %4496 = vmatmul.f32.gmra.mxu2 %v11352_v14  ;;  %4590 = vmatpush.msrb.mxu0 %v4282_v48 }
 0x984   : > { %4622 = vmatpush.msrb.mxu1 %v4326_v21  ;;  %4657 = vmatpush.msrb.mxu2 %v4364_v18 }
 0x985   : > { %4531 = vmatmul.f32.gmra.mxu3 %v11357_v43  ;;  %4591 = vmatpush.msrb.mxu0 %v4280_v17 }
 0x986   : > { %4623 = vmatpush.msrb.mxu1 %v4324_v32  ;;  %4658 = vmatpush.msrb.mxu2 %v4362_v39 }
 0x987   : > { %4461 = vmatmul.f32.gmra.mxu1 %v11363_v2  ;;  %4977 = vmatmul.msk.f32.gmra.mxu0 %vm1106_vm9, %v11365_v36 }
 0x988   : > { %4592 = vmatpush.msrb.mxu0 %v4278_v50  ;;  %4624 = vmatpush.msrb.mxu1 %v4322_v52 }
 0x989   : > { %4659 = vmatpush.msrb.mxu2 %v4360_v62  ;;  %v5196_v62 = vld [vmem:[%s5880_s11 + $0x30] sm:$0xff] }
 0x98a   : > { %4593 = vmatpush.msrb.mxu0 %v4276_v63  ;;  %4625 = vmatpush.msrb.mxu1 %v4320_v44 }
 0x98b   : > { %4660 = vmatpush.msrb.mxu2 %v4358_v29 }
 0x98c   : > { %4499 = vmatmul.f32.gmra.mxu2 %v11377_v11  ;;  %4594 = vmatpush.msrb.mxu0 %v4274_v16 }
 0x98d   : > { %4626 = vmatpush.msrb.mxu1 %v4318_v33  ;;  %4661 = vmatpush.msrb.mxu2 %v4354_v47  ;;  %v5197_v33 = vld [vmem:[%s5880_s11 + $0x40] sm:$0xff] }
 0x98e   : > { %4694 = vmatpush.msra.mxu0 %v11258_v60  ;;  %4534 = vmatmul.f32.gmra.mxu3 %v4411_v9  ;;  %v12360_v60 = vld [vmem:[#allocation125_spill] sm:$0xff] }
 0x98f   : > { %4627 = vmatpush.msrb.mxu1 %v4316_v3  ;;  %4662 = vmatpush.msrb.mxu2 %v4352_v22  ;;  %v4348_v23 = vmul.f32 %v11223_v31, %v12360_v60  ;;  %v4417_v31 = vld [vmem:[#allocation17 + $0xa0] sm:$0xff] }
 0x990   : > { %4695 = vmatpush.msra.mxu0 %v11286_v26  ;;  %4464 = vmatmul.f32.gmra.mxu1 %v4409_v20  ;;  %v4419_v26 = vld [vmem:[#allocation17 + $0xb0] sm:$0xff] }
 0x991   : > { %4978 = vmatmul.msk.f32.gmra.mxu0 %vm1106_vm9, %v4420_v10  ;;  %4628 = vmatpush.msrb.mxu1 %v4312_v37  ;;  %v5198_v37 = vld [vmem:[%s5880_s11 + $0x50] sm:$0xff] }
 0x992   : > { %4663 = vmatpush.msrb.mxu2 %v4350_v30  ;;  %4696 = vmatpush.msra.mxu0 %v11297_v4 }
 0x993   : > { %4629 = vmatpush.msrb.mxu1 %v4310_v19 }
 0x994   : > { %4664 = vmatpush.msrb.mxu2 %v4348_v23  ;;  %4697 = vmatpush.msra.mxu0 %v11311_v56 }
 0x995   : > { %4502 = vmatmul.f32.gmra.mxu2 %v4414_v58 }
 0x996   : > { %4698 = vmatpush.msra.mxu0 %v11325_v15  ;;  %4537 = vmatmul.f32.gmra.mxu3 %v4415_v6 }
 0x998   : > { %4699 = vmatpush.msra.mxu0 %v11344_v35  ;;  %4467 = vmatmul.f32.gmra.mxu1 %v4413_v28 }
 0x999   : > { %4595 = vmatmul.f32.vlgmr.msrb.gmra.mxu0 %v11270_v51 }
 0x99d   : > { %4505 = vmatmul.f32.gmra.mxu2 %v4418_v46 }
 0x99e   : > { %4540 = vmatmul.f32.gmra.mxu3 %v4419_v26 }
 0x9a0   : > { %4470 = vmatmul.f32.gmra.mxu1 %v4417_v31 }
 0x9a1   : > { %4598 = vmatmul.f32.gmra.mxu0 %v11327_v13 }
 0x9a5   : > { %4665 = vmatmul.f32.vlgmr.msrb.gmra.mxu2 %v11251_v41 }
 0x9a6   : > { %4980 = vmatmul.msk.f32.vlgmr.msrb.gmra.mxu3 %vm1106_vm9, %v11214_v34 }
 0x9a8   : > { %4630 = vmatmul.f32.vlgmr.msrb.gmra.mxu1 %v11238_v25 }
 0x9a9   : > { %4601 = vmatmul.f32.gmra.mxu0 %v11363_v2 }
 0x9ad   : > { %4668 = vmatmul.f32.gmra.mxu2 %v11313_v0 }
 0x9ae   : > { %4981 = vmatmul.msk.f32.gmra.mxu3 %vm1106_vm9, %v11272_v53  ;;  %v5193_v53 = vld [vmem:[%s5880_s11] sm:$0xff] }
 0x9b0   : > { %4633 = vmatmul.f32.gmra.mxu1 %v11299_v59 }
 0x9b1   : > { %4604 = vmatmul.f32.gmra.mxu0 %v4409_v20 }
 0x9b5   : > { %4671 = vmatmul.f32.gmra.mxu2 %v11357_v43 }
 0x9b6   : > { %4982 = vmatmul.msk.f32.gmra.mxu3 %vm1106_vm9, %v11329_v40 }
 0x9b8   : > { %4636 = vmatmul.f32.gmra.mxu1 %v11352_v14 }
 0x9b9   : > { %4607 = vmatmul.f32.gmra.mxu0 %v4413_v28 }
 0x9bd   : > { %4674 = vmatmul.f32.gmra.mxu2 %v4411_v9 }
 0x9be   : > { %4983 = vmatmul.msk.f32.gmra.mxu3 %vm1106_vm9, %v11365_v36 }
 0x9c0   : > { %4639 = vmatmul.f32.gmra.mxu1 %v11377_v11 }
 0x9c1   : > { %4610 = vmatmul.f32.gmra.mxu0 %v4417_v31 }
 0x9c5   : > { %4677 = vmatmul.f32.gmra.mxu2 %v4415_v6 }
 0x9c6   : > { %4984 = vmatmul.msk.f32.gmra.mxu3 %vm1106_vm9, %v4420_v10 }
 0x9c8   : > { %4642 = vmatmul.f32.gmra.mxu1 %v4414_v58 }
 0x9c9   : > { %4979 = vmatmul.msk.f32.vlgmr.msra.gmra.mxu0 %vm1106_vm9, %v11178_v24  ;;  %v5194_v24 = vld [vmem:[%s5880_s11 + $0x10] sm:$0xff] }
 0x9cd   : > { %4680 = vmatmul.f32.gmra.mxu2 %v4419_v26 }
 0x9d0   : > { %4645 = vmatmul.f32.gmra.mxu1 %v4418_v46 }
 0x9e0   : > { %v4561_v34 = vpop.f32.mrf.mxu0 }
 0x9e8   : > { %v4564_v25 = vpop.f32.mrf.mxu0 }
 0x9f1   : > { %v4456_v41 = vpop.f32.mrf.mxu1  ;;  %v4567_v51 = vpop.f32.mrf.mxu0 }
 0x9f2   : > { %v4457_v4 = vadd.f32 %v5193_v53, %v4456_v41  ;;  %v4491_v59 = vpop.f32.mrf.mxu2  ;;  %v5199_v41 = vld [vmem:[%s5880_s11 + $0x18] sm:$0xff] }
 0x9f4   : > { %v4492_v56 = vadd.f32 %v4491_v59, %v4457_v4  ;;  %v4526_v0 = vpop.f32.mrf.mxu3 }
 0x9f6   : > { %v4527_v15 = vadd.f32 %v4526_v0, %v4492_v56 }
 0x9f8   : > { %v4562_v13 = vadd.f32 %v4561_v34, %v4527_v15 }
 0x9fa   : > { %v4719_v40 = vmax.f32 %v4562_v13, 0.0  ;;  %v5200_v13 = vld [vmem:[%s5880_s11 + $0x28] sm:$0xff] }
 0x9fb   : > { %v4459_v35 = vpop.f32.mrf.mxu1  ;;  %v4570_v42 = vpop.f32.mrf.mxu0 }
 0x9fc   : > { %4731 = vst [vmem:[%s11426_s18] sm:$0xff] %v4719_v40  ;;  %v4460_v14 = vadd.f32 %v5194_v24, %v4459_v35  ;;  %v4494_v7 = vpop.f32.mrf.mxu2 }
 0x9fe   : > { %v4495_v48 = vadd.f32 %v4494_v7, %v4460_v14 }
 0x9ff   : > { %v4529_v54 = vpop.f32.mrf.mxu3 }
 0xa00   : > { %v4530_v21 = vadd.f32 %v4529_v54, %v4495_v48 }
 0xa02   : > { %v4565_v18 = vadd.f32 %v4564_v25, %v4530_v21  ;;  %v5201_v21 = vld [vmem:[%s5880_s11 + $0x38] sm:$0xff] }
 0xa04   : > { %v4721_v43 = vmax.f32 %v4565_v18, 0.0  ;;  %v4462_v57 = vpop.f32.mrf.mxu1  ;;  %v4573_v17 = vpop.f32.mrf.mxu0 }
 0xa05   : > { %v4463_v32 = vadd.f32 %v5195_v61, %v4462_v57 }
 0xa06   : > { %4733 = vst [vmem:[%s11426_s18 + $0x10] sm:$0xff] %v4721_v43  ;;  %v4497_v39 = vpop.f32.mrf.mxu2 }
 0xa07   : > { %v4498_v2 = vadd.f32 %v4497_v39, %v4463_v32  ;;  %v5202_v39 = vld [vmem:[%s5880_s11 + $0x8] sm:$0xff] }
 0xa08   : > { %v4532_v36 = vpop.f32.mrf.mxu3 }
 0xa09   : > { %v4533_v55 = vadd.f32 %v4532_v36, %v4498_v2 }
 0xa0b   : > { %v4568_v50 = vadd.f32 %v4567_v51, %v4533_v55 }
 0xa0d   : > { %v4723_v8 = vmax.f32 %v4568_v50, 0.0  ;;  %v4465_v52 = vpop.f32.mrf.mxu1 }
 0xa0e   : > { %v4466_v27 = vadd.f32 %v5196_v62, %v4465_v52  ;;  %v4576_v63 = vpop.f32.mrf.mxu0  ;;  %v5203_v52 = vld [vmem:[%s5880_s11 + $0x48] sm:$0xff] }
 0xa0f   : > { %4735 = vst [vmem:[%s11426_s18 + $0x20] sm:$0xff] %v4723_v8  ;;  %v4500_v5 = vpop.f32.mrf.mxu2 }
 0xa10   : > { %v4501_v44 = vadd.f32 %v4500_v5, %v4466_v27 }
 0xa11   : > { %v4535_v29 = vpop.f32.mrf.mxu3 }
 0xa12   : > { %v4536_v11 = vadd.f32 %v4535_v29, %v4501_v44 }
 0xa14   : > { %v4571_v45 = vadd.f32 %v4570_v42, %v4536_v11 }
 0xa15   : > { %v4468_v16 = vpop.f32.mrf.mxu1 }
 0xa16   : > { %v4725_v12 = vmax.f32 %v4571_v45, 0.0  ;;  %v4469_v47 = vadd.f32 %v5197_v33, %v4468_v16  ;;  %v4596_v9 = vpop.f32.mrf.mxu0 }
 0xa17   : > { %v4597_v2 = vadd.f32 %v5202_v39, %v4596_v9  ;;  %v5204_v9 = vld [vmem:[%s5880_s11 + $0x58] sm:$0xff]  ;;  %s4758_s11 = sshll.u32 %s4755_s17, 4  ;;  %s4759_s11 = int_to_ptr.hbm [resolvable:$true] %s4758_s11 }
 0xa18   : > { %4737 = vst [vmem:[%s11426_s18 + $0x30] sm:$0xff] %v4725_v12  ;;  %v4503_v38 = vpop.f32.mrf.mxu2  ;;  %s5519_s23 = sshra.s32 %s4759_s11, 4  ;;  %s5520_s23 = int_to_ptr.hbm [resolvable:$true] %s5519_s23 }
 0xa19   : > { %v4504_v3 = vadd.f32 %v4503_v38, %v4469_v47  ;;  %v4538_v22 = vpop.f32.mrf.mxu3  ;;  %s5521_s3 = scalar_lea.hbm %s5520_s23, 96  ;;  %p5526_p13 = scmp.lt.s32.totalorder %s5520_s23, %s12361_s8 }
 0xa1a   : > { %p5522_p1 = scmp.ne.s32.totalorder %s5520_s23, %s5521_s3  ;;  %p5527_p8 = scmp.lt.s32.totalorder %s5525_s22, %s5521_s3 }
 0xa1b   : > { %v4539_v20 = vadd.f32 %v4538_v22, %v4504_v3 }
 0xa1c   : > { %p5523_p3 = pnand %p5522_p1, %p5840_p0  ;;  %p5528_p7 = por %p5527_p8, %p5526_p13 }
 0xa1d   : > { %v4574_v10 = vadd.f32 %v4573_v17, %v4539_v20  ;;  %v4471_v49 = vpop.f32.mrf.mxu1 }
 0xa1e   : > { %v4472_v30 = vadd.f32 %v5198_v37, %v4471_v49  ;;  %v4599_v1 = vpop.f32.mrf.mxu0  ;;  %p5524_p5 = pneg %p5523_p3 }
 0xa1f   : > { %v4727_v19 = vmax.f32 %v4574_v10, 0.0  ;;  %v4600_v51 = vadd.f32 %v5199_v41, %v4599_v1 }
 0xa20   : > { %v4506_v60 = vpop.f32.mrf.mxu2  ;;  %p5529_p9 = pnand %p5528_p7, %p5524_p5 }
 0xa21   : > { %4739 = vst [vmem:[%s11426_s18 + $0x40] sm:$0xff] %v4727_v19  ;;  %v4507_v23 = vadd.f32 %v4506_v60, %v4472_v30  ;;  %v4541_v58 = vpop.f32.mrf.mxu3 }
 0xa23   : > { %v4542_v6 = vadd.f32 %v4541_v58, %v4507_v23 }
 0xa25   : > { %v4577_v28 = vadd.f32 %v4576_v63, %v4542_v6  ;;  %v4631_v46 = vpop.f32.mrf.mxu1 }
 0xa26   : > { %v4602_v26 = vpop.f32.mrf.mxu0  ;;  %v4632_v8 = vadd.f32 %v4631_v46, %v4597_v2 }
 0xa27   : > { %v4729_v31 = vmax.f32 %v4577_v28, 0.0  ;;  %v4603_v40 = vadd.f32 %v5200_v13, %v4602_v26 }
 0xa28   : > { %v4666_v34 = vpop.f32.mrf.mxu2 }
 0xa29   : > { %4741 = vst [vmem:[%s11426_s18 + $0x50] sm:$0xff] %v4729_v31  ;;  %v4704_v25 = vpop.f32.mrf.mxu3  ;;  %v4667_v63 = vadd.f32 %v4666_v34, %v4632_v8 }
 0xa2d   : > { %v4634_v53 = vpop.f32.mrf.mxu1 }
 0xa2e   : > { %v4605_v4 = vpop.f32.mrf.mxu0  ;;  %v4635_v59 = vadd.f32 %v4634_v53, %v4600_v51 }
 0xa2f   : > { %v4606_v18 = vadd.f32 %v5201_v21, %v4605_v4 }
 0xa30   : > { %v4669_v56 = vpop.f32.mrf.mxu2 }
 0xa31   : > { %v4670_v0 = vadd.f32 %v4669_v56, %v4635_v59  ;;  %v4707_v15 = vpop.f32.mrf.mxu3 }
 0xa33   : > { %v4705_v35 = vadd.f32 %v4704_v25, %v4670_v0 }
 0xa35   : > { %v4722_v42 = vmax.f32 %v4705_v35, 0.0  ;;  %v4637_v24 = vpop.f32.mrf.mxu1 }
 0xa36   : > { %v4608_v14 = vpop.f32.mrf.mxu0  ;;  %v4638_v7 = vadd.f32 %v4637_v24, %v4603_v40 }
 0xa37   : > { %4734 = vst [vmem:[%s11426_s18 + $0x18] sm:$0xff] %v4722_v42  ;;  %v4609_v62 = vadd.f32 %v5203_v52, %v4608_v14 }
 0xa38   : > { %v4672_v48 = vpop.f32.mrf.mxu2 }
 0xa39   : > { %v4673_v54 = vadd.f32 %v4672_v48, %v4638_v7  ;;  %v4710_v57 = vpop.f32.mrf.mxu3 }
 0xa3b   : > { %v4708_v43 = vadd.f32 %v4707_v15, %v4673_v54 }
 0xa3d   : > { %v4724_v17 = vmax.f32 %v4708_v43, 0.0  ;;  %v4640_v61 = vpop.f32.mrf.mxu1 }
 0xa3e   : > { %v4611_v32 = vpop.f32.mrf.mxu0  ;;  %v4641_v36 = vadd.f32 %v4640_v61, %v4606_v18 }
 0xa3f   : > { %4736 = vst [vmem:[%s11426_s18 + $0x28] sm:$0xff] %v4724_v17  ;;  %v4612_v38 = vadd.f32 %v5204_v9, %v4611_v32 }
 0xa40   : > { %v4675_v55 = vpop.f32.mrf.mxu2 }
 0xa41   : > { %v4676_v50 = vadd.f32 %v4675_v55, %v4641_v36  ;;  %v4713_v11 = vpop.f32.mrf.mxu3 }
 0xa43   : > { %v4711_v27 = vadd.f32 %v4710_v57, %v4676_v50 }
 0xa45   : > { %v4726_v5 = vmax.f32 %v4711_v27, 0.0  ;;  %v4643_v44 = vpop.f32.mrf.mxu1 }
 0xa46   : > { %v4701_v29 = vpop.f32.mrf.mxu0  ;;  %v4644_v16 = vadd.f32 %v4643_v44, %v4609_v62 }
 0xa47   : > { %v4702_v45 = vadd.f32 %v4701_v29, %v4667_v63  ;;  %4738 = vst [vmem:[%s11426_s18 + $0x38] sm:$0xff] %v4726_v5 }
 0xa48   : > { %v4678_v12 = vpop.f32.mrf.mxu2 }
 0xa49   : > { %v4720_v33 = vmax.f32 %v4702_v45, 0.0  ;;  %v4679_v47 = vadd.f32 %v4678_v12, %v4644_v16  ;;  %v4716_v37 = vpop.f32.mrf.mxu3 }
 0xa4b   : > { %4732 = vst [vmem:[%s11426_s18 + $0x8] sm:$0xff] %v4720_v33  ;;  %v4714_v3 = vadd.f32 %v4713_v11, %v4679_v47 }
 0xa4d   : > { %v4728_v22 = vmax.f32 %v4714_v3, 0.0  ;;  %v4646_v20 = vpop.f32.mrf.mxu1 }
 0xa4e   : > { %v4647_v10 = vadd.f32 %v4646_v20, %v4612_v38 }
 0xa4f   : > { %4740 = vst [vmem:[%s11426_s18 + $0x48] sm:$0xff] %v4728_v22 }
 0xa50   : > { %v4681_v49 = vpop.f32.mrf.mxu2 }
 0xa51   : > { %v4682_v30 = vadd.f32 %v4681_v49, %v4647_v10 }
 0xa53   : > { %v4717_v1 = vadd.f32 %v4716_v37, %v4682_v30 }
 0xa55   : > { %v4730_v19 = vmax.f32 %v4717_v1, 0.0 }
 0xa57   : > { %4742 = vst [vmem:[%s11426_s18 + $0x58] sm:$0xff] %v4730_v19 }
 0xa58   : > { %5532 = shalt.err (!%p5529_p9)
}
 0xa59   : > { %s5631_s10 = smov 256  }
 0xa5a   : > { %5036 = dma.vmem_to_hbm [thread:$0]  (%p5840_p0), %s4757_s1, 1536, %s4759_s11, %s4744_s20, %s5631_s10, %s5631_s10, %s5607_s21  }
 0xa5b PF: > { %s4773_s18 = sand.u32 1, %s5579_s29   ;;  %p12362_p10 = scmp.ge.s32.totalorder %s5591_s16, 2 }
 0xa5c   : > { %s4774_s5 = scalar_lea.sflag [#allocation4], %s4773_s18 }
 0xa5d   : > { %p5071_p11 = pnand %p12362_p10, %p5846_p6 }
 0xa5f   : > { %p5072_p12 = pneg %p5071_p11 }
 0xa61   : > { %5574 = dma.done.wait (%p5072_p12), %s4774_s5, 1536  }
 0xa62   : > { %5576 = vsyncadd (%p5072_p12), %s4774_s5, 4294965760  ;;  %p32_p2 = scmp.ge.s32.totalorder %s5820_s12, 4   ;;  %s12363_s29 = smov %s5583_s30 }
 0xa63   : > { %s12364_s30 = smov %s5587_s15  ;;  %s12365_s15 = smov %s5832_s14 }
 0xa64   : > { %s12366_s16 = smov %s5820_s12  ;;  %34 = sbr.rel (!%p32_p2) target bundleno = 23 (0x17), region = 178 }
 0xa69   :  { %4780 = vsyncpa [#allocation3], 1 }
 0xa6a   :  { %4782 = vsyncpa [#allocation3 + $0x1], 1 }
 0xa6b   :  { %4783 = vsyncpa [#allocation6], 1 }
 0xa6c   :  { %4784 = vsyncpa [#allocation9], 1 }
 0xa6d   :  { %4785 = vsyncpa [#allocation12], 1 }
 0xa6e   :  { %4786 = vsyncpa [#allocation15], 1 }
 0xa6f   :  { %4787 = vsyncpa [#allocation18], 1 }
 0xa70   :  { %4788 = vsyncpa [#allocation4], 1 }
 0xa71   :  { %4790 = vsyncpa [#allocation4 + $0x1], 1 }

</bundles_post_ra>
